<compile_context>
chip_gen: v6e
topology: v6e:2x2x1
jax: 0.10.0
libtpu: 0.0.40
codegen_flags: <defaults>
</compile_context>

<pallas_src>
import jax
import jax.numpy as jnp
import numpy as np
from jax.experimental import pallas as pl
from jax.experimental.pallas import tpu as pltpu

HIDDEN = 128
INPUT = 28
CLASSES = 10
NUM_LAYERS = 2

LANE = 128      # lane width / padded input & output feature dim
SUBLANE = 8     # f32 sublane count / batch padding multiple


def lstm_fc_kernel(x_ref, wih0_ref, whh0_ref, b0_ref, w1_hbm, b1_ref,
                   wfc_hbm, bfc_ref, out_ref,
                   xh1_ref, w1_vmem, wfc_vmem, dma_sems):
    T, B, _ = x_ref.shape          # static: time-major, batch, padded lanes
    H = HIDDEN

    # Kick off DMAs for the layer-1 / FC weights; they are waited on just before
    # first use so the copies overlap the layer-0 projection + first cell.
    w1_cp = pltpu.make_async_copy(w1_hbm, w1_vmem, dma_sems.at[0])
    wfc_cp = pltpu.make_async_copy(wfc_hbm, wfc_vmem, dma_sems.at[1])
    w1_cp.start()
    wfc_cp.start()

    # Batched layer-0 input projection across all time steps (single MXU matmul,
    # M = T*B rows), combined bias b_ih0+b_hh0 folded in. Time-major x makes the
    # reshape a no-copy view of one contiguous VMEM slab.
    x2d = x_ref[...].reshape(T * B, LANE)
    xproj = (jnp.dot(x2d, wih0_ref[...], preferred_element_type=jnp.float32)
             + b0_ref[...])                                       # (T*B, 4H)

    b1 = b1_ref[...]                                              # (1, 4H) row; VPU-broadcast add

    def gates_to_hc(gates, c):
        # PyTorch LSTM gate order [i, f, g, o].
        i = jax.nn.sigmoid(gates[:, 0 * H:1 * H])
        f = jax.nn.sigmoid(gates[:, 1 * H:2 * H])
        g = jnp.tanh(gates[:, 2 * H:3 * H])
        o = jax.nn.sigmoid(gates[:, 3 * H:4 * H])
        c_new = f * c + i * g
        h_new = o * jnp.tanh(c_new)
        return h_new, c_new

    h0 = jnp.zeros((B, H), jnp.float32)
    c0 = jnp.zeros((B, H), jnp.float32)
    h1 = jnp.zeros((B, H), jnp.float32)
    c1 = jnp.zeros((B, H), jnp.float32)

    # T is small and static -> fully unrolled loop with static slices.
    for t in range(T):
        # Layer 0: only the K=128 recurrent matmul sits on the serial chain.
        gates0 = (xproj[t * B:(t + 1) * B, :]
                  + jnp.dot(h0, whh0_ref[...], preferred_element_type=jnp.float32))
        h0, c0 = gates_to_hc(gates0, c0)

        # Layer 1: fused [h0; h1] @ [w_ih1; w_hh1] via in-place lane writes into a
        # persistent VMEM scratch (no concatenate materialization per step).
        xh1_ref[:, :H] = h0
        xh1_ref[:, H:] = h1
        if t == 0:
            w1_cp.wait()            # layer-1 weights first needed here
        gates1 = (jnp.dot(xh1_ref[...], w1_vmem[...],
                          preferred_element_type=jnp.float32) + b1)
        h1, c1 = gates_to_hc(gates1, c1)

    # Lane-dense FC output slab: real classes live in the first CLASSES lanes.
    wfc_cp.wait()
    out_ref[...] = (jnp.dot(h1, wfc_vmem[...], preferred_element_type=jnp.float32)
                    + bfc_ref[...])


@jax.jit
def rnn_forward(x, wih0_p, whh0_t, b0, w1, b1, wfc_p, bfc_p):
    B, T, D = x.shape
    B_pad = max(SUBLANE, ((B + SUBLANE - 1) // SUBLANE) * SUBLANE)
    # Time-major, batch padded to a sublane multiple, input features padded to a
    # full lane (128). The transpose fuses into the padding copy.
    x_tm = jnp.transpose(x, (1, 0, 2))
    x_pad = jnp.zeros((T, B_pad, LANE), jnp.float32).at[:, :B, :D].set(x_tm)

    vmem = pl.BlockSpec(memory_space=pltpu.MemorySpace.VMEM)
    anys = pl.BlockSpec(memory_space=pl.ANY)
    out = pl.pallas_call(
        lstm_fc_kernel,
        out_shape=jax.ShapeDtypeStruct((B_pad, LANE), jnp.float32),
        in_specs=[vmem, vmem, vmem, vmem, anys, vmem, anys, vmem],
        out_specs=vmem,
        scratch_shapes=[
            pltpu.VMEM((B_pad, 2 * HIDDEN), jnp.float32),   # [h0 ; h1] staging
            pltpu.VMEM((2 * HIDDEN, 4 * HIDDEN), jnp.float32),  # w1 landing buffer
            pltpu.VMEM((HIDDEN, LANE), jnp.float32),        # fc weight landing buffer
            pltpu.SemaphoreType.DMA((2,)),
        ],
    )(x_pad, wih0_p, whh0_t, b0, w1, b1, wfc_p, bfc_p)
    return out[:B, :CLASSES]


def init_params(key):
    k = 1.0 / np.sqrt(HIDDEN)
    keys = jax.random.split(key, 10)
    u = lambda kk, shape: jax.random.uniform(kk, shape, jnp.float32, -k, k)
    # PyTorch LSTM parameter shapes (gate order i, f, g, o)
    wih0 = u(keys[0], (4 * HIDDEN, INPUT))
    whh0 = u(keys[1], (4 * HIDDEN, HIDDEN))
    bih0 = u(keys[2], (4 * HIDDEN,))
    bhh0 = u(keys[3], (4 * HIDDEN,))
    wih1 = u(keys[4], (4 * HIDDEN, HIDDEN))
    whh1 = u(keys[5], (4 * HIDDEN, HIDDEN))
    bih1 = u(keys[6], (4 * HIDDEN,))
    bhh1 = u(keys[7], (4 * HIDDEN,))
    wfc = u(keys[8], (CLASSES, HIDDEN))
    bfc = u(keys[9], (CLASSES,))

    # Kernel-packed forms:
    #  layer 0 input projection: w_ih0^T padded 28 -> 128 rows (zero rows), used once
    #  in the batched projection; recurrent weight w_hh0^T kept separate (K=128).
    wih0_p = jnp.zeros((LANE, 4 * HIDDEN), jnp.float32).at[:INPUT, :].set(wih0.T)
    whh0_t = jnp.asarray(whh0.T)                                 # (128, 512)
    b0 = (bih0 + bhh0)[None, :]                                  # (1, 512), folded into xproj
    #  layer 1 stays fused: [w_ih1^T ; w_hh1^T] -> (256, 512)
    w1 = jnp.concatenate([wih1.T, whh1.T], axis=0)               # (256, 512)
    b1 = (bih1 + bhh1)[None, :]                                  # (1, 512)
    #  fc: pad to a full 128-lane output slab
    wfc_p = jnp.zeros((HIDDEN, LANE), jnp.float32).at[:, :CLASSES].set(wfc.T)
    bfc_p = jnp.zeros((1, LANE), jnp.float32).at[0, :CLASSES].set(bfc)

    return dict(
        wih0=wih0, whh0=whh0, bih0=bih0, bhh0=bhh0,
        wih1=wih1, whh1=whh1, bih1=bih1, bhh1=bhh1,
        wfc=wfc, bfc=bfc,
        wih0_p=wih0_p, whh0_t=whh0_t, b0=b0, w1=w1, b1=b1,
        wfc_p=wfc_p, bfc_p=bfc_p,
    )


def reference_forward(x, p):
    """Pure-JAX reference mimicking PyTorch nn.LSTM (2 layers, batch_first) + Linear."""
    B, T, _ = x.shape
    H = HIDDEN
    h = [jnp.zeros((B, H), jnp.float32) for _ in range(NUM_LAYERS)]
    c = [jnp.zeros((B, H), jnp.float32) for _ in range(NUM_LAYERS)]
    layer_params = [
        (p["wih0"], p["whh0"], p["bih0"], p["bhh0"]),
        (p["wih1"], p["whh1"], p["bih1"], p["bhh1"]),
    ]
    for t in range(T):
        inp = x[:, t, :]
        for l in range(NUM_LAYERS):
            wih, whh, bih, bhh = layer_params[l]
            gates = inp @ wih.T + bih + h[l] @ whh.T + bhh
            i = jax.nn.sigmoid(gates[:, 0 * H:1 * H])
            f = jax.nn.sigmoid(gates[:, 1 * H:2 * H])
            g = jnp.tanh(gates[:, 2 * H:3 * H])
            o = jax.nn.sigmoid(gates[:, 3 * H:4 * H])
            c[l] = f * c[l] + i * g
            h[l] = o * jnp.tanh(c[l])
            inp = h[l]
    return h[-1] @ p["wfc"].T + p["bfc"]


if __name__ == "__main__":
    key = jax.random.PRNGKey(0)
    k_x, k_p = jax.random.split(key)
    B, T = 2, 8
    x = jax.random.normal(k_x, (B, T, INPUT), jnp.float32)
    p = init_params(k_p)

    out = rnn_forward(x, p["wih0_p"], p["whh0_t"], p["b0"], p["w1"], p["b1"],
                      p["wfc_p"], p["bfc_p"])
    out = jax.block_until_ready(out)

    ref = reference_forward(x, p)
    np.testing.assert_allclose(np.asarray(out), np.asarray(ref),
                               rtol=1e-4, atol=1e-4)
    print("KERNEL_OK")
</pallas_src>

<mosaic_0001>
module attributes {stable_mosaic.version = 11 : i64} {
  func.func @lstm_fc_kernel(%arg0: memref<8x8x128xf32, #tpu.memory_space<vmem>>, %arg1: memref<128x512xf32, #tpu.memory_space<vmem>>, %arg2: memref<128x512xf32, #tpu.memory_space<vmem>>, %arg3: memref<1x512xf32, #tpu.memory_space<vmem>>, %arg4: memref<256x512xf32, #tpu.memory_space<any>>, %arg5: memref<1x512xf32, #tpu.memory_space<vmem>>, %arg6: memref<128x128xf32, #tpu.memory_space<any>>, %arg7: memref<1x128xf32, #tpu.memory_space<vmem>>, %arg8: memref<8x128xf32, #tpu.memory_space<vmem>>, %arg9: memref<8x256xf32, #tpu.memory_space<vmem>>, %arg10: memref<256x512xf32, #tpu.memory_space<vmem>>, %arg11: memref<128x128xf32, #tpu.memory_space<vmem>>, %arg12: memref<2x!tpu.dma_semaphore, #tpu.memory_space<semaphore_mem>>) attributes {dimension_semantics = [], scalar_prefetch = 0 : i64, scratch_operands = 4 : i64, tpu.core_type = #tpu.core_type<tc>} {
    %c0_i32 = arith.constant 0 : i32
    %0 = tpu.memref_slice %arg12[%c0_i32] : memref<2x!tpu.dma_semaphore, #tpu.memory_space<semaphore_mem>> -> memref<1x!tpu.dma_semaphore, #tpu.memory_space<semaphore_mem>>
    %1 = tpu.memref_squeeze %0 : memref<1x!tpu.dma_semaphore, #tpu.memory_space<semaphore_mem>> -> memref<!tpu.dma_semaphore, #tpu.memory_space<semaphore_mem>>
    tpu.enqueue_dma source(%arg4 : memref<256x512xf32, #tpu.memory_space<any>>) target(%arg10 : memref<256x512xf32, #tpu.memory_space<vmem>>) target_semaphore(%1 : memref<!tpu.dma_semaphore, #tpu.memory_space<semaphore_mem>>)
    %c1_i32 = arith.constant 1 : i32
    %2 = tpu.memref_slice %arg12[%c1_i32] : memref<2x!tpu.dma_semaphore, #tpu.memory_space<semaphore_mem>> -> memref<1x!tpu.dma_semaphore, #tpu.memory_space<semaphore_mem>>
    %3 = tpu.memref_squeeze %2 : memref<1x!tpu.dma_semaphore, #tpu.memory_space<semaphore_mem>> -> memref<!tpu.dma_semaphore, #tpu.memory_space<semaphore_mem>>
    tpu.enqueue_dma source(%arg6 : memref<128x128xf32, #tpu.memory_space<any>>) target(%arg11 : memref<128x128xf32, #tpu.memory_space<vmem>>) target_semaphore(%3 : memref<!tpu.dma_semaphore, #tpu.memory_space<semaphore_mem>>)
    %c0 = arith.constant 0 : index
    %c0_0 = arith.constant 0 : index
    %c0_1 = arith.constant 0 : index
    %4 = vector.load %arg0[%c0, %c0_0, %c0_1] : memref<8x8x128xf32, #tpu.memory_space<vmem>>, vector<8x8x128xf32>
    %5 = vector.shape_cast %4 : vector<8x8x128xf32> to vector<64x128xf32>
    %c0_2 = arith.constant 0 : index
    %c0_3 = arith.constant 0 : index
    %6 = vector.load %arg1[%c0_2, %c0_3] : memref<128x512xf32, #tpu.memory_space<vmem>>, vector<128x512xf32>
    %cst = arith.constant dense<0.000000e+00> : vector<64x512xf32>
    %7 = tpu.matmul %5, %6, %cst {dimension_numbers = #tpu.dot_dimension_numbers<[1], [0], [0], [1], [0, 0, 1, 1], [], []>} : vector<64x128xf32>, vector<128x512xf32>, vector<64x512xf32> -> vector<64x512xf32>
    %c0_4 = arith.constant 0 : index
    %c0_5 = arith.constant 0 : index
    %8 = vector.load %arg3[%c0_4, %c0_5] : memref<1x512xf32, #tpu.memory_space<vmem>>, vector<1x512xf32>
    %9 = vector.broadcast %8 : vector<1x512xf32> to vector<64x512xf32>
    %10 = arith.addf %7, %9 : vector<64x512xf32>
    %c0_6 = arith.constant 0 : index
    %c0_7 = arith.constant 0 : index
    %11 = vector.load %arg5[%c0_6, %c0_7] : memref<1x512xf32, #tpu.memory_space<vmem>>, vector<1x512xf32>
    %cst_8 = arith.constant 0.000000e+00 : f32
    %12 = vector.broadcast %cst_8 : f32 to vector<8x128xf32>
    %cst_9 = arith.constant 0.000000e+00 : f32
    %13 = vector.broadcast %cst_9 : f32 to vector<8x128xf32>
    %cst_10 = arith.constant 0.000000e+00 : f32
    %14 = vector.broadcast %cst_10 : f32 to vector<8x128xf32>
    %cst_11 = arith.constant 0.000000e+00 : f32
    %15 = vector.broadcast %cst_11 : f32 to vector<8x128xf32>
    %16 = vector.extract_strided_slice %10 {offsets = [0, 0], sizes = [8, 512], strides = [1, 1]} : vector<64x512xf32> to vector<8x512xf32>
    %c0_12 = arith.constant 0 : index
    %c0_13 = arith.constant 0 : index
    %17 = vector.load %arg2[%c0_12, %c0_13] : memref<128x512xf32, #tpu.memory_space<vmem>>, vector<128x512xf32>
    %cst_14 = arith.constant dense<0.000000e+00> : vector<8x512xf32>
    %18 = tpu.matmul %12, %17, %cst_14 {dimension_numbers = #tpu.dot_dimension_numbers<[1], [0], [0], [1], [0, 0, 1, 1], [], []>} : vector<8x128xf32>, vector<128x512xf32>, vector<8x512xf32> -> vector<8x512xf32>
    %19 = arith.addf %16, %18 : vector<8x512xf32>
    %20 = vector.extract_strided_slice %19 {offsets = [0, 0], sizes = [8, 128], strides = [1, 1]} : vector<8x512xf32> to vector<8x128xf32>
    %21 = arith.negf %20 : vector<8x128xf32>
    %22 = math.exp %21 : vector<8x128xf32>
    %cst_15 = arith.constant 1.000000e+00 : f32
    %23 = vector.broadcast %cst_15 : f32 to vector<8x128xf32>
    %24 = arith.addf %23, %22 : vector<8x128xf32>
    %25 = arith.divf %23, %24 : vector<8x128xf32>
    %26 = vector.extract_strided_slice %19 {offsets = [0, 128], sizes = [8, 128], strides = [1, 1]} : vector<8x512xf32> to vector<8x128xf32>
    %27 = arith.negf %26 : vector<8x128xf32>
    %28 = math.exp %27 : vector<8x128xf32>
    %cst_16 = arith.constant 1.000000e+00 : f32
    %29 = vector.broadcast %cst_16 : f32 to vector<8x128xf32>
    %30 = arith.addf %29, %28 : vector<8x128xf32>
    %31 = arith.divf %29, %30 : vector<8x128xf32>
    %32 = vector.extract_strided_slice %19 {offsets = [0, 256], sizes = [8, 128], strides = [1, 1]} : vector<8x512xf32> to vector<8x128xf32>
    %33 = math.tanh %32 : vector<8x128xf32>
    %34 = vector.extract_strided_slice %19 {offsets = [0, 384], sizes = [8, 128], strides = [1, 1]} : vector<8x512xf32> to vector<8x128xf32>
    %35 = arith.negf %34 : vector<8x128xf32>
    %36 = math.exp %35 : vector<8x128xf32>
    %cst_17 = arith.constant 1.000000e+00 : f32
    %37 = vector.broadcast %cst_17 : f32 to vector<8x128xf32>
    %38 = arith.addf %37, %36 : vector<8x128xf32>
    %39 = arith.divf %37, %38 : vector<8x128xf32>
    %40 = arith.mulf %31, %13 : vector<8x128xf32>
    %41 = arith.mulf %25, %33 : vector<8x128xf32>
    %42 = arith.addf %40, %41 : vector<8x128xf32>
    %43 = math.tanh %42 : vector<8x128xf32>
    %44 = arith.mulf %39, %43 : vector<8x128xf32>
    %c0_18 = arith.constant 0 : index
    %c0_19 = arith.constant 0 : index
    %45 = vector.load %arg9[%c0_18, %c0_19] : memref<8x256xf32, #tpu.memory_space<vmem>>, vector<8x128xf32>
    tpu.vector_store %arg9[%c0_18, %c0_19], %44 {strides = array<i32>} : memref<8x256xf32, #tpu.memory_space<vmem>>, vector<8x128xf32>,
    %c0_20 = arith.constant 0 : index
    %c128 = arith.constant 128 : index
    %46 = vector.load %arg9[%c0_20, %c128] : memref<8x256xf32, #tpu.memory_space<vmem>>, vector<8x128xf32>
    tpu.vector_store %arg9[%c0_20, %c128], %14 {strides = array<i32>} : memref<8x256xf32, #tpu.memory_space<vmem>>, vector<8x128xf32>,
    %c0_i32_21 = arith.constant 0 : i32
    %47 = tpu.memref_slice %arg12[%c0_i32_21] : memref<2x!tpu.dma_semaphore, #tpu.memory_space<semaphore_mem>> -> memref<1x!tpu.dma_semaphore, #tpu.memory_space<semaphore_mem>>
    %48 = tpu.memref_squeeze %47 : memref<1x!tpu.dma_semaphore, #tpu.memory_space<semaphore_mem>> -> memref<!tpu.dma_semaphore, #tpu.memory_space<semaphore_mem>>
    tpu.wait_dma2 semaphore(%48 : memref<!tpu.dma_semaphore, #tpu.memory_space<semaphore_mem>>) src(%arg4 : memref<256x512xf32, #tpu.memory_space<any>>) dst(%arg10 : memref<256x512xf32, #tpu.memory_space<vmem>>)
    %c0_22 = arith.constant 0 : index
    %c0_23 = arith.constant 0 : index
    %49 = vector.load %arg9[%c0_22, %c0_23] : memref<8x256xf32, #tpu.memory_space<vmem>>, vector<8x256xf32>
    %c0_24 = arith.constant 0 : index
    %c0_25 = arith.constant 0 : index
    %50 = vector.load %arg10[%c0_24, %c0_25] : memref<256x512xf32, #tpu.memory_space<vmem>>, vector<256x512xf32>
    %cst_26 = arith.constant dense<0.000000e+00> : vector<8x512xf32>
    %51 = tpu.matmul %49, %50, %cst_26 {dimension_numbers = #tpu.dot_dimension_numbers<[1], [0], [0], [1], [0, 0, 1, 1], [], []>} : vector<8x256xf32>, vector<256x512xf32>, vector<8x512xf32> -> vector<8x512xf32>
    %52 = vector.broadcast %11 : vector<1x512xf32> to vector<8x512xf32>
    %53 = arith.addf %51, %52 : vector<8x512xf32>
    %54 = vector.extract_strided_slice %53 {offsets = [0, 0], sizes = [8, 128], strides = [1, 1]} : vector<8x512xf32> to vector<8x128xf32>
    %55 = arith.negf %54 : vector<8x128xf32>
    %56 = math.exp %55 : vector<8x128xf32>
    %cst_27 = arith.constant 1.000000e+00 : f32
    %57 = vector.broadcast %cst_27 : f32 to vector<8x128xf32>
    %58 = arith.addf %57, %56 : vector<8x128xf32>
    %59 = arith.divf %57, %58 : vector<8x128xf32>
    %60 = vector.extract_strided_slice %53 {offsets = [0, 128], sizes = [8, 128], strides = [1, 1]} : vector<8x512xf32> to vector<8x128xf32>
    %61 = arith.negf %60 : vector<8x128xf32>
    %62 = math.exp %61 : vector<8x128xf32>
    %cst_28 = arith.constant 1.000000e+00 : f32
    %63 = vector.broadcast %cst_28 : f32 to vector<8x128xf32>
    %64 = arith.addf %63, %62 : vector<8x128xf32>
    %65 = arith.divf %63, %64 : vector<8x128xf32>
    %66 = vector.extract_strided_slice %53 {offsets = [0, 256], sizes = [8, 128], strides = [1, 1]} : vector<8x512xf32> to vector<8x128xf32>
    %67 = math.tanh %66 : vector<8x128xf32>
    %68 = vector.extract_strided_slice %53 {offsets = [0, 384], sizes = [8, 128], strides = [1, 1]} : vector<8x512xf32> to vector<8x128xf32>
    %69 = arith.negf %68 : vector<8x128xf32>
    %70 = math.exp %69 : vector<8x128xf32>
    %cst_29 = arith.constant 1.000000e+00 : f32
    %71 = vector.broadcast %cst_29 : f32 to vector<8x128xf32>
    %72 = arith.addf %71, %70 : vector<8x128xf32>
    %73 = arith.divf %71, %72 : vector<8x128xf32>
    %74 = arith.mulf %65, %15 : vector<8x128xf32>
    %75 = arith.mulf %59, %67 : vector<8x128xf32>
    %76 = arith.addf %74, %75 : vector<8x128xf32>
    %77 = math.tanh %76 : vector<8x128xf32>
    %78 = arith.mulf %73, %77 : vector<8x128xf32>
    %79 = vector.extract_strided_slice %10 {offsets = [8, 0], sizes = [8, 512], strides = [1, 1]} : vector<64x512xf32> to vector<8x512xf32>
    %c0_30 = arith.constant 0 : index
    %c0_31 = arith.constant 0 : index
    %80 = vector.load %arg2[%c0_30, %c0_31] : memref<128x512xf32, #tpu.memory_space<vmem>>, vector<128x512xf32>
    %cst_32 = arith.constant dense<0.000000e+00> : vector<8x512xf32>
    %81 = tpu.matmul %44, %80, %cst_32 {dimension_numbers = #tpu.dot_dimension_numbers<[1], [0], [0], [1], [0, 0, 1, 1], [], []>} : vector<8x128xf32>, vector<128x512xf32>, vector<8x512xf32> -> vector<8x512xf32>
    %82 = arith.addf %79, %81 : vector<8x512xf32>
    %83 = vector.extract_strided_slice %82 {offsets = [0, 0], sizes = [8, 128], strides = [1, 1]} : vector<8x512xf32> to vector<8x128xf32>
    %84 = arith.negf %83 : vector<8x128xf32>
    %85 = math.exp %84 : vector<8x128xf32>
    %cst_33 = arith.constant 1.000000e+00 : f32
    %86 = vector.broadcast %cst_33 : f32 to vector<8x128xf32>
    %87 = arith.addf %86, %85 : vector<8x128xf32>
    %88 = arith.divf %86, %87 : vector<8x128xf32>
    %89 = vector.extract_strided_slice %82 {offsets = [0, 128], sizes = [8, 128], strides = [1, 1]} : vector<8x512xf32> to vector<8x128xf32>
    %90 = arith.negf %89 : vector<8x128xf32>
    %91 = math.exp %90 : vector<8x128xf32>
    %cst_34 = arith.constant 1.000000e+00 : f32
    %92 = vector.broadcast %cst_34 : f32 to vector<8x128xf32>
    %93 = arith.addf %92, %91 : vector<8x128xf32>
    %94 = arith.divf %92, %93 : vector<8x128xf32>
    %95 = vector.extract_strided_slice %82 {offsets = [0, 256], sizes = [8, 128], strides = [1, 1]} : vector<8x512xf32> to vector<8x128xf32>
    %96 = math.tanh %95 : vector<8x128xf32>
    %97 = vector.extract_strided_slice %82 {offsets = [0, 384], sizes = [8, 128], strides = [1, 1]} : vector<8x512xf32> to vector<8x128xf32>
    %98 = arith.negf %97 : vector<8x128xf32>
    %99 = math.exp %98 : vector<8x128xf32>
    %cst_35 = arith.constant 1.000000e+00 : f32
    %100 = vector.broadcast %cst_35 : f32 to vector<8x128xf32>
    %101 = arith.addf %100, %99 : vector<8x128xf32>
    %102 = arith.divf %100, %101 : vector<8x128xf32>
    %103 = arith.mulf %94, %42 : vector<8x128xf32>
    %104 = arith.mulf %88, %96 : vector<8x128xf32>
    %105 = arith.addf %103, %104 : vector<8x128xf32>
    %106 = math.tanh %105 : vector<8x128xf32>
    %107 = arith.mulf %102, %106 : vector<8x128xf32>
    %c0_36 = arith.constant 0 : index
    %c0_37 = arith.constant 0 : index
    %108 = vector.load %arg9[%c0_36, %c0_37] : memref<8x256xf32, #tpu.memory_space<vmem>>, vector<8x128xf32>
    tpu.vector_store %arg9[%c0_36, %c0_37], %107 {strides = array<i32>} : memref<8x256xf32, #tpu.memory_space<vmem>>, vector<8x128xf32>,
    %c0_38 = arith.constant 0 : index
    %c128_39 = arith.constant 128 : index
    %109 = vector.load %arg9[%c0_38, %c128_39] : memref<8x256xf32, #tpu.memory_space<vmem>>, vector<8x128xf32>
    tpu.vector_store %arg9[%c0_38, %c128_39], %78 {strides = array<i32>} : memref<8x256xf32, #tpu.memory_space<vmem>>, vector<8x128xf32>,
    %c0_40 = arith.constant 0 : index
    %c0_41 = arith.constant 0 : index
    %110 = vector.load %arg9[%c0_40, %c0_41] : memref<8x256xf32, #tpu.memory_space<vmem>>, vector<8x256xf32>
    %c0_42 = arith.constant 0 : index
    %c0_43 = arith.constant 0 : index
    %111 = vector.load %arg10[%c0_42, %c0_43] : memref<256x512xf32, #tpu.memory_space<vmem>>, vector<256x512xf32>
    %cst_44 = arith.constant dense<0.000000e+00> : vector<8x512xf32>
    %112 = tpu.matmul %110, %111, %cst_44 {dimension_numbers = #tpu.dot_dimension_numbers<[1], [0], [0], [1], [0, 0, 1, 1], [], []>} : vector<8x256xf32>, vector<256x512xf32>, vector<8x512xf32> -> vector<8x512xf32>
    %113 = vector.broadcast %11 : vector<1x512xf32> to vector<8x512xf32>
    %114 = arith.addf %112, %113 : vector<8x512xf32>
    %115 = vector.extract_strided_slice %114 {offsets = [0, 0], sizes = [8, 128], strides = [1, 1]} : vector<8x512xf32> to vector<8x128xf32>
    %116 = arith.negf %115 : vector<8x128xf32>
    %117 = math.exp %116 : vector<8x128xf32>
    %cst_45 = arith.constant 1.000000e+00 : f32
    %118 = vector.broadcast %cst_45 : f32 to vector<8x128xf32>
    %119 = arith.addf %118, %117 : vector<8x128xf32>
    %120 = arith.divf %118, %119 : vector<8x128xf32>
    %121 = vector.extract_strided_slice %114 {offsets = [0, 128], sizes = [8, 128], strides = [1, 1]} : vector<8x512xf32> to vector<8x128xf32>
    %122 = arith.negf %121 : vector<8x128xf32>
    %123 = math.exp %122 : vector<8x128xf32>
    %cst_46 = arith.constant 1.000000e+00 : f32
    %124 = vector.broadcast %cst_46 : f32 to vector<8x128xf32>
    %125 = arith.addf %124, %123 : vector<8x128xf32>
    %126 = arith.divf %124, %125 : vector<8x128xf32>
    %127 = vector.extract_strided_slice %114 {offsets = [0, 256], sizes = [8, 128], strides = [1, 1]} : vector<8x512xf32> to vector<8x128xf32>
    %128 = math.tanh %127 : vector<8x128xf32>
    %129 = vector.extract_strided_slice %114 {offsets = [0, 384], sizes = [8, 128], strides = [1, 1]} : vector<8x512xf32> to vector<8x128xf32>
    %130 = arith.negf %129 : vector<8x128xf32>
    %131 = math.exp %130 : vector<8x128xf32>
    %cst_47 = arith.constant 1.000000e+00 : f32
    %132 = vector.broadcast %cst_47 : f32 to vector<8x128xf32>
    %133 = arith.addf %132, %131 : vector<8x128xf32>
    %134 = arith.divf %132, %133 : vector<8x128xf32>
    %135 = arith.mulf %126, %76 : vector<8x128xf32>
    %136 = arith.mulf %120, %128 : vector<8x128xf32>
    %137 = arith.addf %135, %136 : vector<8x128xf32>
    %138 = math.tanh %137 : vector<8x128xf32>
    %139 = arith.mulf %134, %138 : vector<8x128xf32>
    %140 = vector.extract_strided_slice %10 {offsets = [16, 0], sizes = [8, 512], strides = [1, 1]} : vector<64x512xf32> to vector<8x512xf32>
    %c0_48 = arith.constant 0 : index
    %c0_49 = arith.constant 0 : index
    %141 = vector.load %arg2[%c0_48, %c0_49] : memref<128x512xf32, #tpu.memory_space<vmem>>, vector<128x512xf32>
    %cst_50 = arith.constant dense<0.000000e+00> : vector<8x512xf32>
    %142 = tpu.matmul %107, %141, %cst_50 {dimension_numbers = #tpu.dot_dimension_numbers<[1], [0], [0], [1], [0, 0, 1, 1], [], []>} : vector<8x128xf32>, vector<128x512xf32>, vector<8x512xf32> -> vector<8x512xf32>
    %143 = arith.addf %140, %142 : vector<8x512xf32>
    %144 = vector.extract_strided_slice %143 {offsets = [0, 0], sizes = [8, 128], strides = [1, 1]} : vector<8x512xf32> to vector<8x128xf32>
    %145 = arith.negf %144 : vector<8x128xf32>
    %146 = math.exp %145 : vector<8x128xf32>
    %cst_51 = arith.constant 1.000000e+00 : f32
    %147 = vector.broadcast %cst_51 : f32 to vector<8x128xf32>
    %148 = arith.addf %147, %146 : vector<8x128xf32>
    %149 = arith.divf %147, %148 : vector<8x128xf32>
    %150 = vector.extract_strided_slice %143 {offsets = [0, 128], sizes = [8, 128], strides = [1, 1]} : vector<8x512xf32> to vector<8x128xf32>
    %151 = arith.negf %150 : vector<8x128xf32>
    %152 = math.exp %151 : vector<8x128xf32>
    %cst_52 = arith.constant 1.000000e+00 : f32
    %153 = vector.broadcast %cst_52 : f32 to vector<8x128xf32>
    %154 = arith.addf %153, %152 : vector<8x128xf32>
    %155 = arith.divf %153, %154 : vector<8x128xf32>
    %156 = vector.extract_strided_slice %143 {offsets = [0, 256], sizes = [8, 128], strides = [1, 1]} : vector<8x512xf32> to vector<8x128xf32>
    %157 = math.tanh %156 : vector<8x128xf32>
    %158 = vector.extract_strided_slice %143 {offsets = [0, 384], sizes = [8, 128], strides = [1, 1]} : vector<8x512xf32> to vector<8x128xf32>
    %159 = arith.negf %158 : vector<8x128xf32>
    %160 = math.exp %159 : vector<8x128xf32>
    %cst_53 = arith.constant 1.000000e+00 : f32
    %161 = vector.broadcast %cst_53 : f32 to vector<8x128xf32>
    %162 = arith.addf %161, %160 : vector<8x128xf32>
    %163 = arith.divf %161, %162 : vector<8x128xf32>
    %164 = arith.mulf %155, %105 : vector<8x128xf32>
    %165 = arith.mulf %149, %157 : vector<8x128xf32>
    %166 = arith.addf %164, %165 : vector<8x128xf32>
    %167 = math.tanh %166 : vector<8x128xf32>
    %168 = arith.mulf %163, %167 : vector<8x128xf32>
    %c0_54 = arith.constant 0 : index
    %c0_55 = arith.constant 0 : index
    %169 = vector.load %arg9[%c0_54, %c0_55] : memref<8x256xf32, #tpu.memory_space<vmem>>, vector<8x128xf32>
    tpu.vector_store %arg9[%c0_54, %c0_55], %168 {strides = array<i32>} : memref<8x256xf32, #tpu.memory_space<vmem>>, vector<8x128xf32>,
    %c0_56 = arith.constant 0 : index
    %c128_57 = arith.constant 128 : index
    %170 = vector.load %arg9[%c0_56, %c128_57] : memref<8x256xf32, #tpu.memory_space<vmem>>, vector<8x128xf32>
    tpu.vector_store %arg9[%c0_56, %c128_57], %139 {strides = array<i32>} : memref<8x256xf32, #tpu.memory_space<vmem>>, vector<8x128xf32>,
    %c0_58 = arith.constant 0 : index
    %c0_59 = arith.constant 0 : index
    %171 = vector.load %arg9[%c0_58, %c0_59] : memref<8x256xf32, #tpu.memory_space<vmem>>, vector<8x256xf32>
    %c0_60 = arith.constant 0 : index
    %c0_61 = arith.constant 0 : index
    %172 = vector.load %arg10[%c0_60, %c0_61] : memref<256x512xf32, #tpu.memory_space<vmem>>, vector<256x512xf32>
    %cst_62 = arith.constant dense<0.000000e+00> : vector<8x512xf32>
    %173 = tpu.matmul %171, %172, %cst_62 {dimension_numbers = #tpu.dot_dimension_numbers<[1], [0], [0], [1], [0, 0, 1, 1], [], []>} : vector<8x256xf32>, vector<256x512xf32>, vector<8x512xf32> -> vector<8x512xf32>
    %174 = vector.broadcast %11 : vector<1x512xf32> to vector<8x512xf32>
    %175 = arith.addf %173, %174 : vector<8x512xf32>
    %176 = vector.extract_strided_slice %175 {offsets = [0, 0], sizes = [8, 128], strides = [1, 1]} : vector<8x512xf32> to vector<8x128xf32>
    %177 = arith.negf %176 : vector<8x128xf32>
    %178 = math.exp %177 : vector<8x128xf32>
    %cst_63 = arith.constant 1.000000e+00 : f32
    %179 = vector.broadcast %cst_63 : f32 to vector<8x128xf32>
    %180 = arith.addf %179, %178 : vector<8x128xf32>
    %181 = arith.divf %179, %180 : vector<8x128xf32>
    %182 = vector.extract_strided_slice %175 {offsets = [0, 128], sizes = [8, 128], strides = [1, 1]} : vector<8x512xf32> to vector<8x128xf32>
    %183 = arith.negf %182 : vector<8x128xf32>
    %184 = math.exp %183 : vector<8x128xf32>
    %cst_64 = arith.constant 1.000000e+00 : f32
    %185 = vector.broadcast %cst_64 : f32 to vector<8x128xf32>
    %186 = arith.addf %185, %184 : vector<8x128xf32>
    %187 = arith.divf %185, %186 : vector<8x128xf32>
    %188 = vector.extract_strided_slice %175 {offsets = [0, 256], sizes = [8, 128], strides = [1, 1]} : vector<8x512xf32> to vector<8x128xf32>
    %189 = math.tanh %188 : vector<8x128xf32>
    %190 = vector.extract_strided_slice %175 {offsets = [0, 384], sizes = [8, 128], strides = [1, 1]} : vector<8x512xf32> to vector<8x128xf32>
    %191 = arith.negf %190 : vector<8x128xf32>
    %192 = math.exp %191 : vector<8x128xf32>
    %cst_65 = arith.constant 1.000000e+00 : f32
    %193 = vector.broadcast %cst_65 : f32 to vector<8x128xf32>
    %194 = arith.addf %193, %192 : vector<8x128xf32>
    %195 = arith.divf %193, %194 : vector<8x128xf32>
    %196 = arith.mulf %187, %137 : vector<8x128xf32>
    %197 = arith.mulf %181, %189 : vector<8x128xf32>
    %198 = arith.addf %196, %197 : vector<8x128xf32>
    %199 = math.tanh %198 : vector<8x128xf32>
    %200 = arith.mulf %195, %199 : vector<8x128xf32>
    %201 = vector.extract_strided_slice %10 {offsets = [24, 0], sizes = [8, 512], strides = [1, 1]} : vector<64x512xf32> to vector<8x512xf32>
    %c0_66 = arith.constant 0 : index
    %c0_67 = arith.constant 0 : index
    %202 = vector.load %arg2[%c0_66, %c0_67] : memref<128x512xf32, #tpu.memory_space<vmem>>, vector<128x512xf32>
    %cst_68 = arith.constant dense<0.000000e+00> : vector<8x512xf32>
    %203 = tpu.matmul %168, %202, %cst_68 {dimension_numbers = #tpu.dot_dimension_numbers<[1], [0], [0], [1], [0, 0, 1, 1], [], []>} : vector<8x128xf32>, vector<128x512xf32>, vector<8x512xf32> -> vector<8x512xf32>
    %204 = arith.addf %201, %203 : vector<8x512xf32>
    %205 = vector.extract_strided_slice %204 {offsets = [0, 0], sizes = [8, 128], strides = [1, 1]} : vector<8x512xf32> to vector<8x128xf32>
    %206 = arith.negf %205 : vector<8x128xf32>
    %207 = math.exp %206 : vector<8x128xf32>
    %cst_69 = arith.constant 1.000000e+00 : f32
    %208 = vector.broadcast %cst_69 : f32 to vector<8x128xf32>
    %209 = arith.addf %208, %207 : vector<8x128xf32>
    %210 = arith.divf %208, %209 : vector<8x128xf32>
    %211 = vector.extract_strided_slice %204 {offsets = [0, 128], sizes = [8, 128], strides = [1, 1]} : vector<8x512xf32> to vector<8x128xf32>
    %212 = arith.negf %211 : vector<8x128xf32>
    %213 = math.exp %212 : vector<8x128xf32>
    %cst_70 = arith.constant 1.000000e+00 : f32
    %214 = vector.broadcast %cst_70 : f32 to vector<8x128xf32>
    %215 = arith.addf %214, %213 : vector<8x128xf32>
    %216 = arith.divf %214, %215 : vector<8x128xf32>
    %217 = vector.extract_strided_slice %204 {offsets = [0, 256], sizes = [8, 128], strides = [1, 1]} : vector<8x512xf32> to vector<8x128xf32>
    %218 = math.tanh %217 : vector<8x128xf32>
    %219 = vector.extract_strided_slice %204 {offsets = [0, 384], sizes = [8, 128], strides = [1, 1]} : vector<8x512xf32> to vector<8x128xf32>
    %220 = arith.negf %219 : vector<8x128xf32>
    %221 = math.exp %220 : vector<8x128xf32>
    %cst_71 = arith.constant 1.000000e+00 : f32
    %222 = vector.broadcast %cst_71 : f32 to vector<8x128xf32>
    %223 = arith.addf %222, %221 : vector<8x128xf32>
    %224 = arith.divf %222, %223 : vector<8x128xf32>
    %225 = arith.mulf %216, %166 : vector<8x128xf32>
    %226 = arith.mulf %210, %218 : vector<8x128xf32>
    %227 = arith.addf %225, %226 : vector<8x128xf32>
    %228 = math.tanh %227 : vector<8x128xf32>
    %229 = arith.mulf %224, %228 : vector<8x128xf32>
    %c0_72 = arith.constant 0 : index
    %c0_73 = arith.constant 0 : index
    %230 = vector.load %arg9[%c0_72, %c0_73] : memref<8x256xf32, #tpu.memory_space<vmem>>, vector<8x128xf32>
    tpu.vector_store %arg9[%c0_72, %c0_73], %229 {strides = array<i32>} : memref<8x256xf32, #tpu.memory_space<vmem>>, vector<8x128xf32>,
    %c0_74 = arith.constant 0 : index
    %c128_75 = arith.constant 128 : index
    %231 = vector.load %arg9[%c0_74, %c128_75] : memref<8x256xf32, #tpu.memory_space<vmem>>, vector<8x128xf32>
    tpu.vector_store %arg9[%c0_74, %c128_75], %200 {strides = array<i32>} : memref<8x256xf32, #tpu.memory_space<vmem>>, vector<8x128xf32>,
    %c0_76 = arith.constant 0 : index
    %c0_77 = arith.constant 0 : index
    %232 = vector.load %arg9[%c0_76, %c0_77] : memref<8x256xf32, #tpu.memory_space<vmem>>, vector<8x256xf32>
    %c0_78 = arith.constant 0 : index
    %c0_79 = arith.constant 0 : index
    %233 = vector.load %arg10[%c0_78, %c0_79] : memref<256x512xf32, #tpu.memory_space<vmem>>, vector<256x512xf32>
    %cst_80 = arith.constant dense<0.000000e+00> : vector<8x512xf32>
    %234 = tpu.matmul %232, %233, %cst_80 {dimension_numbers = #tpu.dot_dimension_numbers<[1], [0], [0], [1], [0, 0, 1, 1], [], []>} : vector<8x256xf32>, vector<256x512xf32>, vector<8x512xf32> -> vector<8x512xf32>
    %235 = vector.broadcast %11 : vector<1x512xf32> to vector<8x512xf32>
    %236 = arith.addf %234, %235 : vector<8x512xf32>
    %237 = vector.extract_strided_slice %236 {offsets = [0, 0], sizes = [8, 128], strides = [1, 1]} : vector<8x512xf32> to vector<8x128xf32>
    %238 = arith.negf %237 : vector<8x128xf32>
    %239 = math.exp %238 : vector<8x128xf32>
    %cst_81 = arith.constant 1.000000e+00 : f32
    %240 = vector.broadcast %cst_81 : f32 to vector<8x128xf32>
    %241 = arith.addf %240, %239 : vector<8x128xf32>
    %242 = arith.divf %240, %241 : vector<8x128xf32>
    %243 = vector.extract_strided_slice %236 {offsets = [0, 128], sizes = [8, 128], strides = [1, 1]} : vector<8x512xf32> to vector<8x128xf32>
    %244 = arith.negf %243 : vector<8x128xf32>
    %245 = math.exp %244 : vector<8x128xf32>
    %cst_82 = arith.constant 1.000000e+00 : f32
    %246 = vector.broadcast %cst_82 : f32 to vector<8x128xf32>
    %247 = arith.addf %246, %245 : vector<8x128xf32>
    %248 = arith.divf %246, %247 : vector<8x128xf32>
    %249 = vector.extract_strided_slice %236 {offsets = [0, 256], sizes = [8, 128], strides = [1, 1]} : vector<8x512xf32> to vector<8x128xf32>
    %250 = math.tanh %249 : vector<8x128xf32>
    %251 = vector.extract_strided_slice %236 {offsets = [0, 384], sizes = [8, 128], strides = [1, 1]} : vector<8x512xf32> to vector<8x128xf32>
    %252 = arith.negf %251 : vector<8x128xf32>
    %253 = math.exp %252 : vector<8x128xf32>
    %cst_83 = arith.constant 1.000000e+00 : f32
    %254 = vector.broadcast %cst_83 : f32 to vector<8x128xf32>
    %255 = arith.addf %254, %253 : vector<8x128xf32>
    %256 = arith.divf %254, %255 : vector<8x128xf32>
    %257 = arith.mulf %248, %198 : vector<8x128xf32>
    %258 = arith.mulf %242, %250 : vector<8x128xf32>
    %259 = arith.addf %257, %258 : vector<8x128xf32>
    %260 = math.tanh %259 : vector<8x128xf32>
    %261 = arith.mulf %256, %260 : vector<8x128xf32>
    %262 = vector.extract_strided_slice %10 {offsets = [32, 0], sizes = [8, 512], strides = [1, 1]} : vector<64x512xf32> to vector<8x512xf32>
    %c0_84 = arith.constant 0 : index
    %c0_85 = arith.constant 0 : index
    %263 = vector.load %arg2[%c0_84, %c0_85] : memref<128x512xf32, #tpu.memory_space<vmem>>, vector<128x512xf32>
    %cst_86 = arith.constant dense<0.000000e+00> : vector<8x512xf32>
    %264 = tpu.matmul %229, %263, %cst_86 {dimension_numbers = #tpu.dot_dimension_numbers<[1], [0], [0], [1], [0, 0, 1, 1], [], []>} : vector<8x128xf32>, vector<128x512xf32>, vector<8x512xf32> -> vector<8x512xf32>
    %265 = arith.addf %262, %264 : vector<8x512xf32>
    %266 = vector.extract_strided_slice %265 {offsets = [0, 0], sizes = [8, 128], strides = [1, 1]} : vector<8x512xf32> to vector<8x128xf32>
    %267 = arith.negf %266 : vector<8x128xf32>
    %268 = math.exp %267 : vector<8x128xf32>
    %cst_87 = arith.constant 1.000000e+00 : f32
    %269 = vector.broadcast %cst_87 : f32 to vector<8x128xf32>
    %270 = arith.addf %269, %268 : vector<8x128xf32>
    %271 = arith.divf %269, %270 : vector<8x128xf32>
    %272 = vector.extract_strided_slice %265 {offsets = [0, 128], sizes = [8, 128], strides = [1, 1]} : vector<8x512xf32> to vector<8x128xf32>
    %273 = arith.negf %272 : vector<8x128xf32>
    %274 = math.exp %273 : vector<8x128xf32>
    %cst_88 = arith.constant 1.000000e+00 : f32
    %275 = vector.broadcast %cst_88 : f32 to vector<8x128xf32>
    %276 = arith.addf %275, %274 : vector<8x128xf32>
    %277 = arith.divf %275, %276 : vector<8x128xf32>
    %278 = vector.extract_strided_slice %265 {offsets = [0, 256], sizes = [8, 128], strides = [1, 1]} : vector<8x512xf32> to vector<8x128xf32>
    %279 = math.tanh %278 : vector<8x128xf32>
    %280 = vector.extract_strided_slice %265 {offsets = [0, 384], sizes = [8, 128], strides = [1, 1]} : vector<8x512xf32> to vector<8x128xf32>
    %281 = arith.negf %280 : vector<8x128xf32>
    %282 = math.exp %281 : vector<8x128xf32>
    %cst_89 = arith.constant 1.000000e+00 : f32
    %283 = vector.broadcast %cst_89 : f32 to vector<8x128xf32>
    %284 = arith.addf %283, %282 : vector<8x128xf32>
    %285 = arith.divf %283, %284 : vector<8x128xf32>
    %286 = arith.mulf %277, %227 : vector<8x128xf32>
    %287 = arith.mulf %271, %279 : vector<8x128xf32>
    %288 = arith.addf %286, %287 : vector<8x128xf32>
    %289 = math.tanh %288 : vector<8x128xf32>
    %290 = arith.mulf %285, %289 : vector<8x128xf32>
    %c0_90 = arith.constant 0 : index
    %c0_91 = arith.constant 0 : index
    %291 = vector.load %arg9[%c0_90, %c0_91] : memref<8x256xf32, #tpu.memory_space<vmem>>, vector<8x128xf32>
    tpu.vector_store %arg9[%c0_90, %c0_91], %290 {strides = array<i32>} : memref<8x256xf32, #tpu.memory_space<vmem>>, vector<8x128xf32>,
    %c0_92 = arith.constant 0 : index
    %c128_93 = arith.constant 128 : index
    %292 = vector.load %arg9[%c0_92, %c128_93] : memref<8x256xf32, #tpu.memory_space<vmem>>, vector<8x128xf32>
    tpu.vector_store %arg9[%c0_92, %c128_93], %261 {strides = array<i32>} : memref<8x256xf32, #tpu.memory_space<vmem>>, vector<8x128xf32>,
    %c0_94 = arith.constant 0 : index
    %c0_95 = arith.constant 0 : index
    %293 = vector.load %arg9[%c0_94, %c0_95] : memref<8x256xf32, #tpu.memory_space<vmem>>, vector<8x256xf32>
    %c0_96 = arith.constant 0 : index
    %c0_97 = arith.constant 0 : index
    %294 = vector.load %arg10[%c0_96, %c0_97] : memref<256x512xf32, #tpu.memory_space<vmem>>, vector<256x512xf32>
    %cst_98 = arith.constant dense<0.000000e+00> : vector<8x512xf32>
    %295 = tpu.matmul %293, %294, %cst_98 {dimension_numbers = #tpu.dot_dimension_numbers<[1], [0], [0], [1], [0, 0, 1, 1], [], []>} : vector<8x256xf32>, vector<256x512xf32>, vector<8x512xf32> -> vector<8x512xf32>
    %296 = vector.broadcast %11 : vector<1x512xf32> to vector<8x512xf32>
    %297 = arith.addf %295, %296 : vector<8x512xf32>
    %298 = vector.extract_strided_slice %297 {offsets = [0, 0], sizes = [8, 128], strides = [1, 1]} : vector<8x512xf32> to vector<8x128xf32>
    %299 = arith.negf %298 : vector<8x128xf32>
    %300 = math.exp %299 : vector<8x128xf32>
    %cst_99 = arith.constant 1.000000e+00 : f32
    %301 = vector.broadcast %cst_99 : f32 to vector<8x128xf32>
    %302 = arith.addf %301, %300 : vector<8x128xf32>
    %303 = arith.divf %301, %302 : vector<8x128xf32>
    %304 = vector.extract_strided_slice %297 {offsets = [0, 128], sizes = [8, 128], strides = [1, 1]} : vector<8x512xf32> to vector<8x128xf32>
    %305 = arith.negf %304 : vector<8x128xf32>
    %306 = math.exp %305 : vector<8x128xf32>
    %cst_100 = arith.constant 1.000000e+00 : f32
    %307 = vector.broadcast %cst_100 : f32 to vector<8x128xf32>
    %308 = arith.addf %307, %306 : vector<8x128xf32>
    %309 = arith.divf %307, %308 : vector<8x128xf32>
    %310 = vector.extract_strided_slice %297 {offsets = [0, 256], sizes = [8, 128], strides = [1, 1]} : vector<8x512xf32> to vector<8x128xf32>
    %311 = math.tanh %310 : vector<8x128xf32>
    %312 = vector.extract_strided_slice %297 {offsets = [0, 384], sizes = [8, 128], strides = [1, 1]} : vector<8x512xf32> to vector<8x128xf32>
    %313 = arith.negf %312 : vector<8x128xf32>
    %314 = math.exp %313 : vector<8x128xf32>
    %cst_101 = arith.constant 1.000000e+00 : f32
    %315 = vector.broadcast %cst_101 : f32 to vector<8x128xf32>
    %316 = arith.addf %315, %314 : vector<8x128xf32>
    %317 = arith.divf %315, %316 : vector<8x128xf32>
    %318 = arith.mulf %309, %259 : vector<8x128xf32>
    %319 = arith.mulf %303, %311 : vector<8x128xf32>
    %320 = arith.addf %318, %319 : vector<8x128xf32>
    %321 = math.tanh %320 : vector<8x128xf32>
    %322 = arith.mulf %317, %321 : vector<8x128xf32>
    %323 = vector.extract_strided_slice %10 {offsets = [40, 0], sizes = [8, 512], strides = [1, 1]} : vector<64x512xf32> to vector<8x512xf32>
    %c0_102 = arith.constant 0 : index
    %c0_103 = arith.constant 0 : index
    %324 = vector.load %arg2[%c0_102, %c0_103] : memref<128x512xf32, #tpu.memory_space<vmem>>, vector<128x512xf32>
    %cst_104 = arith.constant dense<0.000000e+00> : vector<8x512xf32>
    %325 = tpu.matmul %290, %324, %cst_104 {dimension_numbers = #tpu.dot_dimension_numbers<[1], [0], [0], [1], [0, 0, 1, 1], [], []>} : vector<8x128xf32>, vector<128x512xf32>, vector<8x512xf32> -> vector<8x512xf32>
    %326 = arith.addf %323, %325 : vector<8x512xf32>
    %327 = vector.extract_strided_slice %326 {offsets = [0, 0], sizes = [8, 128], strides = [1, 1]} : vector<8x512xf32> to vector<8x128xf32>
    %328 = arith.negf %327 : vector<8x128xf32>
    %329 = math.exp %328 : vector<8x128xf32>
    %cst_105 = arith.constant 1.000000e+00 : f32
    %330 = vector.broadcast %cst_105 : f32 to vector<8x128xf32>
    %331 = arith.addf %330, %329 : vector<8x128xf32>
    %332 = arith.divf %330, %331 : vector<8x128xf32>
    %333 = vector.extract_strided_slice %326 {offsets = [0, 128], sizes = [8, 128], strides = [1, 1]} : vector<8x512xf32> to vector<8x128xf32>
    %334 = arith.negf %333 : vector<8x128xf32>
    %335 = math.exp %334 : vector<8x128xf32>
    %cst_106 = arith.constant 1.000000e+00 : f32
    %336 = vector.broadcast %cst_106 : f32 to vector<8x128xf32>
    %337 = arith.addf %336, %335 : vector<8x128xf32>
    %338 = arith.divf %336, %337 : vector<8x128xf32>
    %339 = vector.extract_strided_slice %326 {offsets = [0, 256], sizes = [8, 128], strides = [1, 1]} : vector<8x512xf32> to vector<8x128xf32>
    %340 = math.tanh %339 : vector<8x128xf32>
    %341 = vector.extract_strided_slice %326 {offsets = [0, 384], sizes = [8, 128], strides = [1, 1]} : vector<8x512xf32> to vector<8x128xf32>
    %342 = arith.negf %341 : vector<8x128xf32>
    %343 = math.exp %342 : vector<8x128xf32>
    %cst_107 = arith.constant 1.000000e+00 : f32
    %344 = vector.broadcast %cst_107 : f32 to vector<8x128xf32>
    %345 = arith.addf %344, %343 : vector<8x128xf32>
    %346 = arith.divf %344, %345 : vector<8x128xf32>
    %347 = arith.mulf %338, %288 : vector<8x128xf32>
    %348 = arith.mulf %332, %340 : vector<8x128xf32>
    %349 = arith.addf %347, %348 : vector<8x128xf32>
    %350 = math.tanh %349 : vector<8x128xf32>
    %351 = arith.mulf %346, %350 : vector<8x128xf32>
    %c0_108 = arith.constant 0 : index
    %c0_109 = arith.constant 0 : index
    %352 = vector.load %arg9[%c0_108, %c0_109] : memref<8x256xf32, #tpu.memory_space<vmem>>, vector<8x128xf32>
    tpu.vector_store %arg9[%c0_108, %c0_109], %351 {strides = array<i32>} : memref<8x256xf32, #tpu.memory_space<vmem>>, vector<8x128xf32>,
    %c0_110 = arith.constant 0 : index
    %c128_111 = arith.constant 128 : index
    %353 = vector.load %arg9[%c0_110, %c128_111] : memref<8x256xf32, #tpu.memory_space<vmem>>, vector<8x128xf32>
    tpu.vector_store %arg9[%c0_110, %c128_111], %322 {strides = array<i32>} : memref<8x256xf32, #tpu.memory_space<vmem>>, vector<8x128xf32>,
    %c0_112 = arith.constant 0 : index
    %c0_113 = arith.constant 0 : index
    %354 = vector.load %arg9[%c0_112, %c0_113] : memref<8x256xf32, #tpu.memory_space<vmem>>, vector<8x256xf32>
    %c0_114 = arith.constant 0 : index
    %c0_115 = arith.constant 0 : index
    %355 = vector.load %arg10[%c0_114, %c0_115] : memref<256x512xf32, #tpu.memory_space<vmem>>, vector<256x512xf32>
    %cst_116 = arith.constant dense<0.000000e+00> : vector<8x512xf32>
    %356 = tpu.matmul %354, %355, %cst_116 {dimension_numbers = #tpu.dot_dimension_numbers<[1], [0], [0], [1], [0, 0, 1, 1], [], []>} : vector<8x256xf32>, vector<256x512xf32>, vector<8x512xf32> -> vector<8x512xf32>
    %357 = vector.broadcast %11 : vector<1x512xf32> to vector<8x512xf32>
    %358 = arith.addf %356, %357 : vector<8x512xf32>
    %359 = vector.extract_strided_slice %358 {offsets = [0, 0], sizes = [8, 128], strides = [1, 1]} : vector<8x512xf32> to vector<8x128xf32>
    %360 = arith.negf %359 : vector<8x128xf32>
    %361 = math.exp %360 : vector<8x128xf32>
    %cst_117 = arith.constant 1.000000e+00 : f32
    %362 = vector.broadcast %cst_117 : f32 to vector<8x128xf32>
    %363 = arith.addf %362, %361 : vector<8x128xf32>
    %364 = arith.divf %362, %363 : vector<8x128xf32>
    %365 = vector.extract_strided_slice %358 {offsets = [0, 128], sizes = [8, 128], strides = [1, 1]} : vector<8x512xf32> to vector<8x128xf32>
    %366 = arith.negf %365 : vector<8x128xf32>
    %367 = math.exp %366 : vector<8x128xf32>
    %cst_118 = arith.constant 1.000000e+00 : f32
    %368 = vector.broadcast %cst_118 : f32 to vector<8x128xf32>
    %369 = arith.addf %368, %367 : vector<8x128xf32>
    %370 = arith.divf %368, %369 : vector<8x128xf32>
    %371 = vector.extract_strided_slice %358 {offsets = [0, 256], sizes = [8, 128], strides = [1, 1]} : vector<8x512xf32> to vector<8x128xf32>
    %372 = math.tanh %371 : vector<8x128xf32>
    %373 = vector.extract_strided_slice %358 {offsets = [0, 384], sizes = [8, 128], strides = [1, 1]} : vector<8x512xf32> to vector<8x128xf32>
    %374 = arith.negf %373 : vector<8x128xf32>
    %375 = math.exp %374 : vector<8x128xf32>
    %cst_119 = arith.constant 1.000000e+00 : f32
    %376 = vector.broadcast %cst_119 : f32 to vector<8x128xf32>
    %377 = arith.addf %376, %375 : vector<8x128xf32>
    %378 = arith.divf %376, %377 : vector<8x128xf32>
    %379 = arith.mulf %370, %320 : vector<8x128xf32>
    %380 = arith.mulf %364, %372 : vector<8x128xf32>
    %381 = arith.addf %379, %380 : vector<8x128xf32>
    %382 = math.tanh %381 : vector<8x128xf32>
    %383 = arith.mulf %378, %382 : vector<8x128xf32>
    %384 = vector.extract_strided_slice %10 {offsets = [48, 0], sizes = [8, 512], strides = [1, 1]} : vector<64x512xf32> to vector<8x512xf32>
    %c0_120 = arith.constant 0 : index
    %c0_121 = arith.constant 0 : index
    %385 = vector.load %arg2[%c0_120, %c0_121] : memref<128x512xf32, #tpu.memory_space<vmem>>, vector<128x512xf32>
    %cst_122 = arith.constant dense<0.000000e+00> : vector<8x512xf32>
    %386 = tpu.matmul %351, %385, %cst_122 {dimension_numbers = #tpu.dot_dimension_numbers<[1], [0], [0], [1], [0, 0, 1, 1], [], []>} : vector<8x128xf32>, vector<128x512xf32>, vector<8x512xf32> -> vector<8x512xf32>
    %387 = arith.addf %384, %386 : vector<8x512xf32>
    %388 = vector.extract_strided_slice %387 {offsets = [0, 0], sizes = [8, 128], strides = [1, 1]} : vector<8x512xf32> to vector<8x128xf32>
    %389 = arith.negf %388 : vector<8x128xf32>
    %390 = math.exp %389 : vector<8x128xf32>
    %cst_123 = arith.constant 1.000000e+00 : f32
    %391 = vector.broadcast %cst_123 : f32 to vector<8x128xf32>
    %392 = arith.addf %391, %390 : vector<8x128xf32>
    %393 = arith.divf %391, %392 : vector<8x128xf32>
    %394 = vector.extract_strided_slice %387 {offsets = [0, 128], sizes = [8, 128], strides = [1, 1]} : vector<8x512xf32> to vector<8x128xf32>
    %395 = arith.negf %394 : vector<8x128xf32>
    %396 = math.exp %395 : vector<8x128xf32>
    %cst_124 = arith.constant 1.000000e+00 : f32
    %397 = vector.broadcast %cst_124 : f32 to vector<8x128xf32>
    %398 = arith.addf %397, %396 : vector<8x128xf32>
    %399 = arith.divf %397, %398 : vector<8x128xf32>
    %400 = vector.extract_strided_slice %387 {offsets = [0, 256], sizes = [8, 128], strides = [1, 1]} : vector<8x512xf32> to vector<8x128xf32>
    %401 = math.tanh %400 : vector<8x128xf32>
    %402 = vector.extract_strided_slice %387 {offsets = [0, 384], sizes = [8, 128], strides = [1, 1]} : vector<8x512xf32> to vector<8x128xf32>
    %403 = arith.negf %402 : vector<8x128xf32>
    %404 = math.exp %403 : vector<8x128xf32>
    %cst_125 = arith.constant 1.000000e+00 : f32
    %405 = vector.broadcast %cst_125 : f32 to vector<8x128xf32>
    %406 = arith.addf %405, %404 : vector<8x128xf32>
    %407 = arith.divf %405, %406 : vector<8x128xf32>
    %408 = arith.mulf %399, %349 : vector<8x128xf32>
    %409 = arith.mulf %393, %401 : vector<8x128xf32>
    %410 = arith.addf %408, %409 : vector<8x128xf32>
    %411 = math.tanh %410 : vector<8x128xf32>
    %412 = arith.mulf %407, %411 : vector<8x128xf32>
    %c0_126 = arith.constant 0 : index
    %c0_127 = arith.constant 0 : index
    %413 = vector.load %arg9[%c0_126, %c0_127] : memref<8x256xf32, #tpu.memory_space<vmem>>, vector<8x128xf32>
    tpu.vector_store %arg9[%c0_126, %c0_127], %412 {strides = array<i32>} : memref<8x256xf32, #tpu.memory_space<vmem>>, vector<8x128xf32>,
    %c0_128 = arith.constant 0 : index
    %c128_129 = arith.constant 128 : index
    %414 = vector.load %arg9[%c0_128, %c128_129] : memref<8x256xf32, #tpu.memory_space<vmem>>, vector<8x128xf32>
    tpu.vector_store %arg9[%c0_128, %c128_129], %383 {strides = array<i32>} : memref<8x256xf32, #tpu.memory_space<vmem>>, vector<8x128xf32>,
    %c0_130 = arith.constant 0 : index
    %c0_131 = arith.constant 0 : index
    %415 = vector.load %arg9[%c0_130, %c0_131] : memref<8x256xf32, #tpu.memory_space<vmem>>, vector<8x256xf32>
    %c0_132 = arith.constant 0 : index
    %c0_133 = arith.constant 0 : index
    %416 = vector.load %arg10[%c0_132, %c0_133] : memref<256x512xf32, #tpu.memory_space<vmem>>, vector<256x512xf32>
    %cst_134 = arith.constant dense<0.000000e+00> : vector<8x512xf32>
    %417 = tpu.matmul %415, %416, %cst_134 {dimension_numbers = #tpu.dot_dimension_numbers<[1], [0], [0], [1], [0, 0, 1, 1], [], []>} : vector<8x256xf32>, vector<256x512xf32>, vector<8x512xf32> -> vector<8x512xf32>
    %418 = vector.broadcast %11 : vector<1x512xf32> to vector<8x512xf32>
    %419 = arith.addf %417, %418 : vector<8x512xf32>
    %420 = vector.extract_strided_slice %419 {offsets = [0, 0], sizes = [8, 128], strides = [1, 1]} : vector<8x512xf32> to vector<8x128xf32>
    %421 = arith.negf %420 : vector<8x128xf32>
    %422 = math.exp %421 : vector<8x128xf32>
    %cst_135 = arith.constant 1.000000e+00 : f32
    %423 = vector.broadcast %cst_135 : f32 to vector<8x128xf32>
    %424 = arith.addf %423, %422 : vector<8x128xf32>
    %425 = arith.divf %423, %424 : vector<8x128xf32>
    %426 = vector.extract_strided_slice %419 {offsets = [0, 128], sizes = [8, 128], strides = [1, 1]} : vector<8x512xf32> to vector<8x128xf32>
    %427 = arith.negf %426 : vector<8x128xf32>
    %428 = math.exp %427 : vector<8x128xf32>
    %cst_136 = arith.constant 1.000000e+00 : f32
    %429 = vector.broadcast %cst_136 : f32 to vector<8x128xf32>
    %430 = arith.addf %429, %428 : vector<8x128xf32>
    %431 = arith.divf %429, %430 : vector<8x128xf32>
    %432 = vector.extract_strided_slice %419 {offsets = [0, 256], sizes = [8, 128], strides = [1, 1]} : vector<8x512xf32> to vector<8x128xf32>
    %433 = math.tanh %432 : vector<8x128xf32>
    %434 = vector.extract_strided_slice %419 {offsets = [0, 384], sizes = [8, 128], strides = [1, 1]} : vector<8x512xf32> to vector<8x128xf32>
    %435 = arith.negf %434 : vector<8x128xf32>
    %436 = math.exp %435 : vector<8x128xf32>
    %cst_137 = arith.constant 1.000000e+00 : f32
    %437 = vector.broadcast %cst_137 : f32 to vector<8x128xf32>
    %438 = arith.addf %437, %436 : vector<8x128xf32>
    %439 = arith.divf %437, %438 : vector<8x128xf32>
    %440 = arith.mulf %431, %381 : vector<8x128xf32>
    %441 = arith.mulf %425, %433 : vector<8x128xf32>
    %442 = arith.addf %440, %441 : vector<8x128xf32>
    %443 = math.tanh %442 : vector<8x128xf32>
    %444 = arith.mulf %439, %443 : vector<8x128xf32>
    %445 = vector.extract_strided_slice %10 {offsets = [56, 0], sizes = [8, 512], strides = [1, 1]} : vector<64x512xf32> to vector<8x512xf32>
    %c0_138 = arith.constant 0 : index
    %c0_139 = arith.constant 0 : index
    %446 = vector.load %arg2[%c0_138, %c0_139] : memref<128x512xf32, #tpu.memory_space<vmem>>, vector<128x512xf32>
    %cst_140 = arith.constant dense<0.000000e+00> : vector<8x512xf32>
    %447 = tpu.matmul %412, %446, %cst_140 {dimension_numbers = #tpu.dot_dimension_numbers<[1], [0], [0], [1], [0, 0, 1, 1], [], []>} : vector<8x128xf32>, vector<128x512xf32>, vector<8x512xf32> -> vector<8x512xf32>
    %448 = arith.addf %445, %447 : vector<8x512xf32>
    %449 = vector.extract_strided_slice %448 {offsets = [0, 0], sizes = [8, 128], strides = [1, 1]} : vector<8x512xf32> to vector<8x128xf32>
    %450 = arith.negf %449 : vector<8x128xf32>
    %451 = math.exp %450 : vector<8x128xf32>
    %cst_141 = arith.constant 1.000000e+00 : f32
    %452 = vector.broadcast %cst_141 : f32 to vector<8x128xf32>
    %453 = arith.addf %452, %451 : vector<8x128xf32>
    %454 = arith.divf %452, %453 : vector<8x128xf32>
    %455 = vector.extract_strided_slice %448 {offsets = [0, 128], sizes = [8, 128], strides = [1, 1]} : vector<8x512xf32> to vector<8x128xf32>
    %456 = arith.negf %455 : vector<8x128xf32>
    %457 = math.exp %456 : vector<8x128xf32>
    %cst_142 = arith.constant 1.000000e+00 : f32
    %458 = vector.broadcast %cst_142 : f32 to vector<8x128xf32>
    %459 = arith.addf %458, %457 : vector<8x128xf32>
    %460 = arith.divf %458, %459 : vector<8x128xf32>
    %461 = vector.extract_strided_slice %448 {offsets = [0, 256], sizes = [8, 128], strides = [1, 1]} : vector<8x512xf32> to vector<8x128xf32>
    %462 = math.tanh %461 : vector<8x128xf32>
    %463 = vector.extract_strided_slice %448 {offsets = [0, 384], sizes = [8, 128], strides = [1, 1]} : vector<8x512xf32> to vector<8x128xf32>
    %464 = arith.negf %463 : vector<8x128xf32>
    %465 = math.exp %464 : vector<8x128xf32>
    %cst_143 = arith.constant 1.000000e+00 : f32
    %466 = vector.broadcast %cst_143 : f32 to vector<8x128xf32>
    %467 = arith.addf %466, %465 : vector<8x128xf32>
    %468 = arith.divf %466, %467 : vector<8x128xf32>
    %469 = arith.mulf %460, %410 : vector<8x128xf32>
    %470 = arith.mulf %454, %462 : vector<8x128xf32>
    %471 = arith.addf %469, %470 : vector<8x128xf32>
    %472 = math.tanh %471 : vector<8x128xf32>
    %473 = arith.mulf %468, %472 : vector<8x128xf32>
    %c0_144 = arith.constant 0 : index
    %c0_145 = arith.constant 0 : index
    %474 = vector.load %arg9[%c0_144, %c0_145] : memref<8x256xf32, #tpu.memory_space<vmem>>, vector<8x128xf32>
    tpu.vector_store %arg9[%c0_144, %c0_145], %473 {strides = array<i32>} : memref<8x256xf32, #tpu.memory_space<vmem>>, vector<8x128xf32>,
    %c0_146 = arith.constant 0 : index
    %c128_147 = arith.constant 128 : index
    %475 = vector.load %arg9[%c0_146, %c128_147] : memref<8x256xf32, #tpu.memory_space<vmem>>, vector<8x128xf32>
    tpu.vector_store %arg9[%c0_146, %c128_147], %444 {strides = array<i32>} : memref<8x256xf32, #tpu.memory_space<vmem>>, vector<8x128xf32>,
    %c0_148 = arith.constant 0 : index
    %c0_149 = arith.constant 0 : index
    %476 = vector.load %arg9[%c0_148, %c0_149] : memref<8x256xf32, #tpu.memory_space<vmem>>, vector<8x256xf32>
    %c0_150 = arith.constant 0 : index
    %c0_151 = arith.constant 0 : index
    %477 = vector.load %arg10[%c0_150, %c0_151] : memref<256x512xf32, #tpu.memory_space<vmem>>, vector<256x512xf32>
    %cst_152 = arith.constant dense<0.000000e+00> : vector<8x512xf32>
    %478 = tpu.matmul %476, %477, %cst_152 {dimension_numbers = #tpu.dot_dimension_numbers<[1], [0], [0], [1], [0, 0, 1, 1], [], []>} : vector<8x256xf32>, vector<256x512xf32>, vector<8x512xf32> -> vector<8x512xf32>
    %479 = vector.broadcast %11 : vector<1x512xf32> to vector<8x512xf32>
    %480 = arith.addf %478, %479 : vector<8x512xf32>
    %481 = vector.extract_strided_slice %480 {offsets = [0, 0], sizes = [8, 128], strides = [1, 1]} : vector<8x512xf32> to vector<8x128xf32>
    %482 = arith.negf %481 : vector<8x128xf32>
    %483 = math.exp %482 : vector<8x128xf32>
    %cst_153 = arith.constant 1.000000e+00 : f32
    %484 = vector.broadcast %cst_153 : f32 to vector<8x128xf32>
    %485 = arith.addf %484, %483 : vector<8x128xf32>
    %486 = arith.divf %484, %485 : vector<8x128xf32>
    %487 = vector.extract_strided_slice %480 {offsets = [0, 128], sizes = [8, 128], strides = [1, 1]} : vector<8x512xf32> to vector<8x128xf32>
    %488 = arith.negf %487 : vector<8x128xf32>
    %489 = math.exp %488 : vector<8x128xf32>
    %cst_154 = arith.constant 1.000000e+00 : f32
    %490 = vector.broadcast %cst_154 : f32 to vector<8x128xf32>
    %491 = arith.addf %490, %489 : vector<8x128xf32>
    %492 = arith.divf %490, %491 : vector<8x128xf32>
    %493 = vector.extract_strided_slice %480 {offsets = [0, 256], sizes = [8, 128], strides = [1, 1]} : vector<8x512xf32> to vector<8x128xf32>
    %494 = math.tanh %493 : vector<8x128xf32>
    %495 = vector.extract_strided_slice %480 {offsets = [0, 384], sizes = [8, 128], strides = [1, 1]} : vector<8x512xf32> to vector<8x128xf32>
    %496 = arith.negf %495 : vector<8x128xf32>
    %497 = math.exp %496 : vector<8x128xf32>
    %cst_155 = arith.constant 1.000000e+00 : f32
    %498 = vector.broadcast %cst_155 : f32 to vector<8x128xf32>
    %499 = arith.addf %498, %497 : vector<8x128xf32>
    %500 = arith.divf %498, %499 : vector<8x128xf32>
    %501 = arith.mulf %492, %442 : vector<8x128xf32>
    %502 = arith.mulf %486, %494 : vector<8x128xf32>
    %503 = arith.addf %501, %502 : vector<8x128xf32>
    %504 = math.tanh %503 : vector<8x128xf32>
    %505 = arith.mulf %500, %504 : vector<8x128xf32>
    %c1_i32_156 = arith.constant 1 : i32
    %506 = tpu.memref_slice %arg12[%c1_i32_156] : memref<2x!tpu.dma_semaphore, #tpu.memory_space<semaphore_mem>> -> memref<1x!tpu.dma_semaphore, #tpu.memory_space<semaphore_mem>>
    %507 = tpu.memref_squeeze %506 : memref<1x!tpu.dma_semaphore, #tpu.memory_space<semaphore_mem>> -> memref<!tpu.dma_semaphore, #tpu.memory_space<semaphore_mem>>
    tpu.wait_dma2 semaphore(%507 : memref<!tpu.dma_semaphore, #tpu.memory_space<semaphore_mem>>) src(%arg6 : memref<128x128xf32, #tpu.memory_space<any>>) dst(%arg11 : memref<128x128xf32, #tpu.memory_space<vmem>>)
    %c0_157 = arith.constant 0 : index
    %c0_158 = arith.constant 0 : index
    %508 = vector.load %arg11[%c0_157, %c0_158] : memref<128x128xf32, #tpu.memory_space<vmem>>, vector<128x128xf32>
    %cst_159 = arith.constant dense<0.000000e+00> : vector<8x128xf32>
    %509 = tpu.matmul %505, %508, %cst_159 {dimension_numbers = #tpu.dot_dimension_numbers<[1], [0], [0], [1], [0, 0, 1, 1], [], []>} : vector<8x128xf32>, vector<128x128xf32>, vector<8x128xf32> -> vector<8x128xf32>
    %c0_160 = arith.constant 0 : index
    %c0_161 = arith.constant 0 : index
    %510 = vector.load %arg7[%c0_160, %c0_161] : memref<1x128xf32, #tpu.memory_space<vmem>>, vector<1x128xf32>
    %511 = vector.broadcast %510 : vector<1x128xf32> to vector<8x128xf32>
    %512 = arith.addf %509, %511 : vector<8x128xf32>
    %c0_162 = arith.constant 0 : index
    %c0_163 = arith.constant 0 : index
    %513 = vector.load %arg8[%c0_162, %c0_163] : memref<8x128xf32, #tpu.memory_space<vmem>>, vector<8x128xf32>
    tpu.vector_store %arg8[%c0_162, %c0_163], %512 {strides = array<i32>} : memref<8x128xf32, #tpu.memory_space<vmem>>, vector<8x128xf32>,
    return
  }
}

</mosaic_0001>

<bundles_post_ra>
// kernel: rnn_forward.1
= control target key start
LH: loop header
LB: loop body
LE: loop exit
PB: predicated region body
PF: predicated region fallthrough
CT: control target
= control target key end

     0   :  { %13 = vsyncpa [#allocation7], 0  ;;  %s8501_s0 = inlined_call_operand.vmem [shape: f32[8,8,128], index: 0, kind: input, shape index: {}]   ;;  %s8502_s1 = inlined_call_operand.hbm [shape: f32[128,512], index: 1, kind: input, shape index: {}]   ;;  %s8503_s2 = inlined_call_operand.hbm [shape: f32[128,512], index: 2, kind: input, shape index: {}]   ;;  %s8504_s3 = inlined_call_operand.vmem [shape: f32[1,512], index: 3, kind: input, shape index: {}]   ;;  %s8505_s4 = inlined_call_operand.hbm [shape: f32[256,512], index: 4, kind: input, shape index: {}]   ;;  %s8506_s5 = inlined_call_operand.vmem [shape: f32[1,512], index: 5, kind: input, shape index: {}]   ;;  %s8507_s6 = inlined_call_operand.hbm [shape: f32[128,128], index: 6, kind: input, shape index: {}]   ;;  %s8508_s7 = inlined_call_operand.vmem [shape: f32[1,128], index: 7, kind: input, shape index: {}]   ;;  %s8509_s8 = inlined_call_operand.vmem [shape: f32[8,128], index: 8, kind: output, shape index: {}]  }
   0x1   :  { %14 = vsyncpa [#allocation9], 0  ;;  %s5249_s27 = smov [#allocation6]  }
   0x2   :  { %s22_s28 = sshll.u32 %s5249_s27, 4  ;;  %s23_s28 = int_to_ptr.vmem [resolvable:$true] %s22_s28 }
   0x3   :  { %s5169_s29 = scalar_lea.vmem %s23_s28, 8192  ;;  %p5174_p1 = scmp.lt.s32.totalorder %s23_s28, %s23_s28 }
   0x4   :  { %p5170_p0 = scmp.ne.s32.totalorder %s23_s28, %s5169_s29  ;;  %p5175_p2 = scmp.lt.s32.totalorder %s5169_s29, %s5169_s29 }
   0x6   :  { %p5176_p3 = por %p5175_p2, %p5174_p1 }
   0x8   :  { %p5177_p4 = pnand %p5176_p3, %p5170_p0 }
   0xa   :  { %5180 = shalt.err (!%p5177_p4)
}
   0xb   :  { %s5250_s30 = smov 512   ;;  %s5251_s9 = smov 32  }
   0xc   :  { %28 = dma.hbm_to_vmem [thread:$0]  %s8502_s1, 8192, %s23_s28, [#allocation7], %s5250_s30, %s5250_s30, %s5251_s9  }
   0xd   :  { %s5252_s12 = smov [#allocation8]  }
   0xe   :  { %s34_s13 = sshll.u32 %s5252_s12, 4  ;;  %s35_s13 = int_to_ptr.vmem [resolvable:$true] %s34_s13 }
   0xf   :  { %s5189_s14 = scalar_lea.vmem %s35_s13, 8192  ;;  %p5194_p6 = scmp.lt.s32.totalorder %s35_s13, %s35_s13 }
  0x10   :  { %p5190_p5 = scmp.ne.s32.totalorder %s35_s13, %s5189_s14  ;;  %p5195_p7 = scmp.lt.s32.totalorder %s5189_s14, %s5189_s14 }
  0x12   :  { %p5196_p8 = por %p5195_p7, %p5194_p6 }
  0x14   :  { %p5197_p9 = pnand %p5196_p8, %p5190_p5 }
  0x16   :  { %5200 = shalt.err (!%p5197_p9)
}
  0x17   :  { %40 = dma.hbm_to_vmem [thread:$0]  %s8503_s2, 8192, %s35_s13, [#allocation9], %s5250_s30, %s5250_s30, %s5251_s9  }
  0x18   :  { %5241 = dma.done.wait [#allocation7], 8192  }
  0x19   :  { %5242 = vsyncadd [#allocation7], 4294959104 }
  0x1a   :  { %5243 = dma.done.wait [#allocation9], 8192  }
  0x1b   :  { %5244 = vsyncadd [#allocation9], 4294959104  ;;  %v8514_v0 = vmov 0.0   ;;  %v5313_v1 = vld [vmem:[%s8506_s5] sm:$0xf]  ;;  %v145_v2 = vld [vmem:[#allocation6 + $0x1e8] sm:$0xff] }
  0x1c   :  { %234 = vmatprep.mubr.f32.mxu0 %v8514_v0  ;;  %347 = vmatprep.mubr.f32.mxu1 %v8514_v0  ;;  %9017 = vst [vmem:[#allocation20_spill] sm:$0xff] %v5313_v1  ;;  %v147_v3 = vld [vmem:[#allocation6 + $0x1f8] sm:$0xff]  ;;  %v144_v4 = vld [vmem:[#allocation6 + $0x1e0] sm:$0xff]  ;;  %v146_v5 = vld [vmem:[#allocation6 + $0x1f0] sm:$0xff]  ;;  %s5255_s11 = smov [#allocation4]  }
  0x1d   :  { %170 = vmatprep.subr.mxu0 %v145_v2  ;;  %283 = vmatprep.subr.mxu1 %v147_v3  ;;  %v141_v6 = vld [vmem:[#allocation6 + $0x1c8] sm:$0xff]  ;;  %v143_v7 = vld [vmem:[#allocation6 + $0x1d8] sm:$0xff]  ;;  %v140_v8 = vld [vmem:[#allocation6 + $0x1c0] sm:$0xff]  ;;  %s72_s12 = sshll.u32 %s5255_s11, 4  ;;  %s73_s12 = int_to_ptr.vmem [resolvable:$true] %s72_s12 }
  0x1e   :  { %171 = vmatpush1.msra.mxu0 %v144_v4  ;;  %284 = vmatpush1.msra.mxu1 %v146_v5  ;;  %v142_v9 = vld [vmem:[#allocation6 + $0x1d0] sm:$0xff]  ;;  %v137_v10 = vld [vmem:[#allocation6 + $0x1a8] sm:$0xff]  ;;  %v139_v11 = vld [vmem:[#allocation6 + $0x1b8] sm:$0xff] }
  0x1f   :  { %172 = vmatprep.subr.mxu0 %v141_v6  ;;  %285 = vmatprep.subr.mxu1 %v143_v7  ;;  %v136_v12 = vld [vmem:[#allocation6 + $0x1a0] sm:$0xff]  ;;  %v138_v13 = vld [vmem:[#allocation6 + $0x1b0] sm:$0xff]  ;;  %v133_v14 = vld [vmem:[#allocation6 + $0x188] sm:$0xff] }
  0x20   :  { %173 = vmatpush1.msra.mxu0 %v140_v8  ;;  %286 = vmatpush1.msra.mxu1 %v142_v9  ;;  %v135_v15 = vld [vmem:[#allocation6 + $0x198] sm:$0xff]  ;;  %v132_v16 = vld [vmem:[#allocation6 + $0x180] sm:$0xff]  ;;  %v134_v17 = vld [vmem:[#allocation6 + $0x190] sm:$0xff] }
  0x21   :  { %174 = vmatprep.subr.mxu0 %v137_v10  ;;  %287 = vmatprep.subr.mxu1 %v139_v11  ;;  %v129_v18 = vld [vmem:[#allocation6 + $0x168] sm:$0xff]  ;;  %v131_v19 = vld [vmem:[#allocation6 + $0x178] sm:$0xff]  ;;  %v128_v20 = vld [vmem:[#allocation6 + $0x160] sm:$0xff] }
  0x22   :  { %175 = vmatpush1.msra.mxu0 %v136_v12  ;;  %288 = vmatpush1.msra.mxu1 %v138_v13  ;;  %v130_v21 = vld [vmem:[#allocation6 + $0x170] sm:$0xff]  ;;  %v125_v22 = vld [vmem:[#allocation6 + $0x148] sm:$0xff]  ;;  %v127_v23 = vld [vmem:[#allocation6 + $0x158] sm:$0xff] }
  0x23   :  { %176 = vmatprep.subr.mxu0 %v133_v14  ;;  %289 = vmatprep.subr.mxu1 %v135_v15  ;;  %v124_v24 = vld [vmem:[#allocation6 + $0x140] sm:$0xff]  ;;  %v126_v25 = vld [vmem:[#allocation6 + $0x150] sm:$0xff]  ;;  %v121_v26 = vld [vmem:[#allocation6 + $0x128] sm:$0xff] }
  0x24   :  { %177 = vmatpush1.msra.mxu0 %v132_v16  ;;  %290 = vmatpush1.msra.mxu1 %v134_v17  ;;  %v123_v27 = vld [vmem:[#allocation6 + $0x138] sm:$0xff]  ;;  %v120_v28 = vld [vmem:[#allocation6 + $0x120] sm:$0xff]  ;;  %v122_v29 = vld [vmem:[#allocation6 + $0x130] sm:$0xff] }
  0x25   :  { %178 = vmatprep.subr.mxu0 %v129_v18  ;;  %291 = vmatprep.subr.mxu1 %v131_v19  ;;  %v117_v30 = vld [vmem:[#allocation6 + $0x108] sm:$0xff]  ;;  %v119_v31 = vld [vmem:[#allocation6 + $0x118] sm:$0xff]  ;;  %v116_v32 = vld [vmem:[#allocation6 + $0x100] sm:$0xff] }
  0x26   :  { %179 = vmatpush1.msra.mxu0 %v128_v20  ;;  %292 = vmatpush1.msra.mxu1 %v130_v21  ;;  %v118_v33 = vld [vmem:[#allocation6 + $0x110] sm:$0xff]  ;;  %v113_v34 = vld [vmem:[#allocation6 + $0xe8] sm:$0xff]  ;;  %v115_v35 = vld [vmem:[#allocation6 + $0xf8] sm:$0xff] }
  0x27   :  { %180 = vmatprep.subr.mxu0 %v125_v22  ;;  %293 = vmatprep.subr.mxu1 %v127_v23  ;;  %v112_v36 = vld [vmem:[#allocation6 + $0xe0] sm:$0xff]  ;;  %v114_v37 = vld [vmem:[#allocation6 + $0xf0] sm:$0xff]  ;;  %v109_v38 = vld [vmem:[#allocation6 + $0xc8] sm:$0xff] }
  0x28   :  { %181 = vmatpush1.msra.mxu0 %v124_v24  ;;  %294 = vmatpush1.msra.mxu1 %v126_v25  ;;  %v111_v39 = vld [vmem:[#allocation6 + $0xd8] sm:$0xff]  ;;  %v108_v40 = vld [vmem:[#allocation6 + $0xc0] sm:$0xff]  ;;  %v110_v41 = vld [vmem:[#allocation6 + $0xd0] sm:$0xff] }
  0x29   :  { %182 = vmatprep.subr.mxu0 %v121_v26  ;;  %295 = vmatprep.subr.mxu1 %v123_v27  ;;  %v105_v42 = vld [vmem:[#allocation6 + $0xa8] sm:$0xff]  ;;  %v107_v43 = vld [vmem:[#allocation6 + $0xb8] sm:$0xff]  ;;  %v104_v44 = vld [vmem:[#allocation6 + $0xa0] sm:$0xff] }
  0x2a   :  { %183 = vmatpush1.msra.mxu0 %v120_v28  ;;  %296 = vmatpush1.msra.mxu1 %v122_v29  ;;  %v106_v45 = vld [vmem:[#allocation6 + $0xb0] sm:$0xff]  ;;  %v101_v46 = vld [vmem:[#allocation6 + $0x88] sm:$0xff]  ;;  %v103_v47 = vld [vmem:[#allocation6 + $0x98] sm:$0xff] }
  0x2b   :  { %184 = vmatprep.subr.mxu0 %v117_v30  ;;  %297 = vmatprep.subr.mxu1 %v119_v31  ;;  %v100_v48 = vld [vmem:[#allocation6 + $0x80] sm:$0xff]  ;;  %v102_v49 = vld [vmem:[#allocation6 + $0x90] sm:$0xff]  ;;  %v97_v50 = vld [vmem:[#allocation6 + $0x68] sm:$0xff] }
  0x2c   :  { %185 = vmatpush1.msra.mxu0 %v116_v32  ;;  %298 = vmatpush1.msra.mxu1 %v118_v33  ;;  %v99_v51 = vld [vmem:[#allocation6 + $0x78] sm:$0xff]  ;;  %v96_v52 = vld [vmem:[#allocation6 + $0x60] sm:$0xff]  ;;  %v98_v53 = vld [vmem:[#allocation6 + $0x70] sm:$0xff] }
  0x2d   :  { %186 = vmatprep.subr.mxu0 %v113_v34  ;;  %299 = vmatprep.subr.mxu1 %v115_v35  ;;  %v93_v54 = vld [vmem:[#allocation6 + $0x48] sm:$0xff]  ;;  %v95_v55 = vld [vmem:[#allocation6 + $0x58] sm:$0xff]  ;;  %v92_v56 = vld [vmem:[#allocation6 + $0x40] sm:$0xff] }
  0x2e   :  { %187 = vmatpush1.msra.mxu0 %v112_v36  ;;  %300 = vmatpush1.msra.mxu1 %v114_v37  ;;  %v94_v57 = vld [vmem:[#allocation6 + $0x50] sm:$0xff]  ;;  %v89_v58 = vld [vmem:[#allocation6 + $0x28] sm:$0xff]  ;;  %v91_v59 = vld [vmem:[#allocation6 + $0x38] sm:$0xff] }
  0x2f   :  { %188 = vmatprep.subr.mxu0 %v109_v38  ;;  %301 = vmatprep.subr.mxu1 %v111_v39  ;;  %v88_v60 = vld [vmem:[#allocation6 + $0x20] sm:$0xff]  ;;  %v90_v61 = vld [vmem:[#allocation6 + $0x30] sm:$0xff]  ;;  %v85_v62 = vld [vmem:[#allocation6 + $0x8] sm:$0xff] }
  0x30   :  { %189 = vmatpush1.msra.mxu0 %v108_v40  ;;  %302 = vmatpush1.msra.mxu1 %v110_v41  ;;  %v87_v63 = vld [vmem:[#allocation6 + $0x18] sm:$0xff]  ;;  %v84_v2 = vld [vmem:[#allocation6] sm:$0xff]  ;;  %v86_v3 = vld [vmem:[#allocation6 + $0x10] sm:$0xff] }
  0x31   :  { %190 = vmatprep.subr.mxu0 %v105_v42  ;;  %303 = vmatprep.subr.mxu1 %v107_v43  ;;  %v76_v4 = vld [vmem:[%s8501_s0] sm:$0xff]  ;;  %v458_v5 = vld [vmem:[#allocation8 + $0x1e8] sm:$0xff]  ;;  %v460_v6 = vld [vmem:[#allocation8 + $0x1f8] sm:$0xff] }
  0x32   :  { %191 = vmatpush1.msra.mxu0 %v104_v44  ;;  %304 = vmatpush1.msra.mxu1 %v106_v45  ;;  %v457_v7 = vld [vmem:[#allocation8 + $0x1e0] sm:$0xff]  ;;  %v459_v8 = vld [vmem:[#allocation8 + $0x1f0] sm:$0xff]  ;;  %v454_v9 = vld [vmem:[#allocation8 + $0x1c8] sm:$0xff] }
  0x33   :  { %192 = vmatprep.subr.mxu0 %v101_v46  ;;  %305 = vmatprep.subr.mxu1 %v103_v47  ;;  %v456_v10 = vld [vmem:[#allocation8 + $0x1d8] sm:$0xff]  ;;  %v453_v11 = vld [vmem:[#allocation8 + $0x1c0] sm:$0xff]  ;;  %v455_v12 = vld [vmem:[#allocation8 + $0x1d0] sm:$0xff] }
  0x34   :  { %193 = vmatpush1.msra.mxu0 %v100_v48  ;;  %306 = vmatpush1.msra.mxu1 %v102_v49  ;;  %v77_v13 = vld [vmem:[%s8501_s0 + $0x8] sm:$0xff]  ;;  %v452_v15 = vld [vmem:[#allocation8 + $0x1b8] sm:$0xff]  ;;  %v449_v16 = vld [vmem:[#allocation8 + $0x1a0] sm:$0xff] }
  0x35   :  { %194 = vmatprep.subr.mxu0 %v97_v50  ;;  %307 = vmatprep.subr.mxu1 %v99_v51  ;;  %v450_v14 = vld [vmem:[#allocation8 + $0x1a8] sm:$0xff]  ;;  %v451_v17 = vld [vmem:[#allocation8 + $0x1b0] sm:$0xff]  ;;  %v448_v19 = vld [vmem:[#allocation8 + $0x198] sm:$0xff] }
  0x36   :  { %195 = vmatpush1.msra.mxu0 %v96_v52  ;;  %308 = vmatpush1.msra.mxu1 %v98_v53  ;;  %v446_v18 = vld [vmem:[#allocation8 + $0x188] sm:$0xff]  ;;  %v445_v20 = vld [vmem:[#allocation8 + $0x180] sm:$0xff]  ;;  %v447_v21 = vld [vmem:[#allocation8 + $0x190] sm:$0xff] }
  0x37   :  { %196 = vmatprep.subr.mxu0 %v93_v54  ;;  %309 = vmatprep.subr.mxu1 %v95_v55  ;;  %v78_v22 = vld [vmem:[%s8501_s0 + $0x10] sm:$0xff]  ;;  %v442_v23 = vld [vmem:[#allocation8 + $0x168] sm:$0xff]  ;;  %v444_v24 = vld [vmem:[#allocation8 + $0x178] sm:$0xff] }
  0x38   :  { %197 = vmatpush1.msra.mxu0 %v92_v56  ;;  %310 = vmatpush1.msra.mxu1 %v94_v57  ;;  %v441_v25 = vld [vmem:[#allocation8 + $0x160] sm:$0xff]  ;;  %v443_v26 = vld [vmem:[#allocation8 + $0x170] sm:$0xff]  ;;  %v438_v27 = vld [vmem:[#allocation8 + $0x148] sm:$0xff] }
  0x39   :  { %198 = vmatprep.subr.mxu0 %v89_v58  ;;  %311 = vmatprep.subr.mxu1 %v91_v59  ;;  %v440_v28 = vld [vmem:[#allocation8 + $0x158] sm:$0xff]  ;;  %v437_v29 = vld [vmem:[#allocation8 + $0x140] sm:$0xff]  ;;  %v439_v30 = vld [vmem:[#allocation8 + $0x150] sm:$0xff] }
  0x3a   :  { %199 = vmatpush1.msra.mxu0 %v88_v60  ;;  %312 = vmatpush1.msra.mxu1 %v90_v61  ;;  %v79_v31 = vld [vmem:[%s8501_s0 + $0x18] sm:$0xff]  ;;  %v434_v32 = vld [vmem:[#allocation8 + $0x128] sm:$0xff]  ;;  %v433_v34 = vld [vmem:[#allocation8 + $0x120] sm:$0xff] }
  0x3b   :  { %200 = vmatprep.subr.mxu0 %v85_v62  ;;  %313 = vmatprep.subr.mxu1 %v87_v63  ;;  %v436_v33 = vld [vmem:[#allocation8 + $0x138] sm:$0xff]  ;;  %v435_v35 = vld [vmem:[#allocation8 + $0x130] sm:$0xff]  ;;  %v430_v36 = vld [vmem:[#allocation8 + $0x108] sm:$0xff] }
  0x3c   :  { %201 = vmatpush1.msra.mxu0 %v84_v2  ;;  %314 = vmatpush1.msra.mxu1 %v86_v3  ;;  %v432_v37 = vld [vmem:[#allocation8 + $0x118] sm:$0xff]  ;;  %v429_v38 = vld [vmem:[#allocation8 + $0x100] sm:$0xff]  ;;  %v431_v39 = vld [vmem:[#allocation8 + $0x110] sm:$0xff] }
  0x3d   :  { %235 = vmatmul.mubr.f32.vlgmr.msra.gmra.mxu0 %v76_v4  ;;  %348 = vmatmul.mubr.f32.vlgmr.msra.gmra.mxu1 %v76_v4  ;;  %v80_v40 = vld [vmem:[%s8501_s0 + $0x20] sm:$0xff]  ;;  %v426_v41 = vld [vmem:[#allocation8 + $0xe8] sm:$0xff]  ;;  %v428_v42 = vld [vmem:[#allocation8 + $0xf8] sm:$0xff] }
  0x3e   :  { %461 = vmatprep.subr.mxu0 %v458_v5  ;;  %532 = vmatprep.subr.mxu1 %v460_v6  ;;  %v425_v43 = vld [vmem:[#allocation8 + $0xe0] sm:$0xff]  ;;  %v427_v44 = vld [vmem:[#allocation8 + $0xf0] sm:$0xff]  ;;  %v422_v45 = vld [vmem:[#allocation8 + $0xc8] sm:$0xff] }
  0x3f   :  { %462 = vmatpush1.msra.mxu0 %v457_v7  ;;  %533 = vmatpush1.msra.mxu1 %v459_v8  ;;  %v424_v46 = vld [vmem:[#allocation8 + $0xd8] sm:$0xff]  ;;  %v421_v47 = vld [vmem:[#allocation8 + $0xc0] sm:$0xff]  ;;  %v423_v48 = vld [vmem:[#allocation8 + $0xd0] sm:$0xff] }
  0x40   :  { %463 = vmatprep.subr.mxu0 %v454_v9  ;;  %534 = vmatprep.subr.mxu1 %v456_v10  ;;  %v81_v49 = vld [vmem:[%s8501_s0 + $0x28] sm:$0xff]  ;;  %v420_v51 = vld [vmem:[#allocation8 + $0xb8] sm:$0xff]  ;;  %v417_v52 = vld [vmem:[#allocation8 + $0xa0] sm:$0xff] }
  0x41   :  { %240 = vmatprep.mubr.f32.mxu0 %v8514_v0  ;;  %353 = vmatprep.mubr.f32.mxu1 %v8514_v0  ;;  %v418_v50 = vld [vmem:[#allocation8 + $0xa8] sm:$0xff]  ;;  %v419_v53 = vld [vmem:[#allocation8 + $0xb0] sm:$0xff]  ;;  %v416_v55 = vld [vmem:[#allocation8 + $0x98] sm:$0xff] }
  0x42   :  { %464 = vmatpush1.msra.mxu0 %v453_v11  ;;  %535 = vmatpush1.msra.mxu1 %v455_v12  ;;  %v414_v54 = vld [vmem:[#allocation8 + $0x88] sm:$0xff]  ;;  %v413_v56 = vld [vmem:[#allocation8 + $0x80] sm:$0xff]  ;;  %v415_v57 = vld [vmem:[#allocation8 + $0x90] sm:$0xff] }
  0x43   :  { %241 = vmatmul.mubr.f32.gmra.mxu0 %v77_v13  ;;  %354 = vmatmul.mubr.f32.gmra.mxu1 %v77_v13  ;;  %v82_v58 = vld [vmem:[%s8501_s0 + $0x30] sm:$0xff]  ;;  %v410_v59 = vld [vmem:[#allocation8 + $0x68] sm:$0xff]  ;;  %v412_v60 = vld [vmem:[#allocation8 + $0x78] sm:$0xff] }
  0x44   :  { %465 = vmatprep.subr.mxu0 %v450_v14  ;;  %536 = vmatprep.subr.mxu1 %v452_v15  ;;  %v409_v61 = vld [vmem:[#allocation8 + $0x60] sm:$0xff]  ;;  %v411_v62 = vld [vmem:[#allocation8 + $0x70] sm:$0xff]  ;;  %v406_v63 = vld [vmem:[#allocation8 + $0x48] sm:$0xff] }
  0x45   :  { %466 = vmatpush1.msra.mxu0 %v449_v16  ;;  %537 = vmatpush1.msra.mxu1 %v451_v17  ;;  %v408_v2 = vld [vmem:[#allocation8 + $0x58] sm:$0xff]  ;;  %v405_v3 = vld [vmem:[#allocation8 + $0x40] sm:$0xff]  ;;  %v407_v4 = vld [vmem:[#allocation8 + $0x50] sm:$0xff] }
  0x46   :  { %467 = vmatprep.subr.mxu0 %v446_v18  ;;  %538 = vmatprep.subr.mxu1 %v448_v19  ;;  %v83_v5 = vld [vmem:[%s8501_s0 + $0x38] sm:$0xff]  ;;  %v402_v6 = vld [vmem:[#allocation8 + $0x28] sm:$0xff]  ;;  %v401_v8 = vld [vmem:[#allocation8 + $0x20] sm:$0xff]  ;;  %s5254_s0 = smov [#allocation3]  }
  0x47   :  { %246 = vmatprep.mubr.f32.mxu0 %v8514_v0  ;;  %359 = vmatprep.mubr.f32.mxu1 %v8514_v0  ;;  %v404_v7 = vld [vmem:[#allocation8 + $0x38] sm:$0xff]  ;;  %v403_v9 = vld [vmem:[#allocation8 + $0x30] sm:$0xff]  ;;  %v398_v10 = vld [vmem:[#allocation8 + $0x8] sm:$0xff]  ;;  %s60_s10 = sshll.u32 %s5254_s0, 4  ;;  %s61_s10 = int_to_ptr.vmem [resolvable:$true] %s60_s10 }
  0x48   :  { %468 = vmatpush1.msra.mxu0 %v445_v20  ;;  %539 = vmatpush1.msra.mxu1 %v447_v21  ;;  %v400_v11 = vld [vmem:[#allocation8 + $0x18] sm:$0xff]  ;;  %v397_v12 = vld [vmem:[#allocation8] sm:$0xff]  ;;  %v399_v13 = vld [vmem:[#allocation8 + $0x10] sm:$0xff]  ;;  %s5209_s13 = scalar_lea.vmem %s61_s10, 16384  ;;  %p5214_p11 = scmp.lt.s32.totalorder %s61_s10, %s61_s10 }
  0x49   :  { %247 = vmatmul.mubr.f32.gmra.mxu0 %v78_v22  ;;  %360 = vmatmul.mubr.f32.gmra.mxu1 %v78_v22  ;;  %p5210_p10 = scmp.ne.s32.totalorder %s61_s10, %s5209_s13  ;;  %p5215_p12 = scmp.lt.s32.totalorder %s5209_s13, %s5209_s13 }
  0x4a   :  { %469 = vmatprep.subr.mxu0 %v442_v23  ;;  %540 = vmatprep.subr.mxu1 %v444_v24 }
  0x4b   :  { %470 = vmatpush1.msra.mxu0 %v441_v25  ;;  %541 = vmatpush1.msra.mxu1 %v443_v26  ;;  %p5216_p13 = por %p5215_p12, %p5214_p11 }
  0x4c   :  { %471 = vmatprep.subr.mxu0 %v438_v27  ;;  %542 = vmatprep.subr.mxu1 %v440_v28 }
  0x4d   :  { %252 = vmatprep.mubr.f32.mxu0 %v8514_v0  ;;  %365 = vmatprep.mubr.f32.mxu1 %v8514_v0  ;;  %p5217_p0 = pnand %p5216_p13, %p5210_p10 }
  0x4e   :  { %472 = vmatpush1.msra.mxu0 %v437_v29  ;;  %543 = vmatpush1.msra.mxu1 %v439_v30 }
  0x4f   :  { %253 = vmatmul.mubr.f32.gmra.mxu0 %v79_v31  ;;  %366 = vmatmul.mubr.f32.gmra.mxu1 %v79_v31 }
  0x50   :  { %473 = vmatprep.subr.mxu0 %v434_v32  ;;  %544 = vmatprep.subr.mxu1 %v436_v33 }
  0x51   :  { %474 = vmatpush1.msra.mxu0 %v433_v34  ;;  %545 = vmatpush1.msra.mxu1 %v435_v35 }
  0x52   :  { %475 = vmatprep.subr.mxu0 %v430_v36  ;;  %546 = vmatprep.subr.mxu1 %v432_v37 }
  0x53   :  { %258 = vmatprep.mubr.f32.mxu0 %v8514_v0  ;;  %371 = vmatprep.mubr.f32.mxu1 %v8514_v0 }
  0x54   :  { %476 = vmatpush1.msra.mxu0 %v429_v38  ;;  %547 = vmatpush1.msra.mxu1 %v431_v39 }
  0x55   :  { %259 = vmatmul.mubr.f32.gmra.mxu0 %v80_v40  ;;  %372 = vmatmul.mubr.f32.gmra.mxu1 %v80_v40 }
  0x56   :  { %477 = vmatprep.subr.mxu0 %v426_v41  ;;  %548 = vmatprep.subr.mxu1 %v428_v42 }
  0x57   :  { %478 = vmatpush1.msra.mxu0 %v425_v43  ;;  %549 = vmatpush1.msra.mxu1 %v427_v44 }
  0x58   :  { %479 = vmatprep.subr.mxu0 %v422_v45  ;;  %550 = vmatprep.subr.mxu1 %v424_v46 }
  0x59   :  { %264 = vmatprep.mubr.f32.mxu0 %v8514_v0  ;;  %377 = vmatprep.mubr.f32.mxu1 %v8514_v0 }
  0x5a   :  { %480 = vmatpush1.msra.mxu0 %v421_v47  ;;  %551 = vmatpush1.msra.mxu1 %v423_v48 }
  0x5b   :  { %265 = vmatmul.mubr.f32.gmra.mxu0 %v81_v49  ;;  %378 = vmatmul.mubr.f32.gmra.mxu1 %v81_v49 }
  0x5c   :  { %481 = vmatprep.subr.mxu0 %v418_v50  ;;  %552 = vmatprep.subr.mxu1 %v420_v51 }
  0x5d   :  { %482 = vmatpush1.msra.mxu0 %v417_v52  ;;  %553 = vmatpush1.msra.mxu1 %v419_v53 }
  0x5e   :  { %483 = vmatprep.subr.mxu0 %v414_v54  ;;  %554 = vmatprep.subr.mxu1 %v416_v55 }
  0x5f   :  { %270 = vmatprep.mubr.f32.mxu0 %v8514_v0  ;;  %383 = vmatprep.mubr.f32.mxu1 %v8514_v0 }
  0x60   :  { %484 = vmatpush1.msra.mxu0 %v413_v56  ;;  %555 = vmatpush1.msra.mxu1 %v415_v57 }
  0x61   :  { %271 = vmatmul.mubr.f32.gmra.mxu0 %v82_v58  ;;  %384 = vmatmul.mubr.f32.gmra.mxu1 %v82_v58 }
  0x62   :  { %485 = vmatprep.subr.mxu0 %v410_v59  ;;  %556 = vmatprep.subr.mxu1 %v412_v60 }
  0x63   :  { %486 = vmatpush1.msra.mxu0 %v409_v61  ;;  %557 = vmatpush1.msra.mxu1 %v411_v62 }
  0x64   :  { %487 = vmatprep.subr.mxu0 %v406_v63  ;;  %558 = vmatprep.subr.mxu1 %v408_v2 }
  0x65   :  { %276 = vmatprep.mubr.f32.mxu0 %v8514_v0  ;;  %389 = vmatprep.mubr.f32.mxu1 %v8514_v0 }
  0x66   :  { %488 = vmatpush1.msra.mxu0 %v405_v3  ;;  %559 = vmatpush1.msra.mxu1 %v407_v4 }
  0x67   :  { %277 = vmatmul.mubr.f32.gmra.mxu0 %v83_v5  ;;  %390 = vmatmul.mubr.f32.gmra.mxu1 %v83_v5 }
  0x68   :  { %489 = vmatprep.subr.mxu0 %v402_v6  ;;  %560 = vmatprep.subr.mxu1 %v404_v7 }
  0x69   :  { %490 = vmatpush1.msra.mxu0 %v401_v8  ;;  %561 = vmatpush1.msra.mxu1 %v403_v9 }
  0x6a   :  { %491 = vmatprep.subr.mxu0 %v398_v10  ;;  %562 = vmatprep.subr.mxu1 %v400_v11 }
  0x6b   :  { %492 = vmatpush1.msra.mxu0 %v397_v12  ;;  %525 = vmatprep.mubr.f32.mxu0 %v8514_v0 }
  0x6c   :  { %563 = vmatpush1.msra.mxu1 %v399_v13  ;;  %596 = vmatprep.mubr.f32.mxu1 %v8514_v0 }
  0x6d   :  { %526 = vmatmul.mubr.f32.vlgmr.msra.gmra.mxu0 %v8514_v0  ;;  %597 = vmatmul.mubr.f32.vlgmr.msra.gmra.mxu1 %v8514_v0 }
  0x6e   :  { %5220 = shalt.err (!%p5217_p0)  }
  0x6f   :  { %63 = dma.hbm_to_vmem [thread:$0]  %s8505_s4, 16384, %s61_s10, [#allocation5] }
  0x70   :  { %s5229_s16 = scalar_lea.vmem %s73_s12, 2048  ;;  %p5234_p2 = scmp.lt.s32.totalorder %s73_s12, %s73_s12 }
  0x71   :  { %p5230_p1 = scmp.ne.s32.totalorder %s73_s12, %s5229_s16  ;;  %p5235_p3 = scmp.lt.s32.totalorder %s5229_s16, %s5229_s16 }
  0x73   :  { %p5236_p4 = por %p5235_p3, %p5234_p2 }
  0x75   :  { %p5237_p5 = pnand %p5236_p4, %p5230_p1 }
  0x77   :  { %5240 = shalt.err (!%p5237_p5)  }
  0x78   :  { %75 = dma.hbm_to_vmem [thread:$0]  %s8507_s6, 2048, %s73_s12, [#allocation5 + $0x1]  ;;  %v150_v14 = vlaneseq  ;;  %v148_v20 = vld [vmem:[%s8504_s3] sm:$0xf] }
  0x7a   :  { %v5363_v15 = vshrl.u32 %v150_v14, 7 }
  0x7c   :  { %9018 = vst [vmem:[#allocation21_spill] sm:$0xff] %v5363_v15  ;;  %v8513_v18 = vsub.s32 0, %v5363_v15  ;;  %v8510_v19 = vsub.s32 2, %v5363_v15  ;;  %v8512_v23 = vsub.s32 1, %v5363_v15  ;;  %v8511_v24 = vsub.s32 3, %v5363_v15 }
  0x7e   :  { %v153_v25 = vrot.slane %v148_v20, %v8513_v18  ;;  %v5384_v26 = vrot.slane %v148_v20, %v8510_v19  ;;  %v157_v29 = vrot.slane %v148_v20, %v8512_v23  ;;  %v5390_v30 = vrot.slane %v148_v20, %v8511_v24 }
  0xfd   :  { %v5365_v16 = vpop.f32.mrf.mxu0  ;;  %v5367_v17 = vpop.f32.mrf.mxu1 }
  0xff   :  { %v5374_v21 = vpop.f32.mrf.mxu0  ;;  %v5376_v22 = vpop.f32.mrf.mxu1 }
 0x103   :  { %v242_v27 = vpop.f32.mrf.mxu0  ;;  %v355_v28 = vpop.f32.mrf.mxu1 }
 0x104   :  { %v5392_v31 = vadd.f32 %v242_v27, %v153_v25  ;;  %v5395_v32 = vadd.f32 %v355_v28, %v5384_v26 }
 0x105   :  { %v244_v33 = vpop.f32.mrf.mxu0  ;;  %v357_v34 = vpop.f32.mrf.mxu1 }
 0x106   :  { %9019 = vst [vmem:[#allocation22_spill] sm:$0xff] %v5392_v31  ;;  %9020 = vst [vmem:[#allocation23_spill] sm:$0xff] %v5395_v32  ;;  %v5397_v35 = vadd.f32 %v244_v33, %v157_v29  ;;  %v5400_v36 = vadd.f32 %v357_v34, %v5390_v30 }
 0x108   :  { %9021 = vst [vmem:[#allocation24_spill] sm:$0xff] %v5397_v35  ;;  %9022 = vst [vmem:[#allocation25_spill] sm:$0xff] %v5400_v36 }
 0x109   :  { %v248_v37 = vpop.f32.mrf.mxu0  ;;  %v361_v38 = vpop.f32.mrf.mxu1 }
 0x10a   :  { %v5402_v39 = vadd.f32 %v248_v37, %v153_v25  ;;  %v5405_v40 = vadd.f32 %v361_v38, %v5384_v26 }
 0x10b   :  { %v250_v41 = vpop.f32.mrf.mxu0  ;;  %v363_v42 = vpop.f32.mrf.mxu1 }
 0x10c   :  { %9023 = vst [vmem:[#allocation26_spill] sm:$0xff] %v5402_v39  ;;  %9024 = vst [vmem:[#allocation27_spill] sm:$0xff] %v5405_v40  ;;  %v5407_v43 = vadd.f32 %v250_v41, %v157_v29  ;;  %v5410_v44 = vadd.f32 %v363_v42, %v5390_v30  ;;  %v237_v42 = vadd.f32 %v5365_v16, %v153_v25 }
 0x10e   :  { %9025 = vst [vmem:[#allocation28_spill] sm:$0xff] %v5407_v43  ;;  %9026 = vst [vmem:[#allocation29_spill] sm:$0xff] %v5410_v44 }
 0x10f   :  { %v254_v45 = vpop.f32.mrf.mxu0  ;;  %v367_v46 = vpop.f32.mrf.mxu1 }
 0x110   :  { %v5412_v47 = vadd.f32 %v254_v45, %v153_v25  ;;  %v5415_v48 = vadd.f32 %v367_v46, %v5384_v26  ;;  %v239_v46 = vadd.f32 %v5374_v21, %v157_v29 }
 0x111   :  { %v256_v49 = vpop.f32.mrf.mxu0  ;;  %v369_v50 = vpop.f32.mrf.mxu1 }
 0x112   :  { %9027 = vst [vmem:[#allocation30_spill] sm:$0xff] %v5412_v47  ;;  %9028 = vst [vmem:[#allocation31_spill] sm:$0xff] %v5415_v48  ;;  %v5417_v51 = vadd.f32 %v256_v49, %v157_v29  ;;  %v5420_v52 = vadd.f32 %v369_v50, %v5390_v30 }
 0x114   :  { %9029 = vst [vmem:[#allocation32_spill] sm:$0xff] %v5417_v51  ;;  %9030 = vst [vmem:[#allocation33_spill] sm:$0xff] %v5420_v52 }
 0x115   :  { %v260_v53 = vpop.f32.mrf.mxu0  ;;  %v373_v54 = vpop.f32.mrf.mxu1 }
 0x116   :  { %v5422_v55 = vadd.f32 %v260_v53, %v153_v25  ;;  %v5425_v56 = vadd.f32 %v373_v54, %v5384_v26 }
 0x117   :  { %v262_v57 = vpop.f32.mrf.mxu0  ;;  %v375_v58 = vpop.f32.mrf.mxu1 }
 0x118   :  { %9031 = vst [vmem:[#allocation34_spill] sm:$0xff] %v5422_v55  ;;  %9032 = vst [vmem:[#allocation35_spill] sm:$0xff] %v5425_v56  ;;  %v5427_v59 = vadd.f32 %v262_v57, %v157_v29  ;;  %v5430_v60 = vadd.f32 %v375_v58, %v5390_v30 }
 0x11a   :  { %9033 = vst [vmem:[#allocation36_spill] sm:$0xff] %v5427_v59  ;;  %9034 = vst [vmem:[#allocation37_spill] sm:$0xff] %v5430_v60 }
 0x11b   :  { %v266_v61 = vpop.f32.mrf.mxu0  ;;  %v379_v62 = vpop.f32.mrf.mxu1 }
 0x11c   :  { %v5432_v63 = vadd.f32 %v266_v61, %v153_v25  ;;  %v5435_v2 = vadd.f32 %v379_v62, %v5384_v26  ;;  %v352_v62 = vadd.f32 %v5376_v22, %v5390_v30 }
 0x11d   :  { %v268_v3 = vpop.f32.mrf.mxu0  ;;  %v381_v4 = vpop.f32.mrf.mxu1 }
 0x11e   :  { %9035 = vst [vmem:[#allocation38_spill] sm:$0xff] %v5432_v63  ;;  %9036 = vst [vmem:[#allocation39_spill] sm:$0xff] %v5435_v2  ;;  %v5437_v5 = vadd.f32 %v268_v3, %v157_v29  ;;  %v5440_v6 = vadd.f32 %v381_v4, %v5390_v30  ;;  %v350_v4 = vadd.f32 %v5367_v17, %v5384_v26 }
 0x120   :  { %9037 = vst [vmem:[#allocation40_spill] sm:$0xff] %v5437_v5  ;;  %9038 = vst [vmem:[#allocation41_spill] sm:$0xff] %v5440_v6 }
 0x121   :  { %v272_v7 = vpop.f32.mrf.mxu0  ;;  %v385_v8 = vpop.f32.mrf.mxu1 }
 0x122   :  { %v5442_v9 = vadd.f32 %v272_v7, %v153_v25  ;;  %v5445_v10 = vadd.f32 %v385_v8, %v5384_v26 }
 0x123   :  { %v274_v11 = vpop.f32.mrf.mxu0  ;;  %v387_v12 = vpop.f32.mrf.mxu1 }
 0x124   :  { %9039 = vst [vmem:[#allocation42_spill] sm:$0xff] %v5442_v9  ;;  %9040 = vst [vmem:[#allocation43_spill] sm:$0xff] %v5445_v10  ;;  %v5447_v13 = vadd.f32 %v274_v11, %v157_v29  ;;  %v5450_v14 = vadd.f32 %v387_v12, %v5390_v30 }
 0x126   :  { %9041 = vst [vmem:[#allocation44_spill] sm:$0xff] %v5447_v13  ;;  %9042 = vst [vmem:[#allocation45_spill] sm:$0xff] %v5450_v14 }
 0x127   :  { %v278_v20 = vpop.f32.mrf.mxu0  ;;  %v391_v27 = vpop.f32.mrf.mxu1 }
 0x128   :  { %v5452_v28 = vadd.f32 %v278_v20, %v153_v25  ;;  %v5455_v33 = vadd.f32 %v391_v27, %v5384_v26 }
 0x129   :  { %v280_v34 = vpop.f32.mrf.mxu0  ;;  %v393_v37 = vpop.f32.mrf.mxu1 }
 0x12a   :  { %9043 = vst [vmem:[#allocation46_spill] sm:$0xff] %v5452_v28  ;;  %9044 = vst [vmem:[#allocation47_spill] sm:$0xff] %v5455_v33  ;;  %v5457_v38 = vadd.f32 %v280_v34, %v157_v29  ;;  %v5460_v41 = vadd.f32 %v393_v37, %v5390_v30 }
 0x12c   :  { %9045 = vst [vmem:[#allocation48_spill] sm:$0xff] %v5457_v38  ;;  %9046 = vst [vmem:[#allocation49_spill] sm:$0xff] %v5460_v41 }
 0x12d   :  { %v527_v45 = vpop.f32.mrf.mxu0  ;;  %v598_v57 = vpop.f32.mrf.mxu1 }
 0x12e   :  { %v603_v49 = vadd.f32 %v527_v45, %v237_v42  ;;  %v605_v7 = vadd.f32 %v598_v57, %v350_v4 }
 0x12f   :  { %v529_v50 = vpop.f32.mrf.mxu0  ;;  %v600_v61 = vpop.f32.mrf.mxu1 }
 0x130   :  { %v4794_v53 = vmul.f32 -1.442695, %v603_v49  ;;  %v604_v54 = vadd.f32 %v529_v50, %v239_v46  ;;  %v606_v3 = vadd.f32 %v600_v61, %v352_v62 }
 0x132   :  { %4905 = vpow2.f32 %v4794_v53  ;;  %v4795_v58 = vmul.f32 -1.442695, %v604_v54  ;;  %v4796_v16 = vmul.f32 -1.442695, %v606_v3 }
 0x134   :  { %4907 = vpow2.f32 %v4795_v58 }
 0x135   :  { %4909 = vpow2.f32 %v4796_v16 }
 0x13f   :  { %v4906_v25 = vpop.eup %4905 }
 0x140   :  { %v610_v21 = vadd.f32 1.0, %v4906_v25 }
 0x141   :  { %v4908_v29 = vpop.eup %4907 }
 0x142   :  { %4911 = vrcp.f32 %v610_v21  ;;  %v616_v8 = vadd.f32 1.0, %v4908_v29  ;;  %v4910_v11 = vpop.eup %4909 }
 0x143   :  { %4913 = vtanh.f32 %v605_v7  ;;  %v623_v34 = vadd.f32 1.0, %v4910_v11 }
 0x144   :  { %4915 = vrcp.f32 %v616_v8 }
 0x145   :  { %4917 = vrcp.f32 %v623_v34 }
 0x14f   :  { %v4912_v12 = vpop.eup %4911 }
 0x150   :  { %v4914_v20 = vpop.eup %4913 }
 0x151   :  { %v4916_v27 = vpop.eup %4915  ;;  %v627_v30 = vmul.f32 %v4914_v20, %v4912_v12 }
 0x152   :  { %v626_v22 = vmul.f32 0.0, %v4916_v27  ;;  %v4918_v17 = vpop.eup %4917 }
 0x154   :  { %v5468_v37 = vadd.f32 %v627_v30, %v626_v22 }
 0x156   :  { %9047 = vst [vmem:[#allocation50_spill] sm:$0xff] %v5468_v37  ;;  %4919 = vtanh.f32 %v5468_v37 }
 0x163   :  { %v4920_v26 = vpop.eup %4919 }
 0x164   :  { %v5471_v42 = vmul.f32 %v4920_v26, %v4918_v17 }
 0x165   :  { %5245 = dma.done.wait [#allocation5], 16384 }
 0x166   :  { %5246 = vsyncadd [#allocation5], 4294950912  ;;  %852 = vmatprep.mubr.f32.mxu0 %v8514_v0  ;;  %923 = vmatprep.mubr.f32.mxu1 %v8514_v0  ;;  %v5475_v45 = vld [vmem:[#allocation3 + $0x1e8] sm:$0xff]  ;;  %v5477_v46 = vld [vmem:[#allocation3 + $0x1e0] sm:$0xff] }
 0x167   :  { %v5479_v49 = vld [vmem:[#allocation3 + $0x1c8] sm:$0xff]  ;;  %788 = vmatprep.subr.mxu0 %v5475_v45  ;;  %v5482_v50 = vld [vmem:[#allocation3 + $0x1c0] sm:$0xff]  ;;  %v5496_v61 = vld [vmem:[#allocation3 + $0x1f8] sm:$0xff] }
 0x168   :  { %789 = vmatpush1.msra.mxu0 %v5477_v46  ;;  %v5485_v53 = vld [vmem:[#allocation3 + $0x1a8] sm:$0xff]  ;;  %v5488_v54 = vld [vmem:[#allocation3 + $0x1a0] sm:$0xff]  ;;  %859 = vmatprep.subr.mxu1 %v5496_v61  ;;  %v5502_v3 = vld [vmem:[#allocation3 + $0x1f0] sm:$0xff] }
 0x169   :  { %790 = vmatprep.subr.mxu0 %v5479_v49  ;;  %v5491_v57 = vld [vmem:[#allocation3 + $0x188] sm:$0xff]  ;;  %v5494_v58 = vld [vmem:[#allocation3 + $0x180] sm:$0xff]  ;;  %860 = vmatpush1.msra.mxu1 %v5502_v3  ;;  %v5508_v16 = vld [vmem:[#allocation3 + $0x1d8] sm:$0xff] }
 0x16a   :  { %791 = vmatpush1.msra.mxu0 %v5482_v50  ;;  %v5499_v62 = vld [vmem:[#allocation3 + $0x168] sm:$0xff]  ;;  %v5505_v4 = vld [vmem:[#allocation3 + $0x160] sm:$0xff]  ;;  %v5510_v25 = vld [vmem:[#allocation3 + $0x1d0] sm:$0xff]  ;;  %861 = vmatprep.subr.mxu1 %v5508_v16 }
 0x16b   :  { %792 = vmatprep.subr.mxu0 %v5485_v53  ;;  %v5513_v7 = vld [vmem:[#allocation3 + $0x148] sm:$0xff]  ;;  %v5516_v21 = vld [vmem:[#allocation3 + $0x1b8] sm:$0xff]  ;;  %v5519_v29 = vld [vmem:[#allocation3 + $0x140] sm:$0xff]  ;;  %862 = vmatpush1.msra.mxu1 %v5510_v25 }
 0x16c   :  { %793 = vmatpush1.msra.mxu0 %v5488_v54  ;;  %v5522_v8 = vld [vmem:[#allocation3 + $0x1b0] sm:$0xff]  ;;  %v5524_v11 = vld [vmem:[#allocation3 + $0x198] sm:$0xff]  ;;  %v5527_v12 = vld [vmem:[#allocation3 + $0x128] sm:$0xff]  ;;  %863 = vmatprep.subr.mxu1 %v5516_v21 }
 0x16d   :  { %794 = vmatprep.subr.mxu0 %v5491_v57  ;;  %v5530_v20 = vld [vmem:[#allocation3 + $0x190] sm:$0xff]  ;;  %v5533_v27 = vld [vmem:[#allocation3 + $0x120] sm:$0xff]  ;;  %864 = vmatpush1.msra.mxu1 %v5522_v8  ;;  %v5536_v34 = vld [vmem:[#allocation3 + $0x178] sm:$0xff] }
 0x16e   :  { %795 = vmatpush1.msra.mxu0 %v5494_v58  ;;  %v5539_v22 = vld [vmem:[#allocation3 + $0x108] sm:$0xff]  ;;  %865 = vmatprep.subr.mxu1 %v5524_v11  ;;  %v5542_v30 = vld [vmem:[#allocation3 + $0x170] sm:$0xff]  ;;  %v5545_v17 = vld [vmem:[#allocation3 + $0x100] sm:$0xff] }
 0x16f   :  { %796 = vmatprep.subr.mxu0 %v5499_v62  ;;  %866 = vmatpush1.msra.mxu1 %v5530_v20  ;;  %v5548_v26 = vld [vmem:[#allocation3 + $0x158] sm:$0xff]  ;;  %v5551_v19 = vld [vmem:[#allocation3 + $0xe8] sm:$0xff]  ;;  %v5554_v24 = vld [vmem:[#allocation3 + $0x150] sm:$0xff] }
 0x170   :  { %797 = vmatpush1.msra.mxu0 %v5505_v4  ;;  %867 = vmatprep.subr.mxu1 %v5536_v34  ;;  %v5557_v23 = vld [vmem:[#allocation3 + $0xe0] sm:$0xff]  ;;  %v5560_v18 = vld [vmem:[#allocation3 + $0x138] sm:$0xff]  ;;  %v5563_v0 = vld [vmem:[#allocation3 + $0xc8] sm:$0xff] }
 0x171   :  { %798 = vmatprep.subr.mxu0 %v5513_v7  ;;  %868 = vmatpush1.msra.mxu1 %v5542_v30  ;;  %v5566_v33 = vld [vmem:[#allocation3 + $0x130] sm:$0xff]  ;;  %v5569_v41 = vld [vmem:[#allocation3 + $0xc0] sm:$0xff]  ;;  %v5572_v38 = vld [vmem:[#allocation3 + $0x118] sm:$0xff] }
 0x172   :  { %799 = vmatpush1.msra.mxu0 %v5519_v29  ;;  %869 = vmatprep.subr.mxu1 %v5548_v26  ;;  %v5575_v28 = vld [vmem:[#allocation3 + $0xa8] sm:$0xff]  ;;  %v5578_v10 = vld [vmem:[#allocation3 + $0x110] sm:$0xff]  ;;  %v5581_v14 = vld [vmem:[#allocation3 + $0xa0] sm:$0xff] }
 0x173   :  { %800 = vmatprep.subr.mxu0 %v5527_v12  ;;  %870 = vmatpush1.msra.mxu1 %v5554_v24  ;;  %v5584_v13 = vld [vmem:[#allocation3 + $0xf8] sm:$0xff]  ;;  %v5587_v9 = vld [vmem:[#allocation3 + $0x88] sm:$0xff]  ;;  %v5590_v2 = vld [vmem:[#allocation3 + $0xf0] sm:$0xff] }
 0x174   :  { %801 = vmatpush1.msra.mxu0 %v5533_v27  ;;  %871 = vmatprep.subr.mxu1 %v5560_v18  ;;  %v5593_v6 = vld [vmem:[#allocation3 + $0x80] sm:$0xff]  ;;  %v5596_v5 = vld [vmem:[#allocation3 + $0xd8] sm:$0xff]  ;;  %v5599_v63 = vld [vmem:[#allocation3 + $0x68] sm:$0xff] }
 0x175   :  { %802 = vmatprep.subr.mxu0 %v5539_v22  ;;  %872 = vmatpush1.msra.mxu1 %v5566_v33  ;;  %v5602_v56 = vld [vmem:[#allocation3 + $0xd0] sm:$0xff]  ;;  %v5605_v60 = vld [vmem:[#allocation3 + $0x60] sm:$0xff]  ;;  %v5608_v59 = vld [vmem:[#allocation3 + $0xb8] sm:$0xff] }
 0x176   :  { %803 = vmatpush1.msra.mxu0 %v5545_v17  ;;  %873 = vmatprep.subr.mxu1 %v5572_v38  ;;  %v5611_v55 = vld [vmem:[#allocation3 + $0x48] sm:$0xff]  ;;  %v5614_v48 = vld [vmem:[#allocation3 + $0xb0] sm:$0xff]  ;;  %v5617_v52 = vld [vmem:[#allocation3 + $0x40] sm:$0xff] }
 0x177   :  { %804 = vmatprep.subr.mxu0 %v5551_v19  ;;  %874 = vmatpush1.msra.mxu1 %v5578_v10  ;;  %v5620_v51 = vld [vmem:[#allocation3 + $0x98] sm:$0xff]  ;;  %v5623_v47 = vld [vmem:[#allocation3 + $0x28] sm:$0xff]  ;;  %v5626_v40 = vld [vmem:[#allocation3 + $0x90] sm:$0xff] }
 0x178   :  { %805 = vmatpush1.msra.mxu0 %v5557_v23  ;;  %875 = vmatprep.subr.mxu1 %v5584_v13  ;;  %9048 = vst [vmem:[#allocation51_spill] sm:$0xff] %v5623_v47  ;;  %9049 = vst [vmem:[#allocation52_spill] sm:$0xff] %v5626_v40  ;;  %v5629_v44 = vld [vmem:[#allocation3 + $0x20] sm:$0xff]  ;;  %v5632_v43 = vld [vmem:[#allocation3 + $0x78] sm:$0xff] }
 0x179   :  { %806 = vmatprep.subr.mxu0 %v5563_v0  ;;  %876 = vmatpush1.msra.mxu1 %v5590_v2  ;;  %9050 = vst [vmem:[#allocation53_spill] sm:$0xff] %v5629_v44  ;;  %9051 = vst [vmem:[#allocation54_spill] sm:$0xff] %v5632_v43  ;;  %v5635_v39 = vld [vmem:[#allocation3 + $0x8] sm:$0xff]  ;;  %v5638_v37 = vld [vmem:[#allocation3 + $0x70] sm:$0xff] }
 0x17a   :  { %807 = vmatpush1.msra.mxu0 %v5569_v41  ;;  %877 = vmatprep.subr.mxu1 %v5596_v5  ;;  %9052 = vst [vmem:[#allocation55_spill] sm:$0xff] %v5635_v39  ;;  %9053 = vst [vmem:[#allocation56_spill] sm:$0xff] %v5638_v37  ;;  %v5641_v32 = vld [vmem:[#allocation3] sm:$0xff]  ;;  %v5644_v36 = vld [vmem:[#allocation3 + $0x58] sm:$0xff] }
 0x17b   :  { %808 = vmatprep.subr.mxu0 %v5575_v28  ;;  %878 = vmatpush1.msra.mxu1 %v5602_v56  ;;  %9054 = vst [vmem:[#allocation57_spill] sm:$0xff] %v5641_v32  ;;  %9055 = vst [vmem:[#allocation58_spill] sm:$0xff] %v5644_v36  ;;  %v5647_v35 = vld [vmem:[#allocation3 + $0x3e8] sm:$0xff]  ;;  %v5650_v31 = vld [vmem:[#allocation3 + $0x50] sm:$0xff] }
 0x17c   :  { %809 = vmatpush1.msra.mxu0 %v5581_v14  ;;  %879 = vmatprep.subr.mxu1 %v5608_v59  ;;  %9056 = vst [vmem:[#allocation59_spill] sm:$0xff] %v5647_v35  ;;  %9057 = vst [vmem:[#allocation60_spill] sm:$0xff] %v5650_v31  ;;  %v5653_v1 = vld [vmem:[#allocation3 + $0x3e0] sm:$0xff]  ;;  %v5656_v15 = vld [vmem:[#allocation3 + $0x38] sm:$0xff] }
 0x17d   :  { %810 = vmatprep.subr.mxu0 %v5587_v9  ;;  %880 = vmatpush1.msra.mxu1 %v5614_v48  ;;  %9058 = vst [vmem:[#allocation61_spill] sm:$0xff] %v5653_v1  ;;  %9059 = vst [vmem:[#allocation62_spill] sm:$0xff] %v5656_v15 }
 0x17e   :  { %811 = vmatpush1.msra.mxu0 %v5593_v6  ;;  %881 = vmatprep.subr.mxu1 %v5620_v51 }
 0x17f   :  { %812 = vmatprep.subr.mxu0 %v5599_v63  ;;  %882 = vmatpush1.msra.mxu1 %v5626_v40  ;;  %v6001_v40 = vld [vmem:[#allocation8 + $0x28] sm:$0xff] }
 0x180   :  { %813 = vmatpush1.msra.mxu0 %v5605_v60  ;;  %883 = vmatprep.subr.mxu1 %v5632_v43  ;;  %v5665_v43 = vld [vmem:[#allocation3 + $0x3c0] sm:$0xff]  ;;  %9173 = vst [vmem:[#allocation175_spill] sm:$0xff] %v6001_v40 }
 0x181   :  { %814 = vmatprep.subr.mxu0 %v5611_v55  ;;  %884 = vmatpush1.msra.mxu1 %v5638_v37  ;;  %9062 = vst [vmem:[#allocation65_spill] sm:$0xff] %v5665_v43  ;;  %v5671_v37 = vld [vmem:[#allocation3 + $0x3a8] sm:$0xff] }
 0x182   :  { %815 = vmatpush1.msra.mxu0 %v5617_v52  ;;  %885 = vmatprep.subr.mxu1 %v5644_v36  ;;  %9064 = vst [vmem:[#allocation67_spill] sm:$0xff] %v5671_v37  ;;  %v5677_v36 = vld [vmem:[#allocation3 + $0x3a0] sm:$0xff] }
 0x183   :  { %816 = vmatprep.subr.mxu0 %v5623_v47  ;;  %v5659_v47 = vld [vmem:[#allocation3 + $0x3c8] sm:$0xff]  ;;  %886 = vmatpush1.msra.mxu1 %v5650_v31  ;;  %9066 = vst [vmem:[#allocation69_spill] sm:$0xff] %v5677_v36 }
 0x184   :  { %817 = vmatpush1.msra.mxu0 %v5629_v44  ;;  %9060 = vst [vmem:[#allocation63_spill] sm:$0xff] %v5659_v47  ;;  %v5662_v44 = vld [vmem:[#allocation3 + $0x30] sm:$0xff]  ;;  %887 = vmatprep.subr.mxu1 %v5656_v15  ;;  %v5683_v31 = vld [vmem:[#allocation3 + $0x388] sm:$0xff]  ;;  %v5689_v15 = vld [vmem:[#allocation3 + $0x380] sm:$0xff] }
 0x185   :  { %818 = vmatprep.subr.mxu0 %v5635_v39  ;;  %9061 = vst [vmem:[#allocation64_spill] sm:$0xff] %v5662_v44  ;;  %v5668_v39 = vld [vmem:[#allocation3 + $0x18] sm:$0xff]  ;;  %888 = vmatpush1.msra.mxu1 %v5662_v44  ;;  %9068 = vst [vmem:[#allocation71_spill] sm:$0xff] %v5683_v31  ;;  %v5695_v44 = vld [vmem:[#allocation3 + $0x368] sm:$0xff] }
 0x186   :  { %819 = vmatpush1.msra.mxu0 %v5641_v32  ;;  %9063 = vst [vmem:[#allocation66_spill] sm:$0xff] %v5668_v39  ;;  %v5674_v32 = vld [vmem:[#allocation3 + $0x10] sm:$0xff]  ;;  %889 = vmatprep.subr.mxu1 %v5668_v39  ;;  %9070 = vst [vmem:[#allocation73_spill] sm:$0xff] %v5689_v15  ;;  %v5701_v39 = vld [vmem:[#allocation3 + $0x360] sm:$0xff] }
 0x187   :  { %820 = vmatprep.subr.mxu0 %v5647_v35  ;;  %9065 = vst [vmem:[#allocation68_spill] sm:$0xff] %v5674_v32  ;;  %v5680_v35 = vld [vmem:[#allocation3 + $0x3f8] sm:$0xff]  ;;  %890 = vmatpush1.msra.mxu1 %v5674_v32  ;;  %9072 = vst [vmem:[#allocation75_spill] sm:$0xff] %v5695_v44  ;;  %v5707_v32 = vld [vmem:[#allocation3 + $0x348] sm:$0xff] }
 0x188   :  { %821 = vmatpush2.msra.mxu0 %v5653_v1  ;;  %9067 = vst [vmem:[#allocation70_spill] sm:$0xff] %v5680_v35  ;;  %v5686_v1 = vld [vmem:[#allocation3 + $0x3f0] sm:$0xff]  ;;  %891 = vmatprep.subr.mxu1 %v5680_v35  ;;  %9074 = vst [vmem:[#allocation77_spill] sm:$0xff] %v5701_v39  ;;  %v5713_v35 = vld [vmem:[#allocation3 + $0x340] sm:$0xff] }
 0x189   :  { %822 = vmatprep.subr.mxu0 %v5659_v47  ;;  %9069 = vst [vmem:[#allocation72_spill] sm:$0xff] %v5686_v1  ;;  %v5692_v47 = vld [vmem:[#allocation3 + $0x3d8] sm:$0xff]  ;;  %892 = vmatpush2.msra.mxu1 %v5686_v1  ;;  %9076 = vst [vmem:[#allocation79_spill] sm:$0xff] %v5707_v32  ;;  %v5719_v1 = vld [vmem:[#allocation3 + $0x328] sm:$0xff] }
 0x18a   :  { %823 = vmatpush2.msra.mxu0 %v5665_v43  ;;  %9071 = vst [vmem:[#allocation74_spill] sm:$0xff] %v5692_v47  ;;  %v5698_v43 = vld [vmem:[#allocation3 + $0x3d0] sm:$0xff]  ;;  %893 = vmatprep.subr.mxu1 %v5692_v47  ;;  %9078 = vst [vmem:[#allocation81_spill] sm:$0xff] %v5713_v35  ;;  %v5725_v47 = vld [vmem:[#allocation3 + $0x320] sm:$0xff] }
 0x18b   :  { %824 = vmatprep.subr.mxu0 %v5671_v37  ;;  %9073 = vst [vmem:[#allocation76_spill] sm:$0xff] %v5698_v43  ;;  %v5704_v37 = vld [vmem:[#allocation3 + $0x3b8] sm:$0xff]  ;;  %894 = vmatpush2.msra.mxu1 %v5698_v43  ;;  %9080 = vst [vmem:[#allocation83_spill] sm:$0xff] %v5719_v1  ;;  %v5731_v43 = vld [vmem:[#allocation3 + $0x308] sm:$0xff] }
 0x18c   :  { %825 = vmatpush2.msra.mxu0 %v5677_v36  ;;  %9075 = vst [vmem:[#allocation78_spill] sm:$0xff] %v5704_v37  ;;  %v5710_v36 = vld [vmem:[#allocation3 + $0x3b0] sm:$0xff]  ;;  %895 = vmatprep.subr.mxu1 %v5704_v37  ;;  %9082 = vst [vmem:[#allocation85_spill] sm:$0xff] %v5725_v47  ;;  %v5737_v37 = vld [vmem:[#allocation3 + $0x300] sm:$0xff] }
 0x18d   :  { %826 = vmatprep.subr.mxu0 %v5683_v31  ;;  %9077 = vst [vmem:[#allocation80_spill] sm:$0xff] %v5710_v36  ;;  %v5716_v31 = vld [vmem:[#allocation3 + $0x398] sm:$0xff]  ;;  %896 = vmatpush2.msra.mxu1 %v5710_v36  ;;  %9084 = vst [vmem:[#allocation87_spill] sm:$0xff] %v5731_v43  ;;  %v5743_v36 = vld [vmem:[#allocation3 + $0x2e8] sm:$0xff] }
 0x18e   :  { %827 = vmatpush2.msra.mxu0 %v5689_v15  ;;  %9079 = vst [vmem:[#allocation82_spill] sm:$0xff] %v5716_v31  ;;  %v5722_v15 = vld [vmem:[#allocation3 + $0x390] sm:$0xff]  ;;  %897 = vmatprep.subr.mxu1 %v5716_v31  ;;  %9086 = vst [vmem:[#allocation89_spill] sm:$0xff] %v5737_v37  ;;  %v5749_v31 = vld [vmem:[#allocation3 + $0x2e0] sm:$0xff] }
 0x18f   :  { %828 = vmatprep.subr.mxu0 %v5695_v44  ;;  %9081 = vst [vmem:[#allocation84_spill] sm:$0xff] %v5722_v15  ;;  %v5728_v44 = vld [vmem:[#allocation3 + $0x378] sm:$0xff]  ;;  %898 = vmatpush2.msra.mxu1 %v5722_v15  ;;  %9088 = vst [vmem:[#allocation91_spill] sm:$0xff] %v5743_v36  ;;  %v5755_v15 = vld [vmem:[#allocation3 + $0x2c8] sm:$0xff] }
 0x190   :  { %829 = vmatpush2.msra.mxu0 %v5701_v39  ;;  %9083 = vst [vmem:[#allocation86_spill] sm:$0xff] %v5728_v44  ;;  %v5734_v39 = vld [vmem:[#allocation3 + $0x370] sm:$0xff]  ;;  %899 = vmatprep.subr.mxu1 %v5728_v44  ;;  %9090 = vst [vmem:[#allocation93_spill] sm:$0xff] %v5749_v31  ;;  %v5761_v44 = vld [vmem:[#allocation3 + $0x2c0] sm:$0xff] }
 0x191   :  { %830 = vmatprep.subr.mxu0 %v5707_v32  ;;  %9085 = vst [vmem:[#allocation88_spill] sm:$0xff] %v5734_v39  ;;  %v5740_v32 = vld [vmem:[#allocation3 + $0x358] sm:$0xff]  ;;  %900 = vmatpush2.msra.mxu1 %v5734_v39  ;;  %9092 = vst [vmem:[#allocation95_spill] sm:$0xff] %v5755_v15  ;;  %v5767_v39 = vld [vmem:[#allocation3 + $0x2a8] sm:$0xff] }
 0x192   :  { %831 = vmatpush2.msra.mxu0 %v5713_v35  ;;  %9087 = vst [vmem:[#allocation90_spill] sm:$0xff] %v5740_v32  ;;  %v5746_v35 = vld [vmem:[#allocation3 + $0x350] sm:$0xff]  ;;  %901 = vmatprep.subr.mxu1 %v5740_v32  ;;  %9094 = vst [vmem:[#allocation97_spill] sm:$0xff] %v5761_v44  ;;  %v5773_v32 = vld [vmem:[#allocation3 + $0x2a0] sm:$0xff] }
 0x193   :  { %832 = vmatprep.subr.mxu0 %v5719_v1  ;;  %9089 = vst [vmem:[#allocation92_spill] sm:$0xff] %v5746_v35  ;;  %v5752_v1 = vld [vmem:[#allocation3 + $0x338] sm:$0xff]  ;;  %902 = vmatpush2.msra.mxu1 %v5746_v35  ;;  %9096 = vst [vmem:[#allocation99_spill] sm:$0xff] %v5767_v39  ;;  %v5779_v35 = vld [vmem:[#allocation3 + $0x288] sm:$0xff] }
 0x194   :  { %833 = vmatpush2.msra.mxu0 %v5725_v47  ;;  %9091 = vst [vmem:[#allocation94_spill] sm:$0xff] %v5752_v1  ;;  %v5758_v47 = vld [vmem:[#allocation3 + $0x330] sm:$0xff]  ;;  %903 = vmatprep.subr.mxu1 %v5752_v1  ;;  %9098 = vst [vmem:[#allocation101_spill] sm:$0xff] %v5773_v32  ;;  %v5785_v1 = vld [vmem:[#allocation3 + $0x280] sm:$0xff] }
 0x195   :  { %834 = vmatprep.subr.mxu0 %v5731_v43  ;;  %9093 = vst [vmem:[#allocation96_spill] sm:$0xff] %v5758_v47  ;;  %v5764_v43 = vld [vmem:[#allocation3 + $0x318] sm:$0xff]  ;;  %904 = vmatpush2.msra.mxu1 %v5758_v47  ;;  %9100 = vst [vmem:[#allocation103_spill] sm:$0xff] %v5779_v35  ;;  %v5791_v47 = vld [vmem:[#allocation3 + $0x268] sm:$0xff] }
 0x196   :  { %835 = vmatpush2.msra.mxu0 %v5737_v37  ;;  %9095 = vst [vmem:[#allocation98_spill] sm:$0xff] %v5764_v43  ;;  %v5770_v37 = vld [vmem:[#allocation3 + $0x310] sm:$0xff]  ;;  %905 = vmatprep.subr.mxu1 %v5764_v43  ;;  %9102 = vst [vmem:[#allocation105_spill] sm:$0xff] %v5785_v1  ;;  %v5797_v43 = vld [vmem:[#allocation3 + $0x260] sm:$0xff] }
 0x197   :  { %836 = vmatprep.subr.mxu0 %v5743_v36  ;;  %9097 = vst [vmem:[#allocation100_spill] sm:$0xff] %v5770_v37  ;;  %v5776_v36 = vld [vmem:[#allocation3 + $0x2f8] sm:$0xff]  ;;  %906 = vmatpush2.msra.mxu1 %v5770_v37  ;;  %9104 = vst [vmem:[#allocation107_spill] sm:$0xff] %v5791_v47  ;;  %v5803_v37 = vld [vmem:[#allocation3 + $0x248] sm:$0xff] }
 0x198   :  { %837 = vmatpush2.msra.mxu0 %v5749_v31  ;;  %9099 = vst [vmem:[#allocation102_spill] sm:$0xff] %v5776_v36  ;;  %v5782_v31 = vld [vmem:[#allocation3 + $0x2f0] sm:$0xff]  ;;  %907 = vmatprep.subr.mxu1 %v5776_v36  ;;  %9106 = vst [vmem:[#allocation109_spill] sm:$0xff] %v5797_v43  ;;  %v5809_v36 = vld [vmem:[#allocation3 + $0x240] sm:$0xff] }
 0x199   :  { %838 = vmatprep.subr.mxu0 %v5755_v15  ;;  %9101 = vst [vmem:[#allocation104_spill] sm:$0xff] %v5782_v31  ;;  %v5788_v15 = vld [vmem:[#allocation3 + $0x2d8] sm:$0xff]  ;;  %908 = vmatpush2.msra.mxu1 %v5782_v31  ;;  %9108 = vst [vmem:[#allocation111_spill] sm:$0xff] %v5803_v37  ;;  %v5815_v31 = vld [vmem:[#allocation3 + $0x228] sm:$0xff] }
 0x19a   :  { %839 = vmatpush2.msra.mxu0 %v5761_v44  ;;  %9103 = vst [vmem:[#allocation106_spill] sm:$0xff] %v5788_v15  ;;  %v5794_v44 = vld [vmem:[#allocation3 + $0x2d0] sm:$0xff]  ;;  %909 = vmatprep.subr.mxu1 %v5788_v15  ;;  %9110 = vst [vmem:[#allocation113_spill] sm:$0xff] %v5809_v36  ;;  %v5821_v15 = vld [vmem:[#allocation3 + $0x220] sm:$0xff] }
 0x19b   :  { %840 = vmatprep.subr.mxu0 %v5767_v39  ;;  %9105 = vst [vmem:[#allocation108_spill] sm:$0xff] %v5794_v44  ;;  %v5800_v39 = vld [vmem:[#allocation3 + $0x2b8] sm:$0xff]  ;;  %910 = vmatpush2.msra.mxu1 %v5794_v44  ;;  %9112 = vst [vmem:[#allocation115_spill] sm:$0xff] %v5815_v31  ;;  %v5827_v44 = vld [vmem:[#allocation3 + $0x208] sm:$0xff] }
 0x19c   :  { %841 = vmatpush2.msra.mxu0 %v5773_v32  ;;  %9107 = vst [vmem:[#allocation110_spill] sm:$0xff] %v5800_v39  ;;  %v5806_v32 = vld [vmem:[#allocation3 + $0x2b0] sm:$0xff]  ;;  %911 = vmatprep.subr.mxu1 %v5800_v39  ;;  %9114 = vst [vmem:[#allocation117_spill] sm:$0xff] %v5821_v15  ;;  %v5833_v39 = vld [vmem:[#allocation3 + $0x200] sm:$0xff] }
 0x19d   :  { %842 = vmatprep.subr.mxu0 %v5779_v35  ;;  %9109 = vst [vmem:[#allocation112_spill] sm:$0xff] %v5806_v32  ;;  %v5812_v35 = vld [vmem:[#allocation3 + $0x298] sm:$0xff]  ;;  %912 = vmatpush2.msra.mxu1 %v5806_v32  ;;  %9116 = vst [vmem:[#allocation119_spill] sm:$0xff] %v5827_v44  ;;  %v5839_v32 = vld [vmem:[#allocation8 + $0x1e8] sm:$0xff] }
 0x19e   :  { %843 = vmatpush2.msra.mxu0 %v5785_v1  ;;  %9111 = vst [vmem:[#allocation114_spill] sm:$0xff] %v5812_v35  ;;  %v5818_v1 = vld [vmem:[#allocation3 + $0x290] sm:$0xff]  ;;  %913 = vmatprep.subr.mxu1 %v5812_v35  ;;  %9118 = vst [vmem:[#allocation121_spill] sm:$0xff] %v5833_v39 }
 0x19f   :  { %844 = vmatprep.subr.mxu0 %v5791_v47  ;;  %9113 = vst [vmem:[#allocation116_spill] sm:$0xff] %v5818_v1  ;;  %v5824_v47 = vld [vmem:[#allocation3 + $0x278] sm:$0xff]  ;;  %914 = vmatpush2.msra.mxu1 %v5818_v1  ;;  %9120 = vst [vmem:[#allocation123_spill] sm:$0xff] %v5839_v32  ;;  %v5846_v35 = vld [vmem:[#allocation3 + $0x250] sm:$0xff] }
 0x1a0   :  { %845 = vmatpush2.msra.mxu0 %v5797_v43  ;;  %9115 = vst [vmem:[#allocation118_spill] sm:$0xff] %v5824_v47  ;;  %v5830_v43 = vld [vmem:[#allocation3 + $0x270] sm:$0xff]  ;;  %915 = vmatprep.subr.mxu1 %v5824_v47  ;;  %9122 = vst [vmem:[#allocation125_spill] sm:$0xff] %v5846_v35  ;;  %v5852_v1 = vld [vmem:[#allocation3 + $0x238] sm:$0xff] }
 0x1a1   :  { %846 = vmatprep.subr.mxu0 %v5803_v37  ;;  %9117 = vst [vmem:[#allocation120_spill] sm:$0xff] %v5830_v43  ;;  %v5836_v37 = vld [vmem:[#allocation3 + $0x258] sm:$0xff]  ;;  %916 = vmatpush2.msra.mxu1 %v5830_v43  ;;  %9124 = vst [vmem:[#allocation127_spill] sm:$0xff] %v5852_v1  ;;  %v5861_v43 = vld [vmem:[#allocation8 + $0x1a8] sm:$0xff] }
 0x1a2   :  { %847 = vmatpush2.msra.mxu0 %v5809_v36  ;;  %9119 = vst [vmem:[#allocation122_spill] sm:$0xff] %v5836_v37  ;;  %v5843_v36 = vld [vmem:[#allocation8 + $0x1e0] sm:$0xff]  ;;  %917 = vmatprep.subr.mxu1 %v5836_v37  ;;  %9127 = vst [vmem:[#allocation130_spill] sm:$0xff] %v5861_v43  ;;  %v5870_v47 = vld [vmem:[#allocation3 + $0x210] sm:$0xff] }
 0x1a3   :  { %848 = vmatprep.subr.mxu0 %v5815_v31  ;;  %9121 = vst [vmem:[#allocation124_spill] sm:$0xff] %v5843_v36  ;;  %v5849_v31 = vld [vmem:[#allocation8 + $0x1c8] sm:$0xff]  ;;  %918 = vmatpush2.msra.mxu1 %v5846_v35  ;;  %v5867_v37 = vld [vmem:[#allocation8 + $0x1a0] sm:$0xff]  ;;  %9130 = vst [vmem:[#allocation133_spill] sm:$0xff] %v5870_v47 }
 0x1a4   :  { %849 = vmatpush2.msra.mxu0 %v5821_v15  ;;  %9123 = vst [vmem:[#allocation126_spill] sm:$0xff] %v5849_v31  ;;  %v5856_v15 = vld [vmem:[#allocation8 + $0x1c0] sm:$0xff]  ;;  %9129 = vst [vmem:[#allocation132_spill] sm:$0xff] %v5867_v37  ;;  %919 = vmatprep.subr.mxu1 %v5852_v1  ;;  %v5886_v1 = vld [vmem:[#allocation8 + $0x1f0] sm:$0xff] }
 0x1a5   :  { %850 = vmatprep.subr.mxu0 %v5827_v44  ;;  %9125 = vst [vmem:[#allocation128_spill] sm:$0xff] %v5856_v15  ;;  %v5858_v44 = vld [vmem:[#allocation3 + $0x230] sm:$0xff]  ;;  %v5879_v35 = vld [vmem:[#allocation8 + $0x180] sm:$0xff]  ;;  %9135 = vst [vmem:[#allocation138_spill] sm:$0xff] %v5886_v1 }
 0x1a6   :  { %851 = vmatpush2.msra.mxu0 %v5833_v39  ;;  %9126 = vst [vmem:[#allocation129_spill] sm:$0xff] %v5858_v44  ;;  %v5864_v39 = vld [vmem:[#allocation3 + $0x218] sm:$0xff]  ;;  %920 = vmatpush2.msra.mxu1 %v5858_v44  ;;  %9133 = vst [vmem:[#allocation136_spill] sm:$0xff] %v5879_v35 }
 0x1a7   :  { %853 = vmatmul.mubr.f32.vlgmr.msra.gmra.mxu0 %v5471_v42  ;;  %1018 = vmatprep.subr.mxu0 %v5839_v32  ;;  %9128 = vst [vmem:[#allocation131_spill] sm:$0xff] %v5864_v39  ;;  %v5873_v32 = vld [vmem:[#allocation8 + $0x188] sm:$0xff]  ;;  %v5892_v44 = vld [vmem:[#allocation8 + $0x1d8] sm:$0xff] }
 0x1a8   :  { %1019 = vmatpush1.msra.mxu0 %v5843_v36  ;;  %9131 = vst [vmem:[#allocation134_spill] sm:$0xff] %v5873_v32  ;;  %v5876_v36 = vld [vmem:[#allocation8 + $0x1f8] sm:$0xff]  ;;  %921 = vmatprep.subr.mxu1 %v5864_v39  ;;  %9137 = vst [vmem:[#allocation140_spill] sm:$0xff] %v5892_v44  ;;  %v5913_v39 = vld [vmem:[#allocation8 + $0x120] sm:$0xff] }
 0x1a9   :  { %1020 = vmatprep.subr.mxu0 %v5849_v31  ;;  %9132 = vst [vmem:[#allocation135_spill] sm:$0xff] %v5876_v36  ;;  %v5883_v31 = vld [vmem:[#allocation8 + $0x168] sm:$0xff]  ;;  %922 = vmatpush2.msra.mxu1 %v5870_v47  ;;  %v5901_v47 = vld [vmem:[#allocation8 + $0x140] sm:$0xff]  ;;  %9144 = vst [vmem:[#allocation147_spill] sm:$0xff] %v5913_v39 }
 0x1aa   :  { %1021 = vmatpush1.msra.mxu0 %v5856_v15  ;;  %9134 = vst [vmem:[#allocation137_spill] sm:$0xff] %v5883_v31  ;;  %v5889_v15 = vld [vmem:[#allocation8 + $0x160] sm:$0xff]  ;;  %1089 = vmatprep.subr.mxu1 %v5876_v36  ;;  %9140 = vst [vmem:[#allocation143_spill] sm:$0xff] %v5901_v47  ;;  %v5907_v36 = vld [vmem:[#allocation8 + $0x128] sm:$0xff] }
 0x1ab   :  { %1022 = vmatprep.subr.mxu0 %v5861_v43  ;;  %9136 = vst [vmem:[#allocation139_spill] sm:$0xff] %v5889_v15  ;;  %v5895_v43 = vld [vmem:[#allocation8 + $0x148] sm:$0xff]  ;;  %924 = vmatmul.mubr.f32.vlgmr.msra.gmra.mxu1 %v5471_v42  ;;  %9142 = vst [vmem:[#allocation145_spill] sm:$0xff] %v5907_v36 }
 0x1ac   :  { %1023 = vmatpush1.msra.mxu0 %v5867_v37  ;;  %9138 = vst [vmem:[#allocation141_spill] sm:$0xff] %v5895_v43  ;;  %v5898_v37 = vld [vmem:[#allocation8 + $0x1d0] sm:$0xff]  ;;  %1090 = vmatpush1.msra.mxu1 %v5886_v1  ;;  %v5919_v1 = vld [vmem:[#allocation8 + $0x108] sm:$0xff] }
 0x1ad   :  { %1024 = vmatprep.subr.mxu0 %v5873_v32  ;;  %9139 = vst [vmem:[#allocation142_spill] sm:$0xff] %v5898_v37  ;;  %v5904_v32 = vld [vmem:[#allocation8 + $0x1b8] sm:$0xff]  ;;  %1091 = vmatprep.subr.mxu1 %v5892_v44  ;;  %9146 = vst [vmem:[#allocation149_spill] sm:$0xff] %v5919_v1  ;;  %v5925_v44 = vld [vmem:[#allocation8 + $0x100] sm:$0xff] }
 0x1ae   :  { %1025 = vmatpush1.msra.mxu0 %v5879_v35  ;;  %9141 = vst [vmem:[#allocation144_spill] sm:$0xff] %v5904_v32  ;;  %v5910_v35 = vld [vmem:[#allocation8 + $0x1b0] sm:$0xff]  ;;  %1092 = vmatpush1.msra.mxu1 %v5898_v37  ;;  %9148 = vst [vmem:[#allocation151_spill] sm:$0xff] %v5925_v44  ;;  %v5931_v37 = vld [vmem:[#allocation8 + $0xe8] sm:$0xff] }
 0x1af   :  { %1026 = vmatprep.subr.mxu0 %v5883_v31  ;;  %9143 = vst [vmem:[#allocation146_spill] sm:$0xff] %v5910_v35  ;;  %v5916_v31 = vld [vmem:[#allocation8 + $0x198] sm:$0xff]  ;;  %1093 = vmatprep.subr.mxu1 %v5904_v32  ;;  %9150 = vst [vmem:[#allocation153_spill] sm:$0xff] %v5931_v37  ;;  %v5937_v32 = vld [vmem:[#allocation8 + $0xe0] sm:$0xff] }
 0x1b0   :  { %1027 = vmatpush1.msra.mxu0 %v5889_v15  ;;  %9145 = vst [vmem:[#allocation148_spill] sm:$0xff] %v5916_v31  ;;  %v5922_v15 = vld [vmem:[#allocation8 + $0x190] sm:$0xff]  ;;  %1094 = vmatpush1.msra.mxu1 %v5910_v35  ;;  %9152 = vst [vmem:[#allocation155_spill] sm:$0xff] %v5937_v32  ;;  %v5943_v35 = vld [vmem:[#allocation8 + $0xc8] sm:$0xff] }
 0x1b1   :  { %1028 = vmatprep.subr.mxu0 %v5895_v43  ;;  %9147 = vst [vmem:[#allocation150_spill] sm:$0xff] %v5922_v15  ;;  %v5928_v43 = vld [vmem:[#allocation8 + $0x178] sm:$0xff]  ;;  %1095 = vmatprep.subr.mxu1 %v5916_v31  ;;  %9154 = vst [vmem:[#allocation157_spill] sm:$0xff] %v5943_v35  ;;  %v5949_v31 = vld [vmem:[#allocation8 + $0xc0] sm:$0xff] }
 0x1b2   :  { %1029 = vmatpush1.msra.mxu0 %v5901_v47  ;;  %9149 = vst [vmem:[#allocation152_spill] sm:$0xff] %v5928_v43  ;;  %v5934_v47 = vld [vmem:[#allocation8 + $0x170] sm:$0xff]  ;;  %1096 = vmatpush1.msra.mxu1 %v5922_v15  ;;  %9156 = vst [vmem:[#allocation159_spill] sm:$0xff] %v5949_v31  ;;  %v5955_v15 = vld [vmem:[#allocation8 + $0xa8] sm:$0xff] }
 0x1b3   :  { %1030 = vmatprep.subr.mxu0 %v5907_v36  ;;  %9151 = vst [vmem:[#allocation154_spill] sm:$0xff] %v5934_v47  ;;  %v5940_v36 = vld [vmem:[#allocation8 + $0x158] sm:$0xff]  ;;  %1097 = vmatprep.subr.mxu1 %v5928_v43  ;;  %9158 = vst [vmem:[#allocation161_spill] sm:$0xff] %v5955_v15  ;;  %v5961_v43 = vld [vmem:[#allocation8 + $0xa0] sm:$0xff] }
 0x1b4   :  { %1031 = vmatpush1.msra.mxu0 %v5913_v39  ;;  %9153 = vst [vmem:[#allocation156_spill] sm:$0xff] %v5940_v36  ;;  %v5946_v39 = vld [vmem:[#allocation8 + $0x150] sm:$0xff]  ;;  %1098 = vmatpush1.msra.mxu1 %v5934_v47  ;;  %9160 = vst [vmem:[#allocation163_spill] sm:$0xff] %v5961_v43  ;;  %v5967_v47 = vld [vmem:[#allocation8 + $0x88] sm:$0xff] }
 0x1b5   :  { %1032 = vmatprep.subr.mxu0 %v5919_v1  ;;  %9155 = vst [vmem:[#allocation158_spill] sm:$0xff] %v5946_v39  ;;  %v5952_v1 = vld [vmem:[#allocation8 + $0x138] sm:$0xff]  ;;  %1099 = vmatprep.subr.mxu1 %v5940_v36  ;;  %9162 = vst [vmem:[#allocation165_spill] sm:$0xff] %v5967_v47  ;;  %v5974_v36 = vld [vmem:[#allocation8 + $0x110] sm:$0xff] }
 0x1b6   :  { %1033 = vmatpush1.msra.mxu0 %v5925_v44  ;;  %9157 = vst [vmem:[#allocation160_spill] sm:$0xff] %v5952_v1  ;;  %v5958_v44 = vld [vmem:[#allocation8 + $0x130] sm:$0xff]  ;;  %1100 = vmatpush1.msra.mxu1 %v5946_v39  ;;  %9164 = vst [vmem:[#allocation167_spill] sm:$0xff] %v5974_v36  ;;  %v5980_v39 = vld [vmem:[#allocation8 + $0xf8] sm:$0xff] }
 0x1b7   :  { %1034 = vmatprep.subr.mxu0 %v5931_v37  ;;  %9159 = vst [vmem:[#allocation162_spill] sm:$0xff] %v5958_v44  ;;  %v5964_v37 = vld [vmem:[#allocation8 + $0x118] sm:$0xff]  ;;  %1101 = vmatprep.subr.mxu1 %v5952_v1  ;;  %9166 = vst [vmem:[#allocation169_spill] sm:$0xff] %v5980_v39  ;;  %v9168_v1 = vmov 0.0  }
 0x1b8   :  { %1035 = vmatpush1.msra.mxu0 %v5937_v32  ;;  %9161 = vst [vmem:[#allocation164_spill] sm:$0xff] %v5964_v37  ;;  %v5971_v32 = vld [vmem:[#allocation8 + $0x80] sm:$0xff]  ;;  %1102 = vmatpush1.msra.mxu1 %v5958_v44  ;;  %v5989_v44 = vld [vmem:[#allocation8 + $0x48] sm:$0xff] }
 0x1b9   :  { %1036 = vmatprep.subr.mxu0 %v5943_v35  ;;  %9163 = vst [vmem:[#allocation166_spill] sm:$0xff] %v5971_v32  ;;  %v5977_v35 = vld [vmem:[#allocation8 + $0x68] sm:$0xff]  ;;  %1103 = vmatprep.subr.mxu1 %v5964_v37  ;;  %9170 = vst [vmem:[#allocation172_spill] sm:$0xff] %v5989_v44  ;;  %v5995_v37 = vld [vmem:[#allocation8 + $0x40] sm:$0xff] }
 0x1ba   :  { %1037 = vmatpush1.msra.mxu0 %v5949_v31  ;;  %9165 = vst [vmem:[#allocation168_spill] sm:$0xff] %v5977_v35  ;;  %v5983_v31 = vld [vmem:[#allocation8 + $0x60] sm:$0xff]  ;;  %1082 = vmatprep.mubr.f32.mxu0 %v9168_v1  ;;  %9172 = vst [vmem:[#allocation174_spill] sm:$0xff] %v5995_v37 }
 0x1bb   :  { %1038 = vmatprep.subr.mxu0 %v5955_v15  ;;  %9167 = vst [vmem:[#allocation170_spill] sm:$0xff] %v5983_v31  ;;  %v5986_v15 = vld [vmem:[#allocation8 + $0xf0] sm:$0xff]  ;;  %1104 = vmatpush1.msra.mxu1 %v5974_v36  ;;  %v6007_v36 = vld [vmem:[#allocation8 + $0x20] sm:$0xff] }
 0x1bc   :  { %1039 = vmatpush1.msra.mxu0 %v5961_v43  ;;  %9169 = vst [vmem:[#allocation171_spill] sm:$0xff] %v5986_v15  ;;  %v5992_v43 = vld [vmem:[#allocation8 + $0xd8] sm:$0xff]  ;;  %1105 = vmatprep.subr.mxu1 %v5980_v39  ;;  %9174 = vst [vmem:[#allocation176_spill] sm:$0xff] %v6007_v36  ;;  %v6013_v39 = vld [vmem:[#allocation8 + $0x8] sm:$0xff] }
 0x1bd   :  { %1040 = vmatprep.subr.mxu0 %v5967_v47  ;;  %9171 = vst [vmem:[#allocation173_spill] sm:$0xff] %v5992_v43  ;;  %v5998_v47 = vld [vmem:[#allocation8 + $0xd0] sm:$0xff]  ;;  %1106 = vmatpush1.msra.mxu1 %v5986_v15  ;;  %9176 = vst [vmem:[#allocation178_spill] sm:$0xff] %v6013_v39  ;;  %v6019_v15 = vld [vmem:[#allocation8] sm:$0xff] }
 0x1be   :  { %1041 = vmatpush1.msra.mxu0 %v5971_v32  ;;  %v6004_v32 = vld [vmem:[#allocation8 + $0xb8] sm:$0xff]  ;;  %1107 = vmatprep.subr.mxu1 %v5992_v43  ;;  %9177 = vst [vmem:[#allocation179_spill] sm:$0xff] %v6019_v15 }
 0x1bf   :  { %1042 = vmatprep.subr.mxu0 %v5977_v35  ;;  %v6010_v35 = vld [vmem:[#allocation8 + $0xb0] sm:$0xff]  ;;  %1108 = vmatpush1.msra.mxu1 %v5998_v47  ;;  %v6026_v43 = vld [vmem:[#allocation8 + $0x78] sm:$0xff] }
 0x1c0   :  { %1043 = vmatpush1.msra.mxu0 %v5983_v31  ;;  %9175 = vst [vmem:[#allocation177_spill] sm:$0xff] %v6010_v35  ;;  %v6016_v31 = vld [vmem:[#allocation8 + $0x98] sm:$0xff]  ;;  %1109 = vmatprep.subr.mxu1 %v6004_v32  ;;  %9178 = vst [vmem:[#allocation180_spill] sm:$0xff] %v6026_v43 }
 0x1c1   :  { %1044 = vmatprep.subr.mxu0 %v5989_v44  ;;  %v6022_v44 = vld [vmem:[#allocation8 + $0x90] sm:$0xff]  ;;  %1110 = vmatpush1.msra.mxu1 %v6010_v35  ;;  %v6041_v35 = vld [vmem:[#allocation8 + $0x38] sm:$0xff] }
 0x1c2   :  { %1045 = vmatpush1.msra.mxu0 %v5995_v37  ;;  %1111 = vmatprep.subr.mxu1 %v6016_v31  ;;  %v6030_v37 = vld [vmem:[#allocation8 + $0x70] sm:$0xff] }
 0x1c3   :  { %1046 = vmatprep.subr.mxu0 %v6001_v40  ;;  %1112 = vmatpush1.msra.mxu1 %v6022_v44  ;;  %v6034_v40 = vld [vmem:[#allocation8 + $0x58] sm:$0xff] }
 0x1c4   :  { %1047 = vmatpush1.msra.mxu0 %v6007_v36  ;;  %1113 = vmatprep.subr.mxu1 %v6026_v43  ;;  %v6038_v36 = vld [vmem:[#allocation8 + $0x50] sm:$0xff] }
 0x1c5   :  { %1048 = vmatprep.subr.mxu0 %v6013_v39  ;;  %1114 = vmatpush1.msra.mxu1 %v6030_v37  ;;  %v6045_v39 = vld [vmem:[#allocation8 + $0x30] sm:$0xff] }
 0x1c6   :  { %1049 = vmatpush1.msra.mxu0 %v6019_v15  ;;  %1153 = vmatprep.mubr.f32.mxu1 %v9168_v1  ;;  %v6049_v15 = vld [vmem:[#allocation8 + $0x18] sm:$0xff]  ;;  %v6053_v43 = vld [vmem:[#allocation8 + $0x10] sm:$0xff] }
 0x1c7   :  { %1083 = vmatmul.mubr.f32.vlgmr.msra.gmra.mxu0 %v5471_v42  ;;  %1115 = vmatprep.subr.mxu1 %v6034_v40 }
 0x1c8   :  { %1320 = vmatprep.subr.mxu0 %v5475_v45  ;;  %1116 = vmatpush1.msra.mxu1 %v6038_v36  ;;  %v9204_v45 = vld [vmem:[#allocation75_spill] sm:$0xff] }
 0x1c9   :  { %1321 = vmatpush1.msra.mxu0 %v5477_v46  ;;  %1117 = vmatprep.subr.mxu1 %v6041_v35  ;;  %v9205_v46 = vld [vmem:[#allocation78_spill] sm:$0xff] }
 0x1ca   :  { %1322 = vmatprep.subr.mxu0 %v5479_v49  ;;  %1118 = vmatpush1.msra.mxu1 %v6045_v39  ;;  %v9206_v49 = vld [vmem:[#allocation77_spill] sm:$0xff] }
 0x1cb   :  { %1323 = vmatpush1.msra.mxu0 %v5482_v50  ;;  %1119 = vmatprep.subr.mxu1 %v6049_v15  ;;  %v9207_v50 = vld [vmem:[#allocation80_spill] sm:$0xff] }
 0x1cc   :  { %1324 = vmatprep.subr.mxu0 %v5485_v53  ;;  %1120 = vmatpush1.msra.mxu1 %v6053_v43  ;;  %v9208_v53 = vld [vmem:[#allocation79_spill] sm:$0xff] }
 0x1cd   :  { %1325 = vmatpush1.msra.mxu0 %v5488_v54  ;;  %1154 = vmatmul.mubr.f32.vlgmr.msra.gmra.mxu1 %v5471_v42  ;;  %v9203_v42 = vld [vmem:[#allocation76_spill] sm:$0xff]  ;;  %v9209_v54 = vld [vmem:[#allocation82_spill] sm:$0xff] }
 0x1ce   :  { %1391 = vmatprep.subr.mxu1 %v5496_v61  ;;  %1326 = vmatprep.subr.mxu0 %v5491_v57  ;;  %v9210_v57 = vld [vmem:[#allocation81_spill] sm:$0xff]  ;;  %v9212_v61 = vld [vmem:[#allocation83_spill] sm:$0xff] }
 0x1cf   :  { %1392 = vmatpush1.msra.mxu1 %v5502_v3  ;;  %1327 = vmatpush1.msra.mxu0 %v5494_v58  ;;  %v9211_v58 = vld [vmem:[#allocation84_spill] sm:$0xff]  ;;  %v9214_v3 = vld [vmem:[#allocation85_spill] sm:$0xff] }
 0x1d0   :  { %1393 = vmatprep.subr.mxu1 %v5508_v16  ;;  %1328 = vmatprep.subr.mxu0 %v5499_v62  ;;  %v9213_v62 = vld [vmem:[#allocation86_spill] sm:$0xff]  ;;  %v9216_v16 = vld [vmem:[#allocation87_spill] sm:$0xff] }
 0x1d1   :  { %1394 = vmatpush1.msra.mxu1 %v5510_v25  ;;  %1329 = vmatpush1.msra.mxu0 %v5505_v4  ;;  %v9215_v4 = vld [vmem:[#allocation88_spill] sm:$0xff]  ;;  %v9217_v25 = vld [vmem:[#allocation90_spill] sm:$0xff] }
 0x1d2   :  { %1395 = vmatprep.subr.mxu1 %v5516_v21  ;;  %1330 = vmatprep.subr.mxu0 %v5513_v7  ;;  %v9218_v7 = vld [vmem:[#allocation89_spill] sm:$0xff]  ;;  %v9219_v21 = vld [vmem:[#allocation92_spill] sm:$0xff] }
 0x1d3   :  { %1396 = vmatpush1.msra.mxu1 %v5522_v8  ;;  %1331 = vmatpush1.msra.mxu0 %v5519_v29  ;;  %v9220_v29 = vld [vmem:[#allocation91_spill] sm:$0xff]  ;;  %v9221_v8 = vld [vmem:[#allocation94_spill] sm:$0xff] }
 0x1d4   :  { %1397 = vmatprep.subr.mxu1 %v5524_v11  ;;  %1332 = vmatprep.subr.mxu0 %v5527_v12  ;;  %v9222_v11 = vld [vmem:[#allocation93_spill] sm:$0xff]  ;;  %v9223_v12 = vld [vmem:[#allocation96_spill] sm:$0xff] }
 0x1d5   :  { %1398 = vmatpush1.msra.mxu1 %v5530_v20  ;;  %1333 = vmatpush1.msra.mxu0 %v5533_v27  ;;  %v9224_v20 = vld [vmem:[#allocation95_spill] sm:$0xff]  ;;  %v9225_v27 = vld [vmem:[#allocation98_spill] sm:$0xff] }
 0x1d6   :  { %1399 = vmatprep.subr.mxu1 %v5536_v34  ;;  %1334 = vmatprep.subr.mxu0 %v5539_v22  ;;  %v9226_v34 = vld [vmem:[#allocation97_spill] sm:$0xff]  ;;  %v9227_v22 = vld [vmem:[#allocation100_spill] sm:$0xff] }
 0x1d7   :  { %1400 = vmatpush1.msra.mxu1 %v5542_v30  ;;  %1335 = vmatpush1.msra.mxu0 %v5545_v17  ;;  %v9228_v30 = vld [vmem:[#allocation99_spill] sm:$0xff]  ;;  %v9229_v17 = vld [vmem:[#allocation102_spill] sm:$0xff] }
 0x1d8   :  { %1401 = vmatprep.subr.mxu1 %v5548_v26  ;;  %1336 = vmatprep.subr.mxu0 %v5551_v19  ;;  %v9181_v19 = vld [vmem:[#allocation54_spill] sm:$0xff]  ;;  %v9230_v26 = vld [vmem:[#allocation101_spill] sm:$0xff] }
 0x1d9   :  { %1402 = vmatpush1.msra.mxu1 %v5554_v24  ;;  %1337 = vmatpush1.msra.mxu0 %v5557_v23  ;;  %v9182_v23 = vld [vmem:[#allocation53_spill] sm:$0xff]  ;;  %v9183_v24 = vld [vmem:[#allocation56_spill] sm:$0xff] }
 0x1da   :  { %1403 = vmatprep.subr.mxu1 %v5560_v18  ;;  %1338 = vmatprep.subr.mxu0 %v5563_v0  ;;  %v9179_v0 = vld [vmem:[#allocation52_spill] sm:$0xff]  ;;  %v9180_v18 = vld [vmem:[#allocation51_spill] sm:$0xff] }
 0x1db   :  { %1404 = vmatpush1.msra.mxu1 %v5566_v33  ;;  %1339 = vmatpush1.msra.mxu0 %v5569_v41  ;;  %v9200_v33 = vld [vmem:[#allocation71_spill] sm:$0xff]  ;;  %v9202_v41 = vld [vmem:[#allocation73_spill] sm:$0xff] }
 0x1dc   :  { %1405 = vmatprep.subr.mxu1 %v5572_v38  ;;  %1340 = vmatprep.subr.mxu0 %v5575_v28  ;;  %v9199_v28 = vld [vmem:[#allocation72_spill] sm:$0xff]  ;;  %v9201_v38 = vld [vmem:[#allocation74_spill] sm:$0xff] }
 0x1dd   :  { %1406 = vmatpush1.msra.mxu1 %v5578_v10  ;;  %1341 = vmatpush1.msra.mxu0 %v5581_v14  ;;  %v9196_v10 = vld [vmem:[#allocation67_spill] sm:$0xff]  ;;  %v9198_v14 = vld [vmem:[#allocation69_spill] sm:$0xff] }
 0x1de   :  { %1407 = vmatprep.subr.mxu1 %v5584_v13  ;;  %1342 = vmatprep.subr.mxu0 %v5587_v9  ;;  %v9195_v9 = vld [vmem:[#allocation68_spill] sm:$0xff]  ;;  %v9197_v13 = vld [vmem:[#allocation70_spill] sm:$0xff] }
 0x1df   :  { %1408 = vmatpush1.msra.mxu1 %v5590_v2  ;;  %1343 = vmatpush1.msra.mxu0 %v5593_v6  ;;  %v9192_v2 = vld [vmem:[#allocation63_spill] sm:$0xff]  ;;  %v9194_v6 = vld [vmem:[#allocation65_spill] sm:$0xff] }
 0x1e0   :  { %1409 = vmatprep.subr.mxu1 %v5596_v5  ;;  %1344 = vmatprep.subr.mxu0 %v5599_v63  ;;  %v9191_v63 = vld [vmem:[#allocation64_spill] sm:$0xff]  ;;  %v9193_v5 = vld [vmem:[#allocation66_spill] sm:$0xff] }
 0x1e1   :  { %1410 = vmatpush1.msra.mxu1 %v5602_v56  ;;  %1345 = vmatpush1.msra.mxu0 %v5605_v60  ;;  %v9184_v56 = vld [vmem:[#allocation55_spill] sm:$0xff]  ;;  %v9190_v60 = vld [vmem:[#allocation61_spill] sm:$0xff] }
 0x1e2   :  { %1411 = vmatprep.subr.mxu1 %v5608_v59  ;;  %1346 = vmatprep.subr.mxu0 %v5611_v55  ;;  %v9185_v59 = vld [vmem:[#allocation58_spill] sm:$0xff]  ;;  %v9187_v55 = vld [vmem:[#allocation60_spill] sm:$0xff] }
 0x1e3   :  { %1412 = vmatpush1.msra.mxu1 %v5614_v48  ;;  %1347 = vmatpush1.msra.mxu0 %v5617_v52  ;;  %v9186_v48 = vld [vmem:[#allocation57_spill] sm:$0xff]  ;;  %v9189_v52 = vld [vmem:[#allocation62_spill] sm:$0xff] }
 0x1e4   :  { %1413 = vmatprep.subr.mxu1 %v5620_v51  ;;  %1348 = vmatprep.subr.mxu0 %v9180_v18  ;;  %v9188_v51 = vld [vmem:[#allocation59_spill] sm:$0xff] }
 0x1e5   :  { %1414 = vmatpush1.msra.mxu1 %v9179_v0  ;;  %1349 = vmatpush1.msra.mxu0 %v9182_v23  ;;  %v9231_v0 = vld [vmem:[#allocation104_spill] sm:$0xff]  ;;  %v9232_v18 = vld [vmem:[#allocation103_spill] sm:$0xff]  ;;  %v9234_v23 = vld [vmem:[#allocation105_spill] sm:$0xff] }
 0x1e6   :  { %1415 = vmatprep.subr.mxu1 %v9181_v19  ;;  %1350 = vmatprep.subr.mxu0 %v9184_v56  ;;  %v9233_v19 = vld [vmem:[#allocation106_spill] sm:$0xff]  ;;  %v9236_v56 = vld [vmem:[#allocation107_spill] sm:$0xff] }
 0x1e7   :  { %1416 = vmatpush1.msra.mxu1 %v9183_v24  ;;  %1351 = vmatpush1.msra.mxu0 %v9186_v48  ;;  %v9235_v24 = vld [vmem:[#allocation108_spill] sm:$0xff]  ;;  %v9238_v48 = vld [vmem:[#allocation109_spill] sm:$0xff] }
 0x1e8   :  { %1417 = vmatprep.subr.mxu1 %v9185_v59  ;;  %1352 = vmatprep.subr.mxu0 %v9188_v51  ;;  %v9237_v59 = vld [vmem:[#allocation110_spill] sm:$0xff]  ;;  %v9240_v51 = vld [vmem:[#allocation111_spill] sm:$0xff] }
 0x1e9   :  { %1418 = vmatpush1.msra.mxu1 %v9187_v55  ;;  %1353 = vmatpush2.msra.mxu0 %v9190_v60  ;;  %v9239_v55 = vld [vmem:[#allocation112_spill] sm:$0xff]  ;;  %v9242_v60 = vld [vmem:[#allocation113_spill] sm:$0xff] }
 0x1ea   :  { %1419 = vmatprep.subr.mxu1 %v9189_v52  ;;  %1354 = vmatprep.subr.mxu0 %v9192_v2  ;;  %v9241_v52 = vld [vmem:[#allocation114_spill] sm:$0xff]  ;;  %v9244_v2 = vld [vmem:[#allocation115_spill] sm:$0xff] }
 0x1eb   :  { %1420 = vmatpush1.msra.mxu1 %v9191_v63  ;;  %1355 = vmatpush2.msra.mxu0 %v9194_v6  ;;  %v9243_v63 = vld [vmem:[#allocation116_spill] sm:$0xff]  ;;  %v9246_v6 = vld [vmem:[#allocation117_spill] sm:$0xff] }
 0x1ec   :  { %1421 = vmatprep.subr.mxu1 %v9193_v5  ;;  %1356 = vmatprep.subr.mxu0 %v9196_v10  ;;  %v9245_v5 = vld [vmem:[#allocation118_spill] sm:$0xff]  ;;  %v9248_v10 = vld [vmem:[#allocation119_spill] sm:$0xff] }
 0x1ed   :  { %1422 = vmatpush1.msra.mxu1 %v9195_v9  ;;  %1357 = vmatpush2.msra.mxu0 %v9198_v14  ;;  %v9247_v9 = vld [vmem:[#allocation120_spill] sm:$0xff]  ;;  %v9250_v14 = vld [vmem:[#allocation121_spill] sm:$0xff] }
 0x1ee   :  { %1423 = vmatprep.subr.mxu1 %v9197_v13  ;;  %1358 = vmatprep.subr.mxu0 %v9200_v33  ;;  %v9249_v13 = vld [vmem:[#allocation122_spill] sm:$0xff]  ;;  %v9252_v33 = vld [vmem:[#allocation123_spill] sm:$0xff] }
 0x1ef   :  { %1424 = vmatpush2.msra.mxu1 %v9199_v28  ;;  %1359 = vmatpush2.msra.mxu0 %v9202_v41  ;;  %v9251_v28 = vld [vmem:[#allocation125_spill] sm:$0xff] }
 0x1f0   :  { %1425 = vmatprep.subr.mxu1 %v9201_v38  ;;  %1360 = vmatprep.subr.mxu0 %v9204_v45  ;;  %v9253_v38 = vld [vmem:[#allocation127_spill] sm:$0xff]  ;;  %v9254_v41 = vld [vmem:[#allocation129_spill] sm:$0xff] }
 0x1f1   :  { %1426 = vmatpush2.msra.mxu1 %v9203_v42  ;;  %1361 = vmatpush2.msra.mxu0 %v9206_v49  ;;  %v9255_v42 = vld [vmem:[#allocation131_spill] sm:$0xff]  ;;  %v9256_v45 = vld [vmem:[#allocation133_spill] sm:$0xff] }
 0x1f2   :  { %1427 = vmatprep.subr.mxu1 %v9205_v46  ;;  %1362 = vmatprep.subr.mxu0 %v9208_v53  ;;  %v9257_v46 = vld [vmem:[#allocation135_spill] sm:$0xff]  ;;  %v9258_v49 = vld [vmem:[#allocation21_spill] sm:$0xff]  ;;  %v9260_v53 = vld [vmem:[#allocation20_spill] sm:$0xff] }
 0x1f3   :  { %1428 = vmatpush2.msra.mxu1 %v9207_v50  ;;  %1363 = vmatpush2.msra.mxu0 %v9210_v57  ;;  %v9259_v50 = vsub.s32 0, %v9258_v49  ;;  %v9262_v57 = vsub.s32 1, %v9258_v49 }
 0x1f4   :  { %1429 = vmatprep.subr.mxu1 %v9209_v54  ;;  %1364 = vmatprep.subr.mxu0 %v9212_v61 }
 0x1f5   :  { %1430 = vmatpush2.msra.mxu1 %v9211_v58  ;;  %1365 = vmatpush2.msra.mxu0 %v9214_v3  ;;  %v6190_v54 = vrot.slane %v9260_v53, %v9259_v50  ;;  %v6195_v58 = vrot.slane %v9260_v53, %v9262_v57 }
 0x1f6   :  { %1431 = vmatprep.subr.mxu1 %v9213_v62  ;;  %1366 = vmatprep.subr.mxu0 %v9216_v16 }
 0x1f7   :  { %1432 = vmatpush2.msra.mxu1 %v9215_v4  ;;  %1367 = vmatpush2.msra.mxu0 %v9218_v7  ;;  %9261 = vst [vmem:[#allocation52_spill] sm:$0xff] %v6190_v54  ;;  %9263 = vst [vmem:[#allocation51_spill] sm:$0xff] %v6195_v58  ;;  %v9264_v7 = vsub.s32 3, %v9258_v49 }
 0x1f8   :  { %1433 = vmatprep.subr.mxu1 %v9217_v25  ;;  %1368 = vmatprep.subr.mxu0 %v9220_v29 }
 0x1f9   :  { %1434 = vmatpush2.msra.mxu1 %v9219_v21  ;;  %1369 = vmatpush2.msra.mxu0 %v9222_v11  ;;  %v6202_v21 = vrot.slane %v9260_v53, %v9264_v7 }
 0x1fa   :  { %1435 = vmatprep.subr.mxu1 %v9221_v8  ;;  %1370 = vmatprep.subr.mxu0 %v9224_v20 }
 0x1fb   :  { %1436 = vmatpush2.msra.mxu1 %v9223_v12  ;;  %1371 = vmatpush2.msra.mxu0 %v9226_v34  ;;  %9265 = vst [vmem:[#allocation54_spill] sm:$0xff] %v6202_v21  ;;  %v9266_v12 = vsub.s32 2, %v9258_v49 }
 0x1fc   :  { %1437 = vmatprep.subr.mxu1 %v9225_v27  ;;  %1372 = vmatprep.subr.mxu0 %v9228_v30 }
 0x1fd   :  { %1438 = vmatpush2.msra.mxu1 %v9227_v22  ;;  %1373 = vmatpush2.msra.mxu0 %v9230_v26  ;;  %v6208_v20 = vrot.slane %v9260_v53, %v9266_v12 }
 0x1fe   :  { %1439 = vmatprep.subr.mxu1 %v9229_v17  ;;  %1374 = vmatprep.subr.mxu0 %v9232_v18 }
 0x1ff   :  { %1440 = vmatpush2.msra.mxu1 %v9231_v0  ;;  %1375 = vmatpush2.msra.mxu0 %v9234_v23  ;;  %9267 = vst [vmem:[#allocation53_spill] sm:$0xff] %v6208_v20  ;;  %v9268_v23 = vld [vmem:[#allocation22_spill] sm:$0xff] }
 0x200   :  { %1441 = vmatprep.subr.mxu1 %v9233_v19  ;;  %1376 = vmatprep.subr.mxu0 %v9236_v56 }
 0x201   :  { %1442 = vmatpush2.msra.mxu1 %v9235_v24  ;;  %1377 = vmatpush2.msra.mxu0 %v9238_v48 }
 0x202   :  { %1443 = vmatprep.subr.mxu1 %v9237_v59  ;;  %1378 = vmatprep.subr.mxu0 %v9240_v51 }
 0x203   :  { %1444 = vmatpush2.msra.mxu1 %v9239_v55  ;;  %1379 = vmatpush2.msra.mxu0 %v9242_v60 }
 0x204   :  { %1445 = vmatprep.subr.mxu1 %v9241_v52  ;;  %1380 = vmatprep.subr.mxu0 %v9244_v2  ;;  %v9269_v52 = vld [vmem:[#allocation24_spill] sm:$0xff] }
 0x205   :  { %1446 = vmatpush2.msra.mxu1 %v9243_v63  ;;  %1381 = vmatpush2.msra.mxu0 %v9246_v6 }
 0x206   :  { %1447 = vmatprep.subr.mxu1 %v9245_v5  ;;  %1382 = vmatprep.subr.mxu0 %v9248_v10 }
 0x207   :  { %1448 = vmatpush2.msra.mxu1 %v9247_v9  ;;  %1383 = vmatpush2.msra.mxu0 %v9250_v14 }
 0x208   :  { %1449 = vmatprep.subr.mxu1 %v9249_v13  ;;  %1550 = vmatprep.subr.mxu0 %v9252_v33  ;;  %v9270_v13 = vld [vmem:[#allocation25_spill] sm:$0xff] }
 0x209   :  { %1450 = vmatpush2.msra.mxu1 %v9251_v28  ;;  %v9271_v28 = vld [vmem:[#allocation23_spill] sm:$0xff] }
 0x20a   :  { %1451 = vmatprep.subr.mxu1 %v9253_v38 }
 0x20b   :  { %1452 = vmatpush2.msra.mxu1 %v9254_v41 }
 0x20c   :  { %1453 = vmatprep.subr.mxu1 %v9255_v42 }
 0x20d   :  { %1454 = vmatpush2.msra.mxu1 %v9256_v45 }
 0x20e   :  { %1621 = vmatprep.subr.mxu1 %v9257_v46 }
 0x267   :  { %v854_v61 = vpop.f32.mrf.mxu0 }
 0x268   :  { %v855_v62 = vadd.f32 %v854_v61, %v6190_v54 }
 0x269   :  { %v856_v3 = vpop.f32.mrf.mxu0 }
 0x26a   :  { %v4797_v4 = vmul.f32 -1.442695, %v855_v62  ;;  %v857_v16 = vadd.f32 %v856_v3, %v6195_v58 }
 0x26b   :  { %v925_v29 = vpop.f32.mrf.mxu1 }
 0x26c   :  { %4921 = vpow2.f32 %v4797_v4  ;;  %v4798_v25 = vmul.f32 -1.442695, %v857_v16  ;;  %v926_v34 = vadd.f32 %v925_v29, %v6208_v20  ;;  %v9272_v16 = vld [vmem:[#allocation50_spill] sm:$0xff] }
 0x26d   :  { %v927_v8 = vpop.f32.mrf.mxu1 }
 0x26e   :  { %4923 = vpow2.f32 %v4798_v25  ;;  %v928_v11 = vadd.f32 %v927_v8, %v6202_v21 }
 0x270   :  { %v4799_v27 = vmul.f32 -1.442695, %v928_v11 }
 0x272   :  { %4925 = vpow2.f32 %v4799_v27  ;;  %v9273_v27 = vld [vmem:[#allocation124_spill] sm:$0xff] }
 0x273   :  { %4927 = vtanh.f32 %v926_v34  ;;  %v9274_v34 = vld [vmem:[#allocation138_spill] sm:$0xff] }
 0x279   :  { %v4922_v22 = vpop.eup %4921 }
 0x27a   :  { %v933_v30 = vadd.f32 1.0, %v4922_v22  ;;  %v9275_v22 = vld [vmem:[#allocation126_spill] sm:$0xff] }
 0x27b   :  { %v4924_v17 = vpop.eup %4923 }
 0x27c   :  { %4929 = vrcp.f32 %v933_v30  ;;  %v939_v26 = vadd.f32 1.0, %v4924_v17  ;;  %v9276_v30 = vld [vmem:[#allocation140_spill] sm:$0xff] }
 0x27d   :  { %v9277_v17 = vld [vmem:[#allocation128_spill] sm:$0xff] }
 0x27e   :  { %4931 = vrcp.f32 %v939_v26  ;;  %v9278_v26 = vld [vmem:[#allocation142_spill] sm:$0xff] }
 0x27f   :  { %v4926_v0 = vpop.eup %4925 }
 0x280   :  { %v4928_v18 = vpop.eup %4927  ;;  %v946_v59 = vadd.f32 1.0, %v4926_v0  ;;  %v9279_v0 = vld [vmem:[#allocation130_spill] sm:$0xff] }
 0x287   :  { %v1084_v19 = vpop.f32.mrf.mxu0 }
 0x288   :  { %v1160_v24 = vadd.f32 %v1084_v19, %v9268_v23  ;;  %v9281_v19 = vld [vmem:[#allocation132_spill] sm:$0xff]  ;;  %v9282_v23 = vld [vmem:[#allocation146_spill] sm:$0xff] }
 0x289   :  { %v4930_v56 = vpop.eup %4929  ;;  %v1086_v48 = vpop.f32.mrf.mxu0 }
 0x28a   :  { %v950_v55 = vmul.f32 %v4930_v56, %v4928_v18  ;;  %v4800_v51 = vmul.f32 -1.442695, %v1160_v24  ;;  %v1161_v60 = vadd.f32 %v1086_v48, %v9269_v52  ;;  %v9280_v18 = vld [vmem:[#allocation144_spill] sm:$0xff]  ;;  %v9283_v24 = vld [vmem:[#allocation134_spill] sm:$0xff]  ;;  %v9289_v52 = vld [vmem:[#allocation139_spill] sm:$0xff] }
 0x28b   :  { %v4932_v63 = vpop.eup %4931  ;;  %v9284_v56 = vld [vmem:[#allocation148_spill] sm:$0xff]  ;;  %v9286_v48 = vld [vmem:[#allocation150_spill] sm:$0xff] }
 0x28c   :  { %v949_v2 = vmul.f32 0.0, %v4932_v63  ;;  %4933 = vpow2.f32 %v4800_v51  ;;  %v4801_v5 = vmul.f32 -1.442695, %v1161_v60  ;;  %v9288_v51 = vld [vmem:[#allocation152_spill] sm:$0xff]  ;;  %v9290_v60 = vld [vmem:[#allocation154_spill] sm:$0xff]  ;;  %v9291_v63 = vld [vmem:[#allocation141_spill] sm:$0xff] }
 0x28d   :  { %4935 = vrcp.f32 %v946_v59  ;;  %v1155_v9 = vpop.f32.mrf.mxu1  ;;  %v9285_v59 = vld [vmem:[#allocation136_spill] sm:$0xff] }
 0x28e   :  { %v6213_v6 = vadd.f32 %v950_v55, %v949_v2  ;;  %4937 = vpow2.f32 %v4801_v5  ;;  %v1162_v33 = vadd.f32 %v1155_v9, %v9271_v28  ;;  %v9287_v55 = vld [vmem:[#allocation137_spill] sm:$0xff]  ;;  %v9292_v2 = vld [vmem:[#allocation156_spill] sm:$0xff]  ;;  %v9293_v5 = vld [vmem:[#allocation143_spill] sm:$0xff] }
 0x28f   :  { %v1157_v10 = vpop.f32.mrf.mxu1  ;;  %v9294_v9 = vld [vmem:[#allocation158_spill] sm:$0xff] }
 0x290   :  { %4939 = vtanh.f32 %v6213_v6  ;;  %v1163_v14 = vadd.f32 %v1157_v10, %v9270_v13  ;;  %v9295_v10 = vld [vmem:[#allocation145_spill] sm:$0xff]  ;;  %v9296_v13 = vld [vmem:[#allocation160_spill] sm:$0xff]  ;;  %v9298_v28 = vld [vmem:[#allocation162_spill] sm:$0xff] }
 0x291   :  { %4941 = vtanh.f32 %v1162_v33  ;;  %v9299_v33 = vld [vmem:[#allocation149_spill] sm:$0xff] }
 0x292   :  { %v4802_v38 = vmul.f32 -1.442695, %v1163_v14  ;;  %v9297_v14 = vld [vmem:[#allocation147_spill] sm:$0xff] }
 0x294   :  { %4943 = vpow2.f32 %v4802_v38  ;;  %v9300_v38 = vld [vmem:[#allocation164_spill] sm:$0xff] }
 0x299   :  { %v4934_v41 = vpop.eup %4933 }
 0x29a   :  { %v4936_v42 = vpop.eup %4935  ;;  %v1167_v45 = vadd.f32 1.0, %v4934_v41  ;;  %v9301_v41 = vld [vmem:[#allocation151_spill] sm:$0xff] }
 0x29b   :  { %v4938_v46 = vpop.eup %4937 }
 0x29c   :  { %4945 = vrcp.f32 %v1167_v45  ;;  %v1173_v49 = vadd.f32 1.0, %v4938_v46  ;;  %v9303_v45 = vld [vmem:[#allocation153_spill] sm:$0xff] }
 0x29d   :  { %v4940_v50 = vpop.eup %4939  ;;  %v9304_v46 = vld [vmem:[#allocation169_spill] sm:$0xff] }
 0x29e   :  { %4947 = vrcp.f32 %v1173_v49  ;;  %v953_v53 = vmul.f32 %v4940_v50, %v4936_v42  ;;  %v4942_v57 = vpop.eup %4941  ;;  %v9302_v42 = vld [vmem:[#allocation167_spill] sm:$0xff] }
 0x29f   :  { %v9305_v49 = vld [vmem:[#allocation155_spill] sm:$0xff] }
 0x2a0   :  { %1384 = vmatprep.mubr.f32.mxu0 %v953_v53  ;;  %1455 = vmatprep.mubr.f32.mxu1 %v953_v53  ;;  %v9306_v50 = vld [vmem:[#allocation171_spill] sm:$0xff]  ;;  %v9307_v53 = vld [vmem:[#allocation157_spill] sm:$0xff] }
 0x2a1   :  { %v4944_v61 = vpop.eup %4943 }
 0x2a2   :  { %v1180_v4 = vadd.f32 1.0, %v4944_v61  ;;  %v9309_v61 = vld [vmem:[#allocation159_spill] sm:$0xff] }
 0x2a4   :  { %4949 = vrcp.f32 %v1180_v4  ;;  %v9312_v4 = vld [vmem:[#allocation177_spill] sm:$0xff] }
 0x2a9   :  { %v4946_v62 = vpop.eup %4945 }
 0x2aa   :  { %v1184_v7 = vmul.f32 %v4946_v62, %v4942_v57  ;;  %v9308_v57 = vld [vmem:[#allocation173_spill] sm:$0xff] }
 0x2ab   :  { %v4948_v3 = vpop.eup %4947  ;;  %v9310_v62 = vld [vmem:[#allocation161_spill] sm:$0xff] }
 0x2ac   :  { %v1183_v25 = vmul.f32 %v4948_v3, %v9272_v16  ;;  %v9311_v3 = vld [vmem:[#allocation163_spill] sm:$0xff]  ;;  %v9313_v16 = vld [vmem:[#allocation165_spill] sm:$0xff] }
 0x2ae   :  { %v6219_v29 = vadd.f32 %v1184_v7, %v1183_v25  ;;  %v9314_v25 = vld [vmem:[#allocation166_spill] sm:$0xff]  ;;  %v9315_v7 = vld [vmem:[#allocation168_spill] sm:$0xff] }
 0x2b0   :  { %4951 = vtanh.f32 %v6219_v29 }
 0x2b1   :  { %v4950_v8 = vpop.eup %4949 }
 0x2bd   :  { %v4952_v11 = vpop.eup %4951 }
 0x2be   :  { %v6222_v12 = vmul.f32 %v4952_v11, %v4950_v8  ;;  %v9316_v8 = vld [vmem:[#allocation180_spill] sm:$0xff]  ;;  %v9319_v11 = vld [vmem:[#allocation174_spill] sm:$0xff] }
 0x2c0   :  { %1385 = vmatmul.mubr.f32.vlgmr.msra.gmra.mxu0 %v6222_v12  ;;  %1456 = vmatmul.mubr.f32.vlgmr.msra.gmra.mxu1 %v6222_v12 }
 0x2c1   :  { %1551 = vmatpush1.msra.mxu0 %v9273_v27  ;;  %1622 = vmatpush1.msra.mxu1 %v9274_v34  ;;  %v9322_v27 = vld [vmem:[#allocation178_spill] sm:$0xff] }
 0x2c2   :  { %1552 = vmatprep.subr.mxu0 %v9275_v22  ;;  %1623 = vmatprep.subr.mxu1 %v9276_v30  ;;  %v6312_v34 = vld [vmem:[#allocation3 + $0x1d0] sm:$0xff]  ;;  %v6316_v22 = vld [vmem:[#allocation3 + $0x1a8] sm:$0xff]  ;;  %v6318_v30 = vld [vmem:[#allocation3 + $0x1b8] sm:$0xff] }
 0x2c3   :  { %1553 = vmatpush1.msra.mxu0 %v9277_v17  ;;  %1624 = vmatpush1.msra.mxu1 %v9278_v26  ;;  %v6322_v17 = vld [vmem:[#allocation3 + $0x1a0] sm:$0xff]  ;;  %v6324_v26 = vld [vmem:[#allocation3 + $0x1b0] sm:$0xff] }
 0x2c4   :  { %1554 = vmatprep.subr.mxu0 %v9279_v0  ;;  %1625 = vmatprep.subr.mxu1 %v9280_v18  ;;  %v6328_v0 = vld [vmem:[#allocation3 + $0x188] sm:$0xff]  ;;  %v6330_v18 = vld [vmem:[#allocation3 + $0x198] sm:$0xff] }
 0x2c5   :  { %1555 = vmatpush1.msra.mxu0 %v9281_v19  ;;  %1626 = vmatpush1.msra.mxu1 %v9282_v23  ;;  %v6334_v19 = vld [vmem:[#allocation3 + $0x180] sm:$0xff]  ;;  %v6336_v23 = vld [vmem:[#allocation3 + $0x190] sm:$0xff] }
 0x2c6   :  { %1556 = vmatprep.subr.mxu0 %v9283_v24  ;;  %1627 = vmatprep.subr.mxu1 %v9284_v56  ;;  %v6340_v24 = vld [vmem:[#allocation3 + $0x168] sm:$0xff]  ;;  %v6342_v56 = vld [vmem:[#allocation3 + $0x178] sm:$0xff] }
 0x2c7   :  { %1557 = vmatpush1.msra.mxu0 %v9285_v59  ;;  %1628 = vmatpush1.msra.mxu1 %v9286_v48  ;;  %v6346_v59 = vld [vmem:[#allocation3 + $0x160] sm:$0xff]  ;;  %v6348_v48 = vld [vmem:[#allocation3 + $0x170] sm:$0xff] }
 0x2c8   :  { %1558 = vmatprep.subr.mxu0 %v9287_v55  ;;  %1629 = vmatprep.subr.mxu1 %v9288_v51  ;;  %v6352_v55 = vld [vmem:[#allocation3 + $0x148] sm:$0xff]  ;;  %v6354_v51 = vld [vmem:[#allocation3 + $0x158] sm:$0xff] }
 0x2c9   :  { %1559 = vmatpush1.msra.mxu0 %v9289_v52  ;;  %1630 = vmatpush1.msra.mxu1 %v9290_v60  ;;  %v6358_v52 = vld [vmem:[#allocation3 + $0x140] sm:$0xff]  ;;  %v6360_v60 = vld [vmem:[#allocation3 + $0x150] sm:$0xff] }
 0x2ca   :  { %1560 = vmatprep.subr.mxu0 %v9291_v63  ;;  %1631 = vmatprep.subr.mxu1 %v9292_v2  ;;  %v6364_v63 = vld [vmem:[#allocation3 + $0x128] sm:$0xff]  ;;  %v6366_v2 = vld [vmem:[#allocation3 + $0x138] sm:$0xff] }
 0x2cb   :  { %1561 = vmatpush1.msra.mxu0 %v9293_v5  ;;  %1632 = vmatpush1.msra.mxu1 %v9294_v9  ;;  %v6370_v5 = vld [vmem:[#allocation3 + $0x120] sm:$0xff]  ;;  %v6372_v9 = vld [vmem:[#allocation3 + $0x130] sm:$0xff] }
 0x2cc   :  { %1562 = vmatprep.subr.mxu0 %v9295_v10  ;;  %1633 = vmatprep.subr.mxu1 %v9296_v13  ;;  %v6376_v10 = vld [vmem:[#allocation3 + $0x108] sm:$0xff]  ;;  %v6378_v13 = vld [vmem:[#allocation3 + $0x118] sm:$0xff] }
 0x2cd   :  { %1563 = vmatpush1.msra.mxu0 %v9297_v14  ;;  %1634 = vmatpush1.msra.mxu1 %v9298_v28  ;;  %v6382_v14 = vld [vmem:[#allocation3 + $0x100] sm:$0xff]  ;;  %v6384_v28 = vld [vmem:[#allocation3 + $0x110] sm:$0xff] }
 0x2ce   :  { %1564 = vmatprep.subr.mxu0 %v9299_v33  ;;  %1635 = vmatprep.subr.mxu1 %v9300_v38  ;;  %v6388_v33 = vld [vmem:[#allocation3 + $0xe8] sm:$0xff]  ;;  %v6390_v38 = vld [vmem:[#allocation3 + $0xf8] sm:$0xff] }
 0x2cf   :  { %1565 = vmatpush1.msra.mxu0 %v9301_v41  ;;  %1636 = vmatpush1.msra.mxu1 %v9302_v42  ;;  %v6394_v41 = vld [vmem:[#allocation3 + $0xe0] sm:$0xff]  ;;  %v6396_v42 = vld [vmem:[#allocation3 + $0xf0] sm:$0xff] }
 0x2d0   :  { %1566 = vmatprep.subr.mxu0 %v9303_v45  ;;  %1637 = vmatprep.subr.mxu1 %v9304_v46  ;;  %v6400_v45 = vld [vmem:[#allocation3 + $0xc8] sm:$0xff]  ;;  %v6402_v46 = vld [vmem:[#allocation3 + $0xd8] sm:$0xff] }
 0x2d1   :  { %1567 = vmatpush1.msra.mxu0 %v9305_v49  ;;  %1638 = vmatpush1.msra.mxu1 %v9306_v50  ;;  %v6406_v49 = vld [vmem:[#allocation3 + $0xc0] sm:$0xff]  ;;  %v6408_v50 = vld [vmem:[#allocation3 + $0xd0] sm:$0xff] }
 0x2d2   :  { %1568 = vmatprep.subr.mxu0 %v9307_v53  ;;  %1639 = vmatprep.subr.mxu1 %v9308_v57  ;;  %v6412_v53 = vld [vmem:[#allocation3 + $0xa8] sm:$0xff]  ;;  %v6414_v57 = vld [vmem:[#allocation3 + $0xb8] sm:$0xff] }
 0x2d3   :  { %1569 = vmatpush1.msra.mxu0 %v9309_v61  ;;  %1640 = vmatpush1.msra.mxu1 %v5998_v47  ;;  %v9317_v47 = vld [vmem:[#allocation170_spill] sm:$0xff]  ;;  %9324 = vst [vmem:[#allocation56_spill] sm:$0xff] %v6414_v57  ;;  %v6418_v61 = vld [vmem:[#allocation3 + $0xa0] sm:$0xff] }
 0x2d4   :  { %1570 = vmatprep.subr.mxu0 %v9310_v62  ;;  %1641 = vmatprep.subr.mxu1 %v6004_v32  ;;  %v9318_v32 = vld [vmem:[#allocation172_spill] sm:$0xff]  ;;  %9325 = vst [vmem:[#allocation55_spill] sm:$0xff] %v6418_v61  ;;  %v6420_v62 = vld [vmem:[#allocation3 + $0xb0] sm:$0xff] }
 0x2d5   :  { %1571 = vmatpush1.msra.mxu0 %v9311_v3  ;;  %1642 = vmatpush1.msra.mxu1 %v9312_v4  ;;  %9326 = vst [vmem:[#allocation58_spill] sm:$0xff] %v6420_v62  ;;  %v6424_v3 = vld [vmem:[#allocation3 + $0x88] sm:$0xff]  ;;  %v6426_v4 = vld [vmem:[#allocation3 + $0x98] sm:$0xff] }
 0x2d6   :  { %1572 = vmatprep.subr.mxu0 %v9313_v16  ;;  %1643 = vmatprep.subr.mxu1 %v6016_v31  ;;  %v9320_v31 = vld [vmem:[#allocation175_spill] sm:$0xff]  ;;  %9327 = vst [vmem:[#allocation57_spill] sm:$0xff] %v6424_v3  ;;  %9328 = vst [vmem:[#allocation60_spill] sm:$0xff] %v6426_v4  ;;  %v6430_v16 = vld [vmem:[#allocation3 + $0x80] sm:$0xff] }
 0x2d7   :  { %1573 = vmatpush1.msra.mxu0 %v9314_v25  ;;  %1644 = vmatpush1.msra.mxu1 %v6022_v44  ;;  %v9321_v44 = vld [vmem:[#allocation176_spill] sm:$0xff]  ;;  %9329 = vst [vmem:[#allocation59_spill] sm:$0xff] %v6430_v16  ;;  %v6432_v25 = vld [vmem:[#allocation3 + $0x90] sm:$0xff] }
 0x2d8   :  { %1574 = vmatprep.subr.mxu0 %v9315_v7  ;;  %1645 = vmatprep.subr.mxu1 %v9316_v8  ;;  %9330 = vst [vmem:[#allocation62_spill] sm:$0xff] %v6432_v25  ;;  %v6436_v7 = vld [vmem:[#allocation3 + $0x68] sm:$0xff]  ;;  %v6438_v8 = vld [vmem:[#allocation3 + $0x78] sm:$0xff] }
 0x2d9   :  { %1575 = vmatpush1.msra.mxu0 %v9317_v47  ;;  %1646 = vmatpush1.msra.mxu1 %v6030_v37  ;;  %v9323_v37 = vld [vmem:[#allocation179_spill] sm:$0xff]  ;;  %9331 = vst [vmem:[#allocation61_spill] sm:$0xff] %v6436_v7  ;;  %9332 = vst [vmem:[#allocation64_spill] sm:$0xff] %v6438_v8  ;;  %v6442_v47 = vld [vmem:[#allocation3 + $0x60] sm:$0xff] }
 0x2da   :  { %1576 = vmatprep.subr.mxu0 %v9318_v32  ;;  %1647 = vmatprep.subr.mxu1 %v6034_v40  ;;  %v6304_v40 = vld [vmem:[#allocation3 + $0x1c8] sm:$0xff]  ;;  %9333 = vst [vmem:[#allocation63_spill] sm:$0xff] %v6442_v47  ;;  %v6444_v32 = vld [vmem:[#allocation3 + $0x70] sm:$0xff] }
 0x2db   :  { %1577 = vmatpush1.msra.mxu0 %v9319_v11  ;;  %1648 = vmatpush1.msra.mxu1 %v6038_v36  ;;  %v6294_v36 = vld [vmem:[#allocation3 + $0x1f8] sm:$0xff]  ;;  %9334 = vst [vmem:[#allocation66_spill] sm:$0xff] %v6444_v32  ;;  %v6448_v11 = vld [vmem:[#allocation3 + $0x48] sm:$0xff] }
 0x2dc   :  { %1578 = vmatprep.subr.mxu0 %v9320_v31  ;;  %1649 = vmatprep.subr.mxu1 %v6041_v35  ;;  %v6292_v35 = vld [vmem:[#allocation3 + $0x1e8] sm:$0xff]  ;;  %9335 = vst [vmem:[#allocation65_spill] sm:$0xff] %v6448_v11  ;;  %v6450_v31 = vld [vmem:[#allocation3 + $0x58] sm:$0xff] }
 0x2dd   :  { %1579 = vmatpush1.msra.mxu0 %v9321_v44  ;;  %1650 = vmatpush1.msra.mxu1 %v6045_v39  ;;  %v6300_v39 = vld [vmem:[#allocation3 + $0x1f0] sm:$0xff]  ;;  %9336 = vst [vmem:[#allocation68_spill] sm:$0xff] %v6450_v31  ;;  %v6454_v44 = vld [vmem:[#allocation3 + $0x40] sm:$0xff] }
 0x2de   :  { %1580 = vmatprep.subr.mxu0 %v9322_v27  ;;  %1651 = vmatprep.subr.mxu1 %v6049_v15  ;;  %v6298_v15 = vld [vmem:[#allocation3 + $0x1e0] sm:$0xff]  ;;  %9337 = vst [vmem:[#allocation67_spill] sm:$0xff] %v6454_v44  ;;  %v6456_v27 = vld [vmem:[#allocation3 + $0x50] sm:$0xff] }
 0x2df   :  { %1581 = vmatpush1.msra.mxu0 %v9323_v37  ;;  %1614 = vmatprep.mubr.f32.mxu0 %v9168_v1  ;;  %9338 = vst [vmem:[#allocation70_spill] sm:$0xff] %v6456_v27  ;;  %v6460_v37 = vld [vmem:[#allocation3 + $0x28] sm:$0xff] }
 0x2e0   :  { %1652 = vmatpush1.msra.mxu1 %v6053_v43  ;;  %1685 = vmatprep.mubr.f32.mxu1 %v9168_v1  ;;  %v6306_v43 = vld [vmem:[#allocation3 + $0x1d8] sm:$0xff]  ;;  %9339 = vst [vmem:[#allocation69_spill] sm:$0xff] %v6460_v37 }
 0x2e1   :  { %1615 = vmatmul.mubr.f32.vlgmr.msra.gmra.mxu0 %v6222_v12  ;;  %1686 = vmatmul.mubr.f32.vlgmr.msra.gmra.mxu1 %v6222_v12  ;;  %v6310_v12 = vld [vmem:[#allocation3 + $0x1c0] sm:$0xff] }
 0x2e2   :  { %1852 = vmatprep.subr.mxu0 %v6292_v35  ;;  %1923 = vmatprep.subr.mxu1 %v6294_v36 }
 0x2e3   :  { %1853 = vmatpush1.msra.mxu0 %v6298_v15  ;;  %1924 = vmatpush1.msra.mxu1 %v6300_v39 }
 0x2e4   :  { %1854 = vmatprep.subr.mxu0 %v6304_v40  ;;  %1925 = vmatprep.subr.mxu1 %v6306_v43 }
 0x2e5   :  { %1855 = vmatpush1.msra.mxu0 %v6310_v12  ;;  %1926 = vmatpush1.msra.mxu1 %v6312_v34 }
 0x2e6   :  { %1856 = vmatprep.subr.mxu0 %v6316_v22  ;;  %1927 = vmatprep.subr.mxu1 %v6318_v30 }
 0x2e7   :  { %1857 = vmatpush1.msra.mxu0 %v6322_v17  ;;  %1928 = vmatpush1.msra.mxu1 %v6324_v26 }
 0x2e8   :  { %1858 = vmatprep.subr.mxu0 %v6328_v0  ;;  %1929 = vmatprep.subr.mxu1 %v6330_v18 }
 0x2e9   :  { %1859 = vmatpush1.msra.mxu0 %v6334_v19  ;;  %1930 = vmatpush1.msra.mxu1 %v6336_v23 }
 0x2ea   :  { %1860 = vmatprep.subr.mxu0 %v6340_v24  ;;  %1931 = vmatprep.subr.mxu1 %v6342_v56 }
 0x2eb   :  { %1861 = vmatpush1.msra.mxu0 %v6346_v59  ;;  %1932 = vmatpush1.msra.mxu1 %v6348_v48 }
 0x2ec   :  { %1862 = vmatprep.subr.mxu0 %v6352_v55  ;;  %1933 = vmatprep.subr.mxu1 %v6354_v51 }
 0x2ed   :  { %1863 = vmatpush1.msra.mxu0 %v6358_v52  ;;  %1934 = vmatpush1.msra.mxu1 %v6360_v60 }
 0x2ee   :  { %1864 = vmatprep.subr.mxu0 %v6364_v63  ;;  %1935 = vmatprep.subr.mxu1 %v6366_v2 }
 0x2ef   :  { %1865 = vmatpush1.msra.mxu0 %v6370_v5  ;;  %1936 = vmatpush1.msra.mxu1 %v6372_v9 }
 0x2f0   :  { %1866 = vmatprep.subr.mxu0 %v6376_v10  ;;  %1937 = vmatprep.subr.mxu1 %v6378_v13 }
 0x2f1   :  { %1867 = vmatpush1.msra.mxu0 %v6382_v14  ;;  %1938 = vmatpush1.msra.mxu1 %v6384_v28 }
 0x2f2   :  { %1868 = vmatprep.subr.mxu0 %v6388_v33  ;;  %1939 = vmatprep.subr.mxu1 %v6390_v38 }
 0x2f3   :  { %1869 = vmatpush1.msra.mxu0 %v6394_v41  ;;  %1940 = vmatpush1.msra.mxu1 %v6396_v42 }
 0x2f4   :  { %1870 = vmatprep.subr.mxu0 %v6400_v45  ;;  %1941 = vmatprep.subr.mxu1 %v6402_v46 }
 0x2f5   :  { %1871 = vmatpush1.msra.mxu0 %v6406_v49  ;;  %1942 = vmatpush1.msra.mxu1 %v6408_v50 }
 0x2f6   :  { %1872 = vmatprep.subr.mxu0 %v6412_v53  ;;  %1943 = vmatprep.subr.mxu1 %v6414_v57 }
 0x2f7   :  { %1873 = vmatpush1.msra.mxu0 %v6418_v61  ;;  %1944 = vmatpush1.msra.mxu1 %v6420_v62 }
 0x2f8   :  { %1874 = vmatprep.subr.mxu0 %v6424_v3  ;;  %1945 = vmatprep.subr.mxu1 %v6426_v4 }
 0x2f9   :  { %1875 = vmatpush1.msra.mxu0 %v6430_v16  ;;  %1946 = vmatpush1.msra.mxu1 %v6432_v25  ;;  %v6602_v25 = vld [vmem:[#allocation3 + $0x2b8] sm:$0xff]  ;;  %v6618_v16 = vld [vmem:[#allocation3 + $0x280] sm:$0xff] }
 0x2fa   :  { %1876 = vmatprep.subr.mxu0 %v6436_v7  ;;  %1947 = vmatprep.subr.mxu1 %v6438_v8  ;;  %v6586_v8 = vld [vmem:[#allocation3 + $0x2f0] sm:$0xff]  ;;  %v6594_v7 = vld [vmem:[#allocation3 + $0x2c0] sm:$0xff]  ;;  %9388 = vst [vmem:[#allocation120_spill] sm:$0xff] %v6602_v25  ;;  %9393 = vst [vmem:[#allocation123_spill] sm:$0xff] %v6618_v16 }
 0x2fb   :  { %1877 = vmatpush1.msra.mxu0 %v6442_v47  ;;  %1948 = vmatpush1.msra.mxu1 %v6444_v32  ;;  %v6462_v47 = vld [vmem:[#allocation3 + $0x38] sm:$0xff]  ;;  %v6466_v32 = vld [vmem:[#allocation3 + $0x20] sm:$0xff]  ;;  %9382 = vst [vmem:[#allocation114_spill] sm:$0xff] %v6586_v8  ;;  %9385 = vst [vmem:[#allocation115_spill] sm:$0xff] %v6594_v7 }
 0x2fc   :  { %1878 = vmatprep.subr.mxu0 %v6448_v11  ;;  %1949 = vmatprep.subr.mxu1 %v6450_v31  ;;  %9340 = vst [vmem:[#allocation72_spill] sm:$0xff] %v6462_v47  ;;  %9341 = vst [vmem:[#allocation71_spill] sm:$0xff] %v6466_v32  ;;  %v6468_v11 = vld [vmem:[#allocation3 + $0x30] sm:$0xff]  ;;  %v6472_v31 = vld [vmem:[#allocation3 + $0x8] sm:$0xff] }
 0x2fd   :  { %1879 = vmatpush1.msra.mxu0 %v6454_v44  ;;  %1950 = vmatpush1.msra.mxu1 %v6456_v27  ;;  %9342 = vst [vmem:[#allocation74_spill] sm:$0xff] %v6468_v11  ;;  %9343 = vst [vmem:[#allocation73_spill] sm:$0xff] %v6472_v31  ;;  %v6474_v44 = vld [vmem:[#allocation3 + $0x18] sm:$0xff]  ;;  %v6478_v27 = vld [vmem:[#allocation3] sm:$0xff] }
 0x2fe   :  { %1880 = vmatprep.subr.mxu0 %v6460_v37  ;;  %1951 = vmatprep.subr.mxu1 %v6462_v47  ;;  %9344 = vst [vmem:[#allocation76_spill] sm:$0xff] %v6474_v44  ;;  %9345 = vst [vmem:[#allocation75_spill] sm:$0xff] %v6478_v27  ;;  %v6480_v37 = vld [vmem:[#allocation3 + $0x10] sm:$0xff]  ;;  %v6484_v47 = vld [vmem:[#allocation3 + $0x3e8] sm:$0xff] }
 0x2ff   :  { %1881 = vmatpush1.msra.mxu0 %v6466_v32  ;;  %1952 = vmatpush1.msra.mxu1 %v6468_v11  ;;  %9346 = vst [vmem:[#allocation78_spill] sm:$0xff] %v6480_v37  ;;  %9347 = vst [vmem:[#allocation77_spill] sm:$0xff] %v6484_v47  ;;  %v6486_v32 = vld [vmem:[#allocation3 + $0x3f8] sm:$0xff]  ;;  %v6490_v11 = vld [vmem:[#allocation3 + $0x3e0] sm:$0xff] }
 0x300   :  { %1882 = vmatprep.subr.mxu0 %v6472_v31  ;;  %1953 = vmatprep.subr.mxu1 %v6474_v44  ;;  %9348 = vst [vmem:[#allocation80_spill] sm:$0xff] %v6486_v32  ;;  %9349 = vst [vmem:[#allocation79_spill] sm:$0xff] %v6490_v11  ;;  %v6492_v31 = vld [vmem:[#allocation3 + $0x3f0] sm:$0xff]  ;;  %v6496_v44 = vld [vmem:[#allocation3 + $0x3c8] sm:$0xff] }
 0x301   :  { %1883 = vmatpush1.msra.mxu0 %v6478_v27  ;;  %1954 = vmatpush1.msra.mxu1 %v6480_v37  ;;  %9350 = vst [vmem:[#allocation82_spill] sm:$0xff] %v6492_v31  ;;  %9351 = vst [vmem:[#allocation81_spill] sm:$0xff] %v6496_v44  ;;  %v6498_v27 = vld [vmem:[#allocation3 + $0x3d8] sm:$0xff]  ;;  %v6502_v37 = vld [vmem:[#allocation3 + $0x3c0] sm:$0xff] }
 0x302   :  { %1884 = vmatprep.subr.mxu0 %v6484_v47  ;;  %1955 = vmatprep.subr.mxu1 %v6486_v32  ;;  %9352 = vst [vmem:[#allocation84_spill] sm:$0xff] %v6498_v27  ;;  %9353 = vst [vmem:[#allocation83_spill] sm:$0xff] %v6502_v37  ;;  %v6504_v47 = vld [vmem:[#allocation3 + $0x3d0] sm:$0xff]  ;;  %v6508_v32 = vld [vmem:[#allocation3 + $0x3a8] sm:$0xff] }
 0x303   :  { %1885 = vmatpush2.msra.mxu0 %v6490_v11  ;;  %1956 = vmatpush2.msra.mxu1 %v6492_v31  ;;  %9354 = vst [vmem:[#allocation86_spill] sm:$0xff] %v6504_v47  ;;  %9355 = vst [vmem:[#allocation85_spill] sm:$0xff] %v6508_v32  ;;  %v6510_v11 = vld [vmem:[#allocation3 + $0x3b8] sm:$0xff]  ;;  %v6514_v31 = vld [vmem:[#allocation3 + $0x3a0] sm:$0xff] }
 0x304   :  { %1886 = vmatprep.subr.mxu0 %v6496_v44  ;;  %1957 = vmatprep.subr.mxu1 %v6498_v27  ;;  %9356 = vst [vmem:[#allocation88_spill] sm:$0xff] %v6510_v11  ;;  %9357 = vst [vmem:[#allocation87_spill] sm:$0xff] %v6514_v31  ;;  %v6516_v44 = vld [vmem:[#allocation3 + $0x3b0] sm:$0xff]  ;;  %v6520_v27 = vld [vmem:[#allocation3 + $0x388] sm:$0xff] }
 0x305   :  { %1887 = vmatpush2.msra.mxu0 %v6502_v37  ;;  %1958 = vmatpush2.msra.mxu1 %v6504_v47  ;;  %9358 = vst [vmem:[#allocation90_spill] sm:$0xff] %v6516_v44  ;;  %9359 = vst [vmem:[#allocation89_spill] sm:$0xff] %v6520_v27  ;;  %v6522_v37 = vld [vmem:[#allocation3 + $0x398] sm:$0xff]  ;;  %v6526_v47 = vld [vmem:[#allocation3 + $0x380] sm:$0xff] }
 0x306   :  { %1888 = vmatprep.subr.mxu0 %v6508_v32  ;;  %1959 = vmatprep.subr.mxu1 %v6510_v11  ;;  %9360 = vst [vmem:[#allocation92_spill] sm:$0xff] %v6522_v37  ;;  %9361 = vst [vmem:[#allocation91_spill] sm:$0xff] %v6526_v47  ;;  %v6528_v32 = vld [vmem:[#allocation3 + $0x390] sm:$0xff]  ;;  %v6532_v11 = vld [vmem:[#allocation3 + $0x368] sm:$0xff] }
 0x307   :  { %1889 = vmatpush2.msra.mxu0 %v6514_v31  ;;  %1960 = vmatpush2.msra.mxu1 %v6516_v44  ;;  %9362 = vst [vmem:[#allocation94_spill] sm:$0xff] %v6528_v32  ;;  %9363 = vst [vmem:[#allocation93_spill] sm:$0xff] %v6532_v11  ;;  %v6534_v31 = vld [vmem:[#allocation3 + $0x378] sm:$0xff]  ;;  %v6538_v44 = vld [vmem:[#allocation3 + $0x360] sm:$0xff] }
 0x308   :  { %1890 = vmatprep.subr.mxu0 %v6520_v27  ;;  %1961 = vmatprep.subr.mxu1 %v6522_v37  ;;  %9364 = vst [vmem:[#allocation96_spill] sm:$0xff] %v6534_v31  ;;  %9365 = vst [vmem:[#allocation95_spill] sm:$0xff] %v6538_v44  ;;  %v6540_v27 = vld [vmem:[#allocation3 + $0x370] sm:$0xff]  ;;  %v6544_v37 = vld [vmem:[#allocation3 + $0x348] sm:$0xff] }
 0x309   :  { %1891 = vmatpush2.msra.mxu0 %v6526_v47  ;;  %1962 = vmatpush2.msra.mxu1 %v6528_v32  ;;  %9366 = vst [vmem:[#allocation98_spill] sm:$0xff] %v6540_v27  ;;  %9367 = vst [vmem:[#allocation97_spill] sm:$0xff] %v6544_v37  ;;  %v6546_v47 = vld [vmem:[#allocation3 + $0x358] sm:$0xff]  ;;  %v6550_v32 = vld [vmem:[#allocation3 + $0x340] sm:$0xff] }
 0x30a   :  { %1892 = vmatprep.subr.mxu0 %v6532_v11  ;;  %1963 = vmatprep.subr.mxu1 %v6534_v31  ;;  %9368 = vst [vmem:[#allocation100_spill] sm:$0xff] %v6546_v47  ;;  %9369 = vst [vmem:[#allocation99_spill] sm:$0xff] %v6550_v32  ;;  %v6552_v11 = vld [vmem:[#allocation3 + $0x350] sm:$0xff]  ;;  %v6556_v31 = vld [vmem:[#allocation3 + $0x328] sm:$0xff] }
 0x30b   :  { %1893 = vmatpush2.msra.mxu0 %v6538_v44  ;;  %1964 = vmatpush2.msra.mxu1 %v6540_v27  ;;  %9370 = vst [vmem:[#allocation102_spill] sm:$0xff] %v6552_v11  ;;  %9371 = vst [vmem:[#allocation101_spill] sm:$0xff] %v6556_v31  ;;  %v6558_v44 = vld [vmem:[#allocation3 + $0x338] sm:$0xff]  ;;  %v6562_v27 = vld [vmem:[#allocation3 + $0x320] sm:$0xff] }
 0x30c   :  { %1894 = vmatprep.subr.mxu0 %v6544_v37  ;;  %1965 = vmatprep.subr.mxu1 %v6546_v47  ;;  %9372 = vst [vmem:[#allocation104_spill] sm:$0xff] %v6558_v44  ;;  %9373 = vst [vmem:[#allocation103_spill] sm:$0xff] %v6562_v27  ;;  %v6564_v37 = vld [vmem:[#allocation3 + $0x330] sm:$0xff]  ;;  %v6568_v47 = vld [vmem:[#allocation3 + $0x308] sm:$0xff] }
 0x30d   :  { %1895 = vmatpush2.msra.mxu0 %v6550_v32  ;;  %1966 = vmatpush2.msra.mxu1 %v6552_v11  ;;  %9374 = vst [vmem:[#allocation106_spill] sm:$0xff] %v6564_v37  ;;  %9375 = vst [vmem:[#allocation105_spill] sm:$0xff] %v6568_v47  ;;  %v6570_v32 = vld [vmem:[#allocation3 + $0x318] sm:$0xff]  ;;  %v6574_v11 = vld [vmem:[#allocation3 + $0x300] sm:$0xff] }
 0x30e   :  { %1896 = vmatprep.subr.mxu0 %v6556_v31  ;;  %1967 = vmatprep.subr.mxu1 %v6558_v44  ;;  %9376 = vst [vmem:[#allocation108_spill] sm:$0xff] %v6570_v32  ;;  %9377 = vst [vmem:[#allocation107_spill] sm:$0xff] %v6574_v11  ;;  %v6576_v31 = vld [vmem:[#allocation3 + $0x310] sm:$0xff]  ;;  %v6578_v44 = vld [vmem:[#allocation3 + $0x2e8] sm:$0xff] }
 0x30f   :  { %1897 = vmatpush2.msra.mxu0 %v6562_v27  ;;  %1968 = vmatpush2.msra.mxu1 %v6564_v37  ;;  %9378 = vst [vmem:[#allocation110_spill] sm:$0xff] %v6576_v31  ;;  %9379 = vst [vmem:[#allocation109_spill] sm:$0xff] %v6578_v44  ;;  %v6582_v27 = vld [vmem:[#allocation3 + $0x2f8] sm:$0xff]  ;;  %v6584_v37 = vld [vmem:[#allocation3 + $0x2e0] sm:$0xff] }
 0x310   :  { %1898 = vmatprep.subr.mxu0 %v6568_v47  ;;  %1969 = vmatprep.subr.mxu1 %v6570_v32  ;;  %9380 = vst [vmem:[#allocation112_spill] sm:$0xff] %v6582_v27  ;;  %9381 = vst [vmem:[#allocation111_spill] sm:$0xff] %v6584_v37  ;;  %v6590_v32 = vld [vmem:[#allocation3 + $0x2c8] sm:$0xff]  ;;  %v6592_v47 = vld [vmem:[#allocation3 + $0x2d8] sm:$0xff] }
 0x311   :  { %1899 = vmatpush2.msra.mxu0 %v6574_v11  ;;  %1970 = vmatpush2.msra.mxu1 %v6576_v31  ;;  %9383 = vst [vmem:[#allocation113_spill] sm:$0xff] %v6590_v32  ;;  %9384 = vst [vmem:[#allocation116_spill] sm:$0xff] %v6592_v47  ;;  %v6598_v31 = vld [vmem:[#allocation3 + $0x2d0] sm:$0xff]  ;;  %v6600_v11 = vld [vmem:[#allocation3 + $0x2a8] sm:$0xff] }
 0x312   :  { %1900 = vmatprep.subr.mxu0 %v6578_v44  ;;  %1971 = vmatprep.subr.mxu1 %v6582_v27  ;;  %9386 = vst [vmem:[#allocation118_spill] sm:$0xff] %v6598_v31  ;;  %9387 = vst [vmem:[#allocation117_spill] sm:$0xff] %v6600_v11  ;;  %v6606_v27 = vld [vmem:[#allocation3 + $0x2a0] sm:$0xff]  ;;  %v6608_v44 = vld [vmem:[#allocation3 + $0x2b0] sm:$0xff] }
 0x313   :  { %1901 = vmatpush2.msra.mxu0 %v6584_v37  ;;  %1972 = vmatpush2.msra.mxu1 %v6586_v8  ;;  %9389 = vst [vmem:[#allocation119_spill] sm:$0xff] %v6606_v27  ;;  %9390 = vst [vmem:[#allocation122_spill] sm:$0xff] %v6608_v44  ;;  %v6612_v37 = vld [vmem:[#allocation3 + $0x288] sm:$0xff]  ;;  %v6614_v8 = vld [vmem:[#allocation3 + $0x298] sm:$0xff] }
 0x314   :  { %1902 = vmatprep.subr.mxu0 %v6590_v32  ;;  %1973 = vmatprep.subr.mxu1 %v6592_v47  ;;  %9391 = vst [vmem:[#allocation121_spill] sm:$0xff] %v6612_v37  ;;  %9392 = vst [vmem:[#allocation125_spill] sm:$0xff] %v6614_v8  ;;  %v6620_v32 = vld [vmem:[#allocation3 + $0x290] sm:$0xff]  ;;  %v6624_v47 = vld [vmem:[#allocation3 + $0x268] sm:$0xff] }
 0x315   :  { %1903 = vmatpush2.msra.mxu0 %v6594_v7  ;;  %1974 = vmatpush2.msra.mxu1 %v6598_v31  ;;  %9394 = vst [vmem:[#allocation127_spill] sm:$0xff] %v6620_v32  ;;  %9395 = vst [vmem:[#allocation129_spill] sm:$0xff] %v6624_v47  ;;  %v6626_v7 = vld [vmem:[#allocation3 + $0x278] sm:$0xff]  ;;  %v6630_v31 = vld [vmem:[#allocation3 + $0x260] sm:$0xff] }
 0x316   :  { %1904 = vmatprep.subr.mxu0 %v6600_v11  ;;  %1975 = vmatprep.subr.mxu1 %v6602_v25  ;;  %9396 = vst [vmem:[#allocation131_spill] sm:$0xff] %v6626_v7  ;;  %9397 = vst [vmem:[#allocation133_spill] sm:$0xff] %v6630_v31  ;;  %v6632_v11 = vld [vmem:[#allocation3 + $0x270] sm:$0xff]  ;;  %v6636_v25 = vld [vmem:[#allocation3 + $0x248] sm:$0xff] }
 0x317   :  { %1905 = vmatpush2.msra.mxu0 %v6606_v27  ;;  %1976 = vmatpush2.msra.mxu1 %v6608_v44  ;;  %9398 = vst [vmem:[#allocation135_spill] sm:$0xff] %v6632_v11  ;;  %9399 = vst [vmem:[#allocation21_spill] sm:$0xff] %v6636_v25  ;;  %v6638_v27 = vld [vmem:[#allocation3 + $0x258] sm:$0xff]  ;;  %v6642_v44 = vld [vmem:[#allocation3 + $0x240] sm:$0xff] }
 0x318   :  { %1906 = vmatprep.subr.mxu0 %v6612_v37  ;;  %1977 = vmatprep.subr.mxu1 %v6614_v8  ;;  %9400 = vst [vmem:[#allocation20_spill] sm:$0xff] %v6638_v27  ;;  %9401 = vst [vmem:[#allocation22_spill] sm:$0xff] %v6642_v44  ;;  %v6644_v37 = vld [vmem:[#allocation3 + $0x250] sm:$0xff]  ;;  %v6648_v8 = vld [vmem:[#allocation3 + $0x228] sm:$0xff] }
 0x319   :  { %1907 = vmatpush2.msra.mxu0 %v6618_v16  ;;  %1978 = vmatpush2.msra.mxu1 %v6620_v32  ;;  %9402 = vst [vmem:[#allocation24_spill] sm:$0xff] %v6644_v37  ;;  %9403 = vst [vmem:[#allocation25_spill] sm:$0xff] %v6648_v8  ;;  %v6650_v16 = vld [vmem:[#allocation3 + $0x238] sm:$0xff]  ;;  %v6654_v32 = vld [vmem:[#allocation3 + $0x220] sm:$0xff] }
 0x31a   :  { %1908 = vmatprep.subr.mxu0 %v6624_v47  ;;  %1979 = vmatprep.subr.mxu1 %v6626_v7  ;;  %9404 = vst [vmem:[#allocation23_spill] sm:$0xff] %v6650_v16  ;;  %9405 = vst [vmem:[#allocation50_spill] sm:$0xff] %v6654_v32  ;;  %v6656_v47 = vld [vmem:[#allocation3 + $0x230] sm:$0xff]  ;;  %v6660_v7 = vld [vmem:[#allocation3 + $0x208] sm:$0xff] }
 0x31b   :  { %1909 = vmatpush2.msra.mxu0 %v6630_v31  ;;  %1980 = vmatpush2.msra.mxu1 %v6632_v11  ;;  %9406 = vst [vmem:[#allocation124_spill] sm:$0xff] %v6656_v47  ;;  %9407 = vst [vmem:[#allocation138_spill] sm:$0xff] %v6660_v7  ;;  %v6662_v31 = vld [vmem:[#allocation3 + $0x218] sm:$0xff]  ;;  %v6666_v11 = vld [vmem:[#allocation3 + $0x200] sm:$0xff] }
 0x31c   :  { %1910 = vmatprep.subr.mxu0 %v6636_v25  ;;  %1981 = vmatprep.subr.mxu1 %v6638_v27  ;;  %9408 = vst [vmem:[#allocation126_spill] sm:$0xff] %v6662_v31  ;;  %9409 = vst [vmem:[#allocation140_spill] sm:$0xff] %v6666_v11  ;;  %v6668_v25 = vld [vmem:[#allocation3 + $0x210] sm:$0xff]  ;;  %v6672_v27 = vld [vmem:[#allocation8 + $0x1e8] sm:$0xff] }
 0x31d   :  { %1911 = vmatpush2.msra.mxu0 %v6642_v44  ;;  %1982 = vmatpush2.msra.mxu1 %v6644_v37  ;;  %9410 = vst [vmem:[#allocation128_spill] sm:$0xff] %v6668_v25  ;;  %9411 = vst [vmem:[#allocation142_spill] sm:$0xff] %v6672_v27  ;;  %v6674_v44 = vld [vmem:[#allocation8 + $0x1f8] sm:$0xff] }
 0x31e   :  { %1912 = vmatprep.subr.mxu0 %v6648_v8  ;;  %1983 = vmatprep.subr.mxu1 %v6650_v16  ;;  %9412 = vst [vmem:[#allocation130_spill] sm:$0xff] %v6674_v44 }
 0x31f   :  { %1913 = vmatpush2.msra.mxu0 %v6654_v32  ;;  %1984 = vmatpush2.msra.mxu1 %v6656_v47 }
 0x320   :  { %1914 = vmatprep.subr.mxu0 %v6660_v7  ;;  %1985 = vmatprep.subr.mxu1 %v6662_v31 }
 0x321   :  { %1915 = vmatpush2.msra.mxu0 %v6666_v11  ;;  %1986 = vmatpush2.msra.mxu1 %v6668_v25 }
 0x322   :  { %2082 = vmatprep.subr.mxu0 %v6672_v27  ;;  %2153 = vmatprep.subr.mxu1 %v6674_v44 }
 0x380   :  { %v1386_v16 = vpop.f32.mrf.mxu0  ;;  %v1457_v4 = vpop.f32.mrf.mxu1 }
 0x381   :  { %v1387_v32 = vadd.f32 %v1386_v16, %v6190_v54  ;;  %v1458_v27 = vadd.f32 %v1457_v4, %v6208_v20  ;;  %v9416_v20 = vld [vmem:[#allocation27_spill] sm:$0xff] }
 0x382   :  { %v1388_v47 = vpop.f32.mrf.mxu0  ;;  %v1459_v31 = vpop.f32.mrf.mxu1 }
 0x383   :  { %v4803_v8 = vmul.f32 -1.442695, %v1387_v32  ;;  %v1389_v37 = vadd.f32 %v1388_v47, %v6195_v58  ;;  %v1460_v11 = vadd.f32 %v1459_v31, %v6202_v21  ;;  %v9413_v58 = vld [vmem:[#allocation26_spill] sm:$0xff] }
 0x385   :  { %4953 = vpow2.f32 %v4803_v8  ;;  %v4804_v7 = vmul.f32 -1.442695, %v1389_v37  ;;  %v4805_v3 = vmul.f32 -1.442695, %v1460_v11  ;;  %v9414_v11 = vld [vmem:[#allocation28_spill] sm:$0xff] }
 0x387   :  { %4955 = vpow2.f32 %v4804_v7 }
 0x388   :  { %4957 = vpow2.f32 %v4805_v3 }
 0x392   :  { %v4954_v25 = vpop.eup %4953 }
 0x393   :  { %v1465_v62 = vadd.f32 1.0, %v4954_v25 }
 0x394   :  { %v4956_v44 = vpop.eup %4955 }
 0x395   :  { %4959 = vrcp.f32 %v1465_v62  ;;  %v1471_v16 = vadd.f32 1.0, %v4956_v44  ;;  %v4958_v32 = vpop.eup %4957 }
 0x396   :  { %4961 = vtanh.f32 %v1458_v27  ;;  %v1478_v25 = vadd.f32 1.0, %v4958_v32 }
 0x397   :  { %4963 = vrcp.f32 %v1471_v16 }
 0x3a1   :  { %v1616_v47 = vpop.f32.mrf.mxu0  ;;  %v1687_v62 = vpop.f32.mrf.mxu1 }
 0x3a2   :  { %v4960_v8 = vpop.eup %4959  ;;  %v1692_v37 = vadd.f32 %v1616_v47, %v9413_v58  ;;  %v9415_v58 = vld [vmem:[#allocation29_spill] sm:$0xff] }
 0x3a3   :  { %v4962_v7 = vpop.eup %4961  ;;  %v1618_v54 = vpop.f32.mrf.mxu0 }
 0x3a4   :  { %v4964_v61 = vpop.eup %4963  ;;  %v4806_v31 = vmul.f32 -1.442695, %v1692_v37  ;;  %v1693_v21 = vadd.f32 %v1618_v54, %v9414_v11  ;;  %v1482_v57 = vmul.f32 %v4962_v7, %v4960_v8  ;;  %v1689_v27 = vpop.f32.mrf.mxu1  ;;  %v1694_v54 = vadd.f32 %v1687_v62, %v9416_v20 }
 0x3a5   :  { %v1481_v4 = vmul.f32 %v4964_v61, %v6213_v6  ;;  %v1695_v16 = vadd.f32 %v1689_v27, %v9415_v58 }
 0x3a6   :  { %4965 = vpow2.f32 %v4806_v31  ;;  %v4807_v3 = vmul.f32 -1.442695, %v1693_v21 }
 0x3a7   :  { %v6689_v44 = vadd.f32 %v1482_v57, %v1481_v4  ;;  %v4808_v47 = vmul.f32 -1.442695, %v1695_v16 }
 0x3a8   :  { %4967 = vpow2.f32 %v4807_v3 }
 0x3a9   :  { %4969 = vrcp.f32 %v1478_v25 }
 0x3aa   :  { %4971 = vtanh.f32 %v6689_v44 }
 0x3ab   :  { %4973 = vpow2.f32 %v4808_v47  ;;  %v6700_v47 = vld [vmem:[#allocation8 + $0x1e0] sm:$0xff] }
 0x3b3   :  { %v4966_v37 = vpop.eup %4965 }
 0x3b4   :  { %v1699_v8 = vadd.f32 1.0, %v4966_v37  ;;  %v6702_v37 = vld [vmem:[#allocation8 + $0x1f0] sm:$0xff] }
 0x3b5   :  { %v4968_v7 = vpop.eup %4967 }
 0x3b6   :  { %v4970_v6 = vpop.eup %4969  ;;  %4975 = vrcp.f32 %v1699_v8  ;;  %v1705_v61 = vadd.f32 1.0, %v4968_v7  ;;  %v6706_v8 = vld [vmem:[#allocation8 + $0x1d8] sm:$0xff]  ;;  %v6712_v7 = vld [vmem:[#allocation8 + $0x1d0] sm:$0xff] }
 0x3b7   :  { %v4972_v21 = vpop.eup %4971  ;;  %4977 = vtanh.f32 %v1694_v54  ;;  %v6704_v54 = vld [vmem:[#allocation8 + $0x1c8] sm:$0xff] }
 0x3b8   :  { %4979 = vrcp.f32 %v1705_v61  ;;  %v1485_v57 = vmul.f32 %v4972_v21, %v4970_v6  ;;  %v4974_v32 = vpop.eup %4973  ;;  %v6716_v6 = vld [vmem:[#allocation8 + $0x1a8] sm:$0xff]  ;;  %v6718_v61 = vld [vmem:[#allocation8 + $0x1b8] sm:$0xff]  ;;  %v6722_v21 = vld [vmem:[#allocation8 + $0x1a0] sm:$0xff] }
 0x3b9   :  { %v1712_v25 = vadd.f32 1.0, %v4974_v32  ;;  %9417 = vst [vmem:[#allocation144_spill] sm:$0xff] %v6722_v21  ;;  %v6728_v32 = vld [vmem:[#allocation8 + $0x188] sm:$0xff] }
 0x3ba   :  { %1916 = vmatprep.mubr.f32.mxu0 %v1485_v57  ;;  %1987 = vmatprep.mubr.f32.mxu1 %v1485_v57  ;;  %v6724_v57 = vld [vmem:[#allocation8 + $0x1b0] sm:$0xff]  ;;  %9419 = vst [vmem:[#allocation146_spill] sm:$0xff] %v6728_v32 }
 0x3bb   :  { %4981 = vrcp.f32 %v1712_v25  ;;  %9418 = vst [vmem:[#allocation132_spill] sm:$0xff] %v6724_v57  ;;  %v6740_v25 = vld [vmem:[#allocation8 + $0x168] sm:$0xff] }
 0x3bc   :  { %9423 = vst [vmem:[#allocation150_spill] sm:$0xff] %v6740_v25 }
 0x3c3   :  { %v4976_v31 = vpop.eup %4975 }
 0x3c4   :  { %v4978_v11 = vpop.eup %4977 }
 0x3c5   :  { %v4980_v4 = vpop.eup %4979  ;;  %v1716_v3 = vmul.f32 %v4978_v11, %v4976_v31  ;;  %v6730_v31 = vld [vmem:[#allocation8 + $0x198] sm:$0xff]  ;;  %v6734_v11 = vld [vmem:[#allocation8 + $0x180] sm:$0xff] }
 0x3c6   :  { %v1715_v20 = vmul.f32 %v4980_v4, %v6219_v29  ;;  %v6710_v29 = vld [vmem:[#allocation8 + $0x1c0] sm:$0xff]  ;;  %9420 = vst [vmem:[#allocation134_spill] sm:$0xff] %v6730_v31  ;;  %9421 = vst [vmem:[#allocation148_spill] sm:$0xff] %v6734_v11  ;;  %v6736_v4 = vld [vmem:[#allocation8 + $0x190] sm:$0xff] }
 0x3c7   :  { %9422 = vst [vmem:[#allocation136_spill] sm:$0xff] %v6736_v4 }
 0x3c8   :  { %v6695_v62 = vadd.f32 %v1716_v3, %v1715_v20  ;;  %v4982_v27 = vpop.eup %4981  ;;  %v6742_v3 = vld [vmem:[#allocation8 + $0x178] sm:$0xff]  ;;  %v6746_v20 = vld [vmem:[#allocation8 + $0x160] sm:$0xff] }
 0x3c9   :  { %9424 = vst [vmem:[#allocation137_spill] sm:$0xff] %v6742_v3  ;;  %9425 = vst [vmem:[#allocation152_spill] sm:$0xff] %v6746_v20 }
 0x3ca   :  { %4983 = vtanh.f32 %v6695_v62 }
 0x3d7   :  { %v4984_v58 = vpop.eup %4983 }
 0x3d8   :  { %v6698_v16 = vmul.f32 %v4984_v58, %v4982_v27  ;;  %v6748_v27 = vld [vmem:[#allocation8 + $0x170] sm:$0xff]  ;;  %v6752_v58 = vld [vmem:[#allocation8 + $0x148] sm:$0xff] }
 0x3d9   :  { %9426 = vst [vmem:[#allocation139_spill] sm:$0xff] %v6748_v27  ;;  %9427 = vst [vmem:[#allocation154_spill] sm:$0xff] %v6752_v58 }
 0x3da   :  { %1917 = vmatmul.mubr.f32.vlgmr.msra.gmra.mxu0 %v6698_v16  ;;  %1988 = vmatmul.mubr.f32.vlgmr.msra.gmra.mxu1 %v6698_v16 }
 0x3db   :  { %2083 = vmatpush1.msra.mxu0 %v6700_v47  ;;  %2154 = vmatpush1.msra.mxu1 %v6702_v37 }
 0x3dc   :  { %2084 = vmatprep.subr.mxu0 %v6704_v54  ;;  %2155 = vmatprep.subr.mxu1 %v6706_v8 }
 0x3dd   :  { %2085 = vmatpush1.msra.mxu0 %v6710_v29  ;;  %2156 = vmatpush1.msra.mxu1 %v6712_v7 }
 0x3de   :  { %2086 = vmatprep.subr.mxu0 %v6716_v6  ;;  %2157 = vmatprep.subr.mxu1 %v6718_v61 }
 0x3df   :  { %2087 = vmatpush1.msra.mxu0 %v6722_v21  ;;  %2158 = vmatpush1.msra.mxu1 %v6724_v57  ;;  %v6754_v21 = vld [vmem:[#allocation8 + $0x158] sm:$0xff]  ;;  %v6758_v57 = vld [vmem:[#allocation8 + $0x140] sm:$0xff] }
 0x3e0   :  { %2088 = vmatprep.subr.mxu0 %v6728_v32  ;;  %2159 = vmatprep.subr.mxu1 %v6730_v31  ;;  %9428 = vst [vmem:[#allocation141_spill] sm:$0xff] %v6754_v21  ;;  %9429 = vst [vmem:[#allocation156_spill] sm:$0xff] %v6758_v57  ;;  %v6760_v32 = vld [vmem:[#allocation8 + $0x150] sm:$0xff]  ;;  %v6764_v31 = vld [vmem:[#allocation8 + $0x128] sm:$0xff] }
 0x3e1   :  { %2089 = vmatpush1.msra.mxu0 %v6734_v11  ;;  %2160 = vmatpush1.msra.mxu1 %v6736_v4  ;;  %9430 = vst [vmem:[#allocation143_spill] sm:$0xff] %v6760_v32  ;;  %9431 = vst [vmem:[#allocation158_spill] sm:$0xff] %v6764_v31  ;;  %v6766_v11 = vld [vmem:[#allocation8 + $0x138] sm:$0xff]  ;;  %v6770_v4 = vld [vmem:[#allocation8 + $0x120] sm:$0xff] }
 0x3e2   :  { %2090 = vmatprep.subr.mxu0 %v6740_v25  ;;  %2161 = vmatprep.subr.mxu1 %v6742_v3  ;;  %9432 = vst [vmem:[#allocation145_spill] sm:$0xff] %v6766_v11  ;;  %9433 = vst [vmem:[#allocation160_spill] sm:$0xff] %v6770_v4  ;;  %v6772_v25 = vld [vmem:[#allocation8 + $0x130] sm:$0xff]  ;;  %v6776_v3 = vld [vmem:[#allocation8 + $0x108] sm:$0xff] }
 0x3e3   :  { %2091 = vmatpush1.msra.mxu0 %v6746_v20  ;;  %2162 = vmatpush1.msra.mxu1 %v6748_v27  ;;  %9434 = vst [vmem:[#allocation147_spill] sm:$0xff] %v6772_v25  ;;  %9435 = vst [vmem:[#allocation162_spill] sm:$0xff] %v6776_v3  ;;  %v6778_v20 = vld [vmem:[#allocation8 + $0x118] sm:$0xff]  ;;  %v6782_v27 = vld [vmem:[#allocation8 + $0x100] sm:$0xff] }
 0x3e4   :  { %2092 = vmatprep.subr.mxu0 %v6752_v58  ;;  %2163 = vmatprep.subr.mxu1 %v6754_v21  ;;  %9436 = vst [vmem:[#allocation149_spill] sm:$0xff] %v6778_v20  ;;  %9437 = vst [vmem:[#allocation164_spill] sm:$0xff] %v6782_v27  ;;  %v6784_v58 = vld [vmem:[#allocation8 + $0x110] sm:$0xff]  ;;  %v6788_v21 = vld [vmem:[#allocation8 + $0xe8] sm:$0xff] }
 0x3e5   :  { %2093 = vmatpush1.msra.mxu0 %v6758_v57  ;;  %2164 = vmatpush1.msra.mxu1 %v6760_v32  ;;  %9438 = vst [vmem:[#allocation151_spill] sm:$0xff] %v6784_v58  ;;  %9439 = vst [vmem:[#allocation167_spill] sm:$0xff] %v6788_v21  ;;  %v6790_v57 = vld [vmem:[#allocation8 + $0xf8] sm:$0xff]  ;;  %v6794_v32 = vld [vmem:[#allocation8 + $0xe0] sm:$0xff] }
 0x3e6   :  { %2094 = vmatprep.subr.mxu0 %v6764_v31  ;;  %2165 = vmatprep.subr.mxu1 %v6766_v11  ;;  %9440 = vst [vmem:[#allocation153_spill] sm:$0xff] %v6790_v57  ;;  %9441 = vst [vmem:[#allocation169_spill] sm:$0xff] %v6794_v32  ;;  %v6796_v31 = vld [vmem:[#allocation8 + $0xf0] sm:$0xff]  ;;  %v6800_v11 = vld [vmem:[#allocation8 + $0xc8] sm:$0xff] }
 0x3e7   :  { %2095 = vmatpush1.msra.mxu0 %v6770_v4  ;;  %2166 = vmatpush1.msra.mxu1 %v6772_v25  ;;  %9442 = vst [vmem:[#allocation155_spill] sm:$0xff] %v6796_v31  ;;  %9443 = vst [vmem:[#allocation171_spill] sm:$0xff] %v6800_v11  ;;  %v6802_v4 = vld [vmem:[#allocation8 + $0xd8] sm:$0xff]  ;;  %v6806_v25 = vld [vmem:[#allocation8 + $0xc0] sm:$0xff] }
 0x3e8   :  { %2096 = vmatprep.subr.mxu0 %v6776_v3  ;;  %2167 = vmatprep.subr.mxu1 %v6778_v20  ;;  %9444 = vst [vmem:[#allocation157_spill] sm:$0xff] %v6802_v4  ;;  %9445 = vst [vmem:[#allocation173_spill] sm:$0xff] %v6806_v25  ;;  %v6808_v3 = vld [vmem:[#allocation8 + $0xd0] sm:$0xff]  ;;  %v6812_v20 = vld [vmem:[#allocation8 + $0xa8] sm:$0xff] }
 0x3e9   :  { %2097 = vmatpush1.msra.mxu0 %v6782_v27  ;;  %2168 = vmatpush1.msra.mxu1 %v6784_v58  ;;  %9446 = vst [vmem:[#allocation159_spill] sm:$0xff] %v6808_v3  ;;  %9447 = vst [vmem:[#allocation161_spill] sm:$0xff] %v6812_v20  ;;  %v6814_v27 = vld [vmem:[#allocation8 + $0xb8] sm:$0xff]  ;;  %v6818_v58 = vld [vmem:[#allocation8 + $0xa0] sm:$0xff] }
 0x3ea   :  { %2098 = vmatprep.subr.mxu0 %v6788_v21  ;;  %2169 = vmatprep.subr.mxu1 %v6790_v57  ;;  %9448 = vst [vmem:[#allocation163_spill] sm:$0xff] %v6814_v27  ;;  %9449 = vst [vmem:[#allocation177_spill] sm:$0xff] %v6818_v58  ;;  %v6820_v21 = vld [vmem:[#allocation8 + $0xb0] sm:$0xff]  ;;  %v6824_v57 = vld [vmem:[#allocation8 + $0x88] sm:$0xff] }
 0x3eb   :  { %2099 = vmatpush1.msra.mxu0 %v6794_v32  ;;  %2170 = vmatpush1.msra.mxu1 %v6796_v31  ;;  %9450 = vst [vmem:[#allocation165_spill] sm:$0xff] %v6820_v21  ;;  %9451 = vst [vmem:[#allocation166_spill] sm:$0xff] %v6824_v57  ;;  %v6826_v32 = vld [vmem:[#allocation8 + $0x98] sm:$0xff]  ;;  %v6830_v31 = vld [vmem:[#allocation8 + $0x80] sm:$0xff] }
 0x3ec   :  { %2100 = vmatprep.subr.mxu0 %v6800_v11  ;;  %2171 = vmatprep.subr.mxu1 %v6802_v4  ;;  %9452 = vst [vmem:[#allocation168_spill] sm:$0xff] %v6826_v32  ;;  %9453 = vst [vmem:[#allocation180_spill] sm:$0xff] %v6830_v31  ;;  %v6832_v11 = vld [vmem:[#allocation8 + $0x90] sm:$0xff]  ;;  %v6836_v4 = vld [vmem:[#allocation8 + $0x68] sm:$0xff] }
 0x3ed   :  { %2101 = vmatpush1.msra.mxu0 %v6806_v25  ;;  %2172 = vmatpush1.msra.mxu1 %v6808_v3  ;;  %9454 = vst [vmem:[#allocation170_spill] sm:$0xff] %v6832_v11  ;;  %9455 = vst [vmem:[#allocation172_spill] sm:$0xff] %v6836_v4  ;;  %v6838_v25 = vld [vmem:[#allocation8 + $0x78] sm:$0xff]  ;;  %v6842_v3 = vld [vmem:[#allocation8 + $0x60] sm:$0xff] }
 0x3ee   :  { %2102 = vmatprep.subr.mxu0 %v6812_v20  ;;  %2173 = vmatprep.subr.mxu1 %v6814_v27  ;;  %9456 = vst [vmem:[#allocation174_spill] sm:$0xff] %v6838_v25  ;;  %9457 = vst [vmem:[#allocation175_spill] sm:$0xff] %v6842_v3  ;;  %v6844_v20 = vld [vmem:[#allocation8 + $0x70] sm:$0xff]  ;;  %v6848_v27 = vld [vmem:[#allocation8 + $0x48] sm:$0xff] }
 0x3ef   :  { %2103 = vmatpush1.msra.mxu0 %v6818_v58  ;;  %2174 = vmatpush1.msra.mxu1 %v6820_v21  ;;  %9458 = vst [vmem:[#allocation176_spill] sm:$0xff] %v6844_v20  ;;  %v6850_v58 = vld [vmem:[#allocation8 + $0x58] sm:$0xff]  ;;  %v6854_v21 = vld [vmem:[#allocation8 + $0x40] sm:$0xff] }
 0x3f0   :  { %2104 = vmatprep.subr.mxu0 %v6824_v57  ;;  %2175 = vmatprep.subr.mxu1 %v6826_v32  ;;  %9459 = vst [vmem:[#allocation178_spill] sm:$0xff] %v6850_v58  ;;  %v6856_v57 = vld [vmem:[#allocation8 + $0x50] sm:$0xff]  ;;  %v6860_v32 = vld [vmem:[#allocation8 + $0x28] sm:$0xff] }
 0x3f1   :  { %2105 = vmatpush1.msra.mxu0 %v6830_v31  ;;  %2176 = vmatpush1.msra.mxu1 %v6832_v11  ;;  %v6862_v31 = vld [vmem:[#allocation8 + $0x38] sm:$0xff]  ;;  %v6866_v11 = vld [vmem:[#allocation8 + $0x20] sm:$0xff] }
 0x3f2   :  { %2106 = vmatprep.subr.mxu0 %v6836_v4  ;;  %2177 = vmatprep.subr.mxu1 %v6838_v25  ;;  %v6868_v4 = vld [vmem:[#allocation8 + $0x30] sm:$0xff]  ;;  %v6872_v25 = vld [vmem:[#allocation8 + $0x8] sm:$0xff] }
 0x3f3   :  { %2107 = vmatpush1.msra.mxu0 %v6842_v3  ;;  %2178 = vmatpush1.msra.mxu1 %v6844_v20  ;;  %v6874_v3 = vld [vmem:[#allocation8 + $0x18] sm:$0xff]  ;;  %v6878_v20 = vld [vmem:[#allocation8] sm:$0xff] }
 0x3f4   :  { %2108 = vmatprep.subr.mxu0 %v6848_v27  ;;  %2179 = vmatprep.subr.mxu1 %v6850_v58  ;;  %v6882_v58 = vld [vmem:[#allocation8 + $0x10] sm:$0xff] }
 0x3f5   :  { %2109 = vmatpush1.msra.mxu0 %v6854_v21  ;;  %2180 = vmatpush1.msra.mxu1 %v6856_v57 }
 0x3f6   :  { %2110 = vmatprep.subr.mxu0 %v6860_v32  ;;  %2181 = vmatprep.subr.mxu1 %v6862_v31 }
 0x3f7   :  { %2111 = vmatpush1.msra.mxu0 %v6866_v11  ;;  %2182 = vmatpush1.msra.mxu1 %v6868_v4 }
 0x3f8   :  { %2112 = vmatprep.subr.mxu0 %v6872_v25  ;;  %2183 = vmatprep.subr.mxu1 %v6874_v3 }
 0x3f9   :  { %2113 = vmatpush1.msra.mxu0 %v6878_v20  ;;  %2146 = vmatprep.mubr.f32.mxu0 %v9168_v1 }
 0x3fa   :  { %2184 = vmatpush1.msra.mxu1 %v6882_v58  ;;  %2217 = vmatprep.mubr.f32.mxu1 %v9168_v1 }
 0x3fb   :  { %2147 = vmatmul.mubr.f32.vlgmr.msra.gmra.mxu0 %v6698_v16  ;;  %2218 = vmatmul.mubr.f32.vlgmr.msra.gmra.mxu1 %v6698_v16  ;;  %v9501_v16 = vld [vmem:[#allocation95_spill] sm:$0xff] }
 0x3fc   :  { %2384 = vmatprep.subr.mxu0 %v6292_v35  ;;  %2455 = vmatprep.subr.mxu1 %v6294_v36  ;;  %v9460_v35 = vld [vmem:[#allocation56_spill] sm:$0xff]  ;;  %v9461_v36 = vld [vmem:[#allocation55_spill] sm:$0xff] }
 0x3fd   :  { %2385 = vmatpush1.msra.mxu0 %v6298_v15  ;;  %2456 = vmatpush1.msra.mxu1 %v6300_v39  ;;  %v9462_v15 = vld [vmem:[#allocation58_spill] sm:$0xff]  ;;  %v9463_v39 = vld [vmem:[#allocation57_spill] sm:$0xff] }
 0x3fe   :  { %2386 = vmatprep.subr.mxu0 %v6304_v40  ;;  %2457 = vmatprep.subr.mxu1 %v6306_v43  ;;  %v9464_v40 = vld [vmem:[#allocation60_spill] sm:$0xff]  ;;  %v9465_v43 = vld [vmem:[#allocation59_spill] sm:$0xff] }
 0x3ff   :  { %2387 = vmatpush1.msra.mxu0 %v6310_v12  ;;  %2458 = vmatpush1.msra.mxu1 %v6312_v34  ;;  %v9466_v12 = vld [vmem:[#allocation62_spill] sm:$0xff]  ;;  %v9467_v34 = vld [vmem:[#allocation61_spill] sm:$0xff] }
 0x400   :  { %2388 = vmatprep.subr.mxu0 %v6316_v22  ;;  %2459 = vmatprep.subr.mxu1 %v6318_v30  ;;  %v9468_v22 = vld [vmem:[#allocation64_spill] sm:$0xff]  ;;  %v9469_v30 = vld [vmem:[#allocation63_spill] sm:$0xff] }
 0x401   :  { %2389 = vmatpush1.msra.mxu0 %v6322_v17  ;;  %2460 = vmatpush1.msra.mxu1 %v6324_v26  ;;  %v9470_v17 = vld [vmem:[#allocation66_spill] sm:$0xff]  ;;  %v9471_v26 = vld [vmem:[#allocation65_spill] sm:$0xff] }
 0x402   :  { %2390 = vmatprep.subr.mxu0 %v6328_v0  ;;  %2461 = vmatprep.subr.mxu1 %v6330_v18  ;;  %v9472_v0 = vld [vmem:[#allocation68_spill] sm:$0xff]  ;;  %v9473_v18 = vld [vmem:[#allocation67_spill] sm:$0xff] }
 0x403   :  { %2391 = vmatpush1.msra.mxu0 %v6334_v19  ;;  %2462 = vmatpush1.msra.mxu1 %v6336_v23  ;;  %v9474_v19 = vld [vmem:[#allocation70_spill] sm:$0xff]  ;;  %v9475_v23 = vld [vmem:[#allocation69_spill] sm:$0xff] }
 0x404   :  { %2392 = vmatprep.subr.mxu0 %v6340_v24  ;;  %2463 = vmatprep.subr.mxu1 %v6342_v56  ;;  %v9476_v24 = vld [vmem:[#allocation72_spill] sm:$0xff]  ;;  %v9477_v56 = vld [vmem:[#allocation71_spill] sm:$0xff] }
 0x405   :  { %2393 = vmatpush1.msra.mxu0 %v6346_v59  ;;  %2464 = vmatpush1.msra.mxu1 %v6348_v48  ;;  %v9478_v59 = vld [vmem:[#allocation74_spill] sm:$0xff]  ;;  %v9479_v48 = vld [vmem:[#allocation73_spill] sm:$0xff] }
 0x406   :  { %2394 = vmatprep.subr.mxu0 %v6352_v55  ;;  %2465 = vmatprep.subr.mxu1 %v6354_v51  ;;  %v9480_v55 = vld [vmem:[#allocation76_spill] sm:$0xff]  ;;  %v9481_v51 = vld [vmem:[#allocation75_spill] sm:$0xff] }
 0x407   :  { %2395 = vmatpush1.msra.mxu0 %v6358_v52  ;;  %2466 = vmatpush1.msra.mxu1 %v6360_v60  ;;  %v9482_v52 = vld [vmem:[#allocation78_spill] sm:$0xff]  ;;  %v9483_v60 = vld [vmem:[#allocation77_spill] sm:$0xff] }
 0x408   :  { %2396 = vmatprep.subr.mxu0 %v6364_v63  ;;  %2467 = vmatprep.subr.mxu1 %v6366_v2  ;;  %v9484_v63 = vld [vmem:[#allocation80_spill] sm:$0xff]  ;;  %v9485_v2 = vld [vmem:[#allocation79_spill] sm:$0xff] }
 0x409   :  { %2397 = vmatpush1.msra.mxu0 %v6370_v5  ;;  %2468 = vmatpush1.msra.mxu1 %v6372_v9  ;;  %v9486_v5 = vld [vmem:[#allocation82_spill] sm:$0xff]  ;;  %v9487_v9 = vld [vmem:[#allocation81_spill] sm:$0xff] }
 0x40a   :  { %2398 = vmatprep.subr.mxu0 %v6376_v10  ;;  %2469 = vmatprep.subr.mxu1 %v6378_v13  ;;  %v9488_v10 = vld [vmem:[#allocation84_spill] sm:$0xff]  ;;  %v9489_v13 = vld [vmem:[#allocation83_spill] sm:$0xff] }
 0x40b   :  { %2399 = vmatpush1.msra.mxu0 %v6382_v14  ;;  %2470 = vmatpush1.msra.mxu1 %v6384_v28  ;;  %v9490_v14 = vld [vmem:[#allocation86_spill] sm:$0xff]  ;;  %v9491_v28 = vld [vmem:[#allocation85_spill] sm:$0xff] }
 0x40c   :  { %2400 = vmatprep.subr.mxu0 %v6388_v33  ;;  %2471 = vmatprep.subr.mxu1 %v6390_v38  ;;  %v9492_v33 = vld [vmem:[#allocation88_spill] sm:$0xff]  ;;  %v9493_v38 = vld [vmem:[#allocation87_spill] sm:$0xff] }
 0x40d   :  { %2401 = vmatpush1.msra.mxu0 %v6394_v41  ;;  %2472 = vmatpush1.msra.mxu1 %v6396_v42  ;;  %v9494_v41 = vld [vmem:[#allocation90_spill] sm:$0xff]  ;;  %v9495_v42 = vld [vmem:[#allocation89_spill] sm:$0xff] }
 0x40e   :  { %2402 = vmatprep.subr.mxu0 %v6400_v45  ;;  %2473 = vmatprep.subr.mxu1 %v6402_v46  ;;  %v9496_v45 = vld [vmem:[#allocation92_spill] sm:$0xff]  ;;  %v9497_v46 = vld [vmem:[#allocation91_spill] sm:$0xff] }
 0x40f   :  { %2403 = vmatpush1.msra.mxu0 %v6406_v49  ;;  %2474 = vmatpush1.msra.mxu1 %v6408_v50  ;;  %v9498_v49 = vld [vmem:[#allocation94_spill] sm:$0xff]  ;;  %v9499_v50 = vld [vmem:[#allocation93_spill] sm:$0xff] }
 0x410   :  { %2404 = vmatprep.subr.mxu0 %v6412_v53  ;;  %2475 = vmatprep.subr.mxu1 %v9460_v35  ;;  %v9500_v53 = vld [vmem:[#allocation96_spill] sm:$0xff]  ;;  %v9502_v35 = vld [vmem:[#allocation98_spill] sm:$0xff] }
 0x411   :  { %2405 = vmatpush1.msra.mxu0 %v9461_v36  ;;  %2476 = vmatpush1.msra.mxu1 %v9462_v15  ;;  %v9503_v36 = vld [vmem:[#allocation97_spill] sm:$0xff]  ;;  %v9504_v15 = vld [vmem:[#allocation100_spill] sm:$0xff] }
 0x412   :  { %2406 = vmatprep.subr.mxu0 %v9463_v39  ;;  %2477 = vmatprep.subr.mxu1 %v9464_v40  ;;  %v9505_v39 = vld [vmem:[#allocation99_spill] sm:$0xff]  ;;  %v9506_v40 = vld [vmem:[#allocation102_spill] sm:$0xff] }
 0x413   :  { %2407 = vmatpush1.msra.mxu0 %v9465_v43  ;;  %2478 = vmatpush1.msra.mxu1 %v9466_v12  ;;  %v9507_v43 = vld [vmem:[#allocation101_spill] sm:$0xff]  ;;  %v9508_v12 = vld [vmem:[#allocation104_spill] sm:$0xff] }
 0x414   :  { %2408 = vmatprep.subr.mxu0 %v9467_v34  ;;  %2479 = vmatprep.subr.mxu1 %v9468_v22  ;;  %v9509_v34 = vld [vmem:[#allocation103_spill] sm:$0xff]  ;;  %v9510_v22 = vld [vmem:[#allocation106_spill] sm:$0xff] }
 0x415   :  { %2409 = vmatpush1.msra.mxu0 %v9469_v30  ;;  %2480 = vmatpush1.msra.mxu1 %v9470_v17  ;;  %v9511_v30 = vld [vmem:[#allocation105_spill] sm:$0xff]  ;;  %v9512_v17 = vld [vmem:[#allocation108_spill] sm:$0xff] }
 0x416   :  { %2410 = vmatprep.subr.mxu0 %v9471_v26  ;;  %2481 = vmatprep.subr.mxu1 %v9472_v0  ;;  %v9513_v26 = vld [vmem:[#allocation107_spill] sm:$0xff]  ;;  %v9514_v0 = vld [vmem:[#allocation110_spill] sm:$0xff] }
 0x417   :  { %2411 = vmatpush1.msra.mxu0 %v9473_v18  ;;  %2482 = vmatpush1.msra.mxu1 %v9474_v19  ;;  %v9515_v18 = vld [vmem:[#allocation109_spill] sm:$0xff]  ;;  %v9516_v19 = vld [vmem:[#allocation112_spill] sm:$0xff] }
 0x418   :  { %2412 = vmatprep.subr.mxu0 %v9475_v23  ;;  %2483 = vmatprep.subr.mxu1 %v9476_v24  ;;  %v9517_v23 = vld [vmem:[#allocation111_spill] sm:$0xff]  ;;  %v9518_v24 = vld [vmem:[#allocation114_spill] sm:$0xff] }
 0x419   :  { %2413 = vmatpush1.msra.mxu0 %v9477_v56  ;;  %2484 = vmatpush1.msra.mxu1 %v9478_v59  ;;  %v9519_v56 = vld [vmem:[#allocation113_spill] sm:$0xff]  ;;  %v9520_v59 = vld [vmem:[#allocation116_spill] sm:$0xff] }
 0x41a   :  { %2414 = vmatprep.subr.mxu0 %v9479_v48  ;;  %2485 = vmatprep.subr.mxu1 %v9480_v55  ;;  %v9521_v48 = vld [vmem:[#allocation115_spill] sm:$0xff]  ;;  %v9522_v55 = vld [vmem:[#allocation118_spill] sm:$0xff] }
 0x41b   :  { %2415 = vmatpush1.msra.mxu0 %v9481_v51  ;;  %2486 = vmatpush1.msra.mxu1 %v9482_v52  ;;  %v9523_v51 = vld [vmem:[#allocation117_spill] sm:$0xff]  ;;  %v9524_v52 = vld [vmem:[#allocation120_spill] sm:$0xff] }
 0x41c   :  { %2416 = vmatprep.subr.mxu0 %v9483_v60  ;;  %2487 = vmatprep.subr.mxu1 %v9484_v63  ;;  %v9525_v60 = vld [vmem:[#allocation119_spill] sm:$0xff]  ;;  %v9526_v63 = vld [vmem:[#allocation122_spill] sm:$0xff] }
 0x41d   :  { %2417 = vmatpush2.msra.mxu0 %v9485_v2  ;;  %2488 = vmatpush2.msra.mxu1 %v9486_v5  ;;  %v9527_v2 = vld [vmem:[#allocation121_spill] sm:$0xff] }
 0x41e   :  { %2418 = vmatprep.subr.mxu0 %v9487_v9  ;;  %2489 = vmatprep.subr.mxu1 %v9488_v10  ;;  %v9528_v5 = vld [vmem:[#allocation125_spill] sm:$0xff]  ;;  %v9529_v9 = vld [vmem:[#allocation123_spill] sm:$0xff] }
 0x41f   :  { %2419 = vmatpush2.msra.mxu0 %v9489_v13  ;;  %2490 = vmatpush2.msra.mxu1 %v9490_v14  ;;  %v9530_v10 = vld [vmem:[#allocation127_spill] sm:$0xff]  ;;  %v9531_v13 = vld [vmem:[#allocation129_spill] sm:$0xff] }
 0x420   :  { %2420 = vmatprep.subr.mxu0 %v9491_v28  ;;  %2491 = vmatprep.subr.mxu1 %v9492_v33  ;;  %v9532_v14 = vld [vmem:[#allocation131_spill] sm:$0xff]  ;;  %v9533_v28 = vld [vmem:[#allocation133_spill] sm:$0xff] }
 0x421   :  { %2421 = vmatpush2.msra.mxu0 %v9493_v38  ;;  %2492 = vmatpush2.msra.mxu1 %v9494_v41  ;;  %v9534_v33 = vld [vmem:[#allocation135_spill] sm:$0xff]  ;;  %v9535_v38 = vld [vmem:[#allocation21_spill] sm:$0xff]  ;;  %v9536_v41 = vld [vmem:[#allocation20_spill] sm:$0xff] }
 0x422   :  { %2422 = vmatprep.subr.mxu0 %v9495_v42  ;;  %2493 = vmatprep.subr.mxu1 %v9496_v45  ;;  %v9537_v42 = vld [vmem:[#allocation22_spill] sm:$0xff]  ;;  %v9538_v45 = vld [vmem:[#allocation24_spill] sm:$0xff] }
 0x423   :  { %2423 = vmatpush2.msra.mxu0 %v9497_v46  ;;  %2494 = vmatpush2.msra.mxu1 %v9498_v49  ;;  %v9539_v46 = vld [vmem:[#allocation25_spill] sm:$0xff]  ;;  %v9540_v49 = vld [vmem:[#allocation23_spill] sm:$0xff] }
 0x424   :  { %2424 = vmatprep.subr.mxu0 %v9499_v50  ;;  %2495 = vmatprep.subr.mxu1 %v9500_v53  ;;  %v9541_v50 = vld [vmem:[#allocation50_spill] sm:$0xff]  ;;  %v9542_v53 = vld [vmem:[#allocation124_spill] sm:$0xff] }
 0x425   :  { %2425 = vmatpush2.msra.mxu0 %v9501_v16  ;;  %2496 = vmatpush2.msra.mxu1 %v9502_v35  ;;  %v9543_v16 = vld [vmem:[#allocation138_spill] sm:$0xff] }
 0x426   :  { %2426 = vmatprep.subr.mxu0 %v9503_v36  ;;  %2497 = vmatprep.subr.mxu1 %v9504_v15  ;;  %v9544_v35 = vld [vmem:[#allocation126_spill] sm:$0xff]  ;;  %v9545_v36 = vld [vmem:[#allocation140_spill] sm:$0xff] }
 0x427   :  { %2427 = vmatpush2.msra.mxu0 %v9505_v39  ;;  %2498 = vmatpush2.msra.mxu1 %v9506_v40  ;;  %v9546_v15 = vld [vmem:[#allocation128_spill] sm:$0xff]  ;;  %v9547_v39 = vld [vmem:[#allocation142_spill] sm:$0xff] }
 0x428   :  { %2428 = vmatprep.subr.mxu0 %v9507_v43  ;;  %2499 = vmatprep.subr.mxu1 %v9508_v12  ;;  %v9548_v40 = vld [vmem:[#allocation130_spill] sm:$0xff]  ;;  %v9549_v12 = vld [vmem:[#allocation52_spill] sm:$0xff] }
 0x429   :  { %2429 = vmatpush2.msra.mxu0 %v9509_v34  ;;  %2500 = vmatpush2.msra.mxu1 %v9510_v22 }
 0x42a   :  { %2430 = vmatprep.subr.mxu0 %v9511_v30  ;;  %2501 = vmatprep.subr.mxu1 %v9512_v17  ;;  %v9550_v17 = vld [vmem:[#allocation51_spill] sm:$0xff] }
 0x42b   :  { %2431 = vmatpush2.msra.mxu0 %v9513_v26  ;;  %2502 = vmatpush2.msra.mxu1 %v9514_v0 }
 0x42c   :  { %2432 = vmatprep.subr.mxu0 %v9515_v18  ;;  %2503 = vmatprep.subr.mxu1 %v9516_v19 }
 0x42d   :  { %2433 = vmatpush2.msra.mxu0 %v9517_v23  ;;  %2504 = vmatpush2.msra.mxu1 %v9518_v24  ;;  %v9551_v23 = vld [vmem:[#allocation54_spill] sm:$0xff] }
 0x42e   :  { %2434 = vmatprep.subr.mxu0 %v9519_v56  ;;  %2505 = vmatprep.subr.mxu1 %v9520_v59 }
 0x42f   :  { %2435 = vmatpush2.msra.mxu0 %v9521_v48  ;;  %2506 = vmatpush2.msra.mxu1 %v9522_v55  ;;  %v9552_v48 = vld [vmem:[#allocation53_spill] sm:$0xff] }
 0x430   :  { %2436 = vmatprep.subr.mxu0 %v9523_v51  ;;  %2507 = vmatprep.subr.mxu1 %v9524_v52 }
 0x431   :  { %2437 = vmatpush2.msra.mxu0 %v9525_v60  ;;  %2508 = vmatpush2.msra.mxu1 %v9526_v63 }
 0x432   :  { %2438 = vmatprep.subr.mxu0 %v9527_v2  ;;  %2509 = vmatprep.subr.mxu1 %v9528_v5 }
 0x433   :  { %2439 = vmatpush2.msra.mxu0 %v9529_v9  ;;  %2510 = vmatpush2.msra.mxu1 %v9530_v10  ;;  %v9553_v9 = vld [vmem:[#allocation30_spill] sm:$0xff] }
 0x434   :  { %2440 = vmatprep.subr.mxu0 %v9531_v13  ;;  %2511 = vmatprep.subr.mxu1 %v9532_v14 }
 0x435   :  { %2441 = vmatpush2.msra.mxu0 %v9533_v28  ;;  %2512 = vmatpush2.msra.mxu1 %v9534_v33 }
 0x436   :  { %2442 = vmatprep.subr.mxu0 %v9535_v38  ;;  %2513 = vmatprep.subr.mxu1 %v9536_v41  ;;  %v9554_v38 = vld [vmem:[#allocation32_spill] sm:$0xff] }
 0x437   :  { %2443 = vmatpush2.msra.mxu0 %v9537_v42  ;;  %2514 = vmatpush2.msra.mxu1 %v9538_v45 }
 0x438   :  { %2444 = vmatprep.subr.mxu0 %v9539_v46  ;;  %2515 = vmatprep.subr.mxu1 %v9540_v49 }
 0x439   :  { %2445 = vmatpush2.msra.mxu0 %v9541_v50  ;;  %2516 = vmatpush2.msra.mxu1 %v9542_v53 }
 0x43a   :  { %2446 = vmatprep.subr.mxu0 %v9543_v16  ;;  %2517 = vmatprep.subr.mxu1 %v9544_v35  ;;  %v9555_v35 = vld [vmem:[#allocation33_spill] sm:$0xff] }
 0x43b   :  { %2447 = vmatpush2.msra.mxu0 %v9545_v36  ;;  %2518 = vmatpush2.msra.mxu1 %v9546_v15 }
 0x43c   :  { %2614 = vmatprep.subr.mxu0 %v9547_v39  ;;  %2685 = vmatprep.subr.mxu1 %v9548_v40  ;;  %v9556_v40 = vld [vmem:[#allocation31_spill] sm:$0xff] }
 0x49a   :  { %v1918_v43 = vpop.f32.mrf.mxu0  ;;  %v1989_v0 = vpop.f32.mrf.mxu1 }
 0x49b   :  { %v1919_v34 = vadd.f32 %v1918_v43, %v9549_v12  ;;  %v1990_v55 = vadd.f32 %v1989_v0, %v9552_v48 }
 0x49c   :  { %v1920_v22 = vpop.f32.mrf.mxu0  ;;  %v1991_v19 = vpop.f32.mrf.mxu1 }
 0x49d   :  { %v4809_v30 = vmul.f32 -1.442695, %v1919_v34  ;;  %v1921_v26 = vadd.f32 %v1920_v22, %v9550_v17  ;;  %v1992_v24 = vadd.f32 %v1991_v19, %v9551_v23 }
 0x49f   :  { %4985 = vpow2.f32 %v4809_v30  ;;  %v4810_v18 = vmul.f32 -1.442695, %v1921_v26  ;;  %v4811_v56 = vmul.f32 -1.442695, %v1992_v24 }
 0x4a1   :  { %4987 = vpow2.f32 %v4810_v18 }
 0x4a2   :  { %4989 = vpow2.f32 %v4811_v56 }
 0x4ac   :  { %v4986_v59 = vpop.eup %4985 }
 0x4ad   :  { %v1997_v51 = vadd.f32 1.0, %v4986_v59 }
 0x4ae   :  { %v4988_v52 = vpop.eup %4987 }
 0x4af   :  { %4991 = vrcp.f32 %v1997_v51  ;;  %v2003_v60 = vadd.f32 1.0, %v4988_v52  ;;  %v4990_v63 = vpop.eup %4989 }
 0x4b0   :  { %4993 = vtanh.f32 %v1990_v55  ;;  %v2010_v46 = vadd.f32 1.0, %v4990_v63 }
 0x4b1   :  { %4995 = vrcp.f32 %v2003_v60 }
 0x4bb   :  { %v2148_v2 = vpop.f32.mrf.mxu0  ;;  %v2219_v49 = vpop.f32.mrf.mxu1 }
 0x4bc   :  { %v4992_v5 = vpop.eup %4991  ;;  %v2224_v10 = vadd.f32 %v2148_v2, %v9553_v9  ;;  %v2226_v43 = vadd.f32 %v2219_v49, %v9556_v40  ;;  %v9559_v9 = vld [vmem:[#allocation146_spill] sm:$0xff]  ;;  %v9578_v49 = vld [vmem:[#allocation151_spill] sm:$0xff]  ;;  %v9585_v40 = vld [vmem:[#allocation173_spill] sm:$0xff] }
 0x4bd   :  { %v4994_v13 = vpop.eup %4993  ;;  %v2150_v14 = vpop.f32.mrf.mxu0 }
 0x4be   :  { %v4996_v28 = vpop.eup %4995  ;;  %v4812_v33 = vmul.f32 -1.442695, %v2224_v10  ;;  %v2225_v41 = vadd.f32 %v2150_v14, %v9554_v38  ;;  %v2014_v42 = vmul.f32 %v4994_v13, %v4992_v5  ;;  %v2221_v16 = vpop.f32.mrf.mxu1  ;;  %v9558_v5 = vld [vmem:[#allocation132_spill] sm:$0xff]  ;;  %v9568_v10 = vld [vmem:[#allocation141_spill] sm:$0xff]  ;;  %v9570_v14 = vld [vmem:[#allocation143_spill] sm:$0xff] }
 0x4bf   :  { %v2013_v45 = vmul.f32 %v4996_v28, %v6689_v44  ;;  %v2227_v36 = vadd.f32 %v2221_v16, %v9555_v35  ;;  %v9569_v13 = vld [vmem:[#allocation156_spill] sm:$0xff]  ;;  %v9571_v28 = vld [vmem:[#allocation158_spill] sm:$0xff]  ;;  %v9580_v16 = vld [vmem:[#allocation153_spill] sm:$0xff] }
 0x4c0   :  { %4997 = vpow2.f32 %v4812_v33  ;;  %v4813_v50 = vmul.f32 -1.442695, %v2225_v41  ;;  %v9572_v33 = vld [vmem:[#allocation145_spill] sm:$0xff]  ;;  %v9573_v38 = vld [vmem:[#allocation160_spill] sm:$0xff]  ;;  %v9574_v41 = vld [vmem:[#allocation147_spill] sm:$0xff] }
 0x4c1   :  { %v7029_v53 = vadd.f32 %v2014_v42, %v2013_v45  ;;  %v4814_v15 = vmul.f32 -1.442695, %v2227_v36  ;;  %v9575_v42 = vld [vmem:[#allocation162_spill] sm:$0xff]  ;;  %v9576_v45 = vld [vmem:[#allocation149_spill] sm:$0xff]  ;;  %v9582_v36 = vld [vmem:[#allocation155_spill] sm:$0xff] }
 0x4c2   :  { %4999 = vpow2.f32 %v4813_v50  ;;  %v9579_v50 = vld [vmem:[#allocation167_spill] sm:$0xff]  ;;  %v9581_v35 = vld [vmem:[#allocation169_spill] sm:$0xff] }
 0x4c3   :  { %5001 = vrcp.f32 %v2010_v46  ;;  %v9577_v46 = vld [vmem:[#allocation164_spill] sm:$0xff] }
 0x4c4   :  { %5003 = vtanh.f32 %v7029_v53 }
 0x4c5   :  { %5005 = vpow2.f32 %v4814_v15  ;;  %v9583_v15 = vld [vmem:[#allocation171_spill] sm:$0xff] }
 0x4cd   :  { %v4998_v39 = vpop.eup %4997 }
 0x4ce   :  { %v2231_v34 = vadd.f32 1.0, %v4998_v39  ;;  %v9584_v39 = vld [vmem:[#allocation157_spill] sm:$0xff] }
 0x4cf   :  { %v5000_v22 = vpop.eup %4999 }
 0x4d0   :  { %v5002_v44 = vpop.eup %5001  ;;  %5007 = vrcp.f32 %v2231_v34  ;;  %v2237_v30 = vadd.f32 1.0, %v5000_v22  ;;  %v9587_v34 = vld [vmem:[#allocation161_spill] sm:$0xff]  ;;  %v9588_v22 = vld [vmem:[#allocation163_spill] sm:$0xff] }
 0x4d1   :  { %v5004_v26 = vpop.eup %5003  ;;  %5009 = vtanh.f32 %v2226_v43  ;;  %v9586_v43 = vld [vmem:[#allocation159_spill] sm:$0xff] }
 0x4d2   :  { %5011 = vrcp.f32 %v2237_v30  ;;  %v2017_v0 = vmul.f32 %v5004_v26, %v5002_v44  ;;  %v5006_v18 = vpop.eup %5005  ;;  %v9589_v44 = vld [vmem:[#allocation177_spill] sm:$0xff]  ;;  %v9591_v26 = vld [vmem:[#allocation166_spill] sm:$0xff] }
 0x4d3   :  { %v2244_v59 = vadd.f32 1.0, %v5006_v18  ;;  %v9590_v30 = vld [vmem:[#allocation165_spill] sm:$0xff]  ;;  %v9593_v18 = vld [vmem:[#allocation180_spill] sm:$0xff] }
 0x4d4   :  { %2448 = vmatprep.mubr.f32.mxu0 %v2017_v0  ;;  %2519 = vmatprep.mubr.f32.mxu1 %v2017_v0  ;;  %v9592_v0 = vld [vmem:[#allocation168_spill] sm:$0xff] }
 0x4d5   :  { %5013 = vrcp.f32 %v2244_v59  ;;  %v9597_v59 = vld [vmem:[#allocation175_spill] sm:$0xff] }
 0x4dd   :  { %v5008_v19 = vpop.eup %5007 }
 0x4de   :  { %v5010_v24 = vpop.eup %5009 }
 0x4df   :  { %v5012_v56 = vpop.eup %5011  ;;  %v2248_v55 = vmul.f32 %v5010_v24, %v5008_v19  ;;  %v9594_v19 = vld [vmem:[#allocation170_spill] sm:$0xff]  ;;  %v9595_v24 = vld [vmem:[#allocation172_spill] sm:$0xff] }
 0x4e0   :  { %v2247_v51 = vmul.f32 %v5012_v56, %v6695_v62  ;;  %v9557_v62 = vld [vmem:[#allocation144_spill] sm:$0xff]  ;;  %v9596_v56 = vld [vmem:[#allocation174_spill] sm:$0xff] }
 0x4e2   :  { %v7035_v52 = vadd.f32 %v2248_v55, %v2247_v51  ;;  %v5014_v60 = vpop.eup %5013  ;;  %v9598_v55 = vld [vmem:[#allocation176_spill] sm:$0xff]  ;;  %v9599_v51 = vld [vmem:[#allocation178_spill] sm:$0xff] }
 0x4e4   :  { %5015 = vtanh.f32 %v7035_v52 }
 0x4f1   :  { %v5016_v63 = vpop.eup %5015 }
 0x4f2   :  { %v7038_v2 = vmul.f32 %v5016_v63, %v5014_v60  ;;  %v7140_v60 = vld [vmem:[#allocation3 + $0x1b0] sm:$0xff]  ;;  %v7144_v63 = vld [vmem:[#allocation3 + $0x188] sm:$0xff] }
 0x4f4   :  { %2449 = vmatmul.mubr.f32.vlgmr.msra.gmra.mxu0 %v7038_v2  ;;  %2520 = vmatmul.mubr.f32.vlgmr.msra.gmra.mxu1 %v7038_v2 }
 0x4f5   :  { %2615 = vmatpush1.msra.mxu0 %v6700_v47  ;;  %2686 = vmatpush1.msra.mxu1 %v6702_v37  ;;  %v9560_v47 = vld [vmem:[#allocation134_spill] sm:$0xff]  ;;  %v9561_v37 = vld [vmem:[#allocation148_spill] sm:$0xff] }
 0x4f6   :  { %2616 = vmatprep.subr.mxu0 %v6704_v54  ;;  %2687 = vmatprep.subr.mxu1 %v6706_v8  ;;  %v9562_v54 = vld [vmem:[#allocation136_spill] sm:$0xff]  ;;  %v9563_v8 = vld [vmem:[#allocation150_spill] sm:$0xff] }
 0x4f7   :  { %2617 = vmatpush1.msra.mxu0 %v6710_v29  ;;  %2688 = vmatpush1.msra.mxu1 %v6712_v7  ;;  %v9564_v29 = vld [vmem:[#allocation137_spill] sm:$0xff]  ;;  %v9565_v7 = vld [vmem:[#allocation152_spill] sm:$0xff] }
 0x4f8   :  { %2618 = vmatprep.subr.mxu0 %v6716_v6  ;;  %2689 = vmatprep.subr.mxu1 %v6718_v61  ;;  %v9566_v6 = vld [vmem:[#allocation139_spill] sm:$0xff]  ;;  %v9567_v61 = vld [vmem:[#allocation154_spill] sm:$0xff] }
 0x4f9   :  { %2619 = vmatpush1.msra.mxu0 %v9557_v62  ;;  %2690 = vmatpush1.msra.mxu1 %v9558_v5  ;;  %v7150_v62 = vld [vmem:[#allocation3 + $0x180] sm:$0xff]  ;;  %v7152_v5 = vld [vmem:[#allocation3 + $0x190] sm:$0xff] }
 0x4fa   :  { %2620 = vmatprep.subr.mxu0 %v9559_v9  ;;  %2691 = vmatprep.subr.mxu1 %v9560_v47  ;;  %v7156_v9 = vld [vmem:[#allocation3 + $0x168] sm:$0xff]  ;;  %v7158_v47 = vld [vmem:[#allocation3 + $0x178] sm:$0xff] }
 0x4fb   :  { %2621 = vmatpush1.msra.mxu0 %v9561_v37  ;;  %2692 = vmatpush1.msra.mxu1 %v9562_v54  ;;  %v7162_v37 = vld [vmem:[#allocation3 + $0x160] sm:$0xff]  ;;  %v7164_v54 = vld [vmem:[#allocation3 + $0x170] sm:$0xff] }
 0x4fc   :  { %2622 = vmatprep.subr.mxu0 %v9563_v8  ;;  %2693 = vmatprep.subr.mxu1 %v9564_v29  ;;  %v7168_v8 = vld [vmem:[#allocation3 + $0x148] sm:$0xff]  ;;  %v7170_v29 = vld [vmem:[#allocation3 + $0x158] sm:$0xff] }
 0x4fd   :  { %2623 = vmatpush1.msra.mxu0 %v9565_v7  ;;  %2694 = vmatpush1.msra.mxu1 %v9566_v6  ;;  %v7174_v7 = vld [vmem:[#allocation3 + $0x140] sm:$0xff]  ;;  %v7176_v6 = vld [vmem:[#allocation3 + $0x150] sm:$0xff] }
 0x4fe   :  { %2624 = vmatprep.subr.mxu0 %v9567_v61  ;;  %2695 = vmatprep.subr.mxu1 %v9568_v10  ;;  %v7180_v61 = vld [vmem:[#allocation3 + $0x128] sm:$0xff]  ;;  %v7182_v10 = vld [vmem:[#allocation3 + $0x138] sm:$0xff] }
 0x4ff   :  { %2625 = vmatpush1.msra.mxu0 %v9569_v13  ;;  %2696 = vmatpush1.msra.mxu1 %v9570_v14  ;;  %v7186_v13 = vld [vmem:[#allocation3 + $0x120] sm:$0xff]  ;;  %v7188_v14 = vld [vmem:[#allocation3 + $0x130] sm:$0xff] }
 0x500   :  { %2626 = vmatprep.subr.mxu0 %v9571_v28  ;;  %2697 = vmatprep.subr.mxu1 %v9572_v33  ;;  %v7192_v28 = vld [vmem:[#allocation3 + $0x108] sm:$0xff]  ;;  %v7194_v33 = vld [vmem:[#allocation3 + $0x118] sm:$0xff] }
 0x501   :  { %2627 = vmatpush1.msra.mxu0 %v9573_v38  ;;  %2698 = vmatpush1.msra.mxu1 %v9574_v41  ;;  %v7198_v38 = vld [vmem:[#allocation3 + $0x100] sm:$0xff]  ;;  %v7200_v41 = vld [vmem:[#allocation3 + $0x110] sm:$0xff] }
 0x502   :  { %2628 = vmatprep.subr.mxu0 %v9575_v42  ;;  %2699 = vmatprep.subr.mxu1 %v9576_v45  ;;  %v7204_v42 = vld [vmem:[#allocation3 + $0xe8] sm:$0xff]  ;;  %v7206_v45 = vld [vmem:[#allocation3 + $0xf8] sm:$0xff] }
 0x503   :  { %2629 = vmatpush1.msra.mxu0 %v9577_v46  ;;  %2700 = vmatpush1.msra.mxu1 %v9578_v49  ;;  %v7210_v46 = vld [vmem:[#allocation3 + $0xe0] sm:$0xff]  ;;  %v7212_v49 = vld [vmem:[#allocation3 + $0xf0] sm:$0xff] }
 0x504   :  { %2630 = vmatprep.subr.mxu0 %v9579_v50  ;;  %2701 = vmatprep.subr.mxu1 %v9580_v16  ;;  %v7216_v50 = vld [vmem:[#allocation3 + $0xc8] sm:$0xff]  ;;  %v7218_v16 = vld [vmem:[#allocation3 + $0xd8] sm:$0xff] }
 0x505   :  { %2631 = vmatpush1.msra.mxu0 %v9581_v35  ;;  %2702 = vmatpush1.msra.mxu1 %v9582_v36  ;;  %v7222_v35 = vld [vmem:[#allocation3 + $0xc0] sm:$0xff]  ;;  %v7224_v36 = vld [vmem:[#allocation3 + $0xd0] sm:$0xff] }
 0x506   :  { %2632 = vmatprep.subr.mxu0 %v9583_v15  ;;  %2703 = vmatprep.subr.mxu1 %v9584_v39  ;;  %v7228_v15 = vld [vmem:[#allocation3 + $0xa8] sm:$0xff]  ;;  %v7230_v39 = vld [vmem:[#allocation3 + $0xb8] sm:$0xff] }
 0x507   :  { %2633 = vmatpush1.msra.mxu0 %v9585_v40  ;;  %2704 = vmatpush1.msra.mxu1 %v9586_v43  ;;  %9600 = vst [vmem:[#allocation179_spill] sm:$0xff] %v7230_v39  ;;  %v7234_v40 = vld [vmem:[#allocation3 + $0xa0] sm:$0xff]  ;;  %v7236_v43 = vld [vmem:[#allocation3 + $0xb0] sm:$0xff] }
 0x508   :  { %2634 = vmatprep.subr.mxu0 %v9587_v34  ;;  %2705 = vmatprep.subr.mxu1 %v9588_v22  ;;  %9601 = vst [vmem:[#allocation26_spill] sm:$0xff] %v7234_v40  ;;  %9602 = vst [vmem:[#allocation28_spill] sm:$0xff] %v7236_v43  ;;  %v7240_v34 = vld [vmem:[#allocation3 + $0x88] sm:$0xff]  ;;  %v7242_v22 = vld [vmem:[#allocation3 + $0x98] sm:$0xff] }
 0x509   :  { %2635 = vmatpush1.msra.mxu0 %v9589_v44  ;;  %2706 = vmatpush1.msra.mxu1 %v9590_v30  ;;  %9603 = vst [vmem:[#allocation29_spill] sm:$0xff] %v7240_v34  ;;  %9604 = vst [vmem:[#allocation27_spill] sm:$0xff] %v7242_v22  ;;  %v7246_v44 = vld [vmem:[#allocation3 + $0x80] sm:$0xff]  ;;  %v7248_v30 = vld [vmem:[#allocation3 + $0x90] sm:$0xff] }
 0x50a   :  { %2636 = vmatprep.subr.mxu0 %v9591_v26  ;;  %2707 = vmatprep.subr.mxu1 %v9592_v0  ;;  %9605 = vst [vmem:[#allocation56_spill] sm:$0xff] %v7246_v44  ;;  %9606 = vst [vmem:[#allocation55_spill] sm:$0xff] %v7248_v30  ;;  %v7252_v26 = vld [vmem:[#allocation3 + $0x68] sm:$0xff]  ;;  %v7254_v0 = vld [vmem:[#allocation3 + $0x78] sm:$0xff] }
 0x50b   :  { %2637 = vmatpush1.msra.mxu0 %v9593_v18  ;;  %2708 = vmatpush1.msra.mxu1 %v9594_v19  ;;  %9607 = vst [vmem:[#allocation58_spill] sm:$0xff] %v7252_v26  ;;  %9608 = vst [vmem:[#allocation57_spill] sm:$0xff] %v7254_v0  ;;  %v7258_v18 = vld [vmem:[#allocation3 + $0x60] sm:$0xff]  ;;  %v7260_v19 = vld [vmem:[#allocation3 + $0x70] sm:$0xff] }
 0x50c   :  { %2638 = vmatprep.subr.mxu0 %v9595_v24  ;;  %2709 = vmatprep.subr.mxu1 %v9596_v56  ;;  %9609 = vst [vmem:[#allocation60_spill] sm:$0xff] %v7258_v18  ;;  %9610 = vst [vmem:[#allocation59_spill] sm:$0xff] %v7260_v19  ;;  %v7264_v24 = vld [vmem:[#allocation3 + $0x48] sm:$0xff]  ;;  %v7266_v56 = vld [vmem:[#allocation3 + $0x58] sm:$0xff] }
 0x50d   :  { %2639 = vmatpush1.msra.mxu0 %v9597_v59  ;;  %2710 = vmatpush1.msra.mxu1 %v9598_v55  ;;  %9611 = vst [vmem:[#allocation62_spill] sm:$0xff] %v7264_v24  ;;  %9612 = vst [vmem:[#allocation61_spill] sm:$0xff] %v7266_v56  ;;  %v7270_v59 = vld [vmem:[#allocation3 + $0x40] sm:$0xff]  ;;  %v7272_v55 = vld [vmem:[#allocation3 + $0x50] sm:$0xff] }
 0x50e   :  { %2640 = vmatprep.subr.mxu0 %v6848_v27  ;;  %2711 = vmatprep.subr.mxu1 %v9599_v51  ;;  %v7134_v27 = vld [vmem:[#allocation3 + $0x1b8] sm:$0xff]  ;;  %9613 = vst [vmem:[#allocation64_spill] sm:$0xff] %v7270_v59  ;;  %9614 = vst [vmem:[#allocation63_spill] sm:$0xff] %v7272_v55  ;;  %v7276_v51 = vld [vmem:[#allocation3 + $0x28] sm:$0xff] }
 0x50f   :  { %2641 = vmatpush1.msra.mxu0 %v6854_v21  ;;  %2712 = vmatpush1.msra.mxu1 %v6856_v57  ;;  %v7108_v21 = vld [vmem:[#allocation3 + $0x1e8] sm:$0xff]  ;;  %v7110_v57 = vld [vmem:[#allocation3 + $0x1f8] sm:$0xff]  ;;  %9615 = vst [vmem:[#allocation66_spill] sm:$0xff] %v7276_v51 }
 0x510   :  { %2642 = vmatprep.subr.mxu0 %v6860_v32  ;;  %2713 = vmatprep.subr.mxu1 %v6862_v31  ;;  %v7114_v32 = vld [vmem:[#allocation3 + $0x1e0] sm:$0xff]  ;;  %v7116_v31 = vld [vmem:[#allocation3 + $0x1f0] sm:$0xff] }
 0x511   :  { %2643 = vmatpush1.msra.mxu0 %v6866_v11  ;;  %2714 = vmatpush1.msra.mxu1 %v6868_v4  ;;  %v7120_v11 = vld [vmem:[#allocation3 + $0x1c8] sm:$0xff]  ;;  %v7122_v4 = vld [vmem:[#allocation3 + $0x1d8] sm:$0xff] }
 0x512   :  { %2644 = vmatprep.subr.mxu0 %v6872_v25  ;;  %2715 = vmatprep.subr.mxu1 %v6874_v3  ;;  %v7126_v25 = vld [vmem:[#allocation3 + $0x1c0] sm:$0xff]  ;;  %v7128_v3 = vld [vmem:[#allocation3 + $0x1d0] sm:$0xff] }
 0x513   :  { %2645 = vmatpush1.msra.mxu0 %v6878_v20  ;;  %2678 = vmatprep.mubr.f32.mxu0 %v9168_v1  ;;  %v7132_v20 = vld [vmem:[#allocation3 + $0x1a8] sm:$0xff] }
 0x514   :  { %2716 = vmatpush1.msra.mxu1 %v6882_v58  ;;  %2749 = vmatprep.mubr.f32.mxu1 %v9168_v1  ;;  %v7138_v58 = vld [vmem:[#allocation3 + $0x1a0] sm:$0xff] }
 0x515   :  { %2679 = vmatmul.mubr.f32.vlgmr.msra.gmra.mxu0 %v7038_v2  ;;  %2750 = vmatmul.mubr.f32.vlgmr.msra.gmra.mxu1 %v7038_v2  ;;  %v7146_v2 = vld [vmem:[#allocation3 + $0x198] sm:$0xff] }
 0x516   :  { %2916 = vmatprep.subr.mxu0 %v7108_v21  ;;  %2987 = vmatprep.subr.mxu1 %v7110_v57 }
 0x517   :  { %2917 = vmatpush1.msra.mxu0 %v7114_v32  ;;  %2988 = vmatpush1.msra.mxu1 %v7116_v31 }
 0x518   :  { %2918 = vmatprep.subr.mxu0 %v7120_v11  ;;  %2989 = vmatprep.subr.mxu1 %v7122_v4 }
 0x519   :  { %2919 = vmatpush1.msra.mxu0 %v7126_v25  ;;  %2990 = vmatpush1.msra.mxu1 %v7128_v3 }
 0x51a   :  { %2920 = vmatprep.subr.mxu0 %v7132_v20  ;;  %2991 = vmatprep.subr.mxu1 %v7134_v27 }
 0x51b   :  { %2921 = vmatpush1.msra.mxu0 %v7138_v58  ;;  %2992 = vmatpush1.msra.mxu1 %v7140_v60 }
 0x51c   :  { %2922 = vmatprep.subr.mxu0 %v7144_v63  ;;  %2993 = vmatprep.subr.mxu1 %v7146_v2 }
 0x51d   :  { %2923 = vmatpush1.msra.mxu0 %v7150_v62  ;;  %2994 = vmatpush1.msra.mxu1 %v7152_v5 }
 0x51e   :  { %2924 = vmatprep.subr.mxu0 %v7156_v9  ;;  %2995 = vmatprep.subr.mxu1 %v7158_v47 }
 0x51f   :  { %2925 = vmatpush1.msra.mxu0 %v7162_v37  ;;  %2996 = vmatpush1.msra.mxu1 %v7164_v54 }
 0x520   :  { %2926 = vmatprep.subr.mxu0 %v7168_v8  ;;  %2997 = vmatprep.subr.mxu1 %v7170_v29 }
 0x521   :  { %2927 = vmatpush1.msra.mxu0 %v7174_v7  ;;  %2998 = vmatpush1.msra.mxu1 %v7176_v6 }
 0x522   :  { %2928 = vmatprep.subr.mxu0 %v7180_v61  ;;  %2999 = vmatprep.subr.mxu1 %v7182_v10 }
 0x523   :  { %2929 = vmatpush1.msra.mxu0 %v7186_v13  ;;  %3000 = vmatpush1.msra.mxu1 %v7188_v14 }
 0x524   :  { %2930 = vmatprep.subr.mxu0 %v7192_v28  ;;  %3001 = vmatprep.subr.mxu1 %v7194_v33 }
 0x525   :  { %2931 = vmatpush1.msra.mxu0 %v7198_v38  ;;  %3002 = vmatpush1.msra.mxu1 %v7200_v41 }
 0x526   :  { %2932 = vmatprep.subr.mxu0 %v7204_v42  ;;  %3003 = vmatprep.subr.mxu1 %v7206_v45 }
 0x527   :  { %2933 = vmatpush1.msra.mxu0 %v7210_v46  ;;  %3004 = vmatpush1.msra.mxu1 %v7212_v49 }
 0x528   :  { %2934 = vmatprep.subr.mxu0 %v7216_v50  ;;  %3005 = vmatprep.subr.mxu1 %v7218_v16 }
 0x529   :  { %2935 = vmatpush1.msra.mxu0 %v7222_v35  ;;  %3006 = vmatpush1.msra.mxu1 %v7224_v36 }
 0x52a   :  { %2936 = vmatprep.subr.mxu0 %v7228_v15  ;;  %3007 = vmatprep.subr.mxu1 %v7230_v39 }
 0x52b   :  { %2937 = vmatpush1.msra.mxu0 %v7234_v40  ;;  %3008 = vmatpush1.msra.mxu1 %v7236_v43 }
 0x52c   :  { %2938 = vmatprep.subr.mxu0 %v7240_v34  ;;  %3009 = vmatprep.subr.mxu1 %v7242_v22 }
 0x52d   :  { %2939 = vmatpush1.msra.mxu0 %v7246_v44  ;;  %3010 = vmatpush1.msra.mxu1 %v7248_v30  ;;  %v7418_v30 = vld [vmem:[#allocation3 + $0x2b8] sm:$0xff]  ;;  %v7434_v44 = vld [vmem:[#allocation3 + $0x280] sm:$0xff] }
 0x52e   :  { %2940 = vmatprep.subr.mxu0 %v7252_v26  ;;  %3011 = vmatprep.subr.mxu1 %v7254_v0  ;;  %v7402_v0 = vld [vmem:[#allocation3 + $0x2f0] sm:$0xff]  ;;  %v7410_v26 = vld [vmem:[#allocation3 + $0x2c0] sm:$0xff]  ;;  %9664 = vst [vmem:[#allocation113_spill] sm:$0xff] %v7418_v30  ;;  %9669 = vst [vmem:[#allocation120_spill] sm:$0xff] %v7434_v44 }
 0x52f   :  { %2941 = vmatpush1.msra.mxu0 %v7258_v18  ;;  %3012 = vmatpush1.msra.mxu1 %v7260_v19  ;;  %v7278_v18 = vld [vmem:[#allocation3 + $0x38] sm:$0xff]  ;;  %v7282_v19 = vld [vmem:[#allocation3 + $0x20] sm:$0xff]  ;;  %9658 = vst [vmem:[#allocation107_spill] sm:$0xff] %v7402_v0  ;;  %9661 = vst [vmem:[#allocation112_spill] sm:$0xff] %v7410_v26 }
 0x530   :  { %2942 = vmatprep.subr.mxu0 %v7264_v24  ;;  %3013 = vmatprep.subr.mxu1 %v7266_v56  ;;  %9616 = vst [vmem:[#allocation65_spill] sm:$0xff] %v7278_v18  ;;  %9617 = vst [vmem:[#allocation68_spill] sm:$0xff] %v7282_v19  ;;  %v7284_v24 = vld [vmem:[#allocation3 + $0x30] sm:$0xff]  ;;  %v7288_v56 = vld [vmem:[#allocation3 + $0x8] sm:$0xff] }
 0x531   :  { %2943 = vmatpush1.msra.mxu0 %v7270_v59  ;;  %3014 = vmatpush1.msra.mxu1 %v7272_v55  ;;  %9618 = vst [vmem:[#allocation67_spill] sm:$0xff] %v7284_v24  ;;  %9619 = vst [vmem:[#allocation70_spill] sm:$0xff] %v7288_v56  ;;  %v7290_v59 = vld [vmem:[#allocation3 + $0x18] sm:$0xff]  ;;  %v7294_v55 = vld [vmem:[#allocation3] sm:$0xff] }
 0x532   :  { %2944 = vmatprep.subr.mxu0 %v7276_v51  ;;  %3015 = vmatprep.subr.mxu1 %v7278_v18  ;;  %9620 = vst [vmem:[#allocation69_spill] sm:$0xff] %v7290_v59  ;;  %9621 = vst [vmem:[#allocation72_spill] sm:$0xff] %v7294_v55  ;;  %v7296_v51 = vld [vmem:[#allocation3 + $0x10] sm:$0xff]  ;;  %v7300_v18 = vld [vmem:[#allocation3 + $0x3e8] sm:$0xff] }
 0x533   :  { %2945 = vmatpush1.msra.mxu0 %v7282_v19  ;;  %3016 = vmatpush1.msra.mxu1 %v7284_v24  ;;  %9622 = vst [vmem:[#allocation71_spill] sm:$0xff] %v7296_v51  ;;  %9623 = vst [vmem:[#allocation74_spill] sm:$0xff] %v7300_v18  ;;  %v7302_v19 = vld [vmem:[#allocation3 + $0x3f8] sm:$0xff]  ;;  %v7306_v24 = vld [vmem:[#allocation3 + $0x3e0] sm:$0xff] }
 0x534   :  { %2946 = vmatprep.subr.mxu0 %v7288_v56  ;;  %3017 = vmatprep.subr.mxu1 %v7290_v59  ;;  %9624 = vst [vmem:[#allocation73_spill] sm:$0xff] %v7302_v19  ;;  %9625 = vst [vmem:[#allocation76_spill] sm:$0xff] %v7306_v24  ;;  %v7308_v56 = vld [vmem:[#allocation3 + $0x3f0] sm:$0xff]  ;;  %v7312_v59 = vld [vmem:[#allocation3 + $0x3c8] sm:$0xff] }
 0x535   :  { %2947 = vmatpush1.msra.mxu0 %v7294_v55  ;;  %3018 = vmatpush1.msra.mxu1 %v7296_v51  ;;  %9626 = vst [vmem:[#allocation75_spill] sm:$0xff] %v7308_v56  ;;  %9627 = vst [vmem:[#allocation78_spill] sm:$0xff] %v7312_v59  ;;  %v7314_v55 = vld [vmem:[#allocation3 + $0x3d8] sm:$0xff]  ;;  %v7318_v51 = vld [vmem:[#allocation3 + $0x3c0] sm:$0xff] }
 0x536   :  { %2948 = vmatprep.subr.mxu0 %v7300_v18  ;;  %3019 = vmatprep.subr.mxu1 %v7302_v19  ;;  %9628 = vst [vmem:[#allocation77_spill] sm:$0xff] %v7314_v55  ;;  %9629 = vst [vmem:[#allocation80_spill] sm:$0xff] %v7318_v51  ;;  %v7320_v18 = vld [vmem:[#allocation3 + $0x3d0] sm:$0xff]  ;;  %v7324_v19 = vld [vmem:[#allocation3 + $0x3a8] sm:$0xff] }
 0x537   :  { %2949 = vmatpush2.msra.mxu0 %v7306_v24  ;;  %3020 = vmatpush2.msra.mxu1 %v7308_v56  ;;  %9630 = vst [vmem:[#allocation79_spill] sm:$0xff] %v7320_v18  ;;  %9631 = vst [vmem:[#allocation82_spill] sm:$0xff] %v7324_v19  ;;  %v7326_v24 = vld [vmem:[#allocation3 + $0x3b8] sm:$0xff]  ;;  %v7330_v56 = vld [vmem:[#allocation3 + $0x3a0] sm:$0xff] }
 0x538   :  { %2950 = vmatprep.subr.mxu0 %v7312_v59  ;;  %3021 = vmatprep.subr.mxu1 %v7314_v55  ;;  %9632 = vst [vmem:[#allocation81_spill] sm:$0xff] %v7326_v24  ;;  %9633 = vst [vmem:[#allocation84_spill] sm:$0xff] %v7330_v56  ;;  %v7332_v59 = vld [vmem:[#allocation3 + $0x3b0] sm:$0xff]  ;;  %v7336_v55 = vld [vmem:[#allocation3 + $0x388] sm:$0xff] }
 0x539   :  { %2951 = vmatpush2.msra.mxu0 %v7318_v51  ;;  %3022 = vmatpush2.msra.mxu1 %v7320_v18  ;;  %9634 = vst [vmem:[#allocation83_spill] sm:$0xff] %v7332_v59  ;;  %9635 = vst [vmem:[#allocation86_spill] sm:$0xff] %v7336_v55  ;;  %v7338_v51 = vld [vmem:[#allocation3 + $0x398] sm:$0xff]  ;;  %v7342_v18 = vld [vmem:[#allocation3 + $0x380] sm:$0xff] }
 0x53a   :  { %2952 = vmatprep.subr.mxu0 %v7324_v19  ;;  %3023 = vmatprep.subr.mxu1 %v7326_v24  ;;  %9636 = vst [vmem:[#allocation85_spill] sm:$0xff] %v7338_v51  ;;  %9637 = vst [vmem:[#allocation88_spill] sm:$0xff] %v7342_v18  ;;  %v7344_v19 = vld [vmem:[#allocation3 + $0x390] sm:$0xff]  ;;  %v7348_v24 = vld [vmem:[#allocation3 + $0x368] sm:$0xff] }
 0x53b   :  { %2953 = vmatpush2.msra.mxu0 %v7330_v56  ;;  %3024 = vmatpush2.msra.mxu1 %v7332_v59  ;;  %9638 = vst [vmem:[#allocation87_spill] sm:$0xff] %v7344_v19  ;;  %9639 = vst [vmem:[#allocation90_spill] sm:$0xff] %v7348_v24  ;;  %v7350_v56 = vld [vmem:[#allocation3 + $0x378] sm:$0xff]  ;;  %v7354_v59 = vld [vmem:[#allocation3 + $0x360] sm:$0xff] }
 0x53c   :  { %2954 = vmatprep.subr.mxu0 %v7336_v55  ;;  %3025 = vmatprep.subr.mxu1 %v7338_v51  ;;  %9640 = vst [vmem:[#allocation89_spill] sm:$0xff] %v7350_v56  ;;  %9641 = vst [vmem:[#allocation92_spill] sm:$0xff] %v7354_v59  ;;  %v7356_v55 = vld [vmem:[#allocation3 + $0x370] sm:$0xff]  ;;  %v7360_v51 = vld [vmem:[#allocation3 + $0x348] sm:$0xff] }
 0x53d   :  { %2955 = vmatpush2.msra.mxu0 %v7342_v18  ;;  %3026 = vmatpush2.msra.mxu1 %v7344_v19  ;;  %9642 = vst [vmem:[#allocation91_spill] sm:$0xff] %v7356_v55  ;;  %9643 = vst [vmem:[#allocation94_spill] sm:$0xff] %v7360_v51  ;;  %v7362_v18 = vld [vmem:[#allocation3 + $0x358] sm:$0xff]  ;;  %v7366_v19 = vld [vmem:[#allocation3 + $0x340] sm:$0xff] }
 0x53e   :  { %2956 = vmatprep.subr.mxu0 %v7348_v24  ;;  %3027 = vmatprep.subr.mxu1 %v7350_v56  ;;  %9644 = vst [vmem:[#allocation93_spill] sm:$0xff] %v7362_v18  ;;  %9645 = vst [vmem:[#allocation96_spill] sm:$0xff] %v7366_v19  ;;  %v7368_v24 = vld [vmem:[#allocation3 + $0x350] sm:$0xff]  ;;  %v7372_v56 = vld [vmem:[#allocation3 + $0x328] sm:$0xff] }
 0x53f   :  { %2957 = vmatpush2.msra.mxu0 %v7354_v59  ;;  %3028 = vmatpush2.msra.mxu1 %v7356_v55  ;;  %9646 = vst [vmem:[#allocation95_spill] sm:$0xff] %v7368_v24  ;;  %9647 = vst [vmem:[#allocation98_spill] sm:$0xff] %v7372_v56  ;;  %v7374_v59 = vld [vmem:[#allocation3 + $0x338] sm:$0xff]  ;;  %v7378_v55 = vld [vmem:[#allocation3 + $0x320] sm:$0xff] }
 0x540   :  { %2958 = vmatprep.subr.mxu0 %v7360_v51  ;;  %3029 = vmatprep.subr.mxu1 %v7362_v18  ;;  %9648 = vst [vmem:[#allocation97_spill] sm:$0xff] %v7374_v59  ;;  %9649 = vst [vmem:[#allocation100_spill] sm:$0xff] %v7378_v55  ;;  %v7380_v51 = vld [vmem:[#allocation3 + $0x330] sm:$0xff]  ;;  %v7384_v18 = vld [vmem:[#allocation3 + $0x308] sm:$0xff] }
 0x541   :  { %2959 = vmatpush2.msra.mxu0 %v7366_v19  ;;  %3030 = vmatpush2.msra.mxu1 %v7368_v24  ;;  %9650 = vst [vmem:[#allocation99_spill] sm:$0xff] %v7380_v51  ;;  %9651 = vst [vmem:[#allocation102_spill] sm:$0xff] %v7384_v18  ;;  %v7386_v19 = vld [vmem:[#allocation3 + $0x318] sm:$0xff]  ;;  %v7390_v24 = vld [vmem:[#allocation3 + $0x300] sm:$0xff] }
 0x542   :  { %2960 = vmatprep.subr.mxu0 %v7372_v56  ;;  %3031 = vmatprep.subr.mxu1 %v7374_v59  ;;  %9652 = vst [vmem:[#allocation101_spill] sm:$0xff] %v7386_v19  ;;  %9653 = vst [vmem:[#allocation104_spill] sm:$0xff] %v7390_v24  ;;  %v7392_v56 = vld [vmem:[#allocation3 + $0x310] sm:$0xff]  ;;  %v7394_v59 = vld [vmem:[#allocation3 + $0x2e8] sm:$0xff] }
 0x543   :  { %2961 = vmatpush2.msra.mxu0 %v7378_v55  ;;  %3032 = vmatpush2.msra.mxu1 %v7380_v51  ;;  %9654 = vst [vmem:[#allocation103_spill] sm:$0xff] %v7392_v56  ;;  %9655 = vst [vmem:[#allocation106_spill] sm:$0xff] %v7394_v59  ;;  %v7398_v55 = vld [vmem:[#allocation3 + $0x2f8] sm:$0xff]  ;;  %v7400_v51 = vld [vmem:[#allocation3 + $0x2e0] sm:$0xff] }
 0x544   :  { %2962 = vmatprep.subr.mxu0 %v7384_v18  ;;  %3033 = vmatprep.subr.mxu1 %v7386_v19  ;;  %9656 = vst [vmem:[#allocation105_spill] sm:$0xff] %v7398_v55  ;;  %9657 = vst [vmem:[#allocation108_spill] sm:$0xff] %v7400_v51  ;;  %v7406_v19 = vld [vmem:[#allocation3 + $0x2c8] sm:$0xff]  ;;  %v7408_v18 = vld [vmem:[#allocation3 + $0x2d8] sm:$0xff] }
 0x545   :  { %2963 = vmatpush2.msra.mxu0 %v7390_v24  ;;  %3034 = vmatpush2.msra.mxu1 %v7392_v56  ;;  %9659 = vst [vmem:[#allocation110_spill] sm:$0xff] %v7406_v19  ;;  %9660 = vst [vmem:[#allocation109_spill] sm:$0xff] %v7408_v18  ;;  %v7414_v56 = vld [vmem:[#allocation3 + $0x2d0] sm:$0xff]  ;;  %v7416_v24 = vld [vmem:[#allocation3 + $0x2a8] sm:$0xff] }
 0x546   :  { %2964 = vmatprep.subr.mxu0 %v7394_v59  ;;  %3035 = vmatprep.subr.mxu1 %v7398_v55  ;;  %9662 = vst [vmem:[#allocation111_spill] sm:$0xff] %v7414_v56  ;;  %9663 = vst [vmem:[#allocation114_spill] sm:$0xff] %v7416_v24  ;;  %v7422_v55 = vld [vmem:[#allocation3 + $0x2a0] sm:$0xff]  ;;  %v7424_v59 = vld [vmem:[#allocation3 + $0x2b0] sm:$0xff] }
 0x547   :  { %2965 = vmatpush2.msra.mxu0 %v7400_v51  ;;  %3036 = vmatpush2.msra.mxu1 %v7402_v0  ;;  %9665 = vst [vmem:[#allocation116_spill] sm:$0xff] %v7422_v55  ;;  %9666 = vst [vmem:[#allocation115_spill] sm:$0xff] %v7424_v59  ;;  %v7428_v51 = vld [vmem:[#allocation3 + $0x288] sm:$0xff]  ;;  %v7430_v0 = vld [vmem:[#allocation3 + $0x298] sm:$0xff] }
 0x548   :  { %2966 = vmatprep.subr.mxu0 %v7406_v19  ;;  %3037 = vmatprep.subr.mxu1 %v7408_v18  ;;  %9667 = vst [vmem:[#allocation118_spill] sm:$0xff] %v7428_v51  ;;  %9668 = vst [vmem:[#allocation117_spill] sm:$0xff] %v7430_v0  ;;  %v7436_v19 = vld [vmem:[#allocation3 + $0x290] sm:$0xff]  ;;  %v7440_v18 = vld [vmem:[#allocation3 + $0x268] sm:$0xff] }
 0x549   :  { %2967 = vmatpush2.msra.mxu0 %v7410_v26  ;;  %3038 = vmatpush2.msra.mxu1 %v7414_v56  ;;  %9670 = vst [vmem:[#allocation119_spill] sm:$0xff] %v7436_v19  ;;  %9671 = vst [vmem:[#allocation122_spill] sm:$0xff] %v7440_v18  ;;  %v7442_v26 = vld [vmem:[#allocation3 + $0x278] sm:$0xff]  ;;  %v7446_v56 = vld [vmem:[#allocation3 + $0x260] sm:$0xff] }
 0x54a   :  { %2968 = vmatprep.subr.mxu0 %v7416_v24  ;;  %3039 = vmatprep.subr.mxu1 %v7418_v30  ;;  %9672 = vst [vmem:[#allocation121_spill] sm:$0xff] %v7442_v26  ;;  %9673 = vst [vmem:[#allocation125_spill] sm:$0xff] %v7446_v56  ;;  %v7448_v24 = vld [vmem:[#allocation3 + $0x270] sm:$0xff]  ;;  %v7452_v30 = vld [vmem:[#allocation3 + $0x248] sm:$0xff] }
 0x54b   :  { %2969 = vmatpush2.msra.mxu0 %v7422_v55  ;;  %3040 = vmatpush2.msra.mxu1 %v7424_v59  ;;  %9674 = vst [vmem:[#allocation123_spill] sm:$0xff] %v7448_v24  ;;  %9675 = vst [vmem:[#allocation127_spill] sm:$0xff] %v7452_v30  ;;  %v7454_v55 = vld [vmem:[#allocation3 + $0x258] sm:$0xff]  ;;  %v7458_v59 = vld [vmem:[#allocation3 + $0x240] sm:$0xff] }
 0x54c   :  { %2970 = vmatprep.subr.mxu0 %v7428_v51  ;;  %3041 = vmatprep.subr.mxu1 %v7430_v0  ;;  %9676 = vst [vmem:[#allocation129_spill] sm:$0xff] %v7454_v55  ;;  %9677 = vst [vmem:[#allocation131_spill] sm:$0xff] %v7458_v59  ;;  %v7460_v51 = vld [vmem:[#allocation3 + $0x250] sm:$0xff]  ;;  %v7464_v0 = vld [vmem:[#allocation3 + $0x228] sm:$0xff] }
 0x54d   :  { %2971 = vmatpush2.msra.mxu0 %v7434_v44  ;;  %3042 = vmatpush2.msra.mxu1 %v7436_v19  ;;  %9678 = vst [vmem:[#allocation133_spill] sm:$0xff] %v7460_v51  ;;  %9679 = vst [vmem:[#allocation135_spill] sm:$0xff] %v7464_v0  ;;  %v7466_v44 = vld [vmem:[#allocation3 + $0x238] sm:$0xff]  ;;  %v7470_v19 = vld [vmem:[#allocation3 + $0x220] sm:$0xff] }
 0x54e   :  { %2972 = vmatprep.subr.mxu0 %v7440_v18  ;;  %3043 = vmatprep.subr.mxu1 %v7442_v26  ;;  %9680 = vst [vmem:[#allocation21_spill] sm:$0xff] %v7466_v44  ;;  %9681 = vst [vmem:[#allocation20_spill] sm:$0xff] %v7470_v19  ;;  %v7472_v18 = vld [vmem:[#allocation3 + $0x230] sm:$0xff]  ;;  %v7476_v26 = vld [vmem:[#allocation3 + $0x208] sm:$0xff] }
 0x54f   :  { %2973 = vmatpush2.msra.mxu0 %v7446_v56  ;;  %3044 = vmatpush2.msra.mxu1 %v7448_v24  ;;  %9682 = vst [vmem:[#allocation22_spill] sm:$0xff] %v7472_v18  ;;  %9683 = vst [vmem:[#allocation24_spill] sm:$0xff] %v7476_v26  ;;  %v7478_v56 = vld [vmem:[#allocation3 + $0x218] sm:$0xff]  ;;  %v7482_v24 = vld [vmem:[#allocation3 + $0x200] sm:$0xff] }
 0x550   :  { %2974 = vmatprep.subr.mxu0 %v7452_v30  ;;  %3045 = vmatprep.subr.mxu1 %v7454_v55  ;;  %9684 = vst [vmem:[#allocation25_spill] sm:$0xff] %v7478_v56  ;;  %9685 = vst [vmem:[#allocation23_spill] sm:$0xff] %v7482_v24  ;;  %v7484_v30 = vld [vmem:[#allocation3 + $0x210] sm:$0xff]  ;;  %v7488_v55 = vld [vmem:[#allocation8 + $0x1e8] sm:$0xff] }
 0x551   :  { %2975 = vmatpush2.msra.mxu0 %v7458_v59  ;;  %3046 = vmatpush2.msra.mxu1 %v7460_v51  ;;  %9686 = vst [vmem:[#allocation50_spill] sm:$0xff] %v7484_v30  ;;  %9687 = vst [vmem:[#allocation124_spill] sm:$0xff] %v7488_v55  ;;  %v7490_v59 = vld [vmem:[#allocation8 + $0x1f8] sm:$0xff] }
 0x552   :  { %2976 = vmatprep.subr.mxu0 %v7464_v0  ;;  %3047 = vmatprep.subr.mxu1 %v7466_v44  ;;  %9688 = vst [vmem:[#allocation138_spill] sm:$0xff] %v7490_v59 }
 0x553   :  { %2977 = vmatpush2.msra.mxu0 %v7470_v19  ;;  %3048 = vmatpush2.msra.mxu1 %v7472_v18 }
 0x554   :  { %2978 = vmatprep.subr.mxu0 %v7476_v26  ;;  %3049 = vmatprep.subr.mxu1 %v7478_v56 }
 0x555   :  { %2979 = vmatpush2.msra.mxu0 %v7482_v24  ;;  %3050 = vmatpush2.msra.mxu1 %v7484_v30 }
 0x556   :  { %3146 = vmatprep.subr.mxu0 %v7488_v55  ;;  %3217 = vmatprep.subr.mxu1 %v7490_v59 }
 0x5b4   :  { %v2450_v44 = vpop.f32.mrf.mxu0  ;;  %v2521_v22 = vpop.f32.mrf.mxu1 }
 0x5b5   :  { %v2451_v19 = vadd.f32 %v2450_v44, %v9549_v12  ;;  %v2522_v55 = vadd.f32 %v2521_v22, %v9552_v48  ;;  %v9692_v48 = vld [vmem:[#allocation35_spill] sm:$0xff] }
 0x5b6   :  { %v2452_v18 = vpop.f32.mrf.mxu0  ;;  %v2523_v56 = vpop.f32.mrf.mxu1 }
 0x5b7   :  { %v4815_v0 = vmul.f32 -1.442695, %v2451_v19  ;;  %v2453_v51 = vadd.f32 %v2452_v18, %v9550_v17  ;;  %v2524_v24 = vadd.f32 %v2523_v56, %v9551_v23  ;;  %v9689_v17 = vld [vmem:[#allocation34_spill] sm:$0xff] }
 0x5b9   :  { %5017 = vpow2.f32 %v4815_v0  ;;  %v4816_v26 = vmul.f32 -1.442695, %v2453_v51  ;;  %v4817_v34 = vmul.f32 -1.442695, %v2524_v24  ;;  %v9690_v24 = vld [vmem:[#allocation36_spill] sm:$0xff] }
 0x5bb   :  { %5019 = vpow2.f32 %v4816_v26 }
 0x5bc   :  { %5021 = vpow2.f32 %v4817_v34 }
 0x5c6   :  { %v5018_v30 = vpop.eup %5017 }
 0x5c7   :  { %v2529_v43 = vadd.f32 1.0, %v5018_v30 }
 0x5c8   :  { %v5020_v59 = vpop.eup %5019 }
 0x5c9   :  { %5023 = vrcp.f32 %v2529_v43  ;;  %v2535_v44 = vadd.f32 1.0, %v5020_v59  ;;  %v5022_v19 = vpop.eup %5021 }
 0x5ca   :  { %5025 = vtanh.f32 %v2522_v55  ;;  %v2542_v30 = vadd.f32 1.0, %v5022_v19 }
 0x5cb   :  { %5027 = vrcp.f32 %v2535_v44 }
 0x5d5   :  { %v2680_v18 = vpop.f32.mrf.mxu0  ;;  %v2751_v43 = vpop.f32.mrf.mxu1 }
 0x5d6   :  { %v5024_v0 = vpop.eup %5023  ;;  %v2756_v51 = vadd.f32 %v2680_v18, %v9689_v17  ;;  %v9691_v17 = vld [vmem:[#allocation37_spill] sm:$0xff] }
 0x5d7   :  { %v5026_v26 = vpop.eup %5025  ;;  %v2682_v12 = vpop.f32.mrf.mxu0 }
 0x5d8   :  { %v5028_v40 = vpop.eup %5027  ;;  %v4818_v56 = vmul.f32 -1.442695, %v2756_v51  ;;  %v2757_v23 = vadd.f32 %v2682_v12, %v9690_v24  ;;  %v2546_v39 = vmul.f32 %v5026_v26, %v5024_v0  ;;  %v2753_v55 = vpop.f32.mrf.mxu1  ;;  %v2758_v12 = vadd.f32 %v2751_v43, %v9692_v48 }
 0x5d9   :  { %v2545_v22 = vmul.f32 %v5028_v40, %v7029_v53  ;;  %v2759_v44 = vadd.f32 %v2753_v55, %v9691_v17 }
 0x5da   :  { %5029 = vpow2.f32 %v4818_v56  ;;  %v4819_v34 = vmul.f32 -1.442695, %v2757_v23 }
 0x5db   :  { %v7505_v59 = vadd.f32 %v2546_v39, %v2545_v22  ;;  %v4820_v18 = vmul.f32 -1.442695, %v2759_v44 }
 0x5dc   :  { %5031 = vpow2.f32 %v4819_v34 }
 0x5dd   :  { %5033 = vrcp.f32 %v2542_v30 }
 0x5de   :  { %5035 = vtanh.f32 %v7505_v59 }
 0x5df   :  { %5037 = vpow2.f32 %v4820_v18  ;;  %v7516_v18 = vld [vmem:[#allocation8 + $0x1e0] sm:$0xff] }
 0x5e7   :  { %v5030_v51 = vpop.eup %5029 }
 0x5e8   :  { %v2763_v0 = vadd.f32 1.0, %v5030_v51  ;;  %v7518_v51 = vld [vmem:[#allocation8 + $0x1f0] sm:$0xff] }
 0x5e9   :  { %v5032_v26 = vpop.eup %5031 }
 0x5ea   :  { %v5034_v53 = vpop.eup %5033  ;;  %5039 = vrcp.f32 %v2763_v0  ;;  %v2769_v40 = vadd.f32 1.0, %v5032_v26  ;;  %v7522_v0 = vld [vmem:[#allocation8 + $0x1d8] sm:$0xff]  ;;  %v7528_v26 = vld [vmem:[#allocation8 + $0x1d0] sm:$0xff] }
 0x5eb   :  { %v5036_v23 = vpop.eup %5035  ;;  %5041 = vtanh.f32 %v2758_v12  ;;  %v7520_v12 = vld [vmem:[#allocation8 + $0x1c8] sm:$0xff] }
 0x5ec   :  { %5043 = vrcp.f32 %v2769_v40  ;;  %v2549_v39 = vmul.f32 %v5036_v23, %v5034_v53  ;;  %v5038_v19 = vpop.eup %5037  ;;  %v7532_v53 = vld [vmem:[#allocation8 + $0x1a8] sm:$0xff]  ;;  %v7534_v40 = vld [vmem:[#allocation8 + $0x1b8] sm:$0xff]  ;;  %v7538_v23 = vld [vmem:[#allocation8 + $0x1a0] sm:$0xff] }
 0x5ed   :  { %v2776_v30 = vadd.f32 1.0, %v5038_v19  ;;  %9693 = vst [vmem:[#allocation126_spill] sm:$0xff] %v7538_v23  ;;  %v7544_v19 = vld [vmem:[#allocation8 + $0x188] sm:$0xff] }
 0x5ee   :  { %2980 = vmatprep.mubr.f32.mxu0 %v2549_v39  ;;  %3051 = vmatprep.mubr.f32.mxu1 %v2549_v39  ;;  %v7540_v39 = vld [vmem:[#allocation8 + $0x1b0] sm:$0xff]  ;;  %9695 = vst [vmem:[#allocation128_spill] sm:$0xff] %v7544_v19 }
 0x5ef   :  { %5045 = vrcp.f32 %v2776_v30  ;;  %9694 = vst [vmem:[#allocation140_spill] sm:$0xff] %v7540_v39  ;;  %v7556_v30 = vld [vmem:[#allocation8 + $0x168] sm:$0xff] }
 0x5f0   :  { %9699 = vst [vmem:[#allocation32_spill] sm:$0xff] %v7556_v30 }
 0x5f7   :  { %v5040_v56 = vpop.eup %5039 }
 0x5f8   :  { %v5042_v24 = vpop.eup %5041 }
 0x5f9   :  { %v5044_v22 = vpop.eup %5043  ;;  %v2780_v34 = vmul.f32 %v5042_v24, %v5040_v56  ;;  %v7546_v56 = vld [vmem:[#allocation8 + $0x198] sm:$0xff]  ;;  %v7550_v24 = vld [vmem:[#allocation8 + $0x180] sm:$0xff] }
 0x5fa   :  { %v2779_v48 = vmul.f32 %v5044_v22, %v7035_v52  ;;  %v7526_v52 = vld [vmem:[#allocation8 + $0x1c0] sm:$0xff]  ;;  %9696 = vst [vmem:[#allocation142_spill] sm:$0xff] %v7546_v56  ;;  %9697 = vst [vmem:[#allocation130_spill] sm:$0xff] %v7550_v24  ;;  %v7552_v22 = vld [vmem:[#allocation8 + $0x190] sm:$0xff] }
 0x5fb   :  { %9698 = vst [vmem:[#allocation30_spill] sm:$0xff] %v7552_v22 }
 0x5fc   :  { %v7511_v43 = vadd.f32 %v2780_v34, %v2779_v48  ;;  %v5046_v55 = vpop.eup %5045  ;;  %v7558_v34 = vld [vmem:[#allocation8 + $0x178] sm:$0xff]  ;;  %v7562_v48 = vld [vmem:[#allocation8 + $0x160] sm:$0xff] }
 0x5fd   :  { %9700 = vst [vmem:[#allocation33_spill] sm:$0xff] %v7558_v34  ;;  %9701 = vst [vmem:[#allocation31_spill] sm:$0xff] %v7562_v48 }
 0x5fe   :  { %5047 = vtanh.f32 %v7511_v43 }
 0x60b   :  { %v5048_v17 = vpop.eup %5047 }
 0x60c   :  { %v7514_v44 = vmul.f32 %v5048_v17, %v5046_v55  ;;  %v7564_v55 = vld [vmem:[#allocation8 + $0x170] sm:$0xff]  ;;  %v7568_v17 = vld [vmem:[#allocation8 + $0x148] sm:$0xff] }
 0x60d   :  { %9702 = vst [vmem:[#allocation144_spill] sm:$0xff] %v7564_v55  ;;  %9703 = vst [vmem:[#allocation132_spill] sm:$0xff] %v7568_v17 }
 0x60e   :  { %2981 = vmatmul.mubr.f32.vlgmr.msra.gmra.mxu0 %v7514_v44  ;;  %3052 = vmatmul.mubr.f32.vlgmr.msra.gmra.mxu1 %v7514_v44 }
 0x60f   :  { %3147 = vmatpush1.msra.mxu0 %v7516_v18  ;;  %3218 = vmatpush1.msra.mxu1 %v7518_v51 }
 0x610   :  { %3148 = vmatprep.subr.mxu0 %v7520_v12  ;;  %3219 = vmatprep.subr.mxu1 %v7522_v0 }
 0x611   :  { %3149 = vmatpush1.msra.mxu0 %v7526_v52  ;;  %3220 = vmatpush1.msra.mxu1 %v7528_v26 }
 0x612   :  { %3150 = vmatprep.subr.mxu0 %v7532_v53  ;;  %3221 = vmatprep.subr.mxu1 %v7534_v40 }
 0x613   :  { %3151 = vmatpush1.msra.mxu0 %v7538_v23  ;;  %3222 = vmatpush1.msra.mxu1 %v7540_v39  ;;  %v7570_v23 = vld [vmem:[#allocation8 + $0x158] sm:$0xff]  ;;  %v7574_v39 = vld [vmem:[#allocation8 + $0x140] sm:$0xff] }
 0x614   :  { %3152 = vmatprep.subr.mxu0 %v7544_v19  ;;  %3223 = vmatprep.subr.mxu1 %v7546_v56  ;;  %9704 = vst [vmem:[#allocation146_spill] sm:$0xff] %v7570_v23  ;;  %9705 = vst [vmem:[#allocation134_spill] sm:$0xff] %v7574_v39  ;;  %v7576_v19 = vld [vmem:[#allocation8 + $0x150] sm:$0xff]  ;;  %v7580_v56 = vld [vmem:[#allocation8 + $0x128] sm:$0xff] }
 0x615   :  { %3153 = vmatpush1.msra.mxu0 %v7550_v24  ;;  %3224 = vmatpush1.msra.mxu1 %v7552_v22  ;;  %9706 = vst [vmem:[#allocation148_spill] sm:$0xff] %v7576_v19  ;;  %9707 = vst [vmem:[#allocation136_spill] sm:$0xff] %v7580_v56  ;;  %v7582_v24 = vld [vmem:[#allocation8 + $0x138] sm:$0xff]  ;;  %v7586_v22 = vld [vmem:[#allocation8 + $0x120] sm:$0xff] }
 0x616   :  { %3154 = vmatprep.subr.mxu0 %v7556_v30  ;;  %3225 = vmatprep.subr.mxu1 %v7558_v34  ;;  %9708 = vst [vmem:[#allocation150_spill] sm:$0xff] %v7582_v24  ;;  %9709 = vst [vmem:[#allocation137_spill] sm:$0xff] %v7586_v22  ;;  %v7588_v30 = vld [vmem:[#allocation8 + $0x130] sm:$0xff]  ;;  %v7592_v34 = vld [vmem:[#allocation8 + $0x108] sm:$0xff] }
 0x617   :  { %3155 = vmatpush1.msra.mxu0 %v7562_v48  ;;  %3226 = vmatpush1.msra.mxu1 %v7564_v55  ;;  %9710 = vst [vmem:[#allocation152_spill] sm:$0xff] %v7588_v30  ;;  %9711 = vst [vmem:[#allocation139_spill] sm:$0xff] %v7592_v34  ;;  %v7594_v48 = vld [vmem:[#allocation8 + $0x118] sm:$0xff]  ;;  %v7598_v55 = vld [vmem:[#allocation8 + $0x100] sm:$0xff] }
 0x618   :  { %3156 = vmatprep.subr.mxu0 %v7568_v17  ;;  %3227 = vmatprep.subr.mxu1 %v7570_v23  ;;  %9712 = vst [vmem:[#allocation154_spill] sm:$0xff] %v7594_v48  ;;  %9713 = vst [vmem:[#allocation141_spill] sm:$0xff] %v7598_v55  ;;  %v7600_v17 = vld [vmem:[#allocation8 + $0x110] sm:$0xff]  ;;  %v7604_v23 = vld [vmem:[#allocation8 + $0xe8] sm:$0xff] }
 0x619   :  { %3157 = vmatpush1.msra.mxu0 %v7574_v39  ;;  %3228 = vmatpush1.msra.mxu1 %v7576_v19  ;;  %9714 = vst [vmem:[#allocation156_spill] sm:$0xff] %v7600_v17  ;;  %9715 = vst [vmem:[#allocation143_spill] sm:$0xff] %v7604_v23  ;;  %v7606_v39 = vld [vmem:[#allocation8 + $0xf8] sm:$0xff]  ;;  %v7610_v19 = vld [vmem:[#allocation8 + $0xe0] sm:$0xff] }
 0x61a   :  { %3158 = vmatprep.subr.mxu0 %v7580_v56  ;;  %3229 = vmatprep.subr.mxu1 %v7582_v24  ;;  %9716 = vst [vmem:[#allocation158_spill] sm:$0xff] %v7606_v39  ;;  %9717 = vst [vmem:[#allocation145_spill] sm:$0xff] %v7610_v19  ;;  %v7612_v56 = vld [vmem:[#allocation8 + $0xf0] sm:$0xff]  ;;  %v7616_v24 = vld [vmem:[#allocation8 + $0xc8] sm:$0xff] }
 0x61b   :  { %3159 = vmatpush1.msra.mxu0 %v7586_v22  ;;  %3230 = vmatpush1.msra.mxu1 %v7588_v30  ;;  %9718 = vst [vmem:[#allocation160_spill] sm:$0xff] %v7612_v56  ;;  %9719 = vst [vmem:[#allocation147_spill] sm:$0xff] %v7616_v24  ;;  %v7618_v22 = vld [vmem:[#allocation8 + $0xd8] sm:$0xff]  ;;  %v7622_v30 = vld [vmem:[#allocation8 + $0xc0] sm:$0xff] }
 0x61c   :  { %3160 = vmatprep.subr.mxu0 %v7592_v34  ;;  %3231 = vmatprep.subr.mxu1 %v7594_v48  ;;  %9720 = vst [vmem:[#allocation162_spill] sm:$0xff] %v7618_v22  ;;  %9721 = vst [vmem:[#allocation149_spill] sm:$0xff] %v7622_v30  ;;  %v7624_v34 = vld [vmem:[#allocation8 + $0xd0] sm:$0xff]  ;;  %v7628_v48 = vld [vmem:[#allocation8 + $0xa8] sm:$0xff] }
 0x61d   :  { %3161 = vmatpush1.msra.mxu0 %v7598_v55  ;;  %3232 = vmatpush1.msra.mxu1 %v7600_v17  ;;  %9722 = vst [vmem:[#allocation164_spill] sm:$0xff] %v7624_v34  ;;  %9723 = vst [vmem:[#allocation151_spill] sm:$0xff] %v7628_v48  ;;  %v7630_v55 = vld [vmem:[#allocation8 + $0xb8] sm:$0xff]  ;;  %v7634_v17 = vld [vmem:[#allocation8 + $0xa0] sm:$0xff] }
 0x61e   :  { %3162 = vmatprep.subr.mxu0 %v7604_v23  ;;  %3233 = vmatprep.subr.mxu1 %v7606_v39  ;;  %9724 = vst [vmem:[#allocation167_spill] sm:$0xff] %v7630_v55  ;;  %9725 = vst [vmem:[#allocation153_spill] sm:$0xff] %v7634_v17  ;;  %v7636_v23 = vld [vmem:[#allocation8 + $0xb0] sm:$0xff]  ;;  %v7640_v39 = vld [vmem:[#allocation8 + $0x88] sm:$0xff] }
 0x61f   :  { %3163 = vmatpush1.msra.mxu0 %v7610_v19  ;;  %3234 = vmatpush1.msra.mxu1 %v7612_v56  ;;  %9726 = vst [vmem:[#allocation169_spill] sm:$0xff] %v7636_v23  ;;  %9727 = vst [vmem:[#allocation155_spill] sm:$0xff] %v7640_v39  ;;  %v7642_v19 = vld [vmem:[#allocation8 + $0x98] sm:$0xff]  ;;  %v7646_v56 = vld [vmem:[#allocation8 + $0x80] sm:$0xff] }
 0x620   :  { %3164 = vmatprep.subr.mxu0 %v7616_v24  ;;  %3235 = vmatprep.subr.mxu1 %v7618_v22  ;;  %9728 = vst [vmem:[#allocation171_spill] sm:$0xff] %v7642_v19  ;;  %9729 = vst [vmem:[#allocation157_spill] sm:$0xff] %v7646_v56  ;;  %v7648_v24 = vld [vmem:[#allocation8 + $0x90] sm:$0xff]  ;;  %v7652_v22 = vld [vmem:[#allocation8 + $0x68] sm:$0xff] }
 0x621   :  { %3165 = vmatpush1.msra.mxu0 %v7622_v30  ;;  %3236 = vmatpush1.msra.mxu1 %v7624_v34  ;;  %9730 = vst [vmem:[#allocation173_spill] sm:$0xff] %v7648_v24  ;;  %9731 = vst [vmem:[#allocation159_spill] sm:$0xff] %v7652_v22  ;;  %v7654_v30 = vld [vmem:[#allocation8 + $0x78] sm:$0xff]  ;;  %v7658_v34 = vld [vmem:[#allocation8 + $0x60] sm:$0xff] }
 0x622   :  { %3166 = vmatprep.subr.mxu0 %v7628_v48  ;;  %3237 = vmatprep.subr.mxu1 %v7630_v55  ;;  %9732 = vst [vmem:[#allocation161_spill] sm:$0xff] %v7654_v30  ;;  %9733 = vst [vmem:[#allocation163_spill] sm:$0xff] %v7658_v34  ;;  %v7660_v48 = vld [vmem:[#allocation8 + $0x70] sm:$0xff]  ;;  %v7664_v55 = vld [vmem:[#allocation8 + $0x48] sm:$0xff] }
 0x623   :  { %3167 = vmatpush1.msra.mxu0 %v7634_v17  ;;  %3238 = vmatpush1.msra.mxu1 %v7636_v23  ;;  %9734 = vst [vmem:[#allocation177_spill] sm:$0xff] %v7660_v48  ;;  %v7666_v17 = vld [vmem:[#allocation8 + $0x58] sm:$0xff]  ;;  %v7670_v23 = vld [vmem:[#allocation8 + $0x40] sm:$0xff] }
 0x624   :  { %3168 = vmatprep.subr.mxu0 %v7640_v39  ;;  %3239 = vmatprep.subr.mxu1 %v7642_v19  ;;  %9735 = vst [vmem:[#allocation165_spill] sm:$0xff] %v7666_v17  ;;  %v7672_v39 = vld [vmem:[#allocation8 + $0x50] sm:$0xff]  ;;  %v7676_v19 = vld [vmem:[#allocation8 + $0x28] sm:$0xff] }
 0x625   :  { %3169 = vmatpush1.msra.mxu0 %v7646_v56  ;;  %3240 = vmatpush1.msra.mxu1 %v7648_v24  ;;  %v7678_v56 = vld [vmem:[#allocation8 + $0x38] sm:$0xff]  ;;  %v7682_v24 = vld [vmem:[#allocation8 + $0x20] sm:$0xff] }
 0x626   :  { %3170 = vmatprep.subr.mxu0 %v7652_v22  ;;  %3241 = vmatprep.subr.mxu1 %v7654_v30  ;;  %v7684_v22 = vld [vmem:[#allocation8 + $0x30] sm:$0xff]  ;;  %v7688_v30 = vld [vmem:[#allocation8 + $0x8] sm:$0xff] }
 0x627   :  { %3171 = vmatpush1.msra.mxu0 %v7658_v34  ;;  %3242 = vmatpush1.msra.mxu1 %v7660_v48  ;;  %v7690_v34 = vld [vmem:[#allocation8 + $0x18] sm:$0xff]  ;;  %v7694_v48 = vld [vmem:[#allocation8] sm:$0xff] }
 0x628   :  { %3172 = vmatprep.subr.mxu0 %v7664_v55  ;;  %3243 = vmatprep.subr.mxu1 %v7666_v17  ;;  %v7698_v17 = vld [vmem:[#allocation8 + $0x10] sm:$0xff] }
 0x629   :  { %3173 = vmatpush1.msra.mxu0 %v7670_v23  ;;  %3244 = vmatpush1.msra.mxu1 %v7672_v39 }
 0x62a   :  { %3174 = vmatprep.subr.mxu0 %v7676_v19  ;;  %3245 = vmatprep.subr.mxu1 %v7678_v56 }
 0x62b   :  { %3175 = vmatpush1.msra.mxu0 %v7682_v24  ;;  %3246 = vmatpush1.msra.mxu1 %v7684_v22 }
 0x62c   :  { %3176 = vmatprep.subr.mxu0 %v7688_v30  ;;  %3247 = vmatprep.subr.mxu1 %v7690_v34 }
 0x62d   :  { %3177 = vmatpush1.msra.mxu0 %v7694_v48  ;;  %3210 = vmatprep.mubr.f32.mxu0 %v9168_v1 }
 0x62e   :  { %3248 = vmatpush1.msra.mxu1 %v7698_v17  ;;  %3281 = vmatprep.mubr.f32.mxu1 %v9168_v1 }
 0x62f   :  { %3211 = vmatmul.mubr.f32.vlgmr.msra.gmra.mxu0 %v7514_v44  ;;  %3282 = vmatmul.mubr.f32.vlgmr.msra.gmra.mxu1 %v7514_v44  ;;  %v9777_v44 = vld [vmem:[#allocation92_spill] sm:$0xff] }
 0x630   :  { %3448 = vmatprep.subr.mxu0 %v7108_v21  ;;  %3519 = vmatprep.subr.mxu1 %v7110_v57  ;;  %v9736_v21 = vld [vmem:[#allocation179_spill] sm:$0xff]  ;;  %v9737_v57 = vld [vmem:[#allocation26_spill] sm:$0xff] }
 0x631   :  { %3449 = vmatpush1.msra.mxu0 %v7114_v32  ;;  %3520 = vmatpush1.msra.mxu1 %v7116_v31  ;;  %v9738_v32 = vld [vmem:[#allocation28_spill] sm:$0xff]  ;;  %v9739_v31 = vld [vmem:[#allocation29_spill] sm:$0xff] }
 0x632   :  { %3450 = vmatprep.subr.mxu0 %v7120_v11  ;;  %3521 = vmatprep.subr.mxu1 %v7122_v4  ;;  %v9740_v11 = vld [vmem:[#allocation27_spill] sm:$0xff]  ;;  %v9741_v4 = vld [vmem:[#allocation56_spill] sm:$0xff] }
 0x633   :  { %3451 = vmatpush1.msra.mxu0 %v7126_v25  ;;  %3522 = vmatpush1.msra.mxu1 %v7128_v3  ;;  %v9742_v25 = vld [vmem:[#allocation55_spill] sm:$0xff]  ;;  %v9743_v3 = vld [vmem:[#allocation58_spill] sm:$0xff] }
 0x634   :  { %3452 = vmatprep.subr.mxu0 %v7132_v20  ;;  %3523 = vmatprep.subr.mxu1 %v7134_v27  ;;  %v9744_v20 = vld [vmem:[#allocation57_spill] sm:$0xff]  ;;  %v9745_v27 = vld [vmem:[#allocation60_spill] sm:$0xff] }
 0x635   :  { %3453 = vmatpush1.msra.mxu0 %v7138_v58  ;;  %3524 = vmatpush1.msra.mxu1 %v7140_v60  ;;  %v9746_v58 = vld [vmem:[#allocation59_spill] sm:$0xff]  ;;  %v9747_v60 = vld [vmem:[#allocation62_spill] sm:$0xff] }
 0x636   :  { %3454 = vmatprep.subr.mxu0 %v7144_v63  ;;  %3525 = vmatprep.subr.mxu1 %v7146_v2  ;;  %v9748_v63 = vld [vmem:[#allocation61_spill] sm:$0xff]  ;;  %v9749_v2 = vld [vmem:[#allocation64_spill] sm:$0xff] }
 0x637   :  { %3455 = vmatpush1.msra.mxu0 %v7150_v62  ;;  %3526 = vmatpush1.msra.mxu1 %v7152_v5  ;;  %v9750_v62 = vld [vmem:[#allocation63_spill] sm:$0xff]  ;;  %v9751_v5 = vld [vmem:[#allocation66_spill] sm:$0xff] }
 0x638   :  { %3456 = vmatprep.subr.mxu0 %v7156_v9  ;;  %3527 = vmatprep.subr.mxu1 %v7158_v47  ;;  %v9752_v9 = vld [vmem:[#allocation65_spill] sm:$0xff]  ;;  %v9753_v47 = vld [vmem:[#allocation68_spill] sm:$0xff] }
 0x639   :  { %3457 = vmatpush1.msra.mxu0 %v7162_v37  ;;  %3528 = vmatpush1.msra.mxu1 %v7164_v54  ;;  %v9754_v37 = vld [vmem:[#allocation67_spill] sm:$0xff]  ;;  %v9755_v54 = vld [vmem:[#allocation70_spill] sm:$0xff] }
 0x63a   :  { %3458 = vmatprep.subr.mxu0 %v7168_v8  ;;  %3529 = vmatprep.subr.mxu1 %v7170_v29  ;;  %v9756_v8 = vld [vmem:[#allocation69_spill] sm:$0xff]  ;;  %v9757_v29 = vld [vmem:[#allocation72_spill] sm:$0xff] }
 0x63b   :  { %3459 = vmatpush1.msra.mxu0 %v7174_v7  ;;  %3530 = vmatpush1.msra.mxu1 %v7176_v6  ;;  %v9758_v7 = vld [vmem:[#allocation71_spill] sm:$0xff]  ;;  %v9759_v6 = vld [vmem:[#allocation74_spill] sm:$0xff] }
 0x63c   :  { %3460 = vmatprep.subr.mxu0 %v7180_v61  ;;  %3531 = vmatprep.subr.mxu1 %v7182_v10  ;;  %v9760_v61 = vld [vmem:[#allocation73_spill] sm:$0xff]  ;;  %v9761_v10 = vld [vmem:[#allocation76_spill] sm:$0xff] }
 0x63d   :  { %3461 = vmatpush1.msra.mxu0 %v7186_v13  ;;  %3532 = vmatpush1.msra.mxu1 %v7188_v14  ;;  %v9762_v13 = vld [vmem:[#allocation75_spill] sm:$0xff]  ;;  %v9763_v14 = vld [vmem:[#allocation78_spill] sm:$0xff] }
 0x63e   :  { %3462 = vmatprep.subr.mxu0 %v7192_v28  ;;  %3533 = vmatprep.subr.mxu1 %v7194_v33  ;;  %v9764_v28 = vld [vmem:[#allocation77_spill] sm:$0xff]  ;;  %v9765_v33 = vld [vmem:[#allocation80_spill] sm:$0xff] }
 0x63f   :  { %3463 = vmatpush1.msra.mxu0 %v7198_v38  ;;  %3534 = vmatpush1.msra.mxu1 %v7200_v41  ;;  %v9766_v38 = vld [vmem:[#allocation79_spill] sm:$0xff]  ;;  %v9767_v41 = vld [vmem:[#allocation82_spill] sm:$0xff] }
 0x640   :  { %3464 = vmatprep.subr.mxu0 %v7204_v42  ;;  %3535 = vmatprep.subr.mxu1 %v7206_v45  ;;  %v9768_v42 = vld [vmem:[#allocation81_spill] sm:$0xff]  ;;  %v9769_v45 = vld [vmem:[#allocation84_spill] sm:$0xff] }
 0x641   :  { %3465 = vmatpush1.msra.mxu0 %v7210_v46  ;;  %3536 = vmatpush1.msra.mxu1 %v7212_v49  ;;  %v9770_v46 = vld [vmem:[#allocation83_spill] sm:$0xff]  ;;  %v9771_v49 = vld [vmem:[#allocation86_spill] sm:$0xff] }
 0x642   :  { %3466 = vmatprep.subr.mxu0 %v7216_v50  ;;  %3537 = vmatprep.subr.mxu1 %v7218_v16  ;;  %v9772_v50 = vld [vmem:[#allocation85_spill] sm:$0xff]  ;;  %v9773_v16 = vld [vmem:[#allocation88_spill] sm:$0xff] }
 0x643   :  { %3467 = vmatpush1.msra.mxu0 %v7222_v35  ;;  %3538 = vmatpush1.msra.mxu1 %v7224_v36  ;;  %v9774_v35 = vld [vmem:[#allocation87_spill] sm:$0xff]  ;;  %v9775_v36 = vld [vmem:[#allocation90_spill] sm:$0xff] }
 0x644   :  { %3468 = vmatprep.subr.mxu0 %v7228_v15  ;;  %3539 = vmatprep.subr.mxu1 %v9736_v21  ;;  %v9776_v15 = vld [vmem:[#allocation89_spill] sm:$0xff]  ;;  %v9778_v21 = vld [vmem:[#allocation91_spill] sm:$0xff] }
 0x645   :  { %3469 = vmatpush1.msra.mxu0 %v9737_v57  ;;  %3540 = vmatpush1.msra.mxu1 %v9738_v32  ;;  %v9779_v57 = vld [vmem:[#allocation94_spill] sm:$0xff]  ;;  %v9780_v32 = vld [vmem:[#allocation93_spill] sm:$0xff] }
 0x646   :  { %3470 = vmatprep.subr.mxu0 %v9739_v31  ;;  %3541 = vmatprep.subr.mxu1 %v9740_v11  ;;  %v9781_v31 = vld [vmem:[#allocation96_spill] sm:$0xff]  ;;  %v9782_v11 = vld [vmem:[#allocation95_spill] sm:$0xff] }
 0x647   :  { %3471 = vmatpush1.msra.mxu0 %v9741_v4  ;;  %3542 = vmatpush1.msra.mxu1 %v9742_v25  ;;  %v9783_v4 = vld [vmem:[#allocation98_spill] sm:$0xff]  ;;  %v9784_v25 = vld [vmem:[#allocation97_spill] sm:$0xff] }
 0x648   :  { %3472 = vmatprep.subr.mxu0 %v9743_v3  ;;  %3543 = vmatprep.subr.mxu1 %v9744_v20  ;;  %v9785_v3 = vld [vmem:[#allocation100_spill] sm:$0xff]  ;;  %v9786_v20 = vld [vmem:[#allocation99_spill] sm:$0xff] }
 0x649   :  { %3473 = vmatpush1.msra.mxu0 %v9745_v27  ;;  %3544 = vmatpush1.msra.mxu1 %v9746_v58  ;;  %v9787_v27 = vld [vmem:[#allocation102_spill] sm:$0xff]  ;;  %v9788_v58 = vld [vmem:[#allocation101_spill] sm:$0xff] }
 0x64a   :  { %3474 = vmatprep.subr.mxu0 %v9747_v60  ;;  %3545 = vmatprep.subr.mxu1 %v9748_v63  ;;  %v9789_v60 = vld [vmem:[#allocation104_spill] sm:$0xff]  ;;  %v9790_v63 = vld [vmem:[#allocation103_spill] sm:$0xff] }
 0x64b   :  { %3475 = vmatpush1.msra.mxu0 %v9749_v2  ;;  %3546 = vmatpush1.msra.mxu1 %v9750_v62  ;;  %v9791_v2 = vld [vmem:[#allocation106_spill] sm:$0xff]  ;;  %v9792_v62 = vld [vmem:[#allocation105_spill] sm:$0xff] }
 0x64c   :  { %3476 = vmatprep.subr.mxu0 %v9751_v5  ;;  %3547 = vmatprep.subr.mxu1 %v9752_v9  ;;  %v9793_v5 = vld [vmem:[#allocation108_spill] sm:$0xff]  ;;  %v9794_v9 = vld [vmem:[#allocation107_spill] sm:$0xff] }
 0x64d   :  { %3477 = vmatpush1.msra.mxu0 %v9753_v47  ;;  %3548 = vmatpush1.msra.mxu1 %v9754_v37  ;;  %v9795_v47 = vld [vmem:[#allocation110_spill] sm:$0xff]  ;;  %v9796_v37 = vld [vmem:[#allocation109_spill] sm:$0xff] }
 0x64e   :  { %3478 = vmatprep.subr.mxu0 %v9755_v54  ;;  %3549 = vmatprep.subr.mxu1 %v9756_v8  ;;  %v9797_v54 = vld [vmem:[#allocation112_spill] sm:$0xff]  ;;  %v9798_v8 = vld [vmem:[#allocation111_spill] sm:$0xff] }
 0x64f   :  { %3479 = vmatpush1.msra.mxu0 %v9757_v29  ;;  %3550 = vmatpush1.msra.mxu1 %v9758_v7  ;;  %v9799_v29 = vld [vmem:[#allocation114_spill] sm:$0xff]  ;;  %v9800_v7 = vld [vmem:[#allocation113_spill] sm:$0xff] }
 0x650   :  { %3480 = vmatprep.subr.mxu0 %v9759_v6  ;;  %3551 = vmatprep.subr.mxu1 %v9760_v61  ;;  %v9801_v6 = vld [vmem:[#allocation116_spill] sm:$0xff]  ;;  %v9802_v61 = vld [vmem:[#allocation115_spill] sm:$0xff] }
 0x651   :  { %3481 = vmatpush2.msra.mxu0 %v9761_v10  ;;  %3552 = vmatpush2.msra.mxu1 %v9762_v13  ;;  %v9803_v10 = vld [vmem:[#allocation118_spill] sm:$0xff]  ;;  %v9804_v13 = vld [vmem:[#allocation117_spill] sm:$0xff] }
 0x652   :  { %3482 = vmatprep.subr.mxu0 %v9763_v14  ;;  %3553 = vmatprep.subr.mxu1 %v9764_v28  ;;  %v9805_v14 = vld [vmem:[#allocation120_spill] sm:$0xff]  ;;  %v9806_v28 = vld [vmem:[#allocation119_spill] sm:$0xff] }
 0x653   :  { %3483 = vmatpush2.msra.mxu0 %v9765_v33  ;;  %3554 = vmatpush2.msra.mxu1 %v9766_v38  ;;  %v9807_v33 = vld [vmem:[#allocation122_spill] sm:$0xff]  ;;  %v9808_v38 = vld [vmem:[#allocation121_spill] sm:$0xff] }
 0x654   :  { %3484 = vmatprep.subr.mxu0 %v9767_v41  ;;  %3555 = vmatprep.subr.mxu1 %v9768_v42  ;;  %v9809_v41 = vld [vmem:[#allocation125_spill] sm:$0xff]  ;;  %v9810_v42 = vld [vmem:[#allocation123_spill] sm:$0xff] }
 0x655   :  { %3485 = vmatpush2.msra.mxu0 %v9769_v45  ;;  %3556 = vmatpush2.msra.mxu1 %v9770_v46  ;;  %v9811_v45 = vld [vmem:[#allocation127_spill] sm:$0xff]  ;;  %v9812_v46 = vld [vmem:[#allocation129_spill] sm:$0xff] }
 0x656   :  { %3486 = vmatprep.subr.mxu0 %v9771_v49  ;;  %3557 = vmatprep.subr.mxu1 %v9772_v50  ;;  %v9813_v49 = vld [vmem:[#allocation131_spill] sm:$0xff]  ;;  %v9814_v50 = vld [vmem:[#allocation133_spill] sm:$0xff] }
 0x657   :  { %3487 = vmatpush2.msra.mxu0 %v9773_v16  ;;  %3558 = vmatpush2.msra.mxu1 %v9774_v35  ;;  %v9815_v16 = vld [vmem:[#allocation135_spill] sm:$0xff]  ;;  %v9816_v35 = vld [vmem:[#allocation21_spill] sm:$0xff] }
 0x658   :  { %3488 = vmatprep.subr.mxu0 %v9775_v36  ;;  %3559 = vmatprep.subr.mxu1 %v9776_v15  ;;  %v9817_v36 = vld [vmem:[#allocation20_spill] sm:$0xff]  ;;  %v9818_v15 = vld [vmem:[#allocation22_spill] sm:$0xff] }
 0x659   :  { %3489 = vmatpush2.msra.mxu0 %v9777_v44  ;;  %3560 = vmatpush2.msra.mxu1 %v9778_v21  ;;  %v9819_v44 = vld [vmem:[#allocation24_spill] sm:$0xff]  ;;  %v9820_v21 = vld [vmem:[#allocation25_spill] sm:$0xff] }
 0x65a   :  { %3490 = vmatprep.subr.mxu0 %v9779_v57  ;;  %3561 = vmatprep.subr.mxu1 %v9780_v32  ;;  %v9821_v57 = vld [vmem:[#allocation23_spill] sm:$0xff]  ;;  %v9822_v32 = vld [vmem:[#allocation50_spill] sm:$0xff] }
 0x65b   :  { %3491 = vmatpush2.msra.mxu0 %v9781_v31  ;;  %3562 = vmatpush2.msra.mxu1 %v9782_v11  ;;  %v9823_v31 = vld [vmem:[#allocation124_spill] sm:$0xff]  ;;  %v9824_v11 = vld [vmem:[#allocation138_spill] sm:$0xff] }
 0x65c   :  { %3492 = vmatprep.subr.mxu0 %v9783_v4  ;;  %3563 = vmatprep.subr.mxu1 %v9784_v25  ;;  %v9825_v25 = vld [vmem:[#allocation52_spill] sm:$0xff] }
 0x65d   :  { %3493 = vmatpush2.msra.mxu0 %v9785_v3  ;;  %3564 = vmatpush2.msra.mxu1 %v9786_v20 }
 0x65e   :  { %3494 = vmatprep.subr.mxu0 %v9787_v27  ;;  %3565 = vmatprep.subr.mxu1 %v9788_v58  ;;  %v9826_v58 = vld [vmem:[#allocation51_spill] sm:$0xff] }
 0x65f   :  { %3495 = vmatpush2.msra.mxu0 %v9789_v60  ;;  %3566 = vmatpush2.msra.mxu1 %v9790_v63 }
 0x660   :  { %3496 = vmatprep.subr.mxu0 %v9791_v2  ;;  %3567 = vmatprep.subr.mxu1 %v9792_v62 }
 0x661   :  { %3497 = vmatpush2.msra.mxu0 %v9793_v5  ;;  %3568 = vmatpush2.msra.mxu1 %v9794_v9  ;;  %v9827_v5 = vld [vmem:[#allocation54_spill] sm:$0xff] }
 0x662   :  { %3498 = vmatprep.subr.mxu0 %v9795_v47  ;;  %3569 = vmatprep.subr.mxu1 %v9796_v37 }
 0x663   :  { %3499 = vmatpush2.msra.mxu0 %v9797_v54  ;;  %3570 = vmatpush2.msra.mxu1 %v9798_v8  ;;  %v9828_v54 = vld [vmem:[#allocation53_spill] sm:$0xff] }
 0x664   :  { %3500 = vmatprep.subr.mxu0 %v9799_v29  ;;  %3571 = vmatprep.subr.mxu1 %v9800_v7 }
 0x665   :  { %3501 = vmatpush2.msra.mxu0 %v9801_v6  ;;  %3572 = vmatpush2.msra.mxu1 %v9802_v61 }
 0x666   :  { %3502 = vmatprep.subr.mxu0 %v9803_v10  ;;  %3573 = vmatprep.subr.mxu1 %v9804_v13 }
 0x667   :  { %3503 = vmatpush2.msra.mxu0 %v9805_v14  ;;  %3574 = vmatpush2.msra.mxu1 %v9806_v28  ;;  %v9829_v14 = vld [vmem:[#allocation38_spill] sm:$0xff] }
 0x668   :  { %3504 = vmatprep.subr.mxu0 %v9807_v33  ;;  %3575 = vmatprep.subr.mxu1 %v9808_v38 }
 0x669   :  { %3505 = vmatpush2.msra.mxu0 %v9809_v41  ;;  %3576 = vmatpush2.msra.mxu1 %v9810_v42 }
 0x66a   :  { %3506 = vmatprep.subr.mxu0 %v9811_v45  ;;  %3577 = vmatprep.subr.mxu1 %v9812_v46  ;;  %v9830_v45 = vld [vmem:[#allocation40_spill] sm:$0xff] }
 0x66b   :  { %3507 = vmatpush2.msra.mxu0 %v9813_v49  ;;  %3578 = vmatpush2.msra.mxu1 %v9814_v50 }
 0x66c   :  { %3508 = vmatprep.subr.mxu0 %v9815_v16  ;;  %3579 = vmatprep.subr.mxu1 %v9816_v35 }
 0x66d   :  { %3509 = vmatpush2.msra.mxu0 %v9817_v36  ;;  %3580 = vmatpush2.msra.mxu1 %v9818_v15 }
 0x66e   :  { %3510 = vmatprep.subr.mxu0 %v9819_v44  ;;  %3581 = vmatprep.subr.mxu1 %v9820_v21  ;;  %v9831_v21 = vld [vmem:[#allocation41_spill] sm:$0xff] }
 0x66f   :  { %3511 = vmatpush2.msra.mxu0 %v9821_v57  ;;  %3582 = vmatpush2.msra.mxu1 %v9822_v32 }
 0x670   :  { %3678 = vmatprep.subr.mxu0 %v9823_v31  ;;  %3749 = vmatprep.subr.mxu1 %v9824_v11  ;;  %v9832_v11 = vld [vmem:[#allocation39_spill] sm:$0xff] }
 0x6ce   :  { %v2982_v4 = vpop.f32.mrf.mxu0  ;;  %v3053_v63 = vpop.f32.mrf.mxu1 }
 0x6cf   :  { %v2983_v3 = vadd.f32 %v2982_v4, %v9825_v25  ;;  %v3054_v8 = vadd.f32 %v3053_v63, %v9828_v54 }
 0x6d0   :  { %v2984_v20 = vpop.f32.mrf.mxu0  ;;  %v3055_v62 = vpop.f32.mrf.mxu1 }
 0x6d1   :  { %v4821_v27 = vmul.f32 -1.442695, %v2983_v3  ;;  %v2985_v60 = vadd.f32 %v2984_v20, %v9826_v58  ;;  %v3056_v9 = vadd.f32 %v3055_v62, %v9827_v5 }
 0x6d3   :  { %5049 = vpow2.f32 %v4821_v27  ;;  %v4822_v2 = vmul.f32 -1.442695, %v2985_v60  ;;  %v4823_v47 = vmul.f32 -1.442695, %v3056_v9 }
 0x6d5   :  { %5051 = vpow2.f32 %v4822_v2 }
 0x6d6   :  { %5053 = vpow2.f32 %v4823_v47 }
 0x6e0   :  { %v5050_v37 = vpop.eup %5049 }
 0x6e1   :  { %v3061_v29 = vadd.f32 1.0, %v5050_v37 }
 0x6e2   :  { %v5052_v7 = vpop.eup %5051 }
 0x6e3   :  { %5055 = vrcp.f32 %v3061_v29  ;;  %v3067_v6 = vadd.f32 1.0, %v5052_v7  ;;  %v5054_v61 = vpop.eup %5053 }
 0x6e4   :  { %5057 = vtanh.f32 %v3054_v8  ;;  %v3074_v16 = vadd.f32 1.0, %v5054_v61 }
 0x6e5   :  { %5059 = vrcp.f32 %v3067_v6 }
 0x6ef   :  { %v3212_v10 = vpop.f32.mrf.mxu0  ;;  %v3283_v35 = vpop.f32.mrf.mxu1 }
 0x6f0   :  { %v5056_v13 = vpop.eup %5055  ;;  %v3288_v28 = vadd.f32 %v3212_v10, %v9829_v14  ;;  %v3290_v4 = vadd.f32 %v3283_v35, %v9832_v11  ;;  %v9835_v14 = vld [vmem:[#allocation128_spill] sm:$0xff]  ;;  %v9861_v11 = vld [vmem:[#allocation149_spill] sm:$0xff] }
 0x6f1   :  { %v5058_v33 = vpop.eup %5057  ;;  %v3214_v38 = vpop.f32.mrf.mxu0  ;;  %v9854_v35 = vld [vmem:[#allocation156_spill] sm:$0xff] }
 0x6f2   :  { %v5060_v41 = vpop.eup %5059  ;;  %v4824_v42 = vmul.f32 -1.442695, %v3288_v28  ;;  %v3289_v46 = vadd.f32 %v3214_v38, %v9830_v45  ;;  %v3078_v49 = vmul.f32 %v5058_v33, %v5056_v13  ;;  %v3285_v44 = vpop.f32.mrf.mxu1  ;;  %v9834_v13 = vld [vmem:[#allocation140_spill] sm:$0xff]  ;;  %v9844_v28 = vld [vmem:[#allocation146_spill] sm:$0xff]  ;;  %v9849_v45 = vld [vmem:[#allocation137_spill] sm:$0xff] }
 0x6f3   :  { %v3077_v50 = vmul.f32 %v5060_v41, %v7505_v59  ;;  %v3291_v57 = vadd.f32 %v3285_v44, %v9831_v21  ;;  %v9845_v33 = vld [vmem:[#allocation134_spill] sm:$0xff]  ;;  %v9846_v38 = vld [vmem:[#allocation148_spill] sm:$0xff]  ;;  %v9857_v21 = vld [vmem:[#allocation145_spill] sm:$0xff] }
 0x6f4   :  { %5061 = vpow2.f32 %v4824_v42  ;;  %v4825_v36 = vmul.f32 -1.442695, %v3289_v46  ;;  %v9847_v41 = vld [vmem:[#allocation136_spill] sm:$0xff]  ;;  %v9848_v42 = vld [vmem:[#allocation150_spill] sm:$0xff] }
 0x6f5   :  { %v7845_v15 = vadd.f32 %v3078_v49, %v3077_v50  ;;  %v4826_v32 = vmul.f32 -1.442695, %v3291_v57  ;;  %v9850_v46 = vld [vmem:[#allocation152_spill] sm:$0xff]  ;;  %v9851_v49 = vld [vmem:[#allocation139_spill] sm:$0xff]  ;;  %v9852_v50 = vld [vmem:[#allocation154_spill] sm:$0xff] }
 0x6f6   :  { %5063 = vpow2.f32 %v4825_v36  ;;  %v9855_v36 = vld [vmem:[#allocation143_spill] sm:$0xff]  ;;  %v9856_v44 = vld [vmem:[#allocation158_spill] sm:$0xff]  ;;  %v9858_v57 = vld [vmem:[#allocation160_spill] sm:$0xff] }
 0x6f7   :  { %5065 = vrcp.f32 %v3074_v16  ;;  %v9853_v16 = vld [vmem:[#allocation141_spill] sm:$0xff] }
 0x6f8   :  { %5067 = vtanh.f32 %v7845_v15 }
 0x6f9   :  { %5069 = vpow2.f32 %v4826_v32  ;;  %v9859_v32 = vld [vmem:[#allocation147_spill] sm:$0xff] }
 0x701   :  { %v5062_v31 = vpop.eup %5061 }
 0x702   :  { %v3295_v3 = vadd.f32 1.0, %v5062_v31  ;;  %v9860_v31 = vld [vmem:[#allocation162_spill] sm:$0xff] }
 0x703   :  { %v5064_v20 = vpop.eup %5063 }
 0x704   :  { %v5066_v59 = vpop.eup %5065  ;;  %5071 = vrcp.f32 %v3295_v3  ;;  %v3301_v27 = vadd.f32 1.0, %v5064_v20  ;;  %v9863_v3 = vld [vmem:[#allocation151_spill] sm:$0xff] }
 0x705   :  { %v5068_v60 = vpop.eup %5067  ;;  %5073 = vtanh.f32 %v3290_v4  ;;  %v9862_v4 = vld [vmem:[#allocation164_spill] sm:$0xff]  ;;  %v9864_v20 = vld [vmem:[#allocation167_spill] sm:$0xff] }
 0x706   :  { %5075 = vrcp.f32 %v3301_v27  ;;  %v3081_v63 = vmul.f32 %v5068_v60, %v5066_v59  ;;  %v5070_v2 = vpop.eup %5069  ;;  %v9865_v59 = vld [vmem:[#allocation153_spill] sm:$0xff]  ;;  %v9867_v60 = vld [vmem:[#allocation155_spill] sm:$0xff] }
 0x707   :  { %v3308_v37 = vadd.f32 1.0, %v5070_v2  ;;  %v9866_v27 = vld [vmem:[#allocation169_spill] sm:$0xff] }
 0x708   :  { %3512 = vmatprep.mubr.f32.mxu0 %v3081_v63  ;;  %3583 = vmatprep.mubr.f32.mxu1 %v3081_v63  ;;  %v9868_v63 = vld [vmem:[#allocation171_spill] sm:$0xff]  ;;  %v9869_v2 = vld [vmem:[#allocation157_spill] sm:$0xff] }
 0x709   :  { %5077 = vrcp.f32 %v3308_v37  ;;  %v9873_v37 = vld [vmem:[#allocation163_spill] sm:$0xff] }
 0x711   :  { %v5072_v62 = vpop.eup %5071 }
 0x712   :  { %v5074_v9 = vpop.eup %5073 }
 0x713   :  { %v5076_v47 = vpop.eup %5075  ;;  %v3312_v8 = vmul.f32 %v5074_v9, %v5072_v62  ;;  %v9870_v62 = vld [vmem:[#allocation173_spill] sm:$0xff]  ;;  %v9871_v9 = vld [vmem:[#allocation159_spill] sm:$0xff] }
 0x714   :  { %v3311_v29 = vmul.f32 %v5076_v47, %v7511_v43  ;;  %v9833_v43 = vld [vmem:[#allocation126_spill] sm:$0xff]  ;;  %v9872_v47 = vld [vmem:[#allocation161_spill] sm:$0xff] }
 0x716   :  { %v7851_v7 = vadd.f32 %v3312_v8, %v3311_v29  ;;  %v5078_v6 = vpop.eup %5077  ;;  %v9874_v8 = vld [vmem:[#allocation177_spill] sm:$0xff] }
 0x717   :  { %v9875_v29 = vld [vmem:[#allocation165_spill] sm:$0xff] }
 0x718   :  { %5079 = vtanh.f32 %v7851_v7 }
 0x725   :  { %v5080_v61 = vpop.eup %5079 }
 0x726   :  { %v7854_v10 = vmul.f32 %v5080_v61, %v5078_v6  ;;  %v7956_v6 = vld [vmem:[#allocation3 + $0x1b0] sm:$0xff]  ;;  %v7960_v61 = vld [vmem:[#allocation3 + $0x188] sm:$0xff] }
 0x728   :  { %3513 = vmatmul.mubr.f32.vlgmr.msra.gmra.mxu0 %v7854_v10  ;;  %3584 = vmatmul.mubr.f32.vlgmr.msra.gmra.mxu1 %v7854_v10 }
 0x729   :  { %3679 = vmatpush1.msra.mxu0 %v7516_v18  ;;  %3750 = vmatpush1.msra.mxu1 %v7518_v51  ;;  %v9836_v18 = vld [vmem:[#allocation142_spill] sm:$0xff] }
 0x72a   :  { %3680 = vmatprep.subr.mxu0 %v7520_v12  ;;  %3751 = vmatprep.subr.mxu1 %v7522_v0  ;;  %v9837_v51 = vld [vmem:[#allocation130_spill] sm:$0xff]  ;;  %v9839_v0 = vld [vmem:[#allocation32_spill] sm:$0xff] }
 0x72b   :  { %3681 = vmatpush1.msra.mxu0 %v7526_v52  ;;  %3752 = vmatpush1.msra.mxu1 %v7528_v26  ;;  %v9838_v12 = vld [vmem:[#allocation30_spill] sm:$0xff]  ;;  %v9840_v52 = vld [vmem:[#allocation33_spill] sm:$0xff]  ;;  %v9841_v26 = vld [vmem:[#allocation31_spill] sm:$0xff] }
 0x72c   :  { %3682 = vmatprep.subr.mxu0 %v7532_v53  ;;  %3753 = vmatprep.subr.mxu1 %v7534_v40  ;;  %v9842_v53 = vld [vmem:[#allocation144_spill] sm:$0xff] }
 0x72d   :  { %3683 = vmatpush1.msra.mxu0 %v9833_v43  ;;  %3754 = vmatpush1.msra.mxu1 %v9834_v13  ;;  %v9843_v40 = vld [vmem:[#allocation132_spill] sm:$0xff]  ;;  %v7968_v13 = vld [vmem:[#allocation3 + $0x190] sm:$0xff] }
 0x72e   :  { %3684 = vmatprep.subr.mxu0 %v9835_v14  ;;  %3755 = vmatprep.subr.mxu1 %v9836_v18  ;;  %v7966_v43 = vld [vmem:[#allocation3 + $0x180] sm:$0xff]  ;;  %v7972_v14 = vld [vmem:[#allocation3 + $0x168] sm:$0xff]  ;;  %v7974_v18 = vld [vmem:[#allocation3 + $0x178] sm:$0xff] }
 0x72f   :  { %3685 = vmatpush1.msra.mxu0 %v9837_v51  ;;  %3756 = vmatpush1.msra.mxu1 %v9838_v12  ;;  %v7978_v51 = vld [vmem:[#allocation3 + $0x160] sm:$0xff]  ;;  %v7980_v12 = vld [vmem:[#allocation3 + $0x170] sm:$0xff] }
 0x730   :  { %3686 = vmatprep.subr.mxu0 %v9839_v0  ;;  %3757 = vmatprep.subr.mxu1 %v9840_v52  ;;  %v7984_v0 = vld [vmem:[#allocation3 + $0x148] sm:$0xff]  ;;  %v7986_v52 = vld [vmem:[#allocation3 + $0x158] sm:$0xff] }
 0x731   :  { %3687 = vmatpush1.msra.mxu0 %v9841_v26  ;;  %3758 = vmatpush1.msra.mxu1 %v9842_v53  ;;  %v7990_v26 = vld [vmem:[#allocation3 + $0x140] sm:$0xff]  ;;  %v7992_v53 = vld [vmem:[#allocation3 + $0x150] sm:$0xff] }
 0x732   :  { %3688 = vmatprep.subr.mxu0 %v9843_v40  ;;  %3759 = vmatprep.subr.mxu1 %v9844_v28  ;;  %v7996_v40 = vld [vmem:[#allocation3 + $0x128] sm:$0xff]  ;;  %v7998_v28 = vld [vmem:[#allocation3 + $0x138] sm:$0xff] }
 0x733   :  { %3689 = vmatpush1.msra.mxu0 %v9845_v33  ;;  %3760 = vmatpush1.msra.mxu1 %v9846_v38  ;;  %v8002_v33 = vld [vmem:[#allocation3 + $0x120] sm:$0xff]  ;;  %v8004_v38 = vld [vmem:[#allocation3 + $0x130] sm:$0xff] }
 0x734   :  { %3690 = vmatprep.subr.mxu0 %v9847_v41  ;;  %3761 = vmatprep.subr.mxu1 %v9848_v42  ;;  %v8008_v41 = vld [vmem:[#allocation3 + $0x108] sm:$0xff]  ;;  %v8010_v42 = vld [vmem:[#allocation3 + $0x118] sm:$0xff] }
 0x735   :  { %3691 = vmatpush1.msra.mxu0 %v9849_v45  ;;  %3762 = vmatpush1.msra.mxu1 %v9850_v46  ;;  %v8014_v45 = vld [vmem:[#allocation3 + $0x100] sm:$0xff]  ;;  %v8016_v46 = vld [vmem:[#allocation3 + $0x110] sm:$0xff] }
 0x736   :  { %3692 = vmatprep.subr.mxu0 %v9851_v49  ;;  %3763 = vmatprep.subr.mxu1 %v9852_v50  ;;  %v8020_v49 = vld [vmem:[#allocation3 + $0xe8] sm:$0xff]  ;;  %v8022_v50 = vld [vmem:[#allocation3 + $0xf8] sm:$0xff] }
 0x737   :  { %3693 = vmatpush1.msra.mxu0 %v9853_v16  ;;  %3764 = vmatpush1.msra.mxu1 %v9854_v35  ;;  %v8026_v16 = vld [vmem:[#allocation3 + $0xe0] sm:$0xff]  ;;  %v8028_v35 = vld [vmem:[#allocation3 + $0xf0] sm:$0xff] }
 0x738   :  { %3694 = vmatprep.subr.mxu0 %v9855_v36  ;;  %3765 = vmatprep.subr.mxu1 %v9856_v44  ;;  %v8032_v36 = vld [vmem:[#allocation3 + $0xc8] sm:$0xff]  ;;  %v8034_v44 = vld [vmem:[#allocation3 + $0xd8] sm:$0xff] }
 0x739   :  { %3695 = vmatpush1.msra.mxu0 %v9857_v21  ;;  %3766 = vmatpush1.msra.mxu1 %v9858_v57  ;;  %v8038_v21 = vld [vmem:[#allocation3 + $0xc0] sm:$0xff]  ;;  %v8040_v57 = vld [vmem:[#allocation3 + $0xd0] sm:$0xff] }
 0x73a   :  { %3696 = vmatprep.subr.mxu0 %v9859_v32  ;;  %3767 = vmatprep.subr.mxu1 %v9860_v31  ;;  %v8044_v32 = vld [vmem:[#allocation3 + $0xa8] sm:$0xff]  ;;  %v8046_v31 = vld [vmem:[#allocation3 + $0xb8] sm:$0xff] }
 0x73b   :  { %3697 = vmatpush1.msra.mxu0 %v9861_v11  ;;  %3768 = vmatpush1.msra.mxu1 %v9862_v4  ;;  %9876 = vst [vmem:[#allocation166_spill] sm:$0xff] %v8046_v31  ;;  %v8050_v11 = vld [vmem:[#allocation3 + $0xa0] sm:$0xff]  ;;  %v8052_v4 = vld [vmem:[#allocation3 + $0xb0] sm:$0xff] }
 0x73c   :  { %3698 = vmatprep.subr.mxu0 %v9863_v3  ;;  %3769 = vmatprep.subr.mxu1 %v9864_v20  ;;  %9877 = vst [vmem:[#allocation168_spill] sm:$0xff] %v8050_v11  ;;  %9878 = vst [vmem:[#allocation180_spill] sm:$0xff] %v8052_v4  ;;  %v8056_v3 = vld [vmem:[#allocation3 + $0x88] sm:$0xff]  ;;  %v8058_v20 = vld [vmem:[#allocation3 + $0x98] sm:$0xff] }
 0x73d   :  { %3699 = vmatpush1.msra.mxu0 %v9865_v59  ;;  %3770 = vmatpush1.msra.mxu1 %v9866_v27  ;;  %9879 = vst [vmem:[#allocation170_spill] sm:$0xff] %v8056_v3  ;;  %9880 = vst [vmem:[#allocation172_spill] sm:$0xff] %v8058_v20  ;;  %v8062_v59 = vld [vmem:[#allocation3 + $0x80] sm:$0xff]  ;;  %v8064_v27 = vld [vmem:[#allocation3 + $0x90] sm:$0xff] }
 0x73e   :  { %3700 = vmatprep.subr.mxu0 %v9867_v60  ;;  %3771 = vmatprep.subr.mxu1 %v9868_v63  ;;  %9881 = vst [vmem:[#allocation174_spill] sm:$0xff] %v8062_v59  ;;  %9882 = vst [vmem:[#allocation175_spill] sm:$0xff] %v8064_v27  ;;  %v8068_v60 = vld [vmem:[#allocation3 + $0x68] sm:$0xff]  ;;  %v8070_v63 = vld [vmem:[#allocation3 + $0x78] sm:$0xff] }
 0x73f   :  { %3701 = vmatpush1.msra.mxu0 %v9869_v2  ;;  %3772 = vmatpush1.msra.mxu1 %v9870_v62  ;;  %9883 = vst [vmem:[#allocation176_spill] sm:$0xff] %v8068_v60  ;;  %9884 = vst [vmem:[#allocation178_spill] sm:$0xff] %v8070_v63  ;;  %v8074_v2 = vld [vmem:[#allocation3 + $0x60] sm:$0xff]  ;;  %v8076_v62 = vld [vmem:[#allocation3 + $0x70] sm:$0xff] }
 0x740   :  { %3702 = vmatprep.subr.mxu0 %v9871_v9  ;;  %3773 = vmatprep.subr.mxu1 %v9872_v47  ;;  %9885 = vst [vmem:[#allocation34_spill] sm:$0xff] %v8074_v2  ;;  %9886 = vst [vmem:[#allocation36_spill] sm:$0xff] %v8076_v62  ;;  %v8080_v9 = vld [vmem:[#allocation3 + $0x48] sm:$0xff]  ;;  %v8082_v47 = vld [vmem:[#allocation3 + $0x58] sm:$0xff] }
 0x741   :  { %3703 = vmatpush1.msra.mxu0 %v9873_v37  ;;  %3774 = vmatpush1.msra.mxu1 %v9874_v8  ;;  %9887 = vst [vmem:[#allocation37_spill] sm:$0xff] %v8080_v9  ;;  %9888 = vst [vmem:[#allocation35_spill] sm:$0xff] %v8082_v47  ;;  %v8086_v37 = vld [vmem:[#allocation3 + $0x40] sm:$0xff]  ;;  %v8088_v8 = vld [vmem:[#allocation3 + $0x50] sm:$0xff] }
 0x742   :  { %3704 = vmatprep.subr.mxu0 %v7664_v55  ;;  %3775 = vmatprep.subr.mxu1 %v9875_v29  ;;  %v7950_v55 = vld [vmem:[#allocation3 + $0x1b8] sm:$0xff]  ;;  %9889 = vst [vmem:[#allocation179_spill] sm:$0xff] %v8086_v37  ;;  %9890 = vst [vmem:[#allocation26_spill] sm:$0xff] %v8088_v8  ;;  %v8092_v29 = vld [vmem:[#allocation3 + $0x28] sm:$0xff] }
 0x743   :  { %3705 = vmatpush1.msra.mxu0 %v7670_v23  ;;  %3776 = vmatpush1.msra.mxu1 %v7672_v39  ;;  %v7924_v23 = vld [vmem:[#allocation3 + $0x1e8] sm:$0xff]  ;;  %v7926_v39 = vld [vmem:[#allocation3 + $0x1f8] sm:$0xff]  ;;  %9891 = vst [vmem:[#allocation28_spill] sm:$0xff] %v8092_v29 }
 0x744   :  { %3706 = vmatprep.subr.mxu0 %v7676_v19  ;;  %3777 = vmatprep.subr.mxu1 %v7678_v56  ;;  %v7930_v19 = vld [vmem:[#allocation3 + $0x1e0] sm:$0xff]  ;;  %v7932_v56 = vld [vmem:[#allocation3 + $0x1f0] sm:$0xff] }
 0x745   :  { %3707 = vmatpush1.msra.mxu0 %v7682_v24  ;;  %3778 = vmatpush1.msra.mxu1 %v7684_v22  ;;  %v7936_v24 = vld [vmem:[#allocation3 + $0x1c8] sm:$0xff]  ;;  %v7938_v22 = vld [vmem:[#allocation3 + $0x1d8] sm:$0xff] }
 0x746   :  { %3708 = vmatprep.subr.mxu0 %v7688_v30  ;;  %3779 = vmatprep.subr.mxu1 %v7690_v34  ;;  %v7942_v30 = vld [vmem:[#allocation3 + $0x1c0] sm:$0xff]  ;;  %v7944_v34 = vld [vmem:[#allocation3 + $0x1d0] sm:$0xff] }
 0x747   :  { %3709 = vmatpush1.msra.mxu0 %v7694_v48  ;;  %3742 = vmatprep.mubr.f32.mxu0 %v9168_v1  ;;  %v7948_v48 = vld [vmem:[#allocation3 + $0x1a8] sm:$0xff] }
 0x748   :  { %3780 = vmatpush1.msra.mxu1 %v7698_v17  ;;  %3813 = vmatprep.mubr.f32.mxu1 %v9168_v1  ;;  %v7954_v17 = vld [vmem:[#allocation3 + $0x1a0] sm:$0xff] }
 0x749   :  { %3743 = vmatmul.mubr.f32.vlgmr.msra.gmra.mxu0 %v7854_v10  ;;  %3814 = vmatmul.mubr.f32.vlgmr.msra.gmra.mxu1 %v7854_v10  ;;  %v7962_v10 = vld [vmem:[#allocation3 + $0x198] sm:$0xff] }
 0x74a   :  { %3980 = vmatprep.subr.mxu0 %v7924_v23  ;;  %4051 = vmatprep.subr.mxu1 %v7926_v39 }
 0x74b   :  { %3981 = vmatpush1.msra.mxu0 %v7930_v19  ;;  %4052 = vmatpush1.msra.mxu1 %v7932_v56 }
 0x74c   :  { %3982 = vmatprep.subr.mxu0 %v7936_v24  ;;  %4053 = vmatprep.subr.mxu1 %v7938_v22 }
 0x74d   :  { %3983 = vmatpush1.msra.mxu0 %v7942_v30  ;;  %4054 = vmatpush1.msra.mxu1 %v7944_v34 }
 0x74e   :  { %3984 = vmatprep.subr.mxu0 %v7948_v48  ;;  %4055 = vmatprep.subr.mxu1 %v7950_v55 }
 0x74f   :  { %3985 = vmatpush1.msra.mxu0 %v7954_v17  ;;  %4056 = vmatpush1.msra.mxu1 %v7956_v6 }
 0x750   :  { %3986 = vmatprep.subr.mxu0 %v7960_v61  ;;  %4057 = vmatprep.subr.mxu1 %v7962_v10 }
 0x751   :  { %3987 = vmatpush1.msra.mxu0 %v7966_v43  ;;  %4058 = vmatpush1.msra.mxu1 %v7968_v13 }
 0x752   :  { %3988 = vmatprep.subr.mxu0 %v7972_v14  ;;  %4059 = vmatprep.subr.mxu1 %v7974_v18 }
 0x753   :  { %3989 = vmatpush1.msra.mxu0 %v7978_v51  ;;  %4060 = vmatpush1.msra.mxu1 %v7980_v12 }
 0x754   :  { %3990 = vmatprep.subr.mxu0 %v7984_v0  ;;  %4061 = vmatprep.subr.mxu1 %v7986_v52 }
 0x755   :  { %3991 = vmatpush1.msra.mxu0 %v7990_v26  ;;  %4062 = vmatpush1.msra.mxu1 %v7992_v53 }
 0x756   :  { %3992 = vmatprep.subr.mxu0 %v7996_v40  ;;  %4063 = vmatprep.subr.mxu1 %v7998_v28 }
 0x757   :  { %3993 = vmatpush1.msra.mxu0 %v8002_v33  ;;  %4064 = vmatpush1.msra.mxu1 %v8004_v38 }
 0x758   :  { %3994 = vmatprep.subr.mxu0 %v8008_v41  ;;  %4065 = vmatprep.subr.mxu1 %v8010_v42 }
 0x759   :  { %3995 = vmatpush1.msra.mxu0 %v8014_v45  ;;  %4066 = vmatpush1.msra.mxu1 %v8016_v46 }
 0x75a   :  { %3996 = vmatprep.subr.mxu0 %v8020_v49  ;;  %4067 = vmatprep.subr.mxu1 %v8022_v50 }
 0x75b   :  { %3997 = vmatpush1.msra.mxu0 %v8026_v16  ;;  %4068 = vmatpush1.msra.mxu1 %v8028_v35 }
 0x75c   :  { %3998 = vmatprep.subr.mxu0 %v8032_v36  ;;  %4069 = vmatprep.subr.mxu1 %v8034_v44 }
 0x75d   :  { %3999 = vmatpush1.msra.mxu0 %v8038_v21  ;;  %4070 = vmatpush1.msra.mxu1 %v8040_v57 }
 0x75e   :  { %4000 = vmatprep.subr.mxu0 %v8044_v32  ;;  %4071 = vmatprep.subr.mxu1 %v8046_v31 }
 0x75f   :  { %4001 = vmatpush1.msra.mxu0 %v8050_v11  ;;  %4072 = vmatpush1.msra.mxu1 %v8052_v4 }
 0x760   :  { %4002 = vmatprep.subr.mxu0 %v8056_v3  ;;  %4073 = vmatprep.subr.mxu1 %v8058_v20 }
 0x761   :  { %4003 = vmatpush1.msra.mxu0 %v8062_v59  ;;  %4074 = vmatpush1.msra.mxu1 %v8064_v27  ;;  %v8234_v27 = vld [vmem:[#allocation3 + $0x2b8] sm:$0xff]  ;;  %v8250_v59 = vld [vmem:[#allocation3 + $0x280] sm:$0xff] }
 0x762   :  { %4004 = vmatprep.subr.mxu0 %v8068_v60  ;;  %4075 = vmatprep.subr.mxu1 %v8070_v63  ;;  %v8218_v63 = vld [vmem:[#allocation3 + $0x2f0] sm:$0xff]  ;;  %v8226_v60 = vld [vmem:[#allocation3 + $0x2c0] sm:$0xff]  ;;  %9940 = vst [vmem:[#allocation102_spill] sm:$0xff] %v8234_v27  ;;  %9945 = vst [vmem:[#allocation105_spill] sm:$0xff] %v8250_v59 }
 0x763   :  { %4005 = vmatpush1.msra.mxu0 %v8074_v2  ;;  %4076 = vmatpush1.msra.mxu1 %v8076_v62  ;;  %v8094_v2 = vld [vmem:[#allocation3 + $0x38] sm:$0xff]  ;;  %v8098_v62 = vld [vmem:[#allocation3 + $0x20] sm:$0xff]  ;;  %9934 = vst [vmem:[#allocation96_spill] sm:$0xff] %v8218_v63  ;;  %9937 = vst [vmem:[#allocation97_spill] sm:$0xff] %v8226_v60 }
 0x764   :  { %4006 = vmatprep.subr.mxu0 %v8080_v9  ;;  %4077 = vmatprep.subr.mxu1 %v8082_v47  ;;  %9892 = vst [vmem:[#allocation29_spill] sm:$0xff] %v8094_v2  ;;  %9893 = vst [vmem:[#allocation27_spill] sm:$0xff] %v8098_v62  ;;  %v8100_v9 = vld [vmem:[#allocation3 + $0x30] sm:$0xff]  ;;  %v8104_v47 = vld [vmem:[#allocation3 + $0x8] sm:$0xff] }
 0x765   :  { %4007 = vmatpush1.msra.mxu0 %v8086_v37  ;;  %4078 = vmatpush1.msra.mxu1 %v8088_v8  ;;  %9894 = vst [vmem:[#allocation56_spill] sm:$0xff] %v8100_v9  ;;  %9895 = vst [vmem:[#allocation55_spill] sm:$0xff] %v8104_v47  ;;  %v8106_v37 = vld [vmem:[#allocation3 + $0x18] sm:$0xff]  ;;  %v8110_v8 = vld [vmem:[#allocation3] sm:$0xff] }
 0x766   :  { %4008 = vmatprep.subr.mxu0 %v8092_v29  ;;  %4079 = vmatprep.subr.mxu1 %v8094_v2  ;;  %9896 = vst [vmem:[#allocation58_spill] sm:$0xff] %v8106_v37  ;;  %9897 = vst [vmem:[#allocation57_spill] sm:$0xff] %v8110_v8  ;;  %v8112_v29 = vld [vmem:[#allocation3 + $0x10] sm:$0xff]  ;;  %v8116_v2 = vld [vmem:[#allocation3 + $0x3e8] sm:$0xff] }
 0x767   :  { %4009 = vmatpush1.msra.mxu0 %v8098_v62  ;;  %4080 = vmatpush1.msra.mxu1 %v8100_v9  ;;  %9898 = vst [vmem:[#allocation60_spill] sm:$0xff] %v8112_v29  ;;  %9899 = vst [vmem:[#allocation59_spill] sm:$0xff] %v8116_v2  ;;  %v8118_v62 = vld [vmem:[#allocation3 + $0x3f8] sm:$0xff]  ;;  %v8122_v9 = vld [vmem:[#allocation3 + $0x3e0] sm:$0xff] }
 0x768   :  { %4010 = vmatprep.subr.mxu0 %v8104_v47  ;;  %4081 = vmatprep.subr.mxu1 %v8106_v37  ;;  %9900 = vst [vmem:[#allocation62_spill] sm:$0xff] %v8118_v62  ;;  %9901 = vst [vmem:[#allocation61_spill] sm:$0xff] %v8122_v9  ;;  %v8124_v47 = vld [vmem:[#allocation3 + $0x3f0] sm:$0xff]  ;;  %v8128_v37 = vld [vmem:[#allocation3 + $0x3c8] sm:$0xff] }
 0x769   :  { %4011 = vmatpush1.msra.mxu0 %v8110_v8  ;;  %4082 = vmatpush1.msra.mxu1 %v8112_v29  ;;  %9902 = vst [vmem:[#allocation64_spill] sm:$0xff] %v8124_v47  ;;  %9903 = vst [vmem:[#allocation63_spill] sm:$0xff] %v8128_v37  ;;  %v8130_v8 = vld [vmem:[#allocation3 + $0x3d8] sm:$0xff]  ;;  %v8134_v29 = vld [vmem:[#allocation3 + $0x3c0] sm:$0xff] }
 0x76a   :  { %4012 = vmatprep.subr.mxu0 %v8116_v2  ;;  %4083 = vmatprep.subr.mxu1 %v8118_v62  ;;  %9904 = vst [vmem:[#allocation66_spill] sm:$0xff] %v8130_v8  ;;  %9905 = vst [vmem:[#allocation65_spill] sm:$0xff] %v8134_v29  ;;  %v8136_v2 = vld [vmem:[#allocation3 + $0x3d0] sm:$0xff]  ;;  %v8140_v62 = vld [vmem:[#allocation3 + $0x3a8] sm:$0xff] }
 0x76b   :  { %4013 = vmatpush2.msra.mxu0 %v8122_v9  ;;  %4084 = vmatpush2.msra.mxu1 %v8124_v47  ;;  %9906 = vst [vmem:[#allocation68_spill] sm:$0xff] %v8136_v2  ;;  %9907 = vst [vmem:[#allocation67_spill] sm:$0xff] %v8140_v62  ;;  %v8142_v9 = vld [vmem:[#allocation3 + $0x3b8] sm:$0xff]  ;;  %v8146_v47 = vld [vmem:[#allocation3 + $0x3a0] sm:$0xff] }
 0x76c   :  { %4014 = vmatprep.subr.mxu0 %v8128_v37  ;;  %4085 = vmatprep.subr.mxu1 %v8130_v8  ;;  %9908 = vst [vmem:[#allocation70_spill] sm:$0xff] %v8142_v9  ;;  %9909 = vst [vmem:[#allocation69_spill] sm:$0xff] %v8146_v47  ;;  %v8148_v37 = vld [vmem:[#allocation3 + $0x3b0] sm:$0xff]  ;;  %v8152_v8 = vld [vmem:[#allocation3 + $0x388] sm:$0xff] }
 0x76d   :  { %4015 = vmatpush2.msra.mxu0 %v8134_v29  ;;  %4086 = vmatpush2.msra.mxu1 %v8136_v2  ;;  %9910 = vst [vmem:[#allocation72_spill] sm:$0xff] %v8148_v37  ;;  %9911 = vst [vmem:[#allocation71_spill] sm:$0xff] %v8152_v8  ;;  %v8154_v29 = vld [vmem:[#allocation3 + $0x398] sm:$0xff]  ;;  %v8158_v2 = vld [vmem:[#allocation3 + $0x380] sm:$0xff] }
 0x76e   :  { %4016 = vmatprep.subr.mxu0 %v8140_v62  ;;  %4087 = vmatprep.subr.mxu1 %v8142_v9  ;;  %9912 = vst [vmem:[#allocation74_spill] sm:$0xff] %v8154_v29  ;;  %9913 = vst [vmem:[#allocation73_spill] sm:$0xff] %v8158_v2  ;;  %v8160_v62 = vld [vmem:[#allocation3 + $0x390] sm:$0xff]  ;;  %v8164_v9 = vld [vmem:[#allocation3 + $0x368] sm:$0xff] }
 0x76f   :  { %4017 = vmatpush2.msra.mxu0 %v8146_v47  ;;  %4088 = vmatpush2.msra.mxu1 %v8148_v37  ;;  %9914 = vst [vmem:[#allocation76_spill] sm:$0xff] %v8160_v62  ;;  %9915 = vst [vmem:[#allocation75_spill] sm:$0xff] %v8164_v9  ;;  %v8166_v47 = vld [vmem:[#allocation3 + $0x378] sm:$0xff]  ;;  %v8170_v37 = vld [vmem:[#allocation3 + $0x360] sm:$0xff] }
 0x770   :  { %4018 = vmatprep.subr.mxu0 %v8152_v8  ;;  %4089 = vmatprep.subr.mxu1 %v8154_v29  ;;  %9916 = vst [vmem:[#allocation78_spill] sm:$0xff] %v8166_v47  ;;  %9917 = vst [vmem:[#allocation77_spill] sm:$0xff] %v8170_v37  ;;  %v8172_v8 = vld [vmem:[#allocation3 + $0x370] sm:$0xff]  ;;  %v8176_v29 = vld [vmem:[#allocation3 + $0x348] sm:$0xff] }
 0x771   :  { %4019 = vmatpush2.msra.mxu0 %v8158_v2  ;;  %4090 = vmatpush2.msra.mxu1 %v8160_v62  ;;  %9918 = vst [vmem:[#allocation80_spill] sm:$0xff] %v8172_v8  ;;  %9919 = vst [vmem:[#allocation79_spill] sm:$0xff] %v8176_v29  ;;  %v8178_v2 = vld [vmem:[#allocation3 + $0x358] sm:$0xff]  ;;  %v8182_v62 = vld [vmem:[#allocation3 + $0x340] sm:$0xff] }
 0x772   :  { %4020 = vmatprep.subr.mxu0 %v8164_v9  ;;  %4091 = vmatprep.subr.mxu1 %v8166_v47  ;;  %9920 = vst [vmem:[#allocation82_spill] sm:$0xff] %v8178_v2  ;;  %9921 = vst [vmem:[#allocation81_spill] sm:$0xff] %v8182_v62  ;;  %v8184_v9 = vld [vmem:[#allocation3 + $0x350] sm:$0xff]  ;;  %v8188_v47 = vld [vmem:[#allocation3 + $0x328] sm:$0xff] }
 0x773   :  { %4021 = vmatpush2.msra.mxu0 %v8170_v37  ;;  %4092 = vmatpush2.msra.mxu1 %v8172_v8  ;;  %9922 = vst [vmem:[#allocation84_spill] sm:$0xff] %v8184_v9  ;;  %9923 = vst [vmem:[#allocation83_spill] sm:$0xff] %v8188_v47  ;;  %v8190_v37 = vld [vmem:[#allocation3 + $0x338] sm:$0xff]  ;;  %v8194_v8 = vld [vmem:[#allocation3 + $0x320] sm:$0xff] }
 0x774   :  { %4022 = vmatprep.subr.mxu0 %v8176_v29  ;;  %4093 = vmatprep.subr.mxu1 %v8178_v2  ;;  %9924 = vst [vmem:[#allocation86_spill] sm:$0xff] %v8190_v37  ;;  %9925 = vst [vmem:[#allocation85_spill] sm:$0xff] %v8194_v8  ;;  %v8196_v29 = vld [vmem:[#allocation3 + $0x330] sm:$0xff]  ;;  %v8200_v2 = vld [vmem:[#allocation3 + $0x308] sm:$0xff] }
 0x775   :  { %4023 = vmatpush2.msra.mxu0 %v8182_v62  ;;  %4094 = vmatpush2.msra.mxu1 %v8184_v9  ;;  %9926 = vst [vmem:[#allocation88_spill] sm:$0xff] %v8196_v29  ;;  %9927 = vst [vmem:[#allocation87_spill] sm:$0xff] %v8200_v2  ;;  %v8202_v62 = vld [vmem:[#allocation3 + $0x318] sm:$0xff]  ;;  %v8206_v9 = vld [vmem:[#allocation3 + $0x300] sm:$0xff] }
 0x776   :  { %4024 = vmatprep.subr.mxu0 %v8188_v47  ;;  %4095 = vmatprep.subr.mxu1 %v8190_v37  ;;  %9928 = vst [vmem:[#allocation90_spill] sm:$0xff] %v8202_v62  ;;  %9929 = vst [vmem:[#allocation89_spill] sm:$0xff] %v8206_v9  ;;  %v8208_v47 = vld [vmem:[#allocation3 + $0x310] sm:$0xff]  ;;  %v8210_v37 = vld [vmem:[#allocation3 + $0x2e8] sm:$0xff] }
 0x777   :  { %4025 = vmatpush2.msra.mxu0 %v8194_v8  ;;  %4096 = vmatpush2.msra.mxu1 %v8196_v29  ;;  %9930 = vst [vmem:[#allocation92_spill] sm:$0xff] %v8208_v47  ;;  %9931 = vst [vmem:[#allocation91_spill] sm:$0xff] %v8210_v37  ;;  %v8214_v8 = vld [vmem:[#allocation3 + $0x2f8] sm:$0xff]  ;;  %v8216_v29 = vld [vmem:[#allocation3 + $0x2e0] sm:$0xff] }
 0x778   :  { %4026 = vmatprep.subr.mxu0 %v8200_v2  ;;  %4097 = vmatprep.subr.mxu1 %v8202_v62  ;;  %9932 = vst [vmem:[#allocation94_spill] sm:$0xff] %v8214_v8  ;;  %9933 = vst [vmem:[#allocation93_spill] sm:$0xff] %v8216_v29  ;;  %v8222_v62 = vld [vmem:[#allocation3 + $0x2c8] sm:$0xff]  ;;  %v8224_v2 = vld [vmem:[#allocation3 + $0x2d8] sm:$0xff] }
 0x779   :  { %4027 = vmatpush2.msra.mxu0 %v8206_v9  ;;  %4098 = vmatpush2.msra.mxu1 %v8208_v47  ;;  %9935 = vst [vmem:[#allocation95_spill] sm:$0xff] %v8222_v62  ;;  %9936 = vst [vmem:[#allocation98_spill] sm:$0xff] %v8224_v2  ;;  %v8230_v47 = vld [vmem:[#allocation3 + $0x2d0] sm:$0xff]  ;;  %v8232_v9 = vld [vmem:[#allocation3 + $0x2a8] sm:$0xff] }
 0x77a   :  { %4028 = vmatprep.subr.mxu0 %v8210_v37  ;;  %4099 = vmatprep.subr.mxu1 %v8214_v8  ;;  %9938 = vst [vmem:[#allocation100_spill] sm:$0xff] %v8230_v47  ;;  %9939 = vst [vmem:[#allocation99_spill] sm:$0xff] %v8232_v9  ;;  %v8238_v8 = vld [vmem:[#allocation3 + $0x2a0] sm:$0xff]  ;;  %v8240_v37 = vld [vmem:[#allocation3 + $0x2b0] sm:$0xff] }
 0x77b   :  { %4029 = vmatpush2.msra.mxu0 %v8216_v29  ;;  %4100 = vmatpush2.msra.mxu1 %v8218_v63  ;;  %9941 = vst [vmem:[#allocation101_spill] sm:$0xff] %v8238_v8  ;;  %9942 = vst [vmem:[#allocation104_spill] sm:$0xff] %v8240_v37  ;;  %v8244_v29 = vld [vmem:[#allocation3 + $0x288] sm:$0xff]  ;;  %v8246_v63 = vld [vmem:[#allocation3 + $0x298] sm:$0xff] }
 0x77c   :  { %4030 = vmatprep.subr.mxu0 %v8222_v62  ;;  %4101 = vmatprep.subr.mxu1 %v8224_v2  ;;  %9943 = vst [vmem:[#allocation103_spill] sm:$0xff] %v8244_v29  ;;  %9944 = vst [vmem:[#allocation106_spill] sm:$0xff] %v8246_v63  ;;  %v8252_v62 = vld [vmem:[#allocation3 + $0x290] sm:$0xff]  ;;  %v8256_v2 = vld [vmem:[#allocation3 + $0x268] sm:$0xff] }
 0x77d   :  { %4031 = vmatpush2.msra.mxu0 %v8226_v60  ;;  %4102 = vmatpush2.msra.mxu1 %v8230_v47  ;;  %9946 = vst [vmem:[#allocation108_spill] sm:$0xff] %v8252_v62  ;;  %9947 = vst [vmem:[#allocation107_spill] sm:$0xff] %v8256_v2  ;;  %v8258_v60 = vld [vmem:[#allocation3 + $0x278] sm:$0xff]  ;;  %v8262_v47 = vld [vmem:[#allocation3 + $0x260] sm:$0xff] }
 0x77e   :  { %4032 = vmatprep.subr.mxu0 %v8232_v9  ;;  %4103 = vmatprep.subr.mxu1 %v8234_v27  ;;  %9948 = vst [vmem:[#allocation110_spill] sm:$0xff] %v8258_v60  ;;  %9949 = vst [vmem:[#allocation109_spill] sm:$0xff] %v8262_v47  ;;  %v8264_v9 = vld [vmem:[#allocation3 + $0x270] sm:$0xff]  ;;  %v8268_v27 = vld [vmem:[#allocation3 + $0x248] sm:$0xff] }
 0x77f   :  { %4033 = vmatpush2.msra.mxu0 %v8238_v8  ;;  %4104 = vmatpush2.msra.mxu1 %v8240_v37  ;;  %9950 = vst [vmem:[#allocation112_spill] sm:$0xff] %v8264_v9  ;;  %9951 = vst [vmem:[#allocation111_spill] sm:$0xff] %v8268_v27  ;;  %v8270_v8 = vld [vmem:[#allocation3 + $0x258] sm:$0xff]  ;;  %v8274_v37 = vld [vmem:[#allocation3 + $0x240] sm:$0xff] }
 0x780   :  { %4034 = vmatprep.subr.mxu0 %v8244_v29  ;;  %4105 = vmatprep.subr.mxu1 %v8246_v63  ;;  %9952 = vst [vmem:[#allocation114_spill] sm:$0xff] %v8270_v8  ;;  %9953 = vst [vmem:[#allocation113_spill] sm:$0xff] %v8274_v37  ;;  %v8276_v29 = vld [vmem:[#allocation3 + $0x250] sm:$0xff]  ;;  %v8280_v63 = vld [vmem:[#allocation3 + $0x228] sm:$0xff] }
 0x781   :  { %4035 = vmatpush2.msra.mxu0 %v8250_v59  ;;  %4106 = vmatpush2.msra.mxu1 %v8252_v62  ;;  %9954 = vst [vmem:[#allocation116_spill] sm:$0xff] %v8276_v29  ;;  %9955 = vst [vmem:[#allocation115_spill] sm:$0xff] %v8280_v63  ;;  %v8282_v59 = vld [vmem:[#allocation3 + $0x238] sm:$0xff]  ;;  %v8286_v62 = vld [vmem:[#allocation3 + $0x220] sm:$0xff] }
 0x782   :  { %4036 = vmatprep.subr.mxu0 %v8256_v2  ;;  %4107 = vmatprep.subr.mxu1 %v8258_v60  ;;  %9956 = vst [vmem:[#allocation118_spill] sm:$0xff] %v8282_v59  ;;  %9957 = vst [vmem:[#allocation117_spill] sm:$0xff] %v8286_v62  ;;  %v8288_v2 = vld [vmem:[#allocation3 + $0x230] sm:$0xff]  ;;  %v8292_v60 = vld [vmem:[#allocation3 + $0x208] sm:$0xff] }
 0x783   :  { %4037 = vmatpush2.msra.mxu0 %v8262_v47  ;;  %4108 = vmatpush2.msra.mxu1 %v8264_v9  ;;  %9958 = vst [vmem:[#allocation120_spill] sm:$0xff] %v8288_v2  ;;  %9959 = vst [vmem:[#allocation119_spill] sm:$0xff] %v8292_v60  ;;  %v8294_v47 = vld [vmem:[#allocation3 + $0x218] sm:$0xff]  ;;  %v8298_v9 = vld [vmem:[#allocation3 + $0x200] sm:$0xff] }
 0x784   :  { %4038 = vmatprep.subr.mxu0 %v8268_v27  ;;  %4109 = vmatprep.subr.mxu1 %v8270_v8  ;;  %9960 = vst [vmem:[#allocation122_spill] sm:$0xff] %v8294_v47  ;;  %9961 = vst [vmem:[#allocation121_spill] sm:$0xff] %v8298_v9  ;;  %v8300_v27 = vld [vmem:[#allocation3 + $0x210] sm:$0xff]  ;;  %v4207_v8 = vld [vmem:[#allocation8 + $0x1e8] sm:$0xff] }
 0x785   :  { %4039 = vmatpush2.msra.mxu0 %v8274_v37  ;;  %4110 = vmatpush2.msra.mxu1 %v8276_v29  ;;  %9962 = vst [vmem:[#allocation125_spill] sm:$0xff] %v8300_v27  ;;  %v4209_v37 = vld [vmem:[#allocation8 + $0x1f8] sm:$0xff] }
 0x786   :  { %4040 = vmatprep.subr.mxu0 %v8280_v63  ;;  %4111 = vmatprep.subr.mxu1 %v8282_v59 }
 0x787   :  { %4041 = vmatpush2.msra.mxu0 %v8286_v62  ;;  %4112 = vmatpush2.msra.mxu1 %v8288_v2 }
 0x788   :  { %4042 = vmatprep.subr.mxu0 %v8292_v60  ;;  %4113 = vmatprep.subr.mxu1 %v8294_v47 }
 0x789   :  { %4043 = vmatpush2.msra.mxu0 %v8298_v9  ;;  %4114 = vmatpush2.msra.mxu1 %v8300_v27 }
 0x78a   :  { %4210 = vmatprep.subr.mxu0 %v4207_v8  ;;  %4281 = vmatprep.subr.mxu1 %v4209_v37 }
 0x7e8   :  { %v3514_v59 = vpop.f32.mrf.mxu0  ;;  %v3585_v2 = vpop.f32.mrf.mxu1 }
 0x7e9   :  { %v3515_v63 = vadd.f32 %v3514_v59, %v9825_v25  ;;  %v3586_v27 = vadd.f32 %v3585_v2, %v9828_v54  ;;  %v9966_v54 = vld [vmem:[#allocation43_spill] sm:$0xff] }
 0x7ea   :  { %v3516_v29 = vpop.f32.mrf.mxu0  ;;  %v3587_v60 = vpop.f32.mrf.mxu1 }
 0x7eb   :  { %v4827_v20 = vmul.f32 -1.442695, %v3515_v63  ;;  %v3517_v62 = vadd.f32 %v3516_v29, %v9826_v58  ;;  %v3588_v47 = vadd.f32 %v3587_v60, %v9827_v5  ;;  %v9963_v58 = vld [vmem:[#allocation42_spill] sm:$0xff] }
 0x7ed   :  { %5081 = vpow2.f32 %v4827_v20  ;;  %v4828_v3 = vmul.f32 -1.442695, %v3517_v62  ;;  %v4829_v4 = vmul.f32 -1.442695, %v3588_v47  ;;  %v9964_v47 = vld [vmem:[#allocation44_spill] sm:$0xff] }
 0x7ef   :  { %5083 = vpow2.f32 %v4828_v3 }
 0x7f0   :  { %5085 = vpow2.f32 %v4829_v4 }
 0x7fa   :  { %v5082_v9 = vpop.eup %5081 }
 0x7fb   :  { %v3593_v8 = vadd.f32 1.0, %v5082_v9 }
 0x7fc   :  { %v5084_v37 = vpop.eup %5083 }
 0x7fd   :  { %5087 = vrcp.f32 %v3593_v8  ;;  %v3599_v59 = vadd.f32 1.0, %v5084_v37  ;;  %v5086_v63 = vpop.eup %5085 }
 0x7fe   :  { %5089 = vtanh.f32 %v3586_v27  ;;  %v3606_v9 = vadd.f32 1.0, %v5086_v63 }
 0x7ff   :  { %5091 = vrcp.f32 %v3599_v59 }
 0x809   :  { %v3744_v29 = vpop.f32.mrf.mxu0  ;;  %v3815_v4 = vpop.f32.mrf.mxu1 }
 0x80a   :  { %v5088_v20 = vpop.eup %5087  ;;  %v3820_v62 = vadd.f32 %v3744_v29, %v9963_v58  ;;  %v9965_v58 = vld [vmem:[#allocation45_spill] sm:$0xff] }
 0x80b   :  { %v5090_v3 = vpop.eup %5089  ;;  %v3746_v25 = vpop.f32.mrf.mxu0 }
 0x80c   :  { %v5092_v11 = vpop.eup %5091  ;;  %v4830_v60 = vmul.f32 -1.442695, %v3820_v62  ;;  %v3821_v5 = vadd.f32 %v3746_v25, %v9964_v47  ;;  %v3610_v31 = vmul.f32 %v5090_v3, %v5088_v20  ;;  %v3817_v37 = vpop.f32.mrf.mxu1  ;;  %v3822_v25 = vadd.f32 %v3815_v4, %v9966_v54 }
 0x80d   :  { %v3609_v2 = vmul.f32 %v5092_v11, %v7845_v15  ;;  %v3823_v59 = vadd.f32 %v3817_v37, %v9965_v58 }
 0x80e   :  { %5093 = vpow2.f32 %v4830_v60  ;;  %v4831_v8 = vmul.f32 -1.442695, %v3821_v5 }
 0x80f   :  { %v8315_v27 = vadd.f32 %v3610_v31, %v3609_v2  ;;  %v4832_v29 = vmul.f32 -1.442695, %v3823_v59 }
 0x810   :  { %5095 = vpow2.f32 %v4831_v8 }
 0x811   :  { %5097 = vrcp.f32 %v3606_v9 }
 0x812   :  { %5099 = vtanh.f32 %v8315_v27 }
 0x813   :  { %5101 = vpow2.f32 %v4832_v29  ;;  %v4206_v29 = vld [vmem:[#allocation8 + $0x1e0] sm:$0xff] }
 0x81b   :  { %v5094_v62 = vpop.eup %5093 }
 0x81c   :  { %v3827_v20 = vadd.f32 1.0, %v5094_v62  ;;  %v4208_v62 = vld [vmem:[#allocation8 + $0x1f0] sm:$0xff] }
 0x81d   :  { %v5096_v3 = vpop.eup %5095 }
 0x81e   :  { %v5098_v15 = vpop.eup %5097  ;;  %5103 = vrcp.f32 %v3827_v20  ;;  %v3833_v11 = vadd.f32 1.0, %v5096_v3  ;;  %v4205_v20 = vld [vmem:[#allocation8 + $0x1d8] sm:$0xff]  ;;  %v4202_v3 = vld [vmem:[#allocation8 + $0x1c0] sm:$0xff] }
 0x81f   :  { %v5100_v5 = vpop.eup %5099  ;;  %5105 = vtanh.f32 %v3822_v25  ;;  %v4203_v25 = vld [vmem:[#allocation8 + $0x1c8] sm:$0xff] }
 0x820   :  { %5107 = vrcp.f32 %v3833_v11  ;;  %v3613_v31 = vmul.f32 %v5100_v5, %v5098_v15  ;;  %v5102_v63 = vpop.eup %5101  ;;  %v4204_v15 = vld [vmem:[#allocation8 + $0x1d0] sm:$0xff]  ;;  %v4201_v11 = vld [vmem:[#allocation8 + $0x1b8] sm:$0xff]  ;;  %v4198_v5 = vld [vmem:[#allocation8 + $0x1a0] sm:$0xff] }
 0x821   :  { %v3840_v9 = vadd.f32 1.0, %v5102_v63  ;;  %v4195_v63 = vld [vmem:[#allocation8 + $0x188] sm:$0xff] }
 0x822   :  { %4044 = vmatprep.mubr.f32.mxu0 %v3613_v31  ;;  %4115 = vmatprep.mubr.f32.mxu1 %v3613_v31  ;;  %v4200_v31 = vld [vmem:[#allocation8 + $0x1b0] sm:$0xff] }
 0x823   :  { %5109 = vrcp.f32 %v3840_v9  ;;  %v4191_v9 = vld [vmem:[#allocation8 + $0x168] sm:$0xff] }
 0x82b   :  { %v5104_v60 = vpop.eup %5103 }
 0x82c   :  { %v5106_v47 = vpop.eup %5105 }
 0x82d   :  { %v5108_v2 = vpop.eup %5107  ;;  %v3844_v8 = vmul.f32 %v5106_v47, %v5104_v60  ;;  %v4197_v60 = vld [vmem:[#allocation8 + $0x198] sm:$0xff]  ;;  %v4194_v47 = vld [vmem:[#allocation8 + $0x180] sm:$0xff] }
 0x82e   :  { %v3843_v54 = vmul.f32 %v5108_v2, %v7851_v7  ;;  %v4199_v7 = vld [vmem:[#allocation8 + $0x1a8] sm:$0xff]  ;;  %v4196_v2 = vld [vmem:[#allocation8 + $0x190] sm:$0xff] }
 0x830   :  { %v8321_v4 = vadd.f32 %v3844_v8, %v3843_v54  ;;  %v5110_v37 = vpop.eup %5109  ;;  %v4193_v8 = vld [vmem:[#allocation8 + $0x178] sm:$0xff]  ;;  %v4190_v54 = vld [vmem:[#allocation8 + $0x160] sm:$0xff] }
 0x832   :  { %5111 = vtanh.f32 %v8321_v4 }
 0x83f   :  { %v5112_v58 = vpop.eup %5111 }
 0x840   :  { %v8324_v59 = vmul.f32 %v5112_v58, %v5110_v37  ;;  %v4192_v37 = vld [vmem:[#allocation8 + $0x170] sm:$0xff]  ;;  %v4187_v58 = vld [vmem:[#allocation8 + $0x148] sm:$0xff] }
 0x842   :  { %4045 = vmatmul.mubr.f32.vlgmr.msra.gmra.mxu0 %v8324_v59  ;;  %4116 = vmatmul.mubr.f32.vlgmr.msra.gmra.mxu1 %v8324_v59 }
 0x843   :  { %4211 = vmatpush1.msra.mxu0 %v4206_v29  ;;  %4282 = vmatpush1.msra.mxu1 %v4208_v62  ;;  %v4189_v29 = vld [vmem:[#allocation8 + $0x158] sm:$0xff]  ;;  %v4186_v62 = vld [vmem:[#allocation8 + $0x140] sm:$0xff] }
 0x844   :  { %4212 = vmatprep.subr.mxu0 %v4203_v25  ;;  %4283 = vmatprep.subr.mxu1 %v4205_v20  ;;  %v4188_v25 = vld [vmem:[#allocation8 + $0x150] sm:$0xff]  ;;  %v4183_v20 = vld [vmem:[#allocation8 + $0x128] sm:$0xff] }
 0x845   :  { %4213 = vmatpush1.msra.mxu0 %v4202_v3  ;;  %4284 = vmatpush1.msra.mxu1 %v4204_v15  ;;  %v4185_v3 = vld [vmem:[#allocation8 + $0x138] sm:$0xff]  ;;  %v4182_v15 = vld [vmem:[#allocation8 + $0x120] sm:$0xff] }
 0x846   :  { %4214 = vmatprep.subr.mxu0 %v4199_v7  ;;  %4285 = vmatprep.subr.mxu1 %v4201_v11  ;;  %v4184_v7 = vld [vmem:[#allocation8 + $0x130] sm:$0xff]  ;;  %v4179_v11 = vld [vmem:[#allocation8 + $0x108] sm:$0xff] }
 0x847   :  { %4215 = vmatpush1.msra.mxu0 %v4198_v5  ;;  %4286 = vmatpush1.msra.mxu1 %v4200_v31  ;;  %v4181_v5 = vld [vmem:[#allocation8 + $0x118] sm:$0xff]  ;;  %v4178_v31 = vld [vmem:[#allocation8 + $0x100] sm:$0xff] }
 0x848   :  { %4216 = vmatprep.subr.mxu0 %v4195_v63  ;;  %4287 = vmatprep.subr.mxu1 %v4197_v60  ;;  %v4180_v63 = vld [vmem:[#allocation8 + $0x110] sm:$0xff]  ;;  %v4175_v60 = vld [vmem:[#allocation8 + $0xe8] sm:$0xff] }
 0x849   :  { %4217 = vmatpush1.msra.mxu0 %v4194_v47  ;;  %4288 = vmatpush1.msra.mxu1 %v4196_v2  ;;  %v4177_v47 = vld [vmem:[#allocation8 + $0xf8] sm:$0xff]  ;;  %v4174_v2 = vld [vmem:[#allocation8 + $0xe0] sm:$0xff] }
 0x84a   :  { %4218 = vmatprep.subr.mxu0 %v4191_v9  ;;  %4289 = vmatprep.subr.mxu1 %v4193_v8  ;;  %v4176_v9 = vld [vmem:[#allocation8 + $0xf0] sm:$0xff]  ;;  %v4171_v8 = vld [vmem:[#allocation8 + $0xc8] sm:$0xff] }
 0x84b   :  { %4219 = vmatpush1.msra.mxu0 %v4190_v54  ;;  %4290 = vmatpush1.msra.mxu1 %v4192_v37  ;;  %v4173_v54 = vld [vmem:[#allocation8 + $0xd8] sm:$0xff]  ;;  %v4170_v37 = vld [vmem:[#allocation8 + $0xc0] sm:$0xff] }
 0x84c   :  { %4220 = vmatprep.subr.mxu0 %v4187_v58  ;;  %4291 = vmatprep.subr.mxu1 %v4189_v29  ;;  %v4172_v58 = vld [vmem:[#allocation8 + $0xd0] sm:$0xff]  ;;  %v4167_v29 = vld [vmem:[#allocation8 + $0xa8] sm:$0xff] }
 0x84d   :  { %4221 = vmatpush1.msra.mxu0 %v4186_v62  ;;  %4292 = vmatpush1.msra.mxu1 %v4188_v25  ;;  %v4169_v62 = vld [vmem:[#allocation8 + $0xb8] sm:$0xff]  ;;  %v4166_v25 = vld [vmem:[#allocation8 + $0xa0] sm:$0xff] }
 0x84e   :  { %4222 = vmatprep.subr.mxu0 %v4183_v20  ;;  %4293 = vmatprep.subr.mxu1 %v4185_v3  ;;  %v4168_v20 = vld [vmem:[#allocation8 + $0xb0] sm:$0xff]  ;;  %v4163_v3 = vld [vmem:[#allocation8 + $0x88] sm:$0xff] }
 0x84f   :  { %4223 = vmatpush1.msra.mxu0 %v4182_v15  ;;  %4294 = vmatpush1.msra.mxu1 %v4184_v7  ;;  %v4165_v15 = vld [vmem:[#allocation8 + $0x98] sm:$0xff]  ;;  %v4162_v7 = vld [vmem:[#allocation8 + $0x80] sm:$0xff] }
 0x850   :  { %4224 = vmatprep.subr.mxu0 %v4179_v11  ;;  %4295 = vmatprep.subr.mxu1 %v4181_v5  ;;  %v4164_v11 = vld [vmem:[#allocation8 + $0x90] sm:$0xff]  ;;  %v4159_v5 = vld [vmem:[#allocation8 + $0x68] sm:$0xff] }
 0x851   :  { %4225 = vmatpush1.msra.mxu0 %v4178_v31  ;;  %4296 = vmatpush1.msra.mxu1 %v4180_v63  ;;  %v4161_v31 = vld [vmem:[#allocation8 + $0x78] sm:$0xff]  ;;  %v4158_v63 = vld [vmem:[#allocation8 + $0x60] sm:$0xff] }
 0x852   :  { %4226 = vmatprep.subr.mxu0 %v4175_v60  ;;  %4297 = vmatprep.subr.mxu1 %v4177_v47  ;;  %v4160_v60 = vld [vmem:[#allocation8 + $0x70] sm:$0xff]  ;;  %v4155_v47 = vld [vmem:[#allocation8 + $0x48] sm:$0xff] }
 0x853   :  { %4227 = vmatpush1.msra.mxu0 %v4174_v2  ;;  %4298 = vmatpush1.msra.mxu1 %v4176_v9  ;;  %v4157_v2 = vld [vmem:[#allocation8 + $0x58] sm:$0xff]  ;;  %v4154_v9 = vld [vmem:[#allocation8 + $0x40] sm:$0xff] }
 0x854   :  { %4228 = vmatprep.subr.mxu0 %v4171_v8  ;;  %4299 = vmatprep.subr.mxu1 %v4173_v54  ;;  %v4156_v8 = vld [vmem:[#allocation8 + $0x50] sm:$0xff]  ;;  %v4151_v54 = vld [vmem:[#allocation8 + $0x28] sm:$0xff] }
 0x855   :  { %4229 = vmatpush1.msra.mxu0 %v4170_v37  ;;  %4300 = vmatpush1.msra.mxu1 %v4172_v58  ;;  %v4153_v37 = vld [vmem:[#allocation8 + $0x38] sm:$0xff]  ;;  %v4150_v58 = vld [vmem:[#allocation8 + $0x20] sm:$0xff] }
 0x856   :  { %4230 = vmatprep.subr.mxu0 %v4167_v29  ;;  %4301 = vmatprep.subr.mxu1 %v4169_v62  ;;  %v4152_v29 = vld [vmem:[#allocation8 + $0x30] sm:$0xff]  ;;  %v4147_v62 = vld [vmem:[#allocation8 + $0x8] sm:$0xff] }
 0x857   :  { %4231 = vmatpush1.msra.mxu0 %v4166_v25  ;;  %4302 = vmatpush1.msra.mxu1 %v4168_v20  ;;  %v4149_v25 = vld [vmem:[#allocation8 + $0x18] sm:$0xff]  ;;  %v4146_v20 = vld [vmem:[#allocation8] sm:$0xff] }
 0x858   :  { %4232 = vmatprep.subr.mxu0 %v4163_v3  ;;  %4303 = vmatprep.subr.mxu1 %v4165_v15  ;;  %v4148_v3 = vld [vmem:[#allocation8 + $0x10] sm:$0xff]  ;;  %v10009_v15 = vld [vmem:[#allocation80_spill] sm:$0xff] }
 0x859   :  { %4233 = vmatpush1.msra.mxu0 %v4162_v7  ;;  %4304 = vmatpush1.msra.mxu1 %v4164_v11  ;;  %v10010_v7 = vld [vmem:[#allocation79_spill] sm:$0xff]  ;;  %v10011_v11 = vld [vmem:[#allocation82_spill] sm:$0xff] }
 0x85a   :  { %4234 = vmatprep.subr.mxu0 %v4159_v5  ;;  %4305 = vmatprep.subr.mxu1 %v4161_v31  ;;  %v10012_v5 = vld [vmem:[#allocation81_spill] sm:$0xff]  ;;  %v10013_v31 = vld [vmem:[#allocation84_spill] sm:$0xff] }
 0x85b   :  { %4235 = vmatpush1.msra.mxu0 %v4158_v63  ;;  %4306 = vmatpush1.msra.mxu1 %v4160_v60  ;;  %v10014_v63 = vld [vmem:[#allocation83_spill] sm:$0xff]  ;;  %v10015_v60 = vld [vmem:[#allocation86_spill] sm:$0xff] }
 0x85c   :  { %4236 = vmatprep.subr.mxu0 %v4155_v47  ;;  %4307 = vmatprep.subr.mxu1 %v4157_v2  ;;  %v10016_v47 = vld [vmem:[#allocation85_spill] sm:$0xff]  ;;  %v10017_v2 = vld [vmem:[#allocation88_spill] sm:$0xff] }
 0x85d   :  { %4237 = vmatpush1.msra.mxu0 %v4154_v9  ;;  %4308 = vmatpush1.msra.mxu1 %v4156_v8  ;;  %v10018_v9 = vld [vmem:[#allocation87_spill] sm:$0xff]  ;;  %v10019_v8 = vld [vmem:[#allocation90_spill] sm:$0xff] }
 0x85e   :  { %4238 = vmatprep.subr.mxu0 %v4151_v54  ;;  %4309 = vmatprep.subr.mxu1 %v4153_v37  ;;  %v10020_v54 = vld [vmem:[#allocation89_spill] sm:$0xff]  ;;  %v10021_v37 = vld [vmem:[#allocation92_spill] sm:$0xff] }
 0x85f   :  { %4239 = vmatpush1.msra.mxu0 %v4150_v58  ;;  %4310 = vmatpush1.msra.mxu1 %v4152_v29  ;;  %v10022_v58 = vld [vmem:[#allocation91_spill] sm:$0xff]  ;;  %v10023_v29 = vld [vmem:[#allocation94_spill] sm:$0xff] }
 0x860   :  { %4240 = vmatprep.subr.mxu0 %v4147_v62  ;;  %4311 = vmatprep.subr.mxu1 %v4149_v25  ;;  %v10024_v62 = vld [vmem:[#allocation93_spill] sm:$0xff]  ;;  %v10025_v25 = vld [vmem:[#allocation96_spill] sm:$0xff] }
 0x861   :  { %4241 = vmatpush1.msra.mxu0 %v4146_v20  ;;  %4274 = vmatprep.mubr.f32.mxu0 %v9168_v1  ;;  %v10026_v20 = vld [vmem:[#allocation95_spill] sm:$0xff] }
 0x862   :  { %4312 = vmatpush1.msra.mxu1 %v4148_v3  ;;  %4345 = vmatprep.mubr.f32.mxu1 %v9168_v1  ;;  %v10027_v3 = vld [vmem:[#allocation98_spill] sm:$0xff] }
 0x863   :  { %4275 = vmatmul.mubr.f32.vlgmr.msra.gmra.mxu0 %v8324_v59  ;;  %4346 = vmatmul.mubr.f32.vlgmr.msra.gmra.mxu1 %v8324_v59  ;;  %v10008_v59 = vld [vmem:[#allocation77_spill] sm:$0xff] }
 0x864   :  { %4512 = vmatprep.subr.mxu0 %v7924_v23  ;;  %4583 = vmatprep.subr.mxu1 %v7926_v39  ;;  %v9967_v23 = vld [vmem:[#allocation166_spill] sm:$0xff]  ;;  %v9968_v39 = vld [vmem:[#allocation168_spill] sm:$0xff] }
 0x865   :  { %4513 = vmatpush1.msra.mxu0 %v7930_v19  ;;  %4584 = vmatpush1.msra.mxu1 %v7932_v56  ;;  %v9969_v19 = vld [vmem:[#allocation180_spill] sm:$0xff]  ;;  %v9970_v56 = vld [vmem:[#allocation170_spill] sm:$0xff] }
 0x866   :  { %4514 = vmatprep.subr.mxu0 %v7936_v24  ;;  %4585 = vmatprep.subr.mxu1 %v7938_v22  ;;  %v9971_v24 = vld [vmem:[#allocation172_spill] sm:$0xff]  ;;  %v9972_v22 = vld [vmem:[#allocation174_spill] sm:$0xff] }
 0x867   :  { %4515 = vmatpush1.msra.mxu0 %v7942_v30  ;;  %4586 = vmatpush1.msra.mxu1 %v7944_v34  ;;  %v9973_v30 = vld [vmem:[#allocation175_spill] sm:$0xff]  ;;  %v9974_v34 = vld [vmem:[#allocation176_spill] sm:$0xff] }
 0x868   :  { %4516 = vmatprep.subr.mxu0 %v7948_v48  ;;  %4587 = vmatprep.subr.mxu1 %v7950_v55  ;;  %v9975_v48 = vld [vmem:[#allocation178_spill] sm:$0xff] }
 0x869   :  { %4517 = vmatpush1.msra.mxu0 %v7954_v17  ;;  %4588 = vmatpush1.msra.mxu1 %v7956_v6  ;;  %v9976_v55 = vld [vmem:[#allocation34_spill] sm:$0xff]  ;;  %v9977_v17 = vld [vmem:[#allocation36_spill] sm:$0xff]  ;;  %v9978_v6 = vld [vmem:[#allocation37_spill] sm:$0xff] }
 0x86a   :  { %4518 = vmatprep.subr.mxu0 %v7960_v61  ;;  %4589 = vmatprep.subr.mxu1 %v7962_v10  ;;  %v9979_v61 = vld [vmem:[#allocation35_spill] sm:$0xff] }
 0x86b   :  { %4519 = vmatpush1.msra.mxu0 %v7966_v43  ;;  %4590 = vmatpush1.msra.mxu1 %v7968_v13  ;;  %v9980_v10 = vld [vmem:[#allocation179_spill] sm:$0xff]  ;;  %v9981_v43 = vld [vmem:[#allocation26_spill] sm:$0xff]  ;;  %v9982_v13 = vld [vmem:[#allocation28_spill] sm:$0xff] }
 0x86c   :  { %4520 = vmatprep.subr.mxu0 %v7972_v14  ;;  %4591 = vmatprep.subr.mxu1 %v7974_v18  ;;  %v9983_v14 = vld [vmem:[#allocation29_spill] sm:$0xff]  ;;  %v9984_v18 = vld [vmem:[#allocation27_spill] sm:$0xff] }
 0x86d   :  { %4521 = vmatpush1.msra.mxu0 %v7978_v51  ;;  %4592 = vmatpush1.msra.mxu1 %v7980_v12  ;;  %v9985_v51 = vld [vmem:[#allocation56_spill] sm:$0xff]  ;;  %v9986_v12 = vld [vmem:[#allocation55_spill] sm:$0xff] }
 0x86e   :  { %4522 = vmatprep.subr.mxu0 %v7984_v0  ;;  %4593 = vmatprep.subr.mxu1 %v7986_v52  ;;  %v9987_v0 = vld [vmem:[#allocation58_spill] sm:$0xff]  ;;  %v9988_v52 = vld [vmem:[#allocation57_spill] sm:$0xff] }
 0x86f   :  { %4523 = vmatpush1.msra.mxu0 %v7990_v26  ;;  %4594 = vmatpush1.msra.mxu1 %v7992_v53  ;;  %v9989_v26 = vld [vmem:[#allocation60_spill] sm:$0xff]  ;;  %v9990_v53 = vld [vmem:[#allocation59_spill] sm:$0xff] }
 0x870   :  { %4524 = vmatprep.subr.mxu0 %v7996_v40  ;;  %4595 = vmatprep.subr.mxu1 %v7998_v28  ;;  %v9991_v40 = vld [vmem:[#allocation62_spill] sm:$0xff]  ;;  %v9992_v28 = vld [vmem:[#allocation61_spill] sm:$0xff] }
 0x871   :  { %4525 = vmatpush1.msra.mxu0 %v8002_v33  ;;  %4596 = vmatpush1.msra.mxu1 %v8004_v38  ;;  %v9993_v33 = vld [vmem:[#allocation64_spill] sm:$0xff]  ;;  %v9994_v38 = vld [vmem:[#allocation63_spill] sm:$0xff] }
 0x872   :  { %4526 = vmatprep.subr.mxu0 %v8008_v41  ;;  %4597 = vmatprep.subr.mxu1 %v8010_v42  ;;  %v9995_v41 = vld [vmem:[#allocation66_spill] sm:$0xff]  ;;  %v9996_v42 = vld [vmem:[#allocation65_spill] sm:$0xff] }
 0x873   :  { %4527 = vmatpush1.msra.mxu0 %v8014_v45  ;;  %4598 = vmatpush1.msra.mxu1 %v8016_v46  ;;  %v9997_v45 = vld [vmem:[#allocation68_spill] sm:$0xff]  ;;  %v9998_v46 = vld [vmem:[#allocation67_spill] sm:$0xff] }
 0x874   :  { %4528 = vmatprep.subr.mxu0 %v8020_v49  ;;  %4599 = vmatprep.subr.mxu1 %v8022_v50  ;;  %v9999_v49 = vld [vmem:[#allocation70_spill] sm:$0xff]  ;;  %v10000_v50 = vld [vmem:[#allocation69_spill] sm:$0xff] }
 0x875   :  { %4529 = vmatpush1.msra.mxu0 %v8026_v16  ;;  %4600 = vmatpush1.msra.mxu1 %v8028_v35  ;;  %v10001_v16 = vld [vmem:[#allocation72_spill] sm:$0xff]  ;;  %v10002_v35 = vld [vmem:[#allocation71_spill] sm:$0xff] }
 0x876   :  { %4530 = vmatprep.subr.mxu0 %v8032_v36  ;;  %4601 = vmatprep.subr.mxu1 %v8034_v44  ;;  %v10003_v36 = vld [vmem:[#allocation74_spill] sm:$0xff]  ;;  %v10004_v44 = vld [vmem:[#allocation73_spill] sm:$0xff] }
 0x877   :  { %4531 = vmatpush1.msra.mxu0 %v8038_v21  ;;  %4602 = vmatpush1.msra.mxu1 %v8040_v57  ;;  %v10005_v21 = vld [vmem:[#allocation76_spill] sm:$0xff]  ;;  %v10006_v57 = vld [vmem:[#allocation75_spill] sm:$0xff] }
 0x878   :  { %4532 = vmatprep.subr.mxu0 %v8044_v32  ;;  %4603 = vmatprep.subr.mxu1 %v9967_v23  ;;  %v10007_v32 = vld [vmem:[#allocation78_spill] sm:$0xff]  ;;  %v10028_v23 = vld [vmem:[#allocation97_spill] sm:$0xff] }
 0x879   :  { %4533 = vmatpush1.msra.mxu0 %v9968_v39  ;;  %4604 = vmatpush1.msra.mxu1 %v9969_v19  ;;  %v10029_v39 = vld [vmem:[#allocation100_spill] sm:$0xff]  ;;  %v10030_v19 = vld [vmem:[#allocation99_spill] sm:$0xff] }
 0x87a   :  { %4534 = vmatprep.subr.mxu0 %v9970_v56  ;;  %4605 = vmatprep.subr.mxu1 %v9971_v24  ;;  %v10031_v56 = vld [vmem:[#allocation102_spill] sm:$0xff]  ;;  %v10032_v24 = vld [vmem:[#allocation101_spill] sm:$0xff] }
 0x87b   :  { %4535 = vmatpush1.msra.mxu0 %v9972_v22  ;;  %4606 = vmatpush1.msra.mxu1 %v9973_v30  ;;  %v10033_v22 = vld [vmem:[#allocation104_spill] sm:$0xff]  ;;  %v10034_v30 = vld [vmem:[#allocation103_spill] sm:$0xff] }
 0x87c   :  { %4536 = vmatprep.subr.mxu0 %v9974_v34  ;;  %4607 = vmatprep.subr.mxu1 %v9975_v48  ;;  %v10035_v34 = vld [vmem:[#allocation106_spill] sm:$0xff]  ;;  %v10036_v48 = vld [vmem:[#allocation105_spill] sm:$0xff] }
 0x87d   :  { %4537 = vmatpush1.msra.mxu0 %v9976_v55  ;;  %4608 = vmatpush1.msra.mxu1 %v9977_v17  ;;  %v10037_v55 = vld [vmem:[#allocation108_spill] sm:$0xff]  ;;  %v10038_v17 = vld [vmem:[#allocation107_spill] sm:$0xff] }
 0x87e   :  { %4538 = vmatprep.subr.mxu0 %v9978_v6  ;;  %4609 = vmatprep.subr.mxu1 %v9979_v61  ;;  %v10039_v6 = vld [vmem:[#allocation110_spill] sm:$0xff]  ;;  %v10040_v61 = vld [vmem:[#allocation109_spill] sm:$0xff] }
 0x87f   :  { %4539 = vmatpush1.msra.mxu0 %v9980_v10  ;;  %4610 = vmatpush1.msra.mxu1 %v9981_v43  ;;  %v10041_v10 = vld [vmem:[#allocation112_spill] sm:$0xff]  ;;  %v10042_v43 = vld [vmem:[#allocation111_spill] sm:$0xff] }
 0x880   :  { %4540 = vmatprep.subr.mxu0 %v9982_v13  ;;  %4611 = vmatprep.subr.mxu1 %v9983_v14  ;;  %v10043_v13 = vld [vmem:[#allocation114_spill] sm:$0xff]  ;;  %v10044_v14 = vld [vmem:[#allocation113_spill] sm:$0xff] }
 0x881   :  { %4541 = vmatpush1.msra.mxu0 %v9984_v18  ;;  %4612 = vmatpush1.msra.mxu1 %v9985_v51  ;;  %v10045_v18 = vld [vmem:[#allocation116_spill] sm:$0xff]  ;;  %v10046_v51 = vld [vmem:[#allocation115_spill] sm:$0xff] }
 0x882   :  { %4542 = vmatprep.subr.mxu0 %v9986_v12  ;;  %4613 = vmatprep.subr.mxu1 %v9987_v0  ;;  %v10047_v12 = vld [vmem:[#allocation118_spill] sm:$0xff]  ;;  %v10048_v0 = vld [vmem:[#allocation117_spill] sm:$0xff] }
 0x883   :  { %4543 = vmatpush1.msra.mxu0 %v9988_v52  ;;  %4614 = vmatpush1.msra.mxu1 %v9989_v26  ;;  %v10049_v52 = vld [vmem:[#allocation120_spill] sm:$0xff]  ;;  %v10050_v26 = vld [vmem:[#allocation119_spill] sm:$0xff] }
 0x884   :  { %4544 = vmatprep.subr.mxu0 %v9990_v53  ;;  %4615 = vmatprep.subr.mxu1 %v9991_v40  ;;  %v10051_v53 = vld [vmem:[#allocation122_spill] sm:$0xff]  ;;  %v10052_v40 = vld [vmem:[#allocation121_spill] sm:$0xff] }
 0x885   :  { %4545 = vmatpush2.msra.mxu0 %v9992_v28  ;;  %4616 = vmatpush2.msra.mxu1 %v9993_v33  ;;  %v10053_v28 = vld [vmem:[#allocation125_spill] sm:$0xff] }
 0x886   :  { %4546 = vmatprep.subr.mxu0 %v9994_v38  ;;  %4617 = vmatprep.subr.mxu1 %v9995_v41  ;;  %v10054_v38 = vld [vmem:[#allocation52_spill] sm:$0xff] }
 0x887   :  { %4547 = vmatpush2.msra.mxu0 %v9996_v42  ;;  %4618 = vmatpush2.msra.mxu1 %v9997_v45 }
 0x888   :  { %4548 = vmatprep.subr.mxu0 %v9998_v46  ;;  %4619 = vmatprep.subr.mxu1 %v9999_v49  ;;  %v10055_v46 = vld [vmem:[#allocation51_spill] sm:$0xff] }
 0x889   :  { %4549 = vmatpush2.msra.mxu0 %v10000_v50  ;;  %4620 = vmatpush2.msra.mxu1 %v10001_v16 }
 0x88a   :  { %4550 = vmatprep.subr.mxu0 %v10002_v35  ;;  %4621 = vmatprep.subr.mxu1 %v10003_v36  ;;  %v10056_v36 = vld [vmem:[#allocation54_spill] sm:$0xff] }
 0x88b   :  { %4551 = vmatpush2.msra.mxu0 %v10004_v44  ;;  %4622 = vmatpush2.msra.mxu1 %v10005_v21 }
 0x88c   :  { %4552 = vmatprep.subr.mxu0 %v10006_v57  ;;  %4623 = vmatprep.subr.mxu1 %v10007_v32  ;;  %v10057_v32 = vld [vmem:[#allocation53_spill] sm:$0xff] }
 0x88d   :  { %4553 = vmatpush2.msra.mxu0 %v10008_v59  ;;  %4624 = vmatpush2.msra.mxu1 %v10009_v15 }
 0x88e   :  { %4554 = vmatprep.subr.mxu0 %v10010_v7  ;;  %4625 = vmatprep.subr.mxu1 %v10011_v11 }
 0x88f   :  { %4555 = vmatpush2.msra.mxu0 %v10012_v5  ;;  %4626 = vmatpush2.msra.mxu1 %v10013_v31 }
 0x890   :  { %4556 = vmatprep.subr.mxu0 %v10014_v63  ;;  %4627 = vmatprep.subr.mxu1 %v10015_v60  ;;  %v10058_v60 = vld [vmem:[#allocation46_spill] sm:$0xff] }
 0x891   :  { %4557 = vmatpush2.msra.mxu0 %v10016_v47  ;;  %4628 = vmatpush2.msra.mxu1 %v10017_v2 }
 0x892   :  { %4558 = vmatprep.subr.mxu0 %v10018_v9  ;;  %4629 = vmatprep.subr.mxu1 %v10019_v8 }
 0x893   :  { %4559 = vmatpush2.msra.mxu0 %v10020_v54  ;;  %4630 = vmatpush2.msra.mxu1 %v10021_v37  ;;  %v10059_v37 = vld [vmem:[#allocation48_spill] sm:$0xff] }
 0x894   :  { %4560 = vmatprep.subr.mxu0 %v10022_v58  ;;  %4631 = vmatprep.subr.mxu1 %v10023_v29 }
 0x895   :  { %4561 = vmatpush2.msra.mxu0 %v10024_v62  ;;  %4632 = vmatpush2.msra.mxu1 %v10025_v25 }
 0x896   :  { %4562 = vmatprep.subr.mxu0 %v10026_v20  ;;  %4633 = vmatprep.subr.mxu1 %v10027_v3 }
 0x897   :  { %4563 = vmatpush2.msra.mxu0 %v10028_v23  ;;  %4634 = vmatpush2.msra.mxu1 %v10029_v39 }
 0x898   :  { %4564 = vmatprep.subr.mxu0 %v10030_v19  ;;  %4635 = vmatprep.subr.mxu1 %v10031_v56  ;;  %v10060_v19 = vld [vmem:[#allocation49_spill] sm:$0xff] }
 0x899   :  { %4565 = vmatpush2.msra.mxu0 %v10032_v24  ;;  %4636 = vmatpush2.msra.mxu1 %v10033_v22 }
 0x89a   :  { %4566 = vmatprep.subr.mxu0 %v10034_v30  ;;  %4637 = vmatprep.subr.mxu1 %v10035_v34  ;;  %v10061_v30 = vld [vmem:[#allocation47_spill] sm:$0xff] }
 0x89b   :  { %4567 = vmatpush2.msra.mxu0 %v10036_v48  ;;  %4638 = vmatpush2.msra.mxu1 %v10037_v55 }
 0x89c   :  { %4568 = vmatprep.subr.mxu0 %v10038_v17  ;;  %4639 = vmatprep.subr.mxu1 %v10039_v6 }
 0x89d   :  { %4569 = vmatpush2.msra.mxu0 %v10040_v61  ;;  %4640 = vmatpush2.msra.mxu1 %v10041_v10 }
 0x89e   :  { %4570 = vmatprep.subr.mxu0 %v10042_v43  ;;  %4641 = vmatprep.subr.mxu1 %v10043_v13 }
 0x89f   :  { %4571 = vmatpush2.msra.mxu0 %v10044_v14  ;;  %4642 = vmatpush2.msra.mxu1 %v10045_v18 }
 0x8a0   :  { %4572 = vmatprep.subr.mxu0 %v10046_v51  ;;  %4643 = vmatprep.subr.mxu1 %v10047_v12 }
 0x8a1   :  { %4573 = vmatpush2.msra.mxu0 %v10048_v0  ;;  %4644 = vmatpush2.msra.mxu1 %v10049_v52 }
 0x8a2   :  { %4574 = vmatprep.subr.mxu0 %v10050_v26  ;;  %4645 = vmatprep.subr.mxu1 %v10051_v53 }
 0x8a3   :  { %4575 = vmatpush2.msra.mxu0 %v10052_v40  ;;  %4646 = vmatpush2.msra.mxu1 %v10053_v28 }
 0x902   :  { %v4046_v33 = vpop.f32.mrf.mxu0  ;;  %v4117_v50 = vpop.f32.mrf.mxu1 }
 0x903   :  { %v4047_v41 = vadd.f32 %v4046_v33, %v10054_v38  ;;  %v4118_v59 = vadd.f32 %v4117_v50, %v10057_v32 }
 0x904   :  { %v4048_v42 = vpop.f32.mrf.mxu0  ;;  %v4119_v35 = vpop.f32.mrf.mxu1 }
 0x905   :  { %v4833_v45 = vmul.f32 -1.442695, %v4047_v41  ;;  %v4049_v49 = vadd.f32 %v4048_v42, %v10055_v46  ;;  %v4120_v44 = vadd.f32 %v4119_v35, %v10056_v36 }
 0x907   :  { %5113 = vpow2.f32 %v4833_v45  ;;  %v4834_v16 = vmul.f32 -1.442695, %v4049_v49  ;;  %v4835_v21 = vmul.f32 -1.442695, %v4120_v44 }
 0x909   :  { %5115 = vpow2.f32 %v4834_v16 }
 0x90a   :  { %5117 = vpow2.f32 %v4835_v21 }
 0x914   :  { %v5114_v57 = vpop.eup %5113 }
 0x915   :  { %v4125_v15 = vadd.f32 1.0, %v5114_v57 }
 0x916   :  { %v5116_v7 = vpop.eup %5115 }
 0x917   :  { %5119 = vrcp.f32 %v4125_v15  ;;  %v4131_v11 = vadd.f32 1.0, %v5116_v7  ;;  %v5118_v5 = vpop.eup %5117 }
 0x918   :  { %5121 = vtanh.f32 %v4118_v59  ;;  %v4138_v25 = vadd.f32 1.0, %v5118_v5 }
 0x919   :  { %5123 = vrcp.f32 %v4131_v11 }
 0x923   :  { %v4276_v31 = vpop.f32.mrf.mxu0  ;;  %v4347_v20 = vpop.f32.mrf.mxu1 }
 0x924   :  { %v5120_v63 = vpop.eup %5119  ;;  %v4352_v47 = vadd.f32 %v4276_v31, %v10058_v60  ;;  %v4354_v34 = vadd.f32 %v4347_v20, %v10061_v30 }
 0x925   :  { %v5122_v2 = vpop.eup %5121  ;;  %v4278_v9 = vpop.f32.mrf.mxu0 }
 0x926   :  { %v5124_v8 = vpop.eup %5123  ;;  %v4836_v54 = vmul.f32 -1.442695, %v4352_v47  ;;  %v4353_v58 = vadd.f32 %v4278_v9, %v10059_v37  ;;  %v4142_v29 = vmul.f32 %v5122_v2, %v5120_v63  ;;  %v4349_v39 = vpop.f32.mrf.mxu1 }
 0x927   :  { %v4141_v62 = vmul.f32 %v5124_v8, %v8315_v27  ;;  %v4355_v56 = vadd.f32 %v4349_v39, %v10060_v19 }
 0x928   :  { %5125 = vpow2.f32 %v4836_v54  ;;  %v4837_v3 = vmul.f32 -1.442695, %v4353_v58 }
 0x929   :  { %v8467_v23 = vadd.f32 %v4142_v29, %v4141_v62  ;;  %v4838_v24 = vmul.f32 -1.442695, %v4355_v56 }
 0x92a   :  { %5127 = vpow2.f32 %v4837_v3 }
 0x92b   :  { %5129 = vrcp.f32 %v4138_v25 }
 0x92c   :  { %5131 = vtanh.f32 %v8467_v23 }
 0x92d   :  { %5133 = vpow2.f32 %v4838_v24 }
 0x935   :  { %v5126_v22 = vpop.eup %5125 }
 0x936   :  { %v4359_v48 = vadd.f32 1.0, %v5126_v22 }
 0x937   :  { %v5128_v55 = vpop.eup %5127 }
 0x938   :  { %v5130_v27 = vpop.eup %5129  ;;  %5135 = vrcp.f32 %v4359_v48  ;;  %v4365_v17 = vadd.f32 1.0, %v5128_v55 }
 0x939   :  { %v5132_v6 = vpop.eup %5131  ;;  %5137 = vtanh.f32 %v4354_v34 }
 0x93a   :  { %5139 = vrcp.f32 %v4365_v17  ;;  %v4145_v61 = vmul.f32 %v5132_v6, %v5130_v27  ;;  %v5134_v10 = vpop.eup %5133 }
 0x93b   :  { %v4372_v18 = vadd.f32 1.0, %v5134_v10 }
 0x93c   :  { %4576 = vmatprep.mubr.f32.mxu0 %v4145_v61  ;;  %4647 = vmatprep.mubr.f32.mxu1 %v4145_v61 }
 0x93d   :  { %5141 = vrcp.f32 %v4372_v18 }
 0x945   :  { %v5136_v43 = vpop.eup %5135 }
 0x946   :  { %v5138_v13 = vpop.eup %5137 }
 0x947   :  { %v5140_v14 = vpop.eup %5139  ;;  %v4376_v51 = vmul.f32 %v5138_v13, %v5136_v43 }
 0x948   :  { %v4375_v12 = vmul.f32 %v5140_v14, %v8321_v4 }
 0x94a   :  { %v4377_v0 = vadd.f32 %v4376_v51, %v4375_v12  ;;  %v5142_v52 = vpop.eup %5141 }
 0x94c   :  { %5143 = vtanh.f32 %v4377_v0 }
 0x959   :  { %v5144_v26 = vpop.eup %5143 }
 0x95a   :  { %v4379_v53 = vmul.f32 %v5144_v26, %v5142_v52 }
 0x95c   :  { %4577 = vmatmul.mubr.f32.vlgmr.msra.gmra.mxu0 %v4379_v53  ;;  %4648 = vmatmul.mubr.f32.vlgmr.msra.gmra.mxu1 %v4379_v53 }
 0xa1c   :  { %v4578_v40 = vpop.f32.mrf.mxu0  ;;  %v4649_v45 = vpop.f32.mrf.mxu1 }
 0xa1d   :  { %v4579_v28 = vadd.f32 %v4578_v40, %v10054_v38  ;;  %v4650_v44 = vadd.f32 %v4649_v45, %v10057_v32 }
 0xa1e   :  { %v4580_v33 = vpop.f32.mrf.mxu0  ;;  %v4651_v4 = vpop.f32.mrf.mxu1 }
 0xa1f   :  { %v4839_v41 = vmul.f32 -1.442695, %v4579_v28  ;;  %v4581_v42 = vadd.f32 %v4580_v33, %v10055_v46  ;;  %v4652_v50 = vadd.f32 %v4651_v4, %v10056_v36 }
 0xa21   :  { %5145 = vpow2.f32 %v4839_v41  ;;  %v4840_v49 = vmul.f32 -1.442695, %v4581_v42  ;;  %v4841_v16 = vmul.f32 -1.442695, %v4652_v50 }
 0xa23   :  { %5147 = vpow2.f32 %v4840_v49 }
 0xa24   :  { %5149 = vpow2.f32 %v4841_v16 }
 0xa2e   :  { %v5146_v35 = vpop.eup %5145 }
 0xa2f   :  { %v4657_v21 = vadd.f32 1.0, %v5146_v35 }
 0xa30   :  { %v5148_v57 = vpop.eup %5147 }
 0xa31   :  { %5151 = vrcp.f32 %v4657_v21  ;;  %v4663_v38 = vadd.f32 1.0, %v5148_v57  ;;  %v5150_v59 = vpop.eup %5149 }
 0xa32   :  { %5153 = vtanh.f32 %v4650_v44  ;;  %v4670_v11 = vadd.f32 1.0, %v5150_v59 }
 0xa33   :  { %5155 = vrcp.f32 %v4663_v38 }
 0xa34   :  { %5157 = vrcp.f32 %v4670_v11 }
 0xa3e   :  { %v5152_v46 = vpop.eup %5151 }
 0xa3f   :  { %v5154_v15 = vpop.eup %5153 }
 0xa40   :  { %v5156_v7 = vpop.eup %5155  ;;  %v4674_v5 = vmul.f32 %v5154_v15, %v5152_v46 }
 0xa41   :  { %v4673_v31 = vmul.f32 %v5156_v7, %v8467_v23  ;;  %v5158_v63 = vpop.eup %5157 }
 0xa43   :  { %v4675_v36 = vadd.f32 %v4674_v5, %v4673_v31 }
 0xa45   :  { %5159 = vtanh.f32 %v4675_v36 }
 0xa52   :  { %v5160_v32 = vpop.eup %5159 }
 0xa53   :  { %v4677_v60 = vmul.f32 %v5160_v32, %v5158_v63 }
 0xa54   :  { %5247 = dma.done.wait [#allocation5 + $0x1], 2048 }
 0xa55   :  { %5248 = vsyncadd [#allocation5 + $0x1], 4294965248  ;;  %4862 = vmatprep.subr.mxu0 %v9168_v1  ;;  %vm5256_vm0 = vmmov 0   ;;  %v4696_v47 = vld [vmem:[#allocation4 + $0x78] sm:$0xff]  ;;  %v4695_v2 = vld [vmem:[#allocation4 + $0x70] sm:$0xff] }
 0xa56   :  { %4894 = vmatprep.mubr.msk.f32.mxu0 %vm5256_vm0, %v9168_v1  ;;  %4863 = vmatpush3.msra.mxu0 %v4696_v47  ;;  %v4694_v9 = vld [vmem:[#allocation4 + $0x68] sm:$0xff]  ;;  %v4693_v8 = vld [vmem:[#allocation4 + $0x60] sm:$0xff]  ;;  %v4692_v54 = vld [vmem:[#allocation4 + $0x58] sm:$0xff] }
 0xa57   :  { %4864 = vmatprep.subr.mxu0 %v9168_v1  ;;  %v4691_v37 = vld [vmem:[#allocation4 + $0x50] sm:$0xff]  ;;  %v4690_v58 = vld [vmem:[#allocation4 + $0x48] sm:$0xff]  ;;  %v4689_v29 = vld [vmem:[#allocation4 + $0x40] sm:$0xff] }
 0xa58   :  { %4865 = vmatpush3.msra.mxu0 %v4695_v2  ;;  %v4688_v62 = vld [vmem:[#allocation4 + $0x38] sm:$0xff]  ;;  %v4687_v25 = vld [vmem:[#allocation4 + $0x30] sm:$0xff]  ;;  %v4686_v20 = vld [vmem:[#allocation4 + $0x28] sm:$0xff] }
 0xa59   :  { %4866 = vmatprep.subr.mxu0 %v9168_v1  ;;  %v4685_v3 = vld [vmem:[#allocation4 + $0x20] sm:$0xff]  ;;  %v4684_v23 = vld [vmem:[#allocation4 + $0x18] sm:$0xff]  ;;  %v4683_v39 = vld [vmem:[#allocation4 + $0x10] sm:$0xff] }
 0xa5a   :  { %4867 = vmatpush3.msra.mxu0 %v4694_v9  ;;  %v4682_v19 = vld [vmem:[#allocation4 + $0x8] sm:$0xff]  ;;  %v4681_v56 = vld [vmem:[#allocation4] sm:$0xff] }
 0xa5b   :  { %4868 = vmatprep.subr.mxu0 %v9168_v1  ;;  %v4842_v24 = vld [vmem:[%s8508_s7] ss:$0 sm:$0xff] }
 0xa5c   :  { %4869 = vmatpush3.msra.mxu0 %v4693_v8 }
 0xa5d   :  { %4870 = vmatprep.subr.mxu0 %v9168_v1 }
 0xa5e   :  { %4871 = vmatpush3.msra.mxu0 %v4692_v54 }
 0xa5f   :  { %4872 = vmatprep.subr.mxu0 %v9168_v1 }
 0xa60   :  { %4873 = vmatpush3.msra.mxu0 %v4691_v37 }
 0xa61   :  { %4874 = vmatprep.subr.mxu0 %v9168_v1 }
 0xa62   :  { %4875 = vmatpush3.msra.mxu0 %v4690_v58 }
 0xa63   :  { %4876 = vmatprep.subr.mxu0 %v9168_v1 }
 0xa64   :  { %4877 = vmatpush3.msra.mxu0 %v4689_v29 }
 0xa65   :  { %4878 = vmatprep.subr.mxu0 %v9168_v1 }
 0xa66   :  { %4879 = vmatpush3.msra.mxu0 %v4688_v62 }
 0xa67   :  { %4880 = vmatprep.subr.mxu0 %v9168_v1 }
 0xa68   :  { %4881 = vmatpush3.msra.mxu0 %v4687_v25 }
 0xa69   :  { %4882 = vmatprep.subr.mxu0 %v9168_v1 }
 0xa6a   :  { %4883 = vmatpush3.msra.mxu0 %v4686_v20 }
 0xa6b   :  { %4884 = vmatprep.subr.mxu0 %v9168_v1 }
 0xa6c   :  { %4885 = vmatpush3.msra.mxu0 %v4685_v3 }
 0xa6d   :  { %4886 = vmatprep.subr.mxu0 %v9168_v1 }
 0xa6e   :  { %4887 = vmatpush3.msra.mxu0 %v4684_v23 }
 0xa6f   :  { %4888 = vmatprep.subr.mxu0 %v9168_v1 }
 0xa70   :  { %4889 = vmatpush3.msra.mxu0 %v4683_v39 }
 0xa71   :  { %4890 = vmatprep.subr.mxu0 %v9168_v1 }
 0xa72   :  { %4891 = vmatpush3.msra.mxu0 %v4682_v19 }
 0xa73   :  { %4892 = vmatprep.subr.mxu0 %v9168_v1 }
 0xa74   :  { %4893 = vmatpush3.msra.mxu0 %v4681_v56 }
 0xa75   :  { %4895 = vmatmul.mubr.f32.vlgmr.msra.gmra.mxu0 %v4677_v60 }
 0xb35   :  { %v4770_v22 = vpop.f32.mrf.mxu0 }
 0xb36   :  { %v4771_v30 = vadd.f32 %v4842_v24, %v4770_v22 }
 0xb37   :  { %v4896_v34 = vpop.f32.mrf.mxu0 }
 0xb38   :  { %4774 = vst [vmem:[%s8509_s8] sm:$0xff] %v4771_v30 }
 0xb39   :  { %4779 = vsyncpa [#allocation7], 1 }
 0xb3a   :  { %4780 = vsyncpa [#allocation9], 1 }
 0xb3b   :  { %4781 = vsyncmov [#allocation5] }
 0xb3e   :  { %s4782_s19 = vpop.sfrf %4781 }
 0xb3f   :  { %p4843_p6 = scmp.ne.s32.totalorder %s4782_s19, 0 }
 0xb41   :  { %4786 = shalt.err (%p4843_p6)  }
 0xb42   :  { %4788 = vsyncmov [#allocation5 + $0x1] }
 0xb45   :  { %s4789_s20 = vpop.sfrf %4788 }
 0xb46   :  { %p4844_p7 = scmp.ne.s32.totalorder %s4789_s20, 0 }
 0xb48   :  { %4793 = shalt.err (%p4844_p7)  }

</bundles_post_ra>
